<compile_context>
chip_gen: v5e
topology: v5e:2x2
jax: 0.10.0
libtpu: 0.0.40
codegen_flags: <defaults>
</compile_context>

<pallas_src>
import jax
import jax.numpy as jnp
from jax.experimental import pallas as pl
from jax.experimental.pallas import tpu as pltpu

_EPS = 1e-5


def _stem_kernel(xpad_ref, w_ref, gamma_ref, beta_ref, o_ref):
    """Fused conv3x3 + conv5x5 + BN(batch stats) + concat + ReLU.

    xpad_ref:  (N, H+4, W+4, Cin)  input zero-padded by 2, bf16, VMEM
    w_ref:     (25, Ctot, Cin)     per-tap combined weights (weights-as-LHS), bf16
    gamma_ref: (Ctot, 1)           concatenated BN scales, f32
    beta_ref:  (Ctot, 1)           concatenated BN shifts, f32
    o_ref:     (N, Ctot, H*W)      output, NCHW-major (lane-dense), f32
    """
    N, Hp, Wp, Cin = xpad_ref.shape
    H, W = Hp - 4, Wp - 4
    HW = H * W
    Ctot = o_ref.shape[1]

    xp = xpad_ref[...]            # bf16 (cast once in the wrapper)
    w_all = w_ref[...]            # (25, Ctot, Cin) bf16

    # 25-tap accumulate (no lane-offset concat).  Weights-as-LHS so the running
    # accumulator is (Ctot, N*H*W): lane axis = N*H*W, a multiple of 128.
    acc = jnp.zeros((Ctot, N * HW), jnp.float32)
    for ky in range(5):
        for kx in range(5):
            # Leading-dim merge (N,H,W) -> N*H*W is layout-preserving.
            tap = xp[:, ky:ky + H, kx:kx + W, :].reshape(N * HW, Cin)  # bf16
            w_t = w_all[ky * 5 + kx]                                   # (Ctot, Cin)
            acc = acc + jax.lax.dot_general(
                w_t, tap,
                dimension_numbers=(((1,), (1,)), ((), ())),    # contract Cin
                preferred_element_type=jnp.float32)            # (Ctot, N*HW)

    # BatchNorm with training-mode batch statistics over N*H*W.  Reductions run
    # on the lane axis (XLU).  Two-pass centered variance (no cancellation).
    inv_n = 1.0 / float(N * HW)
    mean = jnp.sum(acc, axis=1, keepdims=True) * inv_n                 # (Ctot, 1)
    centered = acc - mean
    var = jnp.sum(centered * centered, axis=1, keepdims=True) * inv_n  # (Ctot, 1)
    scale = jax.lax.rsqrt(jnp.maximum(var, 0.0) + _EPS) * gamma_ref[...]
    out = jnp.maximum(centered * scale + beta_ref[...], 0.0)           # BN + ReLU

    # Lane-dense stores: each batch slice starts at a multiple of 128 lanes.
    for n in range(N):
        o_ref[n, :, :] = out[:, n * HW:(n + 1) * HW].astype(o_ref.dtype)


def stem_block1_forward(x_nchw, params):
    """StemBlock1.forward (stride=1).  Conv weights are HWIO; x/out are NCHW."""
    w3 = params["w3"]                     # (3, 3, Cin, C1)
    w5 = params["w5"]                     # (5, 5, Cin, C2)
    Cin, C1 = w3.shape[2], w3.shape[3]
    C2 = w5.shape[3]
    Ctot = C1 + C2
    N, _, H, W = x_nchw.shape

    # NCHW -> NHWC plus a 2-pixel zero halo (covers both pad=1 3x3 and pad=2
    # 5x5); cast to bf16 once so the kernel DMA and all taps are half-width.
    # TODO(synk): fold the transpose/pad into the kernel (halo BlockSpecs or a
    # zeroed VMEM scratch) to save this extra HBM round-trip of the activation.
    x = jnp.transpose(x_nchw, (0, 2, 3, 1))
    x_pad = jnp.pad(x, ((0, 0), (2, 2), (2, 2), (0, 0))).astype(jnp.bfloat16)

    # Per-tap combined weights in weights-as-LHS orientation (25, Ctot, Cin):
    # the 3x3 kernel sits in the centre 3x3 taps of the 5x5 grid, concatenated
    # with the 5x5 kernel along output channels (makes the channel concat free).
    w3e = jnp.zeros((5, 5, Cin, C1), jnp.float32).at[1:4, 1:4].set(
        w3.astype(jnp.float32))
    w_comb = jnp.concatenate([w3e, w5.astype(jnp.float32)], axis=-1)   # (5,5,Cin,Ctot)
    w_taps = jnp.transpose(w_comb, (0, 1, 3, 2)).reshape(
        25, Ctot, Cin).astype(jnp.bfloat16)

    gamma = jnp.concatenate([params["gamma1"], params["gamma2"]]).reshape(
        Ctot, 1).astype(jnp.float32)
    beta = jnp.concatenate([params["beta1"], params["beta2"]]).reshape(
        Ctot, 1).astype(jnp.float32)

    out = pl.pallas_call(
        _stem_kernel,
        out_shape=jax.ShapeDtypeStruct((N, Ctot, H * W), x_nchw.dtype),
        in_specs=[pl.BlockSpec(memory_space=pltpu.MemorySpace.VMEM)] * 4,
        out_specs=pl.BlockSpec(memory_space=pltpu.MemorySpace.VMEM),
    )(x_pad, w_taps, gamma, beta)

    # Kernel output is already NCHW-major; only a free dim-split reshape left.
    return out.reshape(N, Ctot, H, W)


def _reference(x_nchw, params):
    """Pure-JAX f32 reference of StemBlock1.forward (for a sanity check)."""
    x = jnp.transpose(x_nchw, (0, 2, 3, 1))

    def conv_bn(h, w, pad, g, b):
        y = jax.lax.conv_general_dilated(
            h, w, window_strides=(1, 1), padding=((pad, pad), (pad, pad)),
            dimension_numbers=("NHWC", "HWIO", "NHWC"),
            precision=jax.lax.Precision.HIGHEST)
        m = jnp.mean(y, axis=(0, 1, 2))
        v = jnp.mean((y - m) ** 2, axis=(0, 1, 2))
        return (y - m) * jax.lax.rsqrt(v + _EPS) * g + b

    o1 = conv_bn(x, params["w3"], 1, params["gamma1"], params["beta1"])
    o2 = conv_bn(x, params["w5"], 2, params["gamma2"], params["beta2"])
    o = jnp.maximum(jnp.concatenate([o1, o2], axis=-1), 0.0)
    return jnp.transpose(o, (0, 3, 1, 2))


if __name__ == "__main__":
    key = jax.random.PRNGKey(0)
    k1, k2, k3, k4, k5, k6, k7 = jax.random.split(key, 7)

    # StemBlock1(inplanes=4, planes=(4, 8), stride=1) on a small NCHW input.
    N, inplanes, H, W = 2, 4, 16, 16
    planes = (4, 8)

    x = jax.random.normal(k1, (N, inplanes, H, W), jnp.float32)

    # PyTorch conv weights are OIHW -> transpose to HWIO for the NHWC kernel.
    w3_oihw = 0.1 * jax.random.normal(k2, (planes[0], inplanes, 3, 3), jnp.float32)
    w5_oihw = 0.1 * jax.random.normal(k3, (planes[1], inplanes, 5, 5), jnp.float32)
    params = {
        "w3": jnp.transpose(w3_oihw, (2, 3, 1, 0)),
        "w5": jnp.transpose(w5_oihw, (2, 3, 1, 0)),
        "gamma1": 1.0 + 0.1 * jax.random.normal(k4, (planes[0],), jnp.float32),
        "beta1": 0.1 * jax.random.normal(k5, (planes[0],), jnp.float32),
        "gamma2": 1.0 + 0.1 * jax.random.normal(k6, (planes[1],), jnp.float32),
        "beta2": 0.1 * jax.random.normal(k7, (planes[1],), jnp.float32),
    }

    out = jax.jit(stem_block1_forward)(x, params)
    out = jax.block_until_ready(out)

    ref = _reference(x, params)
    assert out.shape == (N, sum(planes), H, W) and out.dtype == x.dtype
    # bf16 MXU operands vs f32 reference -> slightly looser tolerance.
    assert jnp.allclose(out, ref, atol=2e-2, rtol=2e-2)

    print("KERNEL_OK")
</pallas_src>

<mosaic_0001>
module attributes {stable_mosaic.version = 11 : i64} {
  func.func @_stem_kernel(%arg0: memref<2x20x20x4xbf16, #tpu.memory_space<vmem>>, %arg1: memref<25x12x4xbf16, #tpu.memory_space<vmem>>, %arg2: memref<12x1xf32, #tpu.memory_space<vmem>>, %arg3: memref<12x1xf32, #tpu.memory_space<vmem>>, %arg4: memref<2x12x256xf32, #tpu.memory_space<vmem>>) attributes {dimension_semantics = [], scalar_prefetch = 0 : i64, scratch_operands = 0 : i64, tpu.core_type = #tpu.core_type<tc>} {
    %c0 = arith.constant 0 : index
    %c0_0 = arith.constant 0 : index
    %c0_1 = arith.constant 0 : index
    %c0_2 = arith.constant 0 : index
    %0 = vector.load %arg0[%c0, %c0_0, %c0_1, %c0_2] : memref<2x20x20x4xbf16, #tpu.memory_space<vmem>>, vector<2x20x20x4xbf16>
    %c0_3 = arith.constant 0 : index
    %c0_4 = arith.constant 0 : index
    %c0_5 = arith.constant 0 : index
    %1 = vector.load %arg1[%c0_3, %c0_4, %c0_5] : memref<25x12x4xbf16, #tpu.memory_space<vmem>>, vector<25x12x4xbf16>
    %cst = arith.constant 0.000000e+00 : f32
    %2 = vector.broadcast %cst : f32 to vector<12x512xf32>
    %3 = vector.extract_strided_slice %0 {offsets = [0, 0, 0, 0], sizes = [2, 16, 16, 4], strides = [1, 1, 1, 1]} : vector<2x20x20x4xbf16> to vector<2x16x16x4xbf16>
    %4 = vector.shape_cast %3 : vector<2x16x16x4xbf16> to vector<512x4xbf16>
    %5 = vector.extract_strided_slice %1 {offsets = [0, 0, 0], sizes = [1, 12, 4], strides = [1, 1, 1]} : vector<25x12x4xbf16> to vector<1x12x4xbf16>
    %6 = vector.shape_cast %5 : vector<1x12x4xbf16> to vector<12x4xbf16>
    %cst_6 = arith.constant dense<0.000000e+00> : vector<12x512xf32>
    %7 = tpu.matmul %6, %4, %cst_6 {dimension_numbers = #tpu.dot_dimension_numbers<[1], [1], [0], [0], [0, 0, 1, 0], [], []>} : vector<12x4xbf16>, vector<512x4xbf16>, vector<12x512xf32> -> vector<12x512xf32>
    %8 = arith.addf %2, %7 : vector<12x512xf32>
    %9 = vector.extract_strided_slice %0 {offsets = [0, 0, 1, 0], sizes = [2, 16, 16, 4], strides = [1, 1, 1, 1]} : vector<2x20x20x4xbf16> to vector<2x16x16x4xbf16>
    %10 = vector.shape_cast %9 : vector<2x16x16x4xbf16> to vector<512x4xbf16>
    %11 = vector.extract_strided_slice %1 {offsets = [1, 0, 0], sizes = [1, 12, 4], strides = [1, 1, 1]} : vector<25x12x4xbf16> to vector<1x12x4xbf16>
    %12 = vector.shape_cast %11 : vector<1x12x4xbf16> to vector<12x4xbf16>
    %cst_7 = arith.constant dense<0.000000e+00> : vector<12x512xf32>
    %13 = tpu.matmul %12, %10, %cst_7 {dimension_numbers = #tpu.dot_dimension_numbers<[1], [1], [0], [0], [0, 0, 1, 0], [], []>} : vector<12x4xbf16>, vector<512x4xbf16>, vector<12x512xf32> -> vector<12x512xf32>
    %14 = arith.addf %8, %13 : vector<12x512xf32>
    %15 = vector.extract_strided_slice %0 {offsets = [0, 0, 2, 0], sizes = [2, 16, 16, 4], strides = [1, 1, 1, 1]} : vector<2x20x20x4xbf16> to vector<2x16x16x4xbf16>
    %16 = vector.shape_cast %15 : vector<2x16x16x4xbf16> to vector<512x4xbf16>
    %17 = vector.extract_strided_slice %1 {offsets = [2, 0, 0], sizes = [1, 12, 4], strides = [1, 1, 1]} : vector<25x12x4xbf16> to vector<1x12x4xbf16>
    %18 = vector.shape_cast %17 : vector<1x12x4xbf16> to vector<12x4xbf16>
    %cst_8 = arith.constant dense<0.000000e+00> : vector<12x512xf32>
    %19 = tpu.matmul %18, %16, %cst_8 {dimension_numbers = #tpu.dot_dimension_numbers<[1], [1], [0], [0], [0, 0, 1, 0], [], []>} : vector<12x4xbf16>, vector<512x4xbf16>, vector<12x512xf32> -> vector<12x512xf32>
    %20 = arith.addf %14, %19 : vector<12x512xf32>
    %21 = vector.extract_strided_slice %0 {offsets = [0, 0, 3, 0], sizes = [2, 16, 16, 4], strides = [1, 1, 1, 1]} : vector<2x20x20x4xbf16> to vector<2x16x16x4xbf16>
    %22 = vector.shape_cast %21 : vector<2x16x16x4xbf16> to vector<512x4xbf16>
    %23 = vector.extract_strided_slice %1 {offsets = [3, 0, 0], sizes = [1, 12, 4], strides = [1, 1, 1]} : vector<25x12x4xbf16> to vector<1x12x4xbf16>
    %24 = vector.shape_cast %23 : vector<1x12x4xbf16> to vector<12x4xbf16>
    %cst_9 = arith.constant dense<0.000000e+00> : vector<12x512xf32>
    %25 = tpu.matmul %24, %22, %cst_9 {dimension_numbers = #tpu.dot_dimension_numbers<[1], [1], [0], [0], [0, 0, 1, 0], [], []>} : vector<12x4xbf16>, vector<512x4xbf16>, vector<12x512xf32> -> vector<12x512xf32>
    %26 = arith.addf %20, %25 : vector<12x512xf32>
    %27 = vector.extract_strided_slice %0 {offsets = [0, 0, 4, 0], sizes = [2, 16, 16, 4], strides = [1, 1, 1, 1]} : vector<2x20x20x4xbf16> to vector<2x16x16x4xbf16>
    %28 = vector.shape_cast %27 : vector<2x16x16x4xbf16> to vector<512x4xbf16>
    %29 = vector.extract_strided_slice %1 {offsets = [4, 0, 0], sizes = [1, 12, 4], strides = [1, 1, 1]} : vector<25x12x4xbf16> to vector<1x12x4xbf16>
    %30 = vector.shape_cast %29 : vector<1x12x4xbf16> to vector<12x4xbf16>
    %cst_10 = arith.constant dense<0.000000e+00> : vector<12x512xf32>
    %31 = tpu.matmul %30, %28, %cst_10 {dimension_numbers = #tpu.dot_dimension_numbers<[1], [1], [0], [0], [0, 0, 1, 0], [], []>} : vector<12x4xbf16>, vector<512x4xbf16>, vector<12x512xf32> -> vector<12x512xf32>
    %32 = arith.addf %26, %31 : vector<12x512xf32>
    %33 = vector.extract_strided_slice %0 {offsets = [0, 1, 0, 0], sizes = [2, 16, 16, 4], strides = [1, 1, 1, 1]} : vector<2x20x20x4xbf16> to vector<2x16x16x4xbf16>
    %34 = vector.shape_cast %33 : vector<2x16x16x4xbf16> to vector<512x4xbf16>
    %35 = vector.extract_strided_slice %1 {offsets = [5, 0, 0], sizes = [1, 12, 4], strides = [1, 1, 1]} : vector<25x12x4xbf16> to vector<1x12x4xbf16>
    %36 = vector.shape_cast %35 : vector<1x12x4xbf16> to vector<12x4xbf16>
    %cst_11 = arith.constant dense<0.000000e+00> : vector<12x512xf32>
    %37 = tpu.matmul %36, %34, %cst_11 {dimension_numbers = #tpu.dot_dimension_numbers<[1], [1], [0], [0], [0, 0, 1, 0], [], []>} : vector<12x4xbf16>, vector<512x4xbf16>, vector<12x512xf32> -> vector<12x512xf32>
    %38 = arith.addf %32, %37 : vector<12x512xf32>
    %39 = vector.extract_strided_slice %0 {offsets = [0, 1, 1, 0], sizes = [2, 16, 16, 4], strides = [1, 1, 1, 1]} : vector<2x20x20x4xbf16> to vector<2x16x16x4xbf16>
    %40 = vector.shape_cast %39 : vector<2x16x16x4xbf16> to vector<512x4xbf16>
    %41 = vector.extract_strided_slice %1 {offsets = [6, 0, 0], sizes = [1, 12, 4], strides = [1, 1, 1]} : vector<25x12x4xbf16> to vector<1x12x4xbf16>
    %42 = vector.shape_cast %41 : vector<1x12x4xbf16> to vector<12x4xbf16>
    %cst_12 = arith.constant dense<0.000000e+00> : vector<12x512xf32>
    %43 = tpu.matmul %42, %40, %cst_12 {dimension_numbers = #tpu.dot_dimension_numbers<[1], [1], [0], [0], [0, 0, 1, 0], [], []>} : vector<12x4xbf16>, vector<512x4xbf16>, vector<12x512xf32> -> vector<12x512xf32>
    %44 = arith.addf %38, %43 : vector<12x512xf32>
    %45 = vector.extract_strided_slice %0 {offsets = [0, 1, 2, 0], sizes = [2, 16, 16, 4], strides = [1, 1, 1, 1]} : vector<2x20x20x4xbf16> to vector<2x16x16x4xbf16>
    %46 = vector.shape_cast %45 : vector<2x16x16x4xbf16> to vector<512x4xbf16>
    %47 = vector.extract_strided_slice %1 {offsets = [7, 0, 0], sizes = [1, 12, 4], strides = [1, 1, 1]} : vector<25x12x4xbf16> to vector<1x12x4xbf16>
    %48 = vector.shape_cast %47 : vector<1x12x4xbf16> to vector<12x4xbf16>
    %cst_13 = arith.constant dense<0.000000e+00> : vector<12x512xf32>
    %49 = tpu.matmul %48, %46, %cst_13 {dimension_numbers = #tpu.dot_dimension_numbers<[1], [1], [0], [0], [0, 0, 1, 0], [], []>} : vector<12x4xbf16>, vector<512x4xbf16>, vector<12x512xf32> -> vector<12x512xf32>
    %50 = arith.addf %44, %49 : vector<12x512xf32>
    %51 = vector.extract_strided_slice %0 {offsets = [0, 1, 3, 0], sizes = [2, 16, 16, 4], strides = [1, 1, 1, 1]} : vector<2x20x20x4xbf16> to vector<2x16x16x4xbf16>
    %52 = vector.shape_cast %51 : vector<2x16x16x4xbf16> to vector<512x4xbf16>
    %53 = vector.extract_strided_slice %1 {offsets = [8, 0, 0], sizes = [1, 12, 4], strides = [1, 1, 1]} : vector<25x12x4xbf16> to vector<1x12x4xbf16>
    %54 = vector.shape_cast %53 : vector<1x12x4xbf16> to vector<12x4xbf16>
    %cst_14 = arith.constant dense<0.000000e+00> : vector<12x512xf32>
    %55 = tpu.matmul %54, %52, %cst_14 {dimension_numbers = #tpu.dot_dimension_numbers<[1], [1], [0], [0], [0, 0, 1, 0], [], []>} : vector<12x4xbf16>, vector<512x4xbf16>, vector<12x512xf32> -> vector<12x512xf32>
    %56 = arith.addf %50, %55 : vector<12x512xf32>
    %57 = vector.extract_strided_slice %0 {offsets = [0, 1, 4, 0], sizes = [2, 16, 16, 4], strides = [1, 1, 1, 1]} : vector<2x20x20x4xbf16> to vector<2x16x16x4xbf16>
    %58 = vector.shape_cast %57 : vector<2x16x16x4xbf16> to vector<512x4xbf16>
    %59 = vector.extract_strided_slice %1 {offsets = [9, 0, 0], sizes = [1, 12, 4], strides = [1, 1, 1]} : vector<25x12x4xbf16> to vector<1x12x4xbf16>
    %60 = vector.shape_cast %59 : vector<1x12x4xbf16> to vector<12x4xbf16>
    %cst_15 = arith.constant dense<0.000000e+00> : vector<12x512xf32>
    %61 = tpu.matmul %60, %58, %cst_15 {dimension_numbers = #tpu.dot_dimension_numbers<[1], [1], [0], [0], [0, 0, 1, 0], [], []>} : vector<12x4xbf16>, vector<512x4xbf16>, vector<12x512xf32> -> vector<12x512xf32>
    %62 = arith.addf %56, %61 : vector<12x512xf32>
    %63 = vector.extract_strided_slice %0 {offsets = [0, 2, 0, 0], sizes = [2, 16, 16, 4], strides = [1, 1, 1, 1]} : vector<2x20x20x4xbf16> to vector<2x16x16x4xbf16>
    %64 = vector.shape_cast %63 : vector<2x16x16x4xbf16> to vector<512x4xbf16>
    %65 = vector.extract_strided_slice %1 {offsets = [10, 0, 0], sizes = [1, 12, 4], strides = [1, 1, 1]} : vector<25x12x4xbf16> to vector<1x12x4xbf16>
    %66 = vector.shape_cast %65 : vector<1x12x4xbf16> to vector<12x4xbf16>
    %cst_16 = arith.constant dense<0.000000e+00> : vector<12x512xf32>
    %67 = tpu.matmul %66, %64, %cst_16 {dimension_numbers = #tpu.dot_dimension_numbers<[1], [1], [0], [0], [0, 0, 1, 0], [], []>} : vector<12x4xbf16>, vector<512x4xbf16>, vector<12x512xf32> -> vector<12x512xf32>
    %68 = arith.addf %62, %67 : vector<12x512xf32>
    %69 = vector.extract_strided_slice %0 {offsets = [0, 2, 1, 0], sizes = [2, 16, 16, 4], strides = [1, 1, 1, 1]} : vector<2x20x20x4xbf16> to vector<2x16x16x4xbf16>
    %70 = vector.shape_cast %69 : vector<2x16x16x4xbf16> to vector<512x4xbf16>
    %71 = vector.extract_strided_slice %1 {offsets = [11, 0, 0], sizes = [1, 12, 4], strides = [1, 1, 1]} : vector<25x12x4xbf16> to vector<1x12x4xbf16>
    %72 = vector.shape_cast %71 : vector<1x12x4xbf16> to vector<12x4xbf16>
    %cst_17 = arith.constant dense<0.000000e+00> : vector<12x512xf32>
    %73 = tpu.matmul %72, %70, %cst_17 {dimension_numbers = #tpu.dot_dimension_numbers<[1], [1], [0], [0], [0, 0, 1, 0], [], []>} : vector<12x4xbf16>, vector<512x4xbf16>, vector<12x512xf32> -> vector<12x512xf32>
    %74 = arith.addf %68, %73 : vector<12x512xf32>
    %75 = vector.extract_strided_slice %0 {offsets = [0, 2, 2, 0], sizes = [2, 16, 16, 4], strides = [1, 1, 1, 1]} : vector<2x20x20x4xbf16> to vector<2x16x16x4xbf16>
    %76 = vector.shape_cast %75 : vector<2x16x16x4xbf16> to vector<512x4xbf16>
    %77 = vector.extract_strided_slice %1 {offsets = [12, 0, 0], sizes = [1, 12, 4], strides = [1, 1, 1]} : vector<25x12x4xbf16> to vector<1x12x4xbf16>
    %78 = vector.shape_cast %77 : vector<1x12x4xbf16> to vector<12x4xbf16>
    %cst_18 = arith.constant dense<0.000000e+00> : vector<12x512xf32>
    %79 = tpu.matmul %78, %76, %cst_18 {dimension_numbers = #tpu.dot_dimension_numbers<[1], [1], [0], [0], [0, 0, 1, 0], [], []>} : vector<12x4xbf16>, vector<512x4xbf16>, vector<12x512xf32> -> vector<12x512xf32>
    %80 = arith.addf %74, %79 : vector<12x512xf32>
    %81 = vector.extract_strided_slice %0 {offsets = [0, 2, 3, 0], sizes = [2, 16, 16, 4], strides = [1, 1, 1, 1]} : vector<2x20x20x4xbf16> to vector<2x16x16x4xbf16>
    %82 = vector.shape_cast %81 : vector<2x16x16x4xbf16> to vector<512x4xbf16>
    %83 = vector.extract_strided_slice %1 {offsets = [13, 0, 0], sizes = [1, 12, 4], strides = [1, 1, 1]} : vector<25x12x4xbf16> to vector<1x12x4xbf16>
    %84 = vector.shape_cast %83 : vector<1x12x4xbf16> to vector<12x4xbf16>
    %cst_19 = arith.constant dense<0.000000e+00> : vector<12x512xf32>
    %85 = tpu.matmul %84, %82, %cst_19 {dimension_numbers = #tpu.dot_dimension_numbers<[1], [1], [0], [0], [0, 0, 1, 0], [], []>} : vector<12x4xbf16>, vector<512x4xbf16>, vector<12x512xf32> -> vector<12x512xf32>
    %86 = arith.addf %80, %85 : vector<12x512xf32>
    %87 = vector.extract_strided_slice %0 {offsets = [0, 2, 4, 0], sizes = [2, 16, 16, 4], strides = [1, 1, 1, 1]} : vector<2x20x20x4xbf16> to vector<2x16x16x4xbf16>
    %88 = vector.shape_cast %87 : vector<2x16x16x4xbf16> to vector<512x4xbf16>
    %89 = vector.extract_strided_slice %1 {offsets = [14, 0, 0], sizes = [1, 12, 4], strides = [1, 1, 1]} : vector<25x12x4xbf16> to vector<1x12x4xbf16>
    %90 = vector.shape_cast %89 : vector<1x12x4xbf16> to vector<12x4xbf16>
    %cst_20 = arith.constant dense<0.000000e+00> : vector<12x512xf32>
    %91 = tpu.matmul %90, %88, %cst_20 {dimension_numbers = #tpu.dot_dimension_numbers<[1], [1], [0], [0], [0, 0, 1, 0], [], []>} : vector<12x4xbf16>, vector<512x4xbf16>, vector<12x512xf32> -> vector<12x512xf32>
    %92 = arith.addf %86, %91 : vector<12x512xf32>
    %93 = vector.extract_strided_slice %0 {offsets = [0, 3, 0, 0], sizes = [2, 16, 16, 4], strides = [1, 1, 1, 1]} : vector<2x20x20x4xbf16> to vector<2x16x16x4xbf16>
    %94 = vector.shape_cast %93 : vector<2x16x16x4xbf16> to vector<512x4xbf16>
    %95 = vector.extract_strided_slice %1 {offsets = [15, 0, 0], sizes = [1, 12, 4], strides = [1, 1, 1]} : vector<25x12x4xbf16> to vector<1x12x4xbf16>
    %96 = vector.shape_cast %95 : vector<1x12x4xbf16> to vector<12x4xbf16>
    %cst_21 = arith.constant dense<0.000000e+00> : vector<12x512xf32>
    %97 = tpu.matmul %96, %94, %cst_21 {dimension_numbers = #tpu.dot_dimension_numbers<[1], [1], [0], [0], [0, 0, 1, 0], [], []>} : vector<12x4xbf16>, vector<512x4xbf16>, vector<12x512xf32> -> vector<12x512xf32>
    %98 = arith.addf %92, %97 : vector<12x512xf32>
    %99 = vector.extract_strided_slice %0 {offsets = [0, 3, 1, 0], sizes = [2, 16, 16, 4], strides = [1, 1, 1, 1]} : vector<2x20x20x4xbf16> to vector<2x16x16x4xbf16>
    %100 = vector.shape_cast %99 : vector<2x16x16x4xbf16> to vector<512x4xbf16>
    %101 = vector.extract_strided_slice %1 {offsets = [16, 0, 0], sizes = [1, 12, 4], strides = [1, 1, 1]} : vector<25x12x4xbf16> to vector<1x12x4xbf16>
    %102 = vector.shape_cast %101 : vector<1x12x4xbf16> to vector<12x4xbf16>
    %cst_22 = arith.constant dense<0.000000e+00> : vector<12x512xf32>
    %103 = tpu.matmul %102, %100, %cst_22 {dimension_numbers = #tpu.dot_dimension_numbers<[1], [1], [0], [0], [0, 0, 1, 0], [], []>} : vector<12x4xbf16>, vector<512x4xbf16>, vector<12x512xf32> -> vector<12x512xf32>
    %104 = arith.addf %98, %103 : vector<12x512xf32>
    %105 = vector.extract_strided_slice %0 {offsets = [0, 3, 2, 0], sizes = [2, 16, 16, 4], strides = [1, 1, 1, 1]} : vector<2x20x20x4xbf16> to vector<2x16x16x4xbf16>
    %106 = vector.shape_cast %105 : vector<2x16x16x4xbf16> to vector<512x4xbf16>
    %107 = vector.extract_strided_slice %1 {offsets = [17, 0, 0], sizes = [1, 12, 4], strides = [1, 1, 1]} : vector<25x12x4xbf16> to vector<1x12x4xbf16>
    %108 = vector.shape_cast %107 : vector<1x12x4xbf16> to vector<12x4xbf16>
    %cst_23 = arith.constant dense<0.000000e+00> : vector<12x512xf32>
    %109 = tpu.matmul %108, %106, %cst_23 {dimension_numbers = #tpu.dot_dimension_numbers<[1], [1], [0], [0], [0, 0, 1, 0], [], []>} : vector<12x4xbf16>, vector<512x4xbf16>, vector<12x512xf32> -> vector<12x512xf32>
    %110 = arith.addf %104, %109 : vector<12x512xf32>
    %111 = vector.extract_strided_slice %0 {offsets = [0, 3, 3, 0], sizes = [2, 16, 16, 4], strides = [1, 1, 1, 1]} : vector<2x20x20x4xbf16> to vector<2x16x16x4xbf16>
    %112 = vector.shape_cast %111 : vector<2x16x16x4xbf16> to vector<512x4xbf16>
    %113 = vector.extract_strided_slice %1 {offsets = [18, 0, 0], sizes = [1, 12, 4], strides = [1, 1, 1]} : vector<25x12x4xbf16> to vector<1x12x4xbf16>
    %114 = vector.shape_cast %113 : vector<1x12x4xbf16> to vector<12x4xbf16>
    %cst_24 = arith.constant dense<0.000000e+00> : vector<12x512xf32>
    %115 = tpu.matmul %114, %112, %cst_24 {dimension_numbers = #tpu.dot_dimension_numbers<[1], [1], [0], [0], [0, 0, 1, 0], [], []>} : vector<12x4xbf16>, vector<512x4xbf16>, vector<12x512xf32> -> vector<12x512xf32>
    %116 = arith.addf %110, %115 : vector<12x512xf32>
    %117 = vector.extract_strided_slice %0 {offsets = [0, 3, 4, 0], sizes = [2, 16, 16, 4], strides = [1, 1, 1, 1]} : vector<2x20x20x4xbf16> to vector<2x16x16x4xbf16>
    %118 = vector.shape_cast %117 : vector<2x16x16x4xbf16> to vector<512x4xbf16>
    %119 = vector.extract_strided_slice %1 {offsets = [19, 0, 0], sizes = [1, 12, 4], strides = [1, 1, 1]} : vector<25x12x4xbf16> to vector<1x12x4xbf16>
    %120 = vector.shape_cast %119 : vector<1x12x4xbf16> to vector<12x4xbf16>
    %cst_25 = arith.constant dense<0.000000e+00> : vector<12x512xf32>
    %121 = tpu.matmul %120, %118, %cst_25 {dimension_numbers = #tpu.dot_dimension_numbers<[1], [1], [0], [0], [0, 0, 1, 0], [], []>} : vector<12x4xbf16>, vector<512x4xbf16>, vector<12x512xf32> -> vector<12x512xf32>
    %122 = arith.addf %116, %121 : vector<12x512xf32>
    %123 = vector.extract_strided_slice %0 {offsets = [0, 4, 0, 0], sizes = [2, 16, 16, 4], strides = [1, 1, 1, 1]} : vector<2x20x20x4xbf16> to vector<2x16x16x4xbf16>
    %124 = vector.shape_cast %123 : vector<2x16x16x4xbf16> to vector<512x4xbf16>
    %125 = vector.extract_strided_slice %1 {offsets = [20, 0, 0], sizes = [1, 12, 4], strides = [1, 1, 1]} : vector<25x12x4xbf16> to vector<1x12x4xbf16>
    %126 = vector.shape_cast %125 : vector<1x12x4xbf16> to vector<12x4xbf16>
    %cst_26 = arith.constant dense<0.000000e+00> : vector<12x512xf32>
    %127 = tpu.matmul %126, %124, %cst_26 {dimension_numbers = #tpu.dot_dimension_numbers<[1], [1], [0], [0], [0, 0, 1, 0], [], []>} : vector<12x4xbf16>, vector<512x4xbf16>, vector<12x512xf32> -> vector<12x512xf32>
    %128 = arith.addf %122, %127 : vector<12x512xf32>
    %129 = vector.extract_strided_slice %0 {offsets = [0, 4, 1, 0], sizes = [2, 16, 16, 4], strides = [1, 1, 1, 1]} : vector<2x20x20x4xbf16> to vector<2x16x16x4xbf16>
    %130 = vector.shape_cast %129 : vector<2x16x16x4xbf16> to vector<512x4xbf16>
    %131 = vector.extract_strided_slice %1 {offsets = [21, 0, 0], sizes = [1, 12, 4], strides = [1, 1, 1]} : vector<25x12x4xbf16> to vector<1x12x4xbf16>
    %132 = vector.shape_cast %131 : vector<1x12x4xbf16> to vector<12x4xbf16>
    %cst_27 = arith.constant dense<0.000000e+00> : vector<12x512xf32>
    %133 = tpu.matmul %132, %130, %cst_27 {dimension_numbers = #tpu.dot_dimension_numbers<[1], [1], [0], [0], [0, 0, 1, 0], [], []>} : vector<12x4xbf16>, vector<512x4xbf16>, vector<12x512xf32> -> vector<12x512xf32>
    %134 = arith.addf %128, %133 : vector<12x512xf32>
    %135 = vector.extract_strided_slice %0 {offsets = [0, 4, 2, 0], sizes = [2, 16, 16, 4], strides = [1, 1, 1, 1]} : vector<2x20x20x4xbf16> to vector<2x16x16x4xbf16>
    %136 = vector.shape_cast %135 : vector<2x16x16x4xbf16> to vector<512x4xbf16>
    %137 = vector.extract_strided_slice %1 {offsets = [22, 0, 0], sizes = [1, 12, 4], strides = [1, 1, 1]} : vector<25x12x4xbf16> to vector<1x12x4xbf16>
    %138 = vector.shape_cast %137 : vector<1x12x4xbf16> to vector<12x4xbf16>
    %cst_28 = arith.constant dense<0.000000e+00> : vector<12x512xf32>
    %139 = tpu.matmul %138, %136, %cst_28 {dimension_numbers = #tpu.dot_dimension_numbers<[1], [1], [0], [0], [0, 0, 1, 0], [], []>} : vector<12x4xbf16>, vector<512x4xbf16>, vector<12x512xf32> -> vector<12x512xf32>
    %140 = arith.addf %134, %139 : vector<12x512xf32>
    %141 = vector.extract_strided_slice %0 {offsets = [0, 4, 3, 0], sizes = [2, 16, 16, 4], strides = [1, 1, 1, 1]} : vector<2x20x20x4xbf16> to vector<2x16x16x4xbf16>
    %142 = vector.shape_cast %141 : vector<2x16x16x4xbf16> to vector<512x4xbf16>
    %143 = vector.extract_strided_slice %1 {offsets = [23, 0, 0], sizes = [1, 12, 4], strides = [1, 1, 1]} : vector<25x12x4xbf16> to vector<1x12x4xbf16>
    %144 = vector.shape_cast %143 : vector<1x12x4xbf16> to vector<12x4xbf16>
    %cst_29 = arith.constant dense<0.000000e+00> : vector<12x512xf32>
    %145 = tpu.matmul %144, %142, %cst_29 {dimension_numbers = #tpu.dot_dimension_numbers<[1], [1], [0], [0], [0, 0, 1, 0], [], []>} : vector<12x4xbf16>, vector<512x4xbf16>, vector<12x512xf32> -> vector<12x512xf32>
    %146 = arith.addf %140, %145 : vector<12x512xf32>
    %147 = vector.extract_strided_slice %0 {offsets = [0, 4, 4, 0], sizes = [2, 16, 16, 4], strides = [1, 1, 1, 1]} : vector<2x20x20x4xbf16> to vector<2x16x16x4xbf16>
    %148 = vector.shape_cast %147 : vector<2x16x16x4xbf16> to vector<512x4xbf16>
    %149 = vector.extract_strided_slice %1 {offsets = [24, 0, 0], sizes = [1, 12, 4], strides = [1, 1, 1]} : vector<25x12x4xbf16> to vector<1x12x4xbf16>
    %150 = vector.shape_cast %149 : vector<1x12x4xbf16> to vector<12x4xbf16>
    %cst_30 = arith.constant dense<0.000000e+00> : vector<12x512xf32>
    %151 = tpu.matmul %150, %148, %cst_30 {dimension_numbers = #tpu.dot_dimension_numbers<[1], [1], [0], [0], [0, 0, 1, 0], [], []>} : vector<12x4xbf16>, vector<512x4xbf16>, vector<12x512xf32> -> vector<12x512xf32>
    %152 = arith.addf %146, %151 : vector<12x512xf32>
    %cst_31 = arith.constant dense<0.000000e+00> : vector<12xf32>
    %153 = vector.multi_reduction <add>, %152, %cst_31 [1] : vector<12x512xf32> to vector<12xf32>
    %154 = vector.shape_cast %153 : vector<12xf32> to vector<12x1xf32>
    %cst_32 = arith.constant 0.001953125 : f32
    %155 = vector.broadcast %cst_32 : f32 to vector<12x1xf32>
    %156 = arith.mulf %154, %155 : vector<12x1xf32>
    %157 = vector.broadcast %156 : vector<12x1xf32> to vector<12x512xf32>
    %158 = arith.subf %152, %157 : vector<12x512xf32>
    %159 = arith.mulf %158, %158 : vector<12x512xf32>
    %cst_33 = arith.constant dense<0.000000e+00> : vector<12xf32>
    %160 = vector.multi_reduction <add>, %159, %cst_33 [1] : vector<12x512xf32> to vector<12xf32>
    %161 = vector.shape_cast %160 : vector<12xf32> to vector<12x1xf32>
    %cst_34 = arith.constant 0.001953125 : f32
    %162 = vector.broadcast %cst_34 : f32 to vector<12x1xf32>
    %163 = arith.mulf %161, %162 : vector<12x1xf32>
    %cst_35 = arith.constant 0.000000e+00 : f32
    %164 = vector.broadcast %cst_35 : f32 to vector<12x1xf32>
    %165 = arith.maximumf %163, %164 : vector<12x1xf32>
    %cst_36 = arith.constant 9.99999974E-6 : f32
    %166 = vector.broadcast %cst_36 : f32 to vector<12x1xf32>
    %167 = arith.addf %165, %166 : vector<12x1xf32>
    %168 = math.rsqrt %167 : vector<12x1xf32>
    %c0_37 = arith.constant 0 : index
    %c0_38 = arith.constant 0 : index
    %169 = vector.load %arg2[%c0_37, %c0_38] : memref<12x1xf32, #tpu.memory_space<vmem>>, vector<12x1xf32>
    %170 = arith.mulf %168, %169 : vector<12x1xf32>
    %171 = vector.broadcast %170 : vector<12x1xf32> to vector<12x512xf32>
    %172 = arith.mulf %158, %171 : vector<12x512xf32>
    %c0_39 = arith.constant 0 : index
    %c0_40 = arith.constant 0 : index
    %173 = vector.load %arg3[%c0_39, %c0_40] : memref<12x1xf32, #tpu.memory_space<vmem>>, vector<12x1xf32>
    %174 = vector.broadcast %173 : vector<12x1xf32> to vector<12x512xf32>
    %175 = arith.addf %172, %174 : vector<12x512xf32>
    %cst_41 = arith.constant 0.000000e+00 : f32
    %176 = vector.broadcast %cst_41 : f32 to vector<12x512xf32>
    %177 = arith.maximumf %175, %176 : vector<12x512xf32>
    %178 = vector.extract_strided_slice %177 {offsets = [0, 0], sizes = [12, 256], strides = [1, 1]} : vector<12x512xf32> to vector<12x256xf32>
    %c0_42 = arith.constant 0 : index
    %c0_43 = arith.constant 0 : index
    %c0_44 = arith.constant 0 : index
    %179 = vector.load %arg4[%c0_42, %c0_43, %c0_44] : memref<2x12x256xf32, #tpu.memory_space<vmem>>, vector<1x12x256xf32>
    %180 = vector.shape_cast %179 : vector<1x12x256xf32> to vector<12x256xf32>
    %181 = vector.shape_cast %178 : vector<12x256xf32> to vector<1x12x256xf32>
    tpu.vector_store %arg4[%c0_42, %c0_43, %c0_44], %181 {strides = array<i32>} : memref<2x12x256xf32, #tpu.memory_space<vmem>>, vector<1x12x256xf32>,
    %182 = vector.extract_strided_slice %177 {offsets = [0, 256], sizes = [12, 256], strides = [1, 1]} : vector<12x512xf32> to vector<12x256xf32>
    %c1 = arith.constant 1 : index
    %c0_45 = arith.constant 0 : index
    %c0_46 = arith.constant 0 : index
    %183 = vector.load %arg4[%c1, %c0_45, %c0_46] : memref<2x12x256xf32, #tpu.memory_space<vmem>>, vector<1x12x256xf32>
    %184 = vector.shape_cast %183 : vector<1x12x256xf32> to vector<12x256xf32>
    %185 = vector.shape_cast %182 : vector<12x256xf32> to vector<1x12x256xf32>
    tpu.vector_store %arg4[%c1, %c0_45, %c0_46], %185 {strides = array<i32>} : memref<2x12x256xf32, #tpu.memory_space<vmem>>, vector<1x12x256xf32>,
    return
  }
}

</mosaic_0001>

<bundles_post_ra>
// kernel: stem_block1_forward.1
= control target key start
LH: loop header
LB: loop body
LE: loop exit
PB: predicated region body
PF: predicated region fallthrough
CT: control target
= control target key end

     0   :  { %vm187_vm0 = vsmask.f32 3328  ;;  %vm188_vm1 = vsmask.f32 7440  ;;  %vm1059_vm2 = vcmask 31744   ;;  %v12222_v26 = vmov 0  ;;  %s11547_s0 = inlined_call_operand.vmem [shape: bf16[2,20,20,4], index: 0, kind: input, shape index: {}]   ;;  %s11548_s1 = inlined_call_operand.vmem [shape: bf16[25,12,4], index: 1, kind: input, shape index: {}]   ;;  %s11549_s3 = inlined_call_operand.vmem [shape: f32[12,1], index: 3, kind: input, shape index: {}]   ;;  %s11550_s2 = inlined_call_operand.vmem [shape: f32[12,1], index: 2, kind: input, shape index: {}]   ;;  %s11551_s4 = inlined_call_operand.vmem [shape: f32[2,12,256], index: 4, kind: output, shape index: {}]  }
   0x1   :  { %v6292_v0 = vld [vmem:[%s11547_s0 + $0x54] sm:$0xf]  ;;  %v6297_v1 = vld [vmem:[%s11547_s0 + $0x58] sm:$0xf]  ;;  %v6302_v2 = vld [vmem:[%s11547_s0 + $0x5c] sm:$0x3] }
   0x2   :  { %v11606_v3 = vshrl.u32 %v6292_v0, 16  ;;  %v11601_v4 = vshll.u32 %v6292_v0, 16  ;;  %v11599_v5 = vshll.u32 %v6297_v1, 16  ;;  %v11600_v6 = vshrl.u32 %v6297_v1, 16  ;;  %v6311_v7 = vld [vmem:[%s11547_s0 + $0xb4] sm:$0xf]  ;;  %vm6353_vm3 = vmor %vm187_vm0, %vm188_vm1 }
   0x3   :  { %v11597_v8 = vshll.u32 %v6302_v2, 16  ;;  %v6317_v9 = vld [vmem:[%s11547_s0 + $0xb8] sm:$0xf]  ;;  %v6322_v10 = vld [vmem:[%s11547_s0 + $0xbc] sm:$0x3]  ;;  %v11592_v11 = vshrl.u32 %v6311_v7, 16 }
   0x4   :  { %v361_v12 = vrot.slane %v11606_v3, 4  ;;  %v364_v13 = vrot.slane %v11601_v4, 5  ;;  %v370_v14 = vrot.slane %v11599_v5, 5  ;;  %v374_v15 = vrot.slane %v11600_v6, 4  ;;  %v6336_v16 = vld [vmem:[%s11547_s0 + $0x144] sm:$0xf] }
   0x5   :  { %v380_v17 = vrot.slane %v11597_v8, 5  ;;  %v553_v18 = vrot.slane %v11592_v11, 4  ;;  %v11590_v19 = vshll.u32 %v6311_v7, 16  ;;  %v11588_v20 = vshll.u32 %v6317_v9, 16  ;;  %v6349_v25 = vld [vmem:[%s11547_s0 + $0x148] sm:$0xf] }
   0x6   :  { %v365_v21 = vor.u32 %v364_v13, %v361_v12  ;;  %v375_v22 = vor.u32 %v374_v15, %v370_v14  ;;  %v11589_v23 = vshrl.u32 %v6317_v9, 16  ;;  %v11586_v24 = vshll.u32 %v6322_v10, 16  ;;  %v6370_v36 = vld [vmem:[%s11547_s0 + $0x14c] sm:$0x3]  ;;  %v6385_v44 = vld [vmem:[%s11547_s0 + $0x1a4] sm:$0xf] }
   0x7   :  { %v12223_v26 = vsel %vm6353_vm3, 4294967295, %v12222_v26  ;;  %v556_v27 = vrot.slane %v11590_v19, 5  ;;  %v562_v28 = vrot.slane %v11588_v20, 5  ;;  %v11582_v29 = vshrl.u32 %v6336_v16, 16  ;;  %v6397_v56 = vld [vmem:[%s11547_s0 + $0x1a8] sm:$0xf] }
   0x8   :  { %12224 = vst [vmem:[#allocation2_spill] sm:$0xff] %v12223_v26  ;;  %v11579_v30 = vshll.u32 %v6336_v16, 16  ;;  %v366_v31 = vrot.slane %v365_v21, 4  ;;  %v376_v32 = vrot.slane %v375_v22, 4  ;;  %v566_v33 = vrot.slane %v11589_v23, 4  ;;  %v6035_v26 = vld [vmem:[%s11547_s0 + $0x174] sm:$0xff] }
   0x9   :  { %v572_v34 = vrot.slane %v11586_v24, 5  ;;  %v557_v35 = vor.u32 %v556_v27, %v553_v18  ;;  %v745_v37 = vrot.slane %v11582_v29, 4  ;;  %v11575_v39 = vshll.u32 %v6349_v25, 16  ;;  %v6407_v62 = vld [vmem:[%s11547_s0 + $0x1ac] sm:$0x3] }
   0xa   :  { %v748_v38 = vrot.slane %v11579_v30, 5  ;;  %v371_v40 = vsel %vm6353_vm3, %v366_v31, %v370_v14  ;;  %v381_v41 = vsel %vm6353_vm3, %v376_v32, %v380_v17  ;;  %v567_v42 = vor.u32 %v566_v33, %v562_v28  ;;  %v6412_v63 = vld [vmem:[%s11547_s0 + $0x48] sm:$0xf]  ;;  %v6429_v32 = vld [vmem:[%s11547_s0 + $0x4c] sm:$0xf] }
   0xb   :  { %v11578_v43 = vshrl.u32 %v6349_v25, 16  ;;  %v977_v45 = vunpack.c.l.b16 %v371_v40  ;;  %v978_v46 = vunpack.c.l.b16 %v381_v41  ;;  %v558_v47 = vrot.slane %v557_v35, 4 }
   0xc   :  { %v749_v48 = vor.u32 %v748_v38, %v745_v37  ;;  %v568_v49 = vrot.slane %v567_v42, 4  ;;  %v754_v50 = vrot.slane %v11575_v39, 5  ;;  %v11572_v52 = vshll.u32 %v6370_v36, 16  ;;  %v6441_v38 = vld [vmem:[%s11547_s0 + $0x50] sm:$0x3] }
   0xd   :  { %v758_v51 = vrot.slane %v11578_v43, 4  ;;  %v1034_v53 = vpack.c.b16 %v978_v46, %v977_v45  ;;  %v563_v54 = vsel %vm6353_vm3, %v558_v47, %v562_v28  ;;  %v11571_v57 = vshrl.u32 %v6385_v44, 16  ;;  %v6454_v47 = vld [vmem:[%s11547_s0 + $0xa8] sm:$0xf] }
   0xe   :  { %v750_v55 = vrot.slane %v749_v48, 4  ;;  %v573_v58 = vsel %vm6353_vm3, %v568_v49, %v572_v34  ;;  %v993_v59 = vunpack.c.l.b16 %v563_v54  ;;  %v764_v61 = vrot.slane %v11572_v52, 5 }
   0xf   :  { %v759_v60 = vor.u32 %v758_v51, %v754_v50  ;;  %v6415_v12 = vsel %vm1059_vm2, %v1034_v53, 0  ;;  %v994_v13 = vunpack.c.l.b16 %v573_v58  ;;  %v937_v15 = vrot.slane %v11571_v57, 4 }
  0x10   :  { %12225 = vst [vmem:[#allocation3_spill] sm:$0xff] %v6415_v12  ;;  %v755_v14 = vsel %vm6353_vm3, %v750_v55, %v754_v50  ;;  %1159 = vmatpush.bf16.xpose.msra.mxu0 %v6415_v12  ;;  %v11570_v21 = vshll.u32 %v6385_v44, 16  ;;  %v11563_v22 = vshll.u32 %v6397_v56, 16  ;;  %v11569_v28 = vshrl.u32 %v6397_v56, 16 }
  0x11   :  { %v760_v17 = vrot.slane %v759_v60, 4  ;;  %v1009_v18 = vunpack.c.l.b16 %v755_v14  ;;  %v1042_v27 = vpack.c.b16 %v994_v13, %v993_v59  ;;  %v11562_v31 = vshll.u32 %v6407_v62, 16  ;;  %v6469_v13 = vld [vmem:[%s11547_s0 + $0xac] sm:$0xf] }
  0x12   :  { %v11561_v33 = vshrl.u32 %v6412_v63, 16  ;;  %v940_v35 = vrot.slane %v11570_v21, 5  ;;  %v946_v37 = vrot.slane %v11563_v22, 5  ;;  %v11557_v40 = vshll.u32 %v6412_v63, 16 }
  0x13   :  { %v765_v34 = vsel %vm6353_vm3, %v760_v17, %v764_v61  ;;  %v6445_v41 = vsel %vm1059_vm2, %v1042_v27, 0  ;;  %v950_v45 = vrot.slane %v11569_v28, 4  ;;  %v956_v46 = vrot.slane %v11562_v31, 5 }
  0x14   :  { %12226 = vst [vmem:[#allocation4_spill] sm:$0xff] %v6445_v41  ;;  %v1010_v42 = vunpack.c.l.b16 %v765_v34  ;;  %1173 = vmatpush.bf16.xpose.msra.mxu1 %v6445_v41  ;;  %v941_v48 = vor.u32 %v940_v35, %v937_v15  ;;  %v337_v49 = vrot.slane %v11561_v33, 4  ;;  %v340_v50 = vrot.slane %v11557_v40, 5 }
  0x15   :  { %v11554_v51 = vshll.u32 %v6429_v32, 16  ;;  %v951_v54 = vor.u32 %v950_v45, %v946_v37  ;;  %v11555_v55 = vshrl.u32 %v6429_v32, 16  ;;  %v11553_v58 = vshll.u32 %v6441_v38, 16 }
  0x16   :  { %v1050_v53 = vpack.c.b16 %v1010_v42, %v1009_v18  ;;  %v942_v59 = vrot.slane %v941_v48, 4  ;;  %v341_v60 = vor.u32 %v340_v50, %v337_v49  ;;  %v11552_v14 = vshrl.u32 %v6454_v47, 16  ;;  %v6485_v42 = vld [vmem:[%s11547_s0 + $0xb0] sm:$0x3] }
  0x17   :  { %v346_v61 = vrot.slane %v11554_v51, 5  ;;  %v952_v17 = vrot.slane %v951_v54, 4  ;;  %v350_v18 = vrot.slane %v11555_v55, 4  ;;  %v356_v27 = vrot.slane %v11553_v58, 5  ;;  %12228 = vst [vmem:[#allocation6_spill] sm:$0xff] %v6485_v42 }
  0x18   :  { %v6473_v15 = vsel %vm1059_vm2, %v1050_v53, 0  ;;  %v947_v34 = vsel %vm6353_vm3, %v942_v59, %v946_v37  ;;  %v342_v35 = vrot.slane %v341_v60, 4  ;;  %v529_v45 = vrot.slane %v11552_v14, 4  ;;  %v6496_v37 = vld [vmem:[%s11547_s0 + $0x138] sm:$0xf] }
  0x19   :  { %12227 = vst [vmem:[#allocation5_spill] sm:$0xff] %v6473_v15  ;;  %1187 = vmatpush.bf16.xpose.msra.mxu2 %v6473_v15  ;;  %v11556_v48 = vshll.u32 %v6454_v47, 16  ;;  %v957_v49 = vsel %vm6353_vm3, %v952_v17, %v956_v46  ;;  %v1025_v50 = vunpack.c.l.b16 %v947_v34  ;;  %v351_v53 = vor.u32 %v350_v18, %v346_v61  ;;  %v6506_v46 = vld [vmem:[%s11547_s0 + $0x13c] sm:$0xf] }
  0x1a   :  { %v11558_v54 = vshll.u32 %v6469_v13, 16  ;;  %12229 = vst [vmem:[#allocation7_spill] sm:$0xff] %v6496_v37  ;;  %v1026_v59 = vunpack.c.l.b16 %v957_v49  ;;  %v347_v60 = vsel %vm6353_vm3, %v342_v35, %v346_v61  ;;  %v11560_v58 = vshrl.u32 %v6469_v13, 16 }
  0x1b   :  { %v532_v14 = vrot.slane %v11556_v48, 5  ;;  %12230 = vst [vmem:[#allocation8_spill] sm:$0xff] %v6506_v46  ;;  %v352_v17 = vrot.slane %v351_v53, 4  ;;  %v975_v18 = vunpack.c.l.b16 %v347_v60  ;;  %v11559_v49 = vshll.u32 %v6485_v42, 16  ;;  %v6521_v53 = vld [vmem:[%s11547_s0 + $0x140] sm:$0x3] }
  0x1c   :  { %v538_v34 = vrot.slane %v11558_v54, 5  ;;  %v1058_v51 = vpack.c.b16 %v1026_v59, %v1025_v50  ;;  %v542_v61 = vrot.slane %v11560_v58, 4  ;;  %v11564_v35 = vshrl.u32 %v6496_v37, 16  ;;  %12231 = vst [vmem:[#allocation9_spill] sm:$0xff] %v6521_v53 }
  0x1d   :  { %v533_v55 = vor.u32 %v532_v14, %v529_v45  ;;  %v357_v48 = vsel %vm6353_vm3, %v352_v17, %v356_v27  ;;  %v548_v40 = vrot.slane %v11559_v49, 5  ;;  %v11565_v60 = vshll.u32 %v6496_v37, 16  ;;  %v6531_v27 = vld [vmem:[%s11547_s0 + $0x198] sm:$0xf] }
  0x1e   :  { %v11566_v14 = vshll.u32 %v6506_v46, 16  ;;  %v6526_v45 = vsel %vm1059_vm2, %v1058_v51, 0  ;;  %v976_v50 = vunpack.c.l.b16 %v357_v48  ;;  %v543_v54 = vor.u32 %v542_v61, %v538_v34  ;;  %12233 = vst [vmem:[#allocation11_spill] sm:$0xff] %v6531_v27 }
  0x1f   :  { %12232 = vst [vmem:[#allocation10_spill] sm:$0xff] %v6526_v45  ;;  %v534_v59 = vrot.slane %v533_v55, 4  ;;  %1201 = vmatpush.bf16.xpose.msra.mxu3 %v6526_v45  ;;  %v721_v17 = vrot.slane %v11564_v35, 4  ;;  %v724_v49 = vrot.slane %v11565_v60, 5  ;;  %v11567_v48 = vshrl.u32 %v6506_v46, 16 }
  0x20   :  { %v730_v51 = vrot.slane %v11566_v14, 5  ;;  %v1033_v55 = vpack.c.b16 %v976_v50, %v975_v18  ;;  %v544_v58 = vrot.slane %v543_v54, 4  ;;  %v11568_v33 = vshll.u32 %v6521_v53, 16  ;;  %v6549_v60 = vld [vmem:[%s11547_s0 + $0x19c] sm:$0xf] }
  0x21   :  { %v539_v61 = vsel %vm6353_vm3, %v534_v59, %v538_v34  ;;  %v725_v22 = vor.u32 %v724_v49, %v721_v17  ;;  %v734_v35 = vrot.slane %v11567_v48, 4  ;;  %12234 = vst [vmem:[#allocation12_spill] sm:$0xff] %v6549_v60  ;;  %v6554_v18 = vld [vmem:[%s11547_s0 + $0x1a0] sm:$0x3]  ;;  %v11574_v34 = vshrl.u32 %v6531_v27, 16 }
  0x22   :  { %v991_v31 = vunpack.c.l.b16 %v539_v61  ;;  %12235 = vst [vmem:[#allocation13_spill] sm:$0xff] %v6554_v18  ;;  %v6558_v54 = vsel %vm1059_vm2, %v1033_v55, 0  ;;  %v549_v49 = vsel %vm6353_vm3, %v544_v58, %v548_v40  ;;  %v740_v50 = vrot.slane %v11568_v33, 5  ;;  %v6568_v17 = vld [vmem:[%s11547_s0 + $0x3c] sm:$0xf] }
  0x23   :  { %12236 = vst [vmem:[#allocation14_spill] sm:$0xff] %v6558_v54  ;;  %v11573_v59 = vshll.u32 %v6531_v27, 16  ;;  %1160 = vmatpush.bf16.xpose.msra.mxu0 %v6558_v54  ;;  %v992_v61 = vunpack.c.l.b16 %v549_v49  ;;  %v726_v14 = vrot.slane %v725_v22, 4  ;;  %v735_v48 = vor.u32 %v734_v35, %v730_v51  ;;  %v6583_v22 = vld [vmem:[%s11547_s0 + $0x40] sm:$0xf] }
  0x24   :  { %12237 = vst [vmem:[#allocation15_spill] sm:$0xff] %v6568_v17  ;;  %v913_v55 = vrot.slane %v11574_v34, 4  ;;  %v11576_v58 = vshll.u32 %v6549_v60, 16  ;;  %v11577_v33 = vshrl.u32 %v6549_v60, 16  ;;  %v11580_v28 = vshll.u32 %v6554_v18, 16 }
  0x25   :  { %v916_v40 = vrot.slane %v11573_v59, 5  ;;  %v1041_v21 = vpack.c.b16 %v992_v61, %v991_v31  ;;  %v731_v57 = vsel %vm6353_vm3, %v726_v14, %v730_v51  ;;  %v736_v52 = vrot.slane %v735_v48, 4  ;;  %12238 = vst [vmem:[#allocation16_spill] sm:$0xff] %v6583_v22  ;;  %v6593_v31 = vld [vmem:[%s11547_s0 + $0x44] sm:$0x3] }
  0x26   :  { %v11581_v35 = vshrl.u32 %v6568_v17, 16  ;;  %v1007_v49 = vunpack.c.l.b16 %v731_v57  ;;  %v922_v34 = vrot.slane %v11576_v58, 5  ;;  %v926_v39 = vrot.slane %v11577_v33, 4  ;;  %12239 = vst [vmem:[#allocation17_spill] sm:$0xff] %v6593_v31  ;;  %v6598_v14 = vld [vmem:[%s11547_s0 + $0x9c] sm:$0xf] }
  0x27   :  { %v917_v59 = vor.u32 %v916_v40, %v913_v55  ;;  %12240 = vst [vmem:[#allocation18_spill] sm:$0xff] %v6598_v14  ;;  %v6601_v51 = vsel %vm1059_vm2, %v1041_v21, 0  ;;  %v741_v57 = vsel %vm6353_vm3, %v736_v52, %v740_v50  ;;  %v932_v48 = vrot.slane %v11580_v28, 5 }
  0x28   :  { %12241 = vst [vmem:[#allocation19_spill] sm:$0xff] %v6601_v51  ;;  %v313_v61 = vrot.slane %v11581_v35, 4  ;;  %1174 = vmatpush.bf16.xpose.msra.mxu1 %v6601_v51  ;;  %v1008_v55 = vunpack.c.l.b16 %v741_v57  ;;  %v927_v58 = vor.u32 %v926_v39, %v922_v34  ;;  %v11583_v33 = vshll.u32 %v6568_v17, 16  ;;  %v6622_v39 = vld [vmem:[%s11547_s0 + $0xa0] sm:$0xf] }
  0x29   :  { %v918_v40 = vrot.slane %v917_v59, 4  ;;  %v11584_v43 = vshll.u32 %v6583_v22, 16  ;;  %v11585_v21 = vshrl.u32 %v6583_v22, 16  ;;  %v11587_v30 = vshll.u32 %v6593_v31, 16  ;;  %12242 = vst [vmem:[#allocation20_spill] sm:$0xff] %v6622_v39 }
  0x2a   :  { %v11591_v52 = vshrl.u32 %v6598_v14, 16  ;;  %v1049_v50 = vpack.c.b16 %v1008_v55, %v1007_v49  ;;  %v928_v35 = vrot.slane %v927_v58, 4  ;;  %v316_v57 = vrot.slane %v11583_v33, 5  ;;  %v6627_v59 = vld [vmem:[%s11547_s0 + $0xa4] sm:$0x3] }
  0x2b   :  { %v923_v28 = vsel %vm6353_vm3, %v918_v40, %v922_v34  ;;  %12243 = vst [vmem:[#allocation21_spill] sm:$0xff] %v6627_v59  ;;  %v322_v49 = vrot.slane %v11584_v43, 5  ;;  %v326_v34 = vrot.slane %v11585_v21, 4  ;;  %v332_v58 = vrot.slane %v11587_v30, 5  ;;  %v6638_v55 = vld [vmem:[%s11547_s0 + $0x12c] sm:$0xf] }
  0x2c   :  { %v1023_v29 = vunpack.c.l.b16 %v923_v28  ;;  %12244 = vst [vmem:[#allocation22_spill] sm:$0xff] %v6638_v55  ;;  %v6641_v40 = vsel %vm1059_vm2, %v1049_v50, 0  ;;  %v933_v28 = vsel %vm6353_vm3, %v928_v35, %v932_v48  ;;  %v317_v33 = vor.u32 %v316_v57, %v313_v61  ;;  %v6655_v35 = vld [vmem:[%s11547_s0 + $0x130] sm:$0xf] }
  0x2d   :  { %12245 = vst [vmem:[#allocation23_spill] sm:$0xff] %v6641_v40  ;;  %v505_v43 = vrot.slane %v11591_v52, 4  ;;  %1188 = vmatpush.bf16.xpose.msra.mxu2 %v6641_v40  ;;  %v1024_v21 = vunpack.c.l.b16 %v933_v28  ;;  %v327_v24 = vor.u32 %v326_v34, %v322_v49  ;;  %v11594_v30 = vshll.u32 %v6598_v14, 16  ;;  %v7753_v14 = vld [vmem:[%s11547_s0 + $0xbc] sm:$0x3] }
  0x2e   :  { %v11593_v20 = vshll.u32 %v6622_v39, 16  ;;  %v318_v23 = vrot.slane %v317_v33, 4  ;;  %v11595_v19 = vshrl.u32 %v6622_v39, 16  ;;  %v11596_v50 = vshll.u32 %v6627_v59, 16  ;;  %12246 = vst [vmem:[#allocation24_spill] sm:$0xff] %v6655_v35 }
  0x2f   :  { %v11598_v48 = vshrl.u32 %v6638_v55, 16  ;;  %v1057_v61 = vpack.c.b16 %v1024_v21, %v1023_v29  ;;  %v328_v57 = vrot.slane %v327_v24, 4  ;;  %v508_v34 = vrot.slane %v11594_v30, 5  ;;  %v6665_v33 = vld [vmem:[%s11547_s0 + $0x134] sm:$0x3] }
  0x30   :  { %v514_v28 = vrot.slane %v11593_v20, 5  ;;  %12247 = vst [vmem:[#allocation25_spill] sm:$0xff] %v6665_v33  ;;  %v323_v52 = vsel %vm6353_vm3, %v318_v23, %v322_v49  ;;  %v518_v11 = vrot.slane %v11595_v19, 4  ;;  %v524_v24 = vrot.slane %v11596_v50, 5  ;;  %v6678_v21 = vld [vmem:[%s11547_s0 + $0x18c] sm:$0xf] }
  0x31   :  { %v697_v29 = vrot.slane %v11598_v48, 4  ;;  %12248 = vst [vmem:[#allocation26_spill] sm:$0xff] %v6678_v21  ;;  %v6681_v20 = vsel %vm1059_vm2, %v1057_v61, 0  ;;  %v333_v23 = vsel %vm6353_vm3, %v328_v57, %v332_v58  ;;  %v973_v49 = vunpack.c.l.b16 %v323_v52  ;;  %v6693_v61 = vld [vmem:[%s11547_s0 + $0x190] sm:$0xf] }
  0x32   :  { %12249 = vst [vmem:[#allocation27_spill] sm:$0xff] %v6681_v20  ;;  %v509_v30 = vor.u32 %v508_v34, %v505_v43  ;;  %1202 = vmatpush.bf16.xpose.msra.mxu3 %v6681_v20  ;;  %v974_v19 = vunpack.c.l.b16 %v333_v23  ;;  %v519_v50 = vor.u32 %v518_v11, %v514_v28  ;;  %v11603_v8 = vshll.u32 %v6638_v55, 16 }
  0x33   :  { %v11602_v48 = vshll.u32 %v6655_v35, 16  ;;  %v11604_v6 = vshrl.u32 %v6655_v35, 16  ;;  %v11605_v4 = vshll.u32 %v6665_v33, 16  ;;  %12250 = vst [vmem:[#allocation28_spill] sm:$0xff] %v6693_v61  ;;  %v11607_v43 = vshrl.u32 %v6678_v21, 16 }
  0x34   :  { %v510_v5 = vrot.slane %v509_v30, 4  ;;  %v1032_v52 = vpack.c.b16 %v974_v19, %v973_v49  ;;  %v520_v58 = vrot.slane %v519_v50, 4  ;;  %v700_v11 = vrot.slane %v11603_v8, 5  ;;  %v6703_v30 = vld [vmem:[%s11547_s0 + $0x194] sm:$0x3] }
  0x35   :  { %v706_v57 = vrot.slane %v11602_v48, 5  ;;  %12251 = vst [vmem:[#allocation29_spill] sm:$0xff] %v6703_v30  ;;  %v710_v23 = vrot.slane %v11604_v6, 4  ;;  %v716_v19 = vrot.slane %v11605_v4, 5  ;;  %v889_v50 = vrot.slane %v11607_v43, 4 }
  0x36   :  { %v515_v34 = vsel %vm6353_vm3, %v510_v5, %v514_v28  ;;  %v6716_v49 = vld [vmem:[%s11547_s0 + $0x30] sm:$0xf]  ;;  %v6719_v48 = vsel %vm1059_vm2, %v1032_v52, 0  ;;  %v525_v5 = vsel %vm6353_vm3, %v520_v58, %v524_v24  ;;  %v701_v8 = vor.u32 %v700_v11, %v697_v29  ;;  %v6731_v52 = vld [vmem:[%s11547_s0 + $0x34] sm:$0xf] }
  0x37   :  { %12252 = vst [vmem:[#allocation30_spill] sm:$0xff] %v6716_v49  ;;  %v989_v28 = vunpack.c.l.b16 %v515_v34  ;;  %1161 = vmatpush.bf16.xpose.msra.mxu0 %v6719_v48  ;;  %v990_v6 = vunpack.c.l.b16 %v525_v5  ;;  %v711_v4 = vor.u32 %v710_v23, %v706_v57  ;;  %v11615_v3 = vshll.u32 %v6678_v21, 16 }
  0x38   :  { %12253 = vst [vmem:[#allocation31_spill] sm:$0xff] %v6719_v48  ;;  %v11614_v43 = vshll.u32 %v6693_v61, 16  ;;  %v702_v20 = vrot.slane %v701_v8, 4  ;;  %v11616_v40 = vshrl.u32 %v6693_v61, 16  ;;  %v11617_v51 = vshll.u32 %v6703_v30, 16 }
  0x39   :  { %12254 = vst [vmem:[#allocation32_spill] sm:$0xff] %v6731_v52  ;;  %v11626_v24 = vshrl.u32 %v6716_v49, 16  ;;  %v1040_v29 = vpack.c.b16 %v990_v6, %v989_v28  ;;  %v712_v58 = vrot.slane %v711_v4, 4  ;;  %v892_v11 = vrot.slane %v11615_v3, 5  ;;  %v6741_v8 = vld [vmem:[%s11547_s0 + $0x90] sm:$0xf] }
  0x3a   :  { %v898_v34 = vrot.slane %v11614_v43, 5  ;;  %12255 = vst [vmem:[#allocation33_spill] sm:$0xff] %v6741_v8  ;;  %v707_v23 = vsel %vm6353_vm3, %v702_v20, %v706_v57  ;;  %v902_v5 = vrot.slane %v11616_v40, 4  ;;  %v908_v4 = vrot.slane %v11617_v51, 5  ;;  %v6752_v6 = vld [vmem:[%s11547_s0 + $0x38] sm:$0x3] }
  0x3b   :  { %12256 = vst [vmem:[#allocation34_spill] sm:$0xff] %v6752_v6  ;;  %v289_v28 = vrot.slane %v11626_v24, 4  ;;  %v6757_v43 = vsel %vm1059_vm2, %v1040_v29, 0  ;;  %v717_v20 = vsel %vm6353_vm3, %v712_v58, %v716_v19  ;;  %v1005_v57 = vunpack.c.l.b16 %v707_v23  ;;  %v6769_v29 = vld [vmem:[%s11547_s0 + $0x94] sm:$0xf] }
  0x3c   :  { %12257 = vst [vmem:[#allocation35_spill] sm:$0xff] %v6757_v43  ;;  %v893_v3 = vor.u32 %v892_v11, %v889_v50  ;;  %1175 = vmatpush.bf16.xpose.msra.mxu1 %v6757_v43  ;;  %v1006_v40 = vunpack.c.l.b16 %v717_v20  ;;  %v903_v51 = vor.u32 %v902_v5, %v898_v34  ;;  %v11628_v48 = vshll.u32 %v6716_v49, 16  ;;  %v6081_v61 = vld [vmem:[%s11547_s0 + $0x54] sm:$0xf] }
  0x3d   :  { %v11627_v45 = vshll.u32 %v6731_v52, 16  ;;  %v11629_v15 = vshrl.u32 %v6731_v52, 16  ;;  %v11630_v24 = vshll.u32 %v6752_v6, 16  ;;  %12258 = vst [vmem:[#allocation36_spill] sm:$0xff] %v6769_v29  ;;  %v11638_v19 = vshrl.u32 %v6741_v8, 16 }
  0x3e   :  { %v894_v54 = vrot.slane %v893_v3, 4  ;;  %v1048_v50 = vpack.c.b16 %v1006_v40, %v1005_v57  ;;  %v904_v58 = vrot.slane %v903_v51, 4  ;;  %v292_v11 = vrot.slane %v11628_v48, 5  ;;  %v6779_v3 = vld [vmem:[%s11547_s0 + $0x120] sm:$0xf] }
  0x3f   :  { %v298_v23 = vrot.slane %v11627_v45, 5  ;;  %12259 = vst [vmem:[#allocation37_spill] sm:$0xff] %v6779_v3  ;;  %v302_v20 = vrot.slane %v11629_v15, 4  ;;  %v308_v51 = vrot.slane %v11630_v24, 5  ;;  %v6790_v40 = vld [vmem:[%s11547_s0 + $0x98] sm:$0x3] }
  0x40   :  { %v899_v5 = vsel %vm6353_vm3, %v894_v54, %v898_v34  ;;  %12260 = vst [vmem:[#allocation38_spill] sm:$0xff] %v6790_v40  ;;  %v481_v57 = vrot.slane %v11638_v19, 4  ;;  %v6795_v45 = vsel %vm1059_vm2, %v1048_v50, 0  ;;  %v909_v54 = vsel %vm6353_vm3, %v904_v58, %v908_v4  ;;  %v6807_v50 = vld [vmem:[%s11547_s0 + $0x124] sm:$0xf] }
  0x41   :  { %12261 = vst [vmem:[#allocation39_spill] sm:$0xff] %v6795_v45  ;;  %v1021_v34 = vunpack.c.l.b16 %v899_v5  ;;  %v293_v48 = vor.u32 %v292_v11, %v289_v28  ;;  %1189 = vmatpush.bf16.xpose.msra.mxu2 %v6795_v45  ;;  %v1022_v15 = vunpack.c.l.b16 %v909_v54  ;;  %v303_v24 = vor.u32 %v302_v20, %v298_v23 }
  0x42   :  { %v11640_v43 = vshll.u32 %v6741_v8, 16  ;;  %v11639_v41 = vshll.u32 %v6769_v29, 16  ;;  %v11641_v6 = vshrl.u32 %v6769_v29, 16  ;;  %v11642_v19 = vshll.u32 %v6790_v40, 16  ;;  %12262 = vst [vmem:[#allocation40_spill] sm:$0xff] %v6807_v50 }
  0x43   :  { %v294_v12 = vrot.slane %v293_v48, 4  ;;  %v11645_v4 = vshrl.u32 %v6779_v3, 16  ;;  %v1056_v28 = vpack.c.b16 %v1022_v15, %v1021_v34  ;;  %v304_v58 = vrot.slane %v303_v24, 4  ;;  %v6817_v48 = vld [vmem:[%s11547_s0 + $0x128] sm:$0x3] }
  0x44   :  { %v484_v11 = vrot.slane %v11640_v43, 5  ;;  %v490_v5 = vrot.slane %v11639_v41, 5  ;;  %12263 = vst [vmem:[#allocation41_spill] sm:$0xff] %v6817_v48  ;;  %v494_v54 = vrot.slane %v11641_v6, 4  ;;  %v500_v15 = vrot.slane %v11642_v19, 5 }
  0x45   :  { %v299_v20 = vsel %vm6353_vm3, %v294_v12, %v298_v23  ;;  %v673_v24 = vrot.slane %v11645_v4, 4  ;;  %v6830_v34 = vld [vmem:[%s11547_s0 + $0x180] sm:$0xf]  ;;  %v6833_v41 = vsel %vm1059_vm2, %v1056_v28, 0  ;;  %v309_v12 = vsel %vm6353_vm3, %v304_v58, %v308_v51  ;;  %v6845_v28 = vld [vmem:[%s11547_s0 + $0x184] sm:$0xf] }
  0x46   :  { %12264 = vst [vmem:[#allocation42_spill] sm:$0xff] %v6830_v34  ;;  %v971_v23 = vunpack.c.l.b16 %v299_v20  ;;  %v485_v43 = vor.u32 %v484_v11, %v481_v57  ;;  %1203 = vmatpush.bf16.xpose.msra.mxu3 %v6833_v41  ;;  %v972_v6 = vunpack.c.l.b16 %v309_v12  ;;  %v495_v19 = vor.u32 %v494_v54, %v490_v5 }
  0x47   :  { %12265 = vst [vmem:[#allocation43_spill] sm:$0xff] %v6833_v41  ;;  %v11652_v45 = vshll.u32 %v6779_v3, 16  ;;  %v11651_v4 = vshll.u32 %v6807_v50, 16  ;;  %v11653_v29 = vshrl.u32 %v6807_v50, 16  ;;  %v11654_v8 = vshll.u32 %v6817_v48, 16 }
  0x48   :  { %v486_v40 = vrot.slane %v485_v43, 4  ;;  %12266 = vst [vmem:[#allocation44_spill] sm:$0xff] %v6845_v28  ;;  %v11657_v51 = vshrl.u32 %v6830_v34, 16  ;;  %v1031_v57 = vpack.c.b16 %v972_v6, %v971_v23  ;;  %v496_v58 = vrot.slane %v495_v19, 4  ;;  %v6855_v43 = vld [vmem:[%s11547_s0 + $0x188] sm:$0x3] }
  0x49   :  { %v676_v11 = vrot.slane %v11652_v45, 5  ;;  %v682_v20 = vrot.slane %v11651_v4, 5  ;;  %12267 = vst [vmem:[#allocation45_spill] sm:$0xff] %v6855_v43  ;;  %v686_v12 = vrot.slane %v11653_v29, 4  ;;  %v692_v6 = vrot.slane %v11654_v8, 5 }
  0x4a   :  { %v491_v54 = vsel %vm6353_vm3, %v486_v40, %v490_v5  ;;  %v865_v19 = vrot.slane %v11657_v51, 4  ;;  %v6868_v23 = vld [vmem:[%s11547_s0 + $0x24] sm:$0xf]  ;;  %v6871_v4 = vsel %vm1059_vm2, %v1031_v57, 0  ;;  %v501_v40 = vsel %vm6353_vm3, %v496_v58, %v500_v15  ;;  %v6883_v57 = vld [vmem:[%s11547_s0 + $0x28] sm:$0xf] }
  0x4b   :  { %12268 = vst [vmem:[#allocation46_spill] sm:$0xff] %v6868_v23  ;;  %v987_v5 = vunpack.c.l.b16 %v491_v54  ;;  %v677_v45 = vor.u32 %v676_v11, %v673_v24  ;;  %1162 = vmatpush.bf16.xpose.msra.mxu0 %v6871_v4  ;;  %v988_v29 = vunpack.c.l.b16 %v501_v40  ;;  %v687_v8 = vor.u32 %v686_v12, %v682_v20 }
  0x4c   :  { %12269 = vst [vmem:[#allocation47_spill] sm:$0xff] %v6871_v4  ;;  %v11664_v41 = vshll.u32 %v6830_v34, 16  ;;  %v11663_v51 = vshll.u32 %v6845_v28, 16  ;;  %v11665_v50 = vshrl.u32 %v6845_v28, 16  ;;  %v11666_v3 = vshll.u32 %v6855_v43, 16 }
  0x4d   :  { %v678_v48 = vrot.slane %v677_v45, 4  ;;  %12270 = vst [vmem:[#allocation48_spill] sm:$0xff] %v6883_v57  ;;  %v11674_v15 = vshrl.u32 %v6868_v23, 16  ;;  %v1039_v24 = vpack.c.b16 %v988_v29, %v987_v5  ;;  %v688_v58 = vrot.slane %v687_v8, 4  ;;  %v6893_v45 = vld [vmem:[%s11547_s0 + $0x84] sm:$0xf] }
  0x4e   :  { %v868_v11 = vrot.slane %v11664_v41, 5  ;;  %v874_v54 = vrot.slane %v11663_v51, 5  ;;  %12271 = vst [vmem:[#allocation49_spill] sm:$0xff] %v6893_v45  ;;  %v878_v40 = vrot.slane %v11665_v50, 4  ;;  %v884_v8 = vrot.slane %v11666_v3, 5 }
  0x4f   :  { %v683_v12 = vsel %vm6353_vm3, %v678_v48, %v682_v20  ;;  %v6904_v29 = vld [vmem:[%s11547_s0 + $0x2c] sm:$0x3]  ;;  %v265_v5 = vrot.slane %v11674_v15, 4  ;;  %v6909_v51 = vsel %vm1059_vm2, %v1039_v24, 0  ;;  %v693_v48 = vsel %vm6353_vm3, %v688_v58, %v692_v6  ;;  %v6921_v24 = vld [vmem:[%s11547_s0 + $0x88] sm:$0xf] }
  0x50   :  { %12272 = vst [vmem:[#allocation50_spill] sm:$0xff] %v6904_v29  ;;  %v1003_v20 = vunpack.c.l.b16 %v683_v12  ;;  %v869_v41 = vor.u32 %v868_v11, %v865_v19  ;;  %1176 = vmatpush.bf16.xpose.msra.mxu1 %v6909_v51  ;;  %v1004_v50 = vunpack.c.l.b16 %v693_v48  ;;  %v879_v3 = vor.u32 %v878_v40, %v874_v54 }
  0x51   :  { %12273 = vst [vmem:[#allocation51_spill] sm:$0xff] %v6909_v51  ;;  %v11676_v4 = vshll.u32 %v6868_v23, 16  ;;  %v11675_v43 = vshll.u32 %v6883_v57, 16  ;;  %v11677_v34 = vshrl.u32 %v6883_v57, 16  ;;  %v11678_v15 = vshll.u32 %v6904_v29, 16 }
  0x52   :  { %v870_v28 = vrot.slane %v869_v41, 4  ;;  %12274 = vst [vmem:[#allocation52_spill] sm:$0xff] %v6921_v24  ;;  %v11686_v6 = vshrl.u32 %v6893_v45, 16  ;;  %v1047_v19 = vpack.c.b16 %v1004_v50, %v1003_v20  ;;  %v880_v58 = vrot.slane %v879_v3, 4  ;;  %v6931_v41 = vld [vmem:[%s11547_s0 + $0x114] sm:$0xf] }
  0x53   :  { %v268_v11 = vrot.slane %v11676_v4, 5  ;;  %v274_v12 = vrot.slane %v11675_v43, 5  ;;  %12275 = vst [vmem:[#allocation53_spill] sm:$0xff] %v6931_v41  ;;  %v278_v48 = vrot.slane %v11677_v34, 4  ;;  %v284_v3 = vrot.slane %v11678_v15, 5 }
  0x54   :  { %v875_v40 = vsel %vm6353_vm3, %v870_v28, %v874_v54  ;;  %v6942_v50 = vld [vmem:[%s11547_s0 + $0x8c] sm:$0x3]  ;;  %v457_v20 = vrot.slane %v11686_v6, 4  ;;  %v6947_v43 = vsel %vm1059_vm2, %v1047_v19, 0  ;;  %v885_v28 = vsel %vm6353_vm3, %v880_v58, %v884_v8  ;;  %v6959_v19 = vld [vmem:[%s11547_s0 + $0x118] sm:$0xf] }
  0x55   :  { %12276 = vst [vmem:[#allocation54_spill] sm:$0xff] %v6942_v50  ;;  %v1019_v54 = vunpack.c.l.b16 %v875_v40  ;;  %v269_v4 = vor.u32 %v268_v11, %v265_v5  ;;  %1190 = vmatpush.bf16.xpose.msra.mxu2 %v6947_v43  ;;  %v1020_v34 = vunpack.c.l.b16 %v885_v28  ;;  %v279_v15 = vor.u32 %v278_v48, %v274_v12 }
  0x56   :  { %12277 = vst [vmem:[#allocation55_spill] sm:$0xff] %v6947_v43  ;;  %v11688_v51 = vshll.u32 %v6893_v45, 16  ;;  %v11687_v29 = vshll.u32 %v6921_v24, 16  ;;  %v11689_v23 = vshrl.u32 %v6921_v24, 16  ;;  %v11690_v6 = vshll.u32 %v6942_v50, 16 }
  0x57   :  { %v270_v57 = vrot.slane %v269_v4, 4  ;;  %12278 = vst [vmem:[#allocation56_spill] sm:$0xff] %v6959_v19  ;;  %v11693_v8 = vshrl.u32 %v6931_v41, 16  ;;  %v1055_v5 = vpack.c.b16 %v1020_v34, %v1019_v54  ;;  %v280_v58 = vrot.slane %v279_v15, 4  ;;  %v6969_v4 = vld [vmem:[%s11547_s0 + $0x11c] sm:$0x3] }
  0x58   :  { %v460_v11 = vrot.slane %v11688_v51, 5  ;;  %v466_v40 = vrot.slane %v11687_v29, 5  ;;  %12279 = vst [vmem:[#allocation57_spill] sm:$0xff] %v6969_v4  ;;  %v470_v28 = vrot.slane %v11689_v23, 4  ;;  %v476_v34 = vrot.slane %v11690_v6, 5 }
  0x59   :  { %v275_v48 = vsel %vm6353_vm3, %v270_v57, %v274_v12  ;;  %v649_v15 = vrot.slane %v11693_v8, 4  ;;  %v6982_v54 = vld [vmem:[%s11547_s0 + $0x174] sm:$0xf]  ;;  %v6985_v29 = vsel %vm1059_vm2, %v1055_v5, 0  ;;  %v285_v57 = vsel %vm6353_vm3, %v280_v58, %v284_v3  ;;  %v6997_v5 = vld [vmem:[%s11547_s0 + $0x178] sm:$0xf] }
  0x5a   :  { %12280 = vst [vmem:[#allocation58_spill] sm:$0xff] %v6982_v54  ;;  %v969_v12 = vunpack.c.l.b16 %v275_v48  ;;  %v461_v51 = vor.u32 %v460_v11, %v457_v20  ;;  %1204 = vmatpush.bf16.xpose.msra.mxu3 %v6985_v29  ;;  %v970_v23 = vunpack.c.l.b16 %v285_v57  ;;  %v471_v6 = vor.u32 %v470_v28, %v466_v40 }
  0x5b   :  { %12281 = vst [vmem:[#allocation59_spill] sm:$0xff] %v6985_v29  ;;  %v11700_v43 = vshll.u32 %v6931_v41, 16  ;;  %v11699_v8 = vshll.u32 %v6959_v19, 16  ;;  %v11701_v24 = vshrl.u32 %v6959_v19, 16  ;;  %v11702_v45 = vshll.u32 %v6969_v4, 16 }
  0x5c   :  { %v462_v50 = vrot.slane %v461_v51, 4  ;;  %12282 = vst [vmem:[#allocation60_spill] sm:$0xff] %v6997_v5  ;;  %v11705_v3 = vshrl.u32 %v6982_v54, 16  ;;  %v1030_v20 = vpack.c.b16 %v970_v23, %v969_v12  ;;  %v472_v58 = vrot.slane %v471_v6, 4  ;;  %v7007_v51 = vld [vmem:[%s11547_s0 + $0x17c] sm:$0x3] }
  0x5d   :  { %v652_v11 = vrot.slane %v11700_v43, 5  ;;  %v658_v48 = vrot.slane %v11699_v8, 5  ;;  %12283 = vst [vmem:[#allocation61_spill] sm:$0xff] %v7007_v51  ;;  %v662_v57 = vrot.slane %v11701_v24, 4  ;;  %v668_v23 = vrot.slane %v11702_v45, 5 }
  0x5e   :  { %v467_v28 = vsel %vm6353_vm3, %v462_v50, %v466_v40  ;;  %v841_v6 = vrot.slane %v11705_v3, 4  ;;  %v7020_v12 = vld [vmem:[%s11547_s0 + $0x18] sm:$0xf]  ;;  %v7023_v8 = vsel %vm1059_vm2, %v1030_v20, 0  ;;  %v477_v50 = vsel %vm6353_vm3, %v472_v58, %v476_v34  ;;  %v7035_v20 = vld [vmem:[%s11547_s0 + $0x1c] sm:$0xf] }
  0x5f   :  { %12284 = vst [vmem:[#allocation62_spill] sm:$0xff] %v7020_v12  ;;  %v985_v40 = vunpack.c.l.b16 %v467_v28  ;;  %v653_v43 = vor.u32 %v652_v11, %v649_v15  ;;  %1163 = vmatpush.bf16.xpose.msra.mxu0 %v7023_v8  ;;  %v986_v24 = vunpack.c.l.b16 %v477_v50  ;;  %v663_v45 = vor.u32 %v662_v57, %v658_v48 }
  0x60   :  { %12285 = vst [vmem:[#allocation63_spill] sm:$0xff] %v7023_v8  ;;  %v11712_v29 = vshll.u32 %v6982_v54, 16  ;;  %v11711_v3 = vshll.u32 %v6997_v5, 16  ;;  %v11713_v19 = vshrl.u32 %v6997_v5, 16  ;;  %v11714_v41 = vshll.u32 %v7007_v51, 16 }
  0x61   :  { %v654_v4 = vrot.slane %v653_v43, 4  ;;  %12286 = vst [vmem:[#allocation64_spill] sm:$0xff] %v7035_v20  ;;  %v11722_v34 = vshrl.u32 %v7020_v12, 16  ;;  %v1038_v15 = vpack.c.b16 %v986_v24, %v985_v40  ;;  %v664_v58 = vrot.slane %v663_v45, 4  ;;  %v7045_v43 = vld [vmem:[%s11547_s0 + $0x78] sm:$0xf] }
  0x62   :  { %v844_v11 = vrot.slane %v11712_v29, 5  ;;  %v850_v28 = vrot.slane %v11711_v3, 5  ;;  %12287 = vst [vmem:[#allocation65_spill] sm:$0xff] %v7045_v43  ;;  %v854_v50 = vrot.slane %v11713_v19, 4  ;;  %v860_v45 = vrot.slane %v11714_v41, 5 }
  0x63   :  { %v659_v57 = vsel %vm6353_vm3, %v654_v4, %v658_v48  ;;  %v7056_v24 = vld [vmem:[%s11547_s0 + $0x20] sm:$0x3]  ;;  %v241_v40 = vrot.slane %v11722_v34, 4  ;;  %v7061_v3 = vsel %vm1059_vm2, %v1038_v15, 0  ;;  %v669_v4 = vsel %vm6353_vm3, %v664_v58, %v668_v23  ;;  %v7073_v15 = vld [vmem:[%s11547_s0 + $0x7c] sm:$0xf] }
  0x64   :  { %12288 = vst [vmem:[#allocation66_spill] sm:$0xff] %v7056_v24  ;;  %v1001_v48 = vunpack.c.l.b16 %v659_v57  ;;  %v845_v29 = vor.u32 %v844_v11, %v841_v6  ;;  %1177 = vmatpush.bf16.xpose.msra.mxu1 %v7061_v3  ;;  %v1002_v19 = vunpack.c.l.b16 %v669_v4  ;;  %v855_v41 = vor.u32 %v854_v50, %v850_v28 }
  0x65   :  { %12289 = vst [vmem:[#allocation67_spill] sm:$0xff] %v7061_v3  ;;  %v11724_v8 = vshll.u32 %v7020_v12, 16  ;;  %v11723_v51 = vshll.u32 %v7035_v20, 16  ;;  %v11725_v54 = vshrl.u32 %v7035_v20, 16  ;;  %v11726_v34 = vshll.u32 %v7056_v24, 16 }
  0x66   :  { %v846_v5 = vrot.slane %v845_v29, 4  ;;  %12290 = vst [vmem:[#allocation68_spill] sm:$0xff] %v7073_v15  ;;  %v11734_v23 = vshrl.u32 %v7045_v43, 16  ;;  %v1046_v6 = vpack.c.b16 %v1002_v19, %v1001_v48  ;;  %v856_v58 = vrot.slane %v855_v41, 4  ;;  %v7083_v29 = vld [vmem:[%s11547_s0 + $0x108] sm:$0xf] }
  0x67   :  { %v244_v11 = vrot.slane %v11724_v8, 5  ;;  %v250_v57 = vrot.slane %v11723_v51, 5  ;;  %12291 = vst [vmem:[#allocation69_spill] sm:$0xff] %v7083_v29  ;;  %v254_v4 = vrot.slane %v11725_v54, 4  ;;  %v260_v41 = vrot.slane %v11726_v34, 5 }
  0x68   :  { %v851_v50 = vsel %vm6353_vm3, %v846_v5, %v850_v28  ;;  %v7094_v19 = vld [vmem:[%s11547_s0 + $0x80] sm:$0x3]  ;;  %v433_v48 = vrot.slane %v11734_v23, 4  ;;  %v7099_v51 = vsel %vm1059_vm2, %v1046_v6, 0  ;;  %v861_v5 = vsel %vm6353_vm3, %v856_v58, %v860_v45  ;;  %v7111_v6 = vld [vmem:[%s11547_s0 + $0x10c] sm:$0xf] }
  0x69   :  { %12292 = vst [vmem:[#allocation70_spill] sm:$0xff] %v7094_v19  ;;  %v1017_v28 = vunpack.c.l.b16 %v851_v50  ;;  %v245_v8 = vor.u32 %v244_v11, %v241_v40  ;;  %1191 = vmatpush.bf16.xpose.msra.mxu2 %v7099_v51  ;;  %v1018_v54 = vunpack.c.l.b16 %v861_v5  ;;  %v255_v34 = vor.u32 %v254_v4, %v250_v57 }
  0x6a   :  { %12293 = vst [vmem:[#allocation71_spill] sm:$0xff] %v7099_v51  ;;  %v11736_v3 = vshll.u32 %v7045_v43, 16  ;;  %v11735_v24 = vshll.u32 %v7073_v15, 16  ;;  %v11737_v12 = vshrl.u32 %v7073_v15, 16  ;;  %v11738_v23 = vshll.u32 %v7094_v19, 16 }
  0x6b   :  { %v246_v20 = vrot.slane %v245_v8, 4  ;;  %12294 = vst [vmem:[#allocation72_spill] sm:$0xff] %v7111_v6  ;;  %v11741_v45 = vshrl.u32 %v7083_v29, 16  ;;  %v1054_v40 = vpack.c.b16 %v1018_v54, %v1017_v28  ;;  %v256_v58 = vrot.slane %v255_v34, 4  ;;  %v7121_v8 = vld [vmem:[%s11547_s0 + $0x110] sm:$0x3] }
  0x6c   :  { %v436_v11 = vrot.slane %v11736_v3, 5  ;;  %v442_v50 = vrot.slane %v11735_v24, 5  ;;  %12295 = vst [vmem:[#allocation73_spill] sm:$0xff] %v7121_v8  ;;  %v446_v5 = vrot.slane %v11737_v12, 4  ;;  %v452_v54 = vrot.slane %v11738_v23, 5 }
  0x6d   :  { %v251_v4 = vsel %vm6353_vm3, %v246_v20, %v250_v57  ;;  %v625_v34 = vrot.slane %v11741_v45, 4  ;;  %v7134_v28 = vld [vmem:[%s11547_s0 + $0x168] sm:$0xf]  ;;  %v7137_v24 = vsel %vm1059_vm2, %v1054_v40, 0  ;;  %v261_v20 = vsel %vm6353_vm3, %v256_v58, %v260_v41  ;;  %v7149_v40 = vld [vmem:[%s11547_s0 + $0x16c] sm:$0xf] }
  0x6e   :  { %12296 = vst [vmem:[#allocation74_spill] sm:$0xff] %v7134_v28  ;;  %v967_v57 = vunpack.c.l.b16 %v251_v4  ;;  %v437_v3 = vor.u32 %v436_v11, %v433_v48  ;;  %1205 = vmatpush.bf16.xpose.msra.mxu3 %v7137_v24  ;;  %v968_v12 = vunpack.c.l.b16 %v261_v20  ;;  %v447_v23 = vor.u32 %v446_v5, %v442_v50 }
  0x6f   :  { %12297 = vst [vmem:[#allocation75_spill] sm:$0xff] %v7137_v24  ;;  %v11748_v51 = vshll.u32 %v7083_v29, 16  ;;  %v11747_v45 = vshll.u32 %v7111_v6, 16  ;;  %v11749_v15 = vshrl.u32 %v7111_v6, 16  ;;  %v11750_v43 = vshll.u32 %v7121_v8, 16 }
  0x70   :  { %v438_v19 = vrot.slane %v437_v3, 4  ;;  %12298 = vst [vmem:[#allocation76_spill] sm:$0xff] %v7149_v40  ;;  %v11753_v41 = vshrl.u32 %v7134_v28, 16  ;;  %v1029_v48 = vpack.c.b16 %v968_v12, %v967_v57  ;;  %v448_v58 = vrot.slane %v447_v23, 4  ;;  %v7159_v3 = vld [vmem:[%s11547_s0 + $0x170] sm:$0x3] }
  0x71   :  { %v628_v11 = vrot.slane %v11748_v51, 5  ;;  %v634_v4 = vrot.slane %v11747_v45, 5  ;;  %12299 = vst [vmem:[#allocation77_spill] sm:$0xff] %v7159_v3  ;;  %v638_v20 = vrot.slane %v11749_v15, 4  ;;  %v644_v12 = vrot.slane %v11750_v43, 5 }
  0x72   :  { %v443_v5 = vsel %vm6353_vm3, %v438_v19, %v442_v50  ;;  %v817_v23 = vrot.slane %v11753_v41, 4  ;;  %v7172_v57 = vld [vmem:[%s11547_s0 + $0xc] sm:$0xf]  ;;  %v7175_v45 = vsel %vm1059_vm2, %v1029_v48, 0  ;;  %v453_v19 = vsel %vm6353_vm3, %v448_v58, %v452_v54  ;;  %v7187_v48 = vld [vmem:[%s11547_s0 + $0x10] sm:$0xf] }
  0x73   :  { %12300 = vst [vmem:[#allocation78_spill] sm:$0xff] %v7172_v57  ;;  %v983_v50 = vunpack.c.l.b16 %v443_v5  ;;  %v629_v51 = vor.u32 %v628_v11, %v625_v34  ;;  %1164 = vmatpush.bf16.xpose.msra.mxu0 %v7175_v45  ;;  %v984_v15 = vunpack.c.l.b16 %v453_v19  ;;  %v639_v43 = vor.u32 %v638_v20, %v634_v4 }
  0x74   :  { %12301 = vst [vmem:[#allocation79_spill] sm:$0xff] %v7175_v45  ;;  %v11760_v24 = vshll.u32 %v7134_v28, 16  ;;  %v11759_v41 = vshll.u32 %v7149_v40, 16  ;;  %v11761_v6 = vshrl.u32 %v7149_v40, 16  ;;  %v11762_v29 = vshll.u32 %v7159_v3, 16 }
  0x75   :  { %v630_v8 = vrot.slane %v629_v51, 4  ;;  %12302 = vst [vmem:[#allocation80_spill] sm:$0xff] %v7187_v48  ;;  %v11770_v54 = vshrl.u32 %v7172_v57, 16  ;;  %v1037_v34 = vpack.c.b16 %v984_v15, %v983_v50  ;;  %v640_v58 = vrot.slane %v639_v43, 4  ;;  %v7197_v51 = vld [vmem:[%s11547_s0 + $0x6c] sm:$0xf] }
  0x76   :  { %v820_v11 = vrot.slane %v11760_v24, 5  ;;  %v826_v5 = vrot.slane %v11759_v41, 5  ;;  %12303 = vst [vmem:[#allocation81_spill] sm:$0xff] %v7197_v51  ;;  %v830_v19 = vrot.slane %v11761_v6, 4  ;;  %v836_v43 = vrot.slane %v11762_v29, 5 }
  0x77   :  { %v635_v20 = vsel %vm6353_vm3, %v630_v8, %v634_v4  ;;  %v7208_v15 = vld [vmem:[%s11547_s0 + $0x14] sm:$0x3]  ;;  %v217_v50 = vrot.slane %v11770_v54, 4  ;;  %v7213_v41 = vsel %vm1059_vm2, %v1037_v34, 0  ;;  %v645_v8 = vsel %vm6353_vm3, %v640_v58, %v644_v12  ;;  %v7225_v34 = vld [vmem:[%s11547_s0 + $0x70] sm:$0xf] }
  0x78   :  { %12304 = vst [vmem:[#allocation82_spill] sm:$0xff] %v7208_v15  ;;  %v999_v4 = vunpack.c.l.b16 %v635_v20  ;;  %v821_v24 = vor.u32 %v820_v11, %v817_v23  ;;  %1178 = vmatpush.bf16.xpose.msra.mxu1 %v7213_v41  ;;  %v1000_v6 = vunpack.c.l.b16 %v645_v8  ;;  %v831_v29 = vor.u32 %v830_v19, %v826_v5 }
  0x79   :  { %12305 = vst [vmem:[#allocation83_spill] sm:$0xff] %v7213_v41  ;;  %v11772_v45 = vshll.u32 %v7172_v57, 16  ;;  %v11771_v3 = vshll.u32 %v7187_v48, 16  ;;  %v11773_v28 = vshrl.u32 %v7187_v48, 16  ;;  %v11774_v54 = vshll.u32 %v7208_v15, 16 }
  0x7a   :  { %v822_v40 = vrot.slane %v821_v24, 4  ;;  %12306 = vst [vmem:[#allocation84_spill] sm:$0xff] %v7225_v34  ;;  %v11782_v12 = vshrl.u32 %v7197_v51, 16  ;;  %v1045_v23 = vpack.c.b16 %v1000_v6, %v999_v4  ;;  %v832_v58 = vrot.slane %v831_v29, 4  ;;  %v7235_v24 = vld [vmem:[%s11547_s0 + $0xfc] sm:$0xf] }
  0x7b   :  { %v220_v11 = vrot.slane %v11772_v45, 5  ;;  %v226_v20 = vrot.slane %v11771_v3, 5  ;;  %12307 = vst [vmem:[#allocation85_spill] sm:$0xff] %v7235_v24  ;;  %v230_v8 = vrot.slane %v11773_v28, 4  ;;  %v236_v29 = vrot.slane %v11774_v54, 5 }
  0x7c   :  { %v827_v19 = vsel %vm6353_vm3, %v822_v40, %v826_v5  ;;  %v7246_v6 = vld [vmem:[%s11547_s0 + $0x74] sm:$0x3]  ;;  %v409_v4 = vrot.slane %v11782_v12, 4  ;;  %v7251_v3 = vsel %vm1059_vm2, %v1045_v23, 0  ;;  %v837_v40 = vsel %vm6353_vm3, %v832_v58, %v836_v43  ;;  %v7263_v23 = vld [vmem:[%s11547_s0 + $0x100] sm:$0xf] }
  0x7d   :  { %12308 = vst [vmem:[#allocation86_spill] sm:$0xff] %v7246_v6  ;;  %v1015_v5 = vunpack.c.l.b16 %v827_v19  ;;  %v221_v45 = vor.u32 %v220_v11, %v217_v50  ;;  %1192 = vmatpush.bf16.xpose.msra.mxu2 %v7251_v3  ;;  %v1016_v28 = vunpack.c.l.b16 %v837_v40  ;;  %v231_v54 = vor.u32 %v230_v8, %v226_v20 }
  0x7e   :  { %12309 = vst [vmem:[#allocation87_spill] sm:$0xff] %v7251_v3  ;;  %v11784_v41 = vshll.u32 %v7197_v51, 16  ;;  %v11783_v15 = vshll.u32 %v7225_v34, 16  ;;  %v11785_v57 = vshrl.u32 %v7225_v34, 16  ;;  %v11786_v12 = vshll.u32 %v7246_v6, 16 }
  0x7f   :  { %v222_v48 = vrot.slane %v221_v45, 4  ;;  %12310 = vst [vmem:[#allocation88_spill] sm:$0xff] %v7263_v23  ;;  %v11789_v43 = vshrl.u32 %v7235_v24, 16  ;;  %v1053_v50 = vpack.c.b16 %v1016_v28, %v1015_v5  ;;  %v232_v58 = vrot.slane %v231_v54, 4  ;;  %v7273_v45 = vld [vmem:[%s11547_s0 + $0x104] sm:$0x3] }
  0x80   :  { %v412_v11 = vrot.slane %v11784_v41, 5  ;;  %v418_v19 = vrot.slane %v11783_v15, 5  ;;  %12311 = vst [vmem:[#allocation89_spill] sm:$0xff] %v7273_v45  ;;  %v422_v40 = vrot.slane %v11785_v57, 4  ;;  %v428_v28 = vrot.slane %v11786_v12, 5 }
  0x81   :  { %v227_v8 = vsel %vm6353_vm3, %v222_v48, %v226_v20  ;;  %v601_v54 = vrot.slane %v11789_v43, 4  ;;  %v7286_v5 = vld [vmem:[%s11547_s0 + $0x15c] sm:$0xf]  ;;  %v7289_v15 = vsel %vm1059_vm2, %v1053_v50, 0  ;;  %v237_v48 = vsel %vm6353_vm3, %v232_v58, %v236_v29  ;;  %v7301_v50 = vld [vmem:[%s11547_s0 + $0x160] sm:$0xf] }
  0x82   :  { %12312 = vst [vmem:[#allocation90_spill] sm:$0xff] %v7286_v5  ;;  %v965_v20 = vunpack.c.l.b16 %v227_v8  ;;  %v413_v41 = vor.u32 %v412_v11, %v409_v4  ;;  %1206 = vmatpush.bf16.xpose.msra.mxu3 %v7289_v15  ;;  %v966_v57 = vunpack.c.l.b16 %v237_v48  ;;  %v423_v12 = vor.u32 %v422_v40, %v418_v19 }
  0x83   :  { %12313 = vst [vmem:[#allocation91_spill] sm:$0xff] %v7289_v15  ;;  %v11796_v3 = vshll.u32 %v7235_v24, 16  ;;  %v11795_v43 = vshll.u32 %v7263_v23, 16  ;;  %v11797_v34 = vshrl.u32 %v7263_v23, 16  ;;  %v11798_v51 = vshll.u32 %v7273_v45, 16 }
  0x84   :  { %v414_v6 = vrot.slane %v413_v41, 4  ;;  %12314 = vst [vmem:[#allocation92_spill] sm:$0xff] %v7301_v50  ;;  %v11801_v29 = vshrl.u32 %v7286_v5, 16  ;;  %v1028_v4 = vpack.c.b16 %v966_v57, %v965_v20  ;;  %v424_v58 = vrot.slane %v423_v12, 4  ;;  %v7311_v41 = vld [vmem:[%s11547_s0 + $0x164] sm:$0x3] }
  0x85   :  { %v604_v11 = vrot.slane %v11796_v3, 5  ;;  %v610_v8 = vrot.slane %v11795_v43, 5  ;;  %12315 = vst [vmem:[#allocation93_spill] sm:$0xff] %v7311_v41  ;;  %v614_v48 = vrot.slane %v11797_v34, 4  ;;  %v620_v57 = vrot.slane %v11798_v51, 5 }
  0x86   :  { %v419_v40 = vsel %vm6353_vm3, %v414_v6, %v418_v19  ;;  %v793_v12 = vrot.slane %v11801_v29, 4  ;;  %v7324_v20 = vld [vmem:[%s11547_s0] sm:$0xf]  ;;  %v7327_v43 = vsel %vm1059_vm2, %v1028_v4, 0  ;;  %v429_v6 = vsel %vm6353_vm3, %v424_v58, %v428_v28  ;;  %v7339_v4 = vld [vmem:[%s11547_s0 + $0x4] sm:$0xf] }
  0x87   :  { %12316 = vst [vmem:[#allocation94_spill] sm:$0xff] %v7324_v20  ;;  %v981_v19 = vunpack.c.l.b16 %v419_v40  ;;  %v605_v3 = vor.u32 %v604_v11, %v601_v54  ;;  %1165 = vmatpush.bf16.xpose.msra.mxu0 %v7327_v43  ;;  %v982_v34 = vunpack.c.l.b16 %v429_v6  ;;  %v615_v51 = vor.u32 %v614_v48, %v610_v8 }
  0x88   :  { %12317 = vst [vmem:[#allocation95_spill] sm:$0xff] %v7327_v43  ;;  %v11808_v15 = vshll.u32 %v7286_v5, 16  ;;  %v11807_v29 = vshll.u32 %v7301_v50, 16  ;;  %v11809_v23 = vshrl.u32 %v7301_v50, 16  ;;  %v11810_v24 = vshll.u32 %v7311_v41, 16 }
  0x89   :  { %v606_v45 = vrot.slane %v605_v3, 4  ;;  %12318 = vst [vmem:[#allocation96_spill] sm:$0xff] %v7339_v4  ;;  %v11817_v28 = vshrl.u32 %v7324_v20, 16  ;;  %v1036_v54 = vpack.c.b16 %v982_v34, %v981_v19  ;;  %v616_v58 = vrot.slane %v615_v51, 4  ;;  %v7349_v3 = vld [vmem:[%s11547_s0 + $0x60] sm:$0xf] }
  0x8a   :  { %v796_v11 = vrot.slane %v11808_v15, 5  ;;  %v802_v40 = vrot.slane %v11807_v29, 5  ;;  %12319 = vst [vmem:[#allocation97_spill] sm:$0xff] %v7349_v3  ;;  %v806_v6 = vrot.slane %v11809_v23, 4  ;;  %v812_v51 = vrot.slane %v11810_v24, 5 }
  0x8b   :  { %v611_v48 = vsel %vm6353_vm3, %v606_v45, %v610_v8  ;;  %v7360_v34 = vld [vmem:[%s11547_s0 + $0x8] sm:$0x3]  ;;  %v193_v19 = vrot.slane %v11817_v28, 4  ;;  %v7365_v29 = vsel %vm1059_vm2, %v1036_v54, 0  ;;  %v621_v45 = vsel %vm6353_vm3, %v616_v58, %v620_v57  ;;  %v7377_v54 = vld [vmem:[%s11547_s0 + $0x64] sm:$0xf] }
  0x8c   :  { %12320 = vst [vmem:[#allocation98_spill] sm:$0xff] %v7360_v34  ;;  %v997_v8 = vunpack.c.l.b16 %v611_v48  ;;  %v797_v15 = vor.u32 %v796_v11, %v793_v12  ;;  %1179 = vmatpush.bf16.xpose.msra.mxu1 %v7365_v29  ;;  %v998_v23 = vunpack.c.l.b16 %v621_v45  ;;  %v807_v24 = vor.u32 %v806_v6, %v802_v40 }
  0x8d   :  { %12321 = vst [vmem:[#allocation99_spill] sm:$0xff] %v7365_v29  ;;  %v11819_v43 = vshll.u32 %v7324_v20, 16  ;;  %v11818_v41 = vshll.u32 %v7339_v4, 16  ;;  %v11820_v5 = vshrl.u32 %v7339_v4, 16  ;;  %v11821_v28 = vshll.u32 %v7360_v34, 16 }
  0x8e   :  { %v798_v50 = vrot.slane %v797_v15, 4  ;;  %12322 = vst [vmem:[#allocation100_spill] sm:$0xff] %v7377_v54  ;;  %v11829_v57 = vshrl.u32 %v7349_v3, 16  ;;  %v1044_v12 = vpack.c.b16 %v998_v23, %v997_v8  ;;  %v808_v58 = vrot.slane %v807_v24, 4  ;;  %v7387_v15 = vld [vmem:[%s11547_s0 + $0xf0] sm:$0xf] }
  0x8f   :  { %v196_v11 = vrot.slane %v11819_v43, 5  ;;  %v202_v48 = vrot.slane %v11818_v41, 5  ;;  %12323 = vst [vmem:[#allocation101_spill] sm:$0xff] %v7387_v15  ;;  %v206_v45 = vrot.slane %v11820_v5, 4  ;;  %v212_v24 = vrot.slane %v11821_v28, 5 }
  0x90   :  { %v803_v6 = vsel %vm6353_vm3, %v798_v50, %v802_v40  ;;  %v7398_v23 = vld [vmem:[%s11547_s0 + $0x68] sm:$0x3]  ;;  %v385_v8 = vrot.slane %v11829_v57, 4  ;;  %v7403_v41 = vsel %vm1059_vm2, %v1044_v12, 0  ;;  %v813_v50 = vsel %vm6353_vm3, %v808_v58, %v812_v51  ;;  %v7415_v12 = vld [vmem:[%s11547_s0 + $0xf4] sm:$0xf] }
  0x91   :  { %12324 = vst [vmem:[#allocation102_spill] sm:$0xff] %v7403_v41  ;;  %v1013_v40 = vunpack.c.l.b16 %v803_v6  ;;  %v197_v43 = vor.u32 %v196_v11, %v193_v19  ;;  %1193 = vmatpush.bf16.xpose.msra.mxu2 %v7403_v41  ;;  %v1014_v5 = vunpack.c.l.b16 %v813_v50  ;;  %v207_v28 = vor.u32 %v206_v45, %v202_v48 }
  0x92   :  { %v11831_v29 = vshll.u32 %v7349_v3, 16  ;;  %v11830_v34 = vshll.u32 %v7377_v54, 16  ;;  %v11832_v20 = vshrl.u32 %v7377_v54, 16  ;;  %v11833_v57 = vshll.u32 %v7398_v23, 16 }
  0x93   :  { %v198_v4 = vrot.slane %v197_v43, 4  ;;  %v11835_v51 = vshrl.u32 %v7387_v15, 16  ;;  %v1052_v19 = vpack.c.b16 %v1014_v5, %v1013_v40  ;;  %v208_v58 = vrot.slane %v207_v28, 4  ;;  %v7425_v43 = vld [vmem:[%s11547_s0 + $0xf8] sm:$0x3] }
  0x94   :  { %v388_v11 = vrot.slane %v11831_v29, 5  ;;  %v394_v6 = vrot.slane %v11830_v34, 5  ;;  %v398_v50 = vrot.slane %v11832_v20, 4  ;;  %v404_v5 = vrot.slane %v11833_v57, 5  ;;  %v7438_v40 = vld [vmem:[%s11547_s0 + $0x150] sm:$0xf] }
  0x95   :  { %v203_v45 = vsel %vm6353_vm3, %v198_v4, %v202_v48  ;;  %v577_v28 = vrot.slane %v11835_v51, 4  ;;  %v7441_v34 = vsel %vm1059_vm2, %v1052_v19, 0  ;;  %v213_v4 = vsel %vm6353_vm3, %v208_v58, %v212_v24  ;;  %v7458_v58 = vld [vmem:[%s11547_s0 + $0x154] sm:$0xf] }
  0x96   :  { %12325 = vst [vmem:[#allocation103_spill] sm:$0xff] %v7441_v34  ;;  %v963_v48 = vunpack.c.l.b16 %v203_v45  ;;  %v389_v29 = vor.u32 %v388_v11, %v385_v8  ;;  %1207 = vmatpush.bf16.xpose.msra.mxu3 %v7441_v34  ;;  %v964_v20 = vunpack.c.l.b16 %v213_v4  ;;  %v399_v57 = vor.u32 %v398_v50, %v394_v6  ;;  %v7472_v45 = vld [vmem:[%s11547_s0 + $0x158] sm:$0x3] }
  0x97   :  { %v11848_v41 = vshll.u32 %v7387_v15, 16  ;;  %v11845_v51 = vshll.u32 %v7415_v12, 16  ;;  %v11847_v3 = vshrl.u32 %v7415_v12, 16  ;;  %v11846_v52 = vshll.u32 %v7425_v43, 16 }
  0x98   :  { %v390_v54 = vrot.slane %v389_v29, 4  ;;  %v11853_v19 = vshrl.u32 %v7438_v40, 16  ;;  %v1027_v49 = vpack.c.b16 %v964_v20, %v963_v48  ;;  %v400_v30 = vrot.slane %v399_v57, 4  ;;  %v6011_v29 = vld [vmem:[%s11547_s0 + $0x54] sm:$0xff] }
  0x99   :  { %v580_v24 = vrot.slane %v11848_v41, 5  ;;  %v586_v8 = vrot.slane %v11845_v51, 5  ;;  %v590_v20 = vrot.slane %v11847_v3, 4  ;;  %v596_v57 = vrot.slane %v11846_v52, 5  ;;  %v6019_v51 = vld [vmem:[%s11547_s0 + $0xb4] sm:$0xff] }
  0x9a   :  { %v395_v11 = vsel %vm6353_vm3, %v390_v54, %v394_v6  ;;  %v769_v50 = vrot.slane %v11853_v19, 4  ;;  %v1064_v4 = vsel %vm1059_vm2, %v1027_v49, 0  ;;  %v405_v48 = vsel %vm6353_vm3, %v400_v30, %v404_v5 }
  0x9b   :  { %v979_v54 = vunpack.c.l.b16 %v395_v11  ;;  %v581_v6 = vor.u32 %v580_v24, %v577_v28  ;;  %1166 = vmatpush.bf16.xpose.msra.mxu0 %v1064_v4  ;;  %v980_v52 = vunpack.c.l.b16 %v405_v48  ;;  %v591_v3 = vor.u32 %v590_v20, %v586_v8 }
  0x9c   :  { %v11856_v41 = vshll.u32 %v7438_v40, 16  ;;  %v11854_v34 = vshll.u32 %v7458_v58, 16  ;;  %v11855_v19 = vshrl.u32 %v7458_v58, 16  ;;  %v11857_v49 = vshll.u32 %v7472_v45, 16 }
  0x9d   :  { %v582_v15 = vrot.slane %v581_v6, 4  ;;  %v7487_v30 = vsel %vm1059_vm2, %v6011_v29, 0  ;;  %v1035_v5 = vpack.c.b16 %v980_v52, %v979_v54  ;;  %v592_v28 = vrot.slane %v591_v3, 4  ;;  %v6010_v52 = vld [vmem:[%s11547_s0 + $0x48] sm:$0xff] }
  0x9e   :  { %12326 = vst [vmem:[#allocation104_spill] sm:$0xff] %v7487_v30  ;;  %v772_v24 = vrot.slane %v11856_v41, 5  ;;  %v778_v11 = vrot.slane %v11854_v34, 5  ;;  %v782_v4 = vrot.slane %v11855_v19, 4  ;;  %v7499_v48 = vsel %vm1059_vm2, %v6019_v51, 0 }
  0x9f   :  { %v587_v20 = vsel %vm6353_vm3, %v582_v15, %v586_v8  ;;  %12327 = vst [vmem:[#allocation105_spill] sm:$0xff] %v7499_v48  ;;  %v7505_v3 = vsel %vm1059_vm2, %v1035_v5, 0  ;;  %v597_v29 = vsel %vm6353_vm3, %v592_v28, %v596_v57  ;;  %v6031_v15 = vld [vmem:[%s11547_s0 + $0x144] sm:$0xff]  ;;  %v788_v34 = vrot.slane %v11857_v49, 5 }
  0xa0   :  { %12328 = vst [vmem:[#allocation106_spill] sm:$0xff] %v7505_v3  ;;  %v995_v54 = vunpack.c.l.b16 %v587_v20  ;;  %v773_v6 = vor.u32 %v772_v24, %v769_v50  ;;  %1180 = vmatpush.bf16.xpose.msra.mxu1 %v7505_v3  ;;  %v996_v51 = vunpack.c.l.b16 %v597_v29  ;;  %v783_v8 = vor.u32 %v782_v4, %v778_v11  ;;  %v6018_v50 = vld [vmem:[%s11547_s0 + $0xa8] sm:$0xff] }
  0xa1   :  { %v7517_v57 = vsel %vm1059_vm2, %v6010_v52, 0  ;;  %v7525_v24 = vsel %vm1059_vm2, %v6031_v15, 0  ;;  %v6039_v52 = vld [vmem:[%s11547_s0 + $0x1a4] sm:$0xff]  ;;  %v6045_v3 = vld [vmem:[%s11548_s1 + $0x8] sm:$0x30]  ;;  %vm1567_vm4 = vcmask 1042432  }
  0xa2   :  { %v774_v19 = vrot.slane %v773_v6, 4  ;;  %v1043_v5 = vpack.c.b16 %v996_v51, %v995_v54  ;;  %v784_v41 = vrot.slane %v783_v8, 4  ;;  %12329 = vst [vmem:[#allocation107_spill] sm:$0xff] %v7517_v57  ;;  %v6017_v8 = vld [vmem:[%s11547_s0 + $0x9c] sm:$0xff]  ;;  %vm1568_vm5 = vcmask 1046532  }
  0xa3   :  { %1479 = vmatpush.bf16.xpose.msrb.mxu0 %v7487_v30  ;;  %12330 = vst [vmem:[#allocation108_spill] sm:$0xff] %v7525_v24  ;;  %v5711_v21 = vrot.slane %v6081_v61, 9  ;;  %vm7731_vm6 = vmor %vm1567_vm4, %vm1568_vm5  ;;  %v7738_v61 = vld [vmem:[%s11547_s0 + $0x5c] sm:$0x3]  ;;  %vm2058_vm7 = vsmask.f32 2304 }
  0xa4   :  { %v779_v28 = vsel %vm6353_vm3, %v774_v19, %v778_v11  ;;  %v1112_v20 = vsel %vm1059_vm2, %v1043_v5, 0  ;;  %v789_v4 = vsel %vm6353_vm3, %v784_v41, %v788_v34  ;;  %v7536_v19 = vsel %vm1059_vm2, %v6018_v50, 0  ;;  %v6009_v11 = vld [vmem:[%s11547_s0 + $0x3c] sm:$0xff] }
  0xa5   :  { %v1011_v29 = vunpack.c.l.b16 %v779_v28  ;;  %1194 = vmatpush.bf16.xpose.msra.mxu2 %v1112_v20  ;;  %v1012_v54 = vunpack.c.l.b16 %v789_v4  ;;  %12331 = vst [vmem:[#allocation109_spill] sm:$0xff] %v7536_v19  ;;  %v6030_v41 = vld [vmem:[%s11547_s0 + $0x138] sm:$0xff]  ;;  %v7545_v34 = vsel %vm1059_vm2, %v6039_v52, 0  ;;  %v7553_v51 = vsel %vm1059_vm2, %v6009_v11, 0  ;;  %v6008_v20 = vld [vmem:[%s11547_s0 + $0x30] sm:$0xff]  ;;  %v6028_v11 = vld [vmem:[%s11547_s0 + $0x120] sm:$0xff] }
  0xa6   :  { %12332 = vst [vmem:[#allocation110_spill] sm:$0xff] %v7545_v34  ;;  %v7560_v5 = vsel %vm1059_vm2, %v6030_v41, 0  ;;  %v6038_v50 = vld [vmem:[%s11547_s0 + $0x198] sm:$0xff]  ;;  %v7568_v28 = vsel %vm1059_vm2, %v6017_v8, 0  ;;  %v6029_v4 = vld [vmem:[%s11547_s0 + $0x12c] sm:$0xff]  ;;  %v6036_v41 = vld [vmem:[%s11547_s0 + $0x180] sm:$0xff] }
  0xa7   :  { %v1051_v6 = vpack.c.b16 %v1012_v54, %v1011_v29  ;;  %12334 = vst [vmem:[#allocation112_spill] sm:$0xff] %v7553_v51  ;;  %v7577_v29 = vsel %vm1059_vm2, %v6038_v50, 0  ;;  %v6037_v52 = vld [vmem:[%s11547_s0 + $0x18c] sm:$0xff]  ;;  %v6007_v8 = vld [vmem:[%s11547_s0 + $0x24] sm:$0xff]  ;;  %v7603_v49 = vsel %vm1059_vm2, %v6029_v4, 0  ;;  %v6006_v4 = vld [vmem:[%s11547_s0 + $0x18] sm:$0xff] }
  0xa8   :  { %1493 = vmatpush.bf16.xpose.msrb.mxu1 %v7499_v48  ;;  %12335 = vst [vmem:[#allocation113_spill] sm:$0xff] %v7560_v5  ;;  %v6016_v54 = vld [vmem:[%s11547_s0 + $0x90] sm:$0xff]  ;;  %v6015_v50 = vld [vmem:[%s11547_s0 + $0x84] sm:$0xff]  ;;  %vm2059_vm8 = vsmask.f32 6416  ;;  %vm2805_vm10 = vcmask 1041408  }
  0xa9   :  { %v7548_v15 = vsel %vm1059_vm2, %v1051_v6, 0  ;;  %12336 = vst [vmem:[#allocation114_spill] sm:$0xff] %v7568_v28  ;;  %v7590_v6 = vsel %vm1059_vm2, %v6008_v20, 0  ;;  %v6027_v20 = vld [vmem:[%s11547_s0 + $0x114] sm:$0xff]  ;;  %vm8347_vm9 = vmor %vm2058_vm7, %vm2059_vm8  ;;  %vm2806_vm11 = vcmask 1045508   ;;  %vm5429_vm13 = vcmask 1043456  }
  0xaa   :  { %12333 = vst [vmem:[#allocation111_spill] sm:$0xff] %v7548_v15  ;;  %1208 = vmatpush.bf16.xpose.msra.mxu3 %v7548_v15  ;;  %v5562_v15 = vld [vmem:[%s11548_s1 + $0x8] sm:$0xf]  ;;  %vm9022_vm12 = vmor %vm2805_vm10, %vm2806_vm11 }
  0xab   :  { %1480 = vmatpush.bf16.xpose.msrb.mxu0 %v7517_v57  ;;  %12337 = vst [vmem:[#allocation115_spill] sm:$0xff] %v7577_v29  ;;  %v7648_v57 = vsel %vm1059_vm2, %v6028_v11, 0  ;;  %v7665_v11 = vsel %vm1059_vm2, %v6027_v20, 0 }
  0xac   :  { %12338 = vst [vmem:[#allocation116_spill] sm:$0xff] %v7590_v6 }
  0xad   :  { %1507 = vmatpush.bf16.xpose.msrb.mxu2 %v7525_v24  ;;  %12339 = vst [vmem:[#allocation117_spill] sm:$0xff] %v7603_v49  ;;  %v6033_v24 = vld [vmem:[%s11547_s0 + $0x15c] sm:$0xff] }
  0xae   :  { %12342 = vst [vmem:[#allocation120_spill] sm:$0xff] %v7648_v57 }
  0xaf   :  { %12346 = vst [vmem:[#allocation124_spill] sm:$0xff] %v7665_v11 }
  0xb0   :  { %1494 = vmatpush.bf16.xpose.msrb.mxu1 %v7536_v19  ;;  %v6005_v19 = vld [vmem:[%s11547_s0 + $0xc] sm:$0xff] }
  0xb1   :  { %v7685_v20 = vsel %vm1059_vm2, %v6005_v19, 0  ;;  %v7701_v19 = vsel %vm1059_vm2, %v6033_v24, 0  ;;  %v6080_v24 = vld [vmem:[%s11547_s0 + $0x1a8] sm:$0xf] }
  0xb2   :  { %1521 = vmatpush.bf16.xpose.msrb.mxu3 %v7545_v34  ;;  %v7635_v34 = vsel %vm1059_vm2, %v6016_v54, 0  ;;  %v7654_v54 = vsel %vm1059_vm2, %v6007_v8, 0  ;;  %v7671_v8 = vsel %vm1059_vm2, %v6006_v4, 0  ;;  %12352 = vst [vmem:[#allocation130_spill] sm:$0xff] %v7685_v20 }
  0xb3   :  { %1481 = vmatpush.bf16.xpose.msrb.mxu0 %v7553_v51  ;;  %v6026_v51 = vld [vmem:[%s11547_s0 + $0x108] sm:$0xff]  ;;  %12340 = vst [vmem:[#allocation118_spill] sm:$0xff] %v7635_v34 }
  0xb4   :  { %12344 = vst [vmem:[#allocation122_spill] sm:$0xff] %v7654_v54  ;;  %v7679_v30 = vsel %vm1059_vm2, %v6026_v51, 0  ;;  %v6078_v51 = vld [vmem:[%s11547_s0 + $0xb8] sm:$0xf] }
  0xb5   :  { %1508 = vmatpush.bf16.xpose.msrb.mxu2 %v7560_v5  ;;  %v6034_v5 = vld [vmem:[%s11547_s0 + $0x168] sm:$0xff]  ;;  %12348 = vst [vmem:[#allocation126_spill] sm:$0xff] %v7671_v8 }
  0xb6   :  { %12350 = vst [vmem:[#allocation128_spill] sm:$0xff] %v7679_v30 }
  0xb7   :  { %12355 = vst [vmem:[#allocation133_spill] sm:$0xff] %v7701_v19 }
  0xb8   :  { %1495 = vmatpush.bf16.xpose.msrb.mxu1 %v7568_v28  ;;  %v6014_v28 = vld [vmem:[%s11547_s0 + $0x78] sm:$0xff] }
  0xb9   :  { %v7676_v48 = vsel %vm1059_vm2, %v6014_v28, 0  ;;  %v6077_v28 = vld [vmem:[%s11547_s0 + $0x58] sm:$0xf] }
  0xba   :  { %1522 = vmatpush.bf16.xpose.msrb.mxu3 %v7577_v29  ;;  %v5563_v29 = vor.u32 %v6045_v3, %v5562_v15  ;;  %v6013_v3 = vld [vmem:[%s11547_s0 + $0x6c] sm:$0xff]  ;;  %v6025_v15 = vld [vmem:[%s11547_s0 + $0xfc] sm:$0xff]  ;;  %12349 = vst [vmem:[#allocation127_spill] sm:$0xff] %v7676_v48 }
  0xbb   :  { %1482 = vmatpush.bf16.xpose.msrb.mxu0 %v7590_v6  ;;  %v7645_v6 = vsel %vm1059_vm2, %v6037_v52, 0  ;;  %v7662_v52 = vsel %vm1059_vm2, %v6015_v50, 0  ;;  %v7682_v50 = vsel %vm1059_vm2, %v6034_v5, 0  ;;  %v7691_v4 = vsel %vm1059_vm2, %v6025_v15, 0  ;;  %v6012_v15 = vld [vmem:[%s11547_s0 + $0x60] sm:$0xff] }
  0xbc   :  { %5564 = vmatmul.msk.bf16.vlgmr.msra.gmra.mxu0 %vm1059_vm2, %v5563_v29  ;;  %12341 = vst [vmem:[#allocation119_spill] sm:$0xff] %v7645_v6  ;;  %5565 = vmatmul.msk.bf16.vlgmr.msra.gmra.mxu1 %vm1059_vm2, %v5563_v29  ;;  %v1677_v5 = vrot.slane %v6078_v51, 5  ;;  %v6079_v51 = vld [vmem:[%s11547_s0 + $0x148] sm:$0xf] }
  0xbd   :  { %1509 = vmatpush.bf16.xpose.msrb.mxu2 %v7603_v49  ;;  %v7651_v49 = vsel %vm1059_vm2, %v6036_v41, 0  ;;  %12345 = vst [vmem:[#allocation123_spill] sm:$0xff] %v7662_v52  ;;  %v7668_v41 = vsel %vm1059_vm2, %v6035_v26, 0  ;;  %5567 = vmatmul.msk.bf16.vlgmr.msra.gmra.mxu3 %vm1059_vm2, %v5563_v29  ;;  %v7688_v26 = vsel %vm1059_vm2, %v6013_v3, 0  ;;  %v6004_v3 = vld [vmem:[%s11547_s0] sm:$0xff] }
  0xbe   :  { %12343 = vst [vmem:[#allocation121_spill] sm:$0xff] %v7651_v49  ;;  %5566 = vmatmul.msk.bf16.vlgmr.msra.gmra.mxu2 %vm1059_vm2, %v5563_v29  ;;  %v1621_v29 = vrot.slane %v6077_v28, 5  ;;  %v6024_v28 = vld [vmem:[%s11547_s0 + $0xf0] sm:$0xff]  ;;  %v7723_v35 = vsel %vm1059_vm2, %v6004_v3, 0  ;;  %v1679_v39 = vrot.slane %v1677_v5, 4 }
  0xbf   :  { %12347 = vst [vmem:[#allocation125_spill] sm:$0xff] %v7668_v41  ;;  %v7729_v55 = vsel %vm1059_vm2, %v6024_v28, 0  ;;  %v6032_v3 = vld [vmem:[%s11547_s0 + $0x150] sm:$0xff] }
  0xc0   :  { %1496 = vmatpush.bf16.xpose.msrb.mxu1 %v7635_v34  ;;  %12351 = vst [vmem:[#allocation129_spill] sm:$0xff] %v7682_v50  ;;  %v1733_v34 = vrot.slane %v6079_v51, 5  ;;  %v1623_v33 = vrot.slane %v1621_v29, 4  ;;  %v7726_v51 = vsel %vm1059_vm2, %v6012_v15, 0  ;;  %v1622_v15 = vsel %vm7731_vm6, %v5711_v21, %v1621_v29  ;;  %v6083_v28 = vld [vmem:[%s11547_s0 + $0xb4] sm:$0xf] }
  0xc1   :  { %12353 = vst [vmem:[#allocation131_spill] sm:$0xff] %v7688_v26  ;;  %v5719_v59 = vrot.slane %v6083_v28, 9  ;;  %v1813_v22 = vunpack.c.l.b16 %v1622_v15  ;;  %v6085_v21 = vld [vmem:[%s11547_s0 + $0x144] sm:$0xf]  ;;  %v7762_v28 = vsel %vm1059_vm2, %v6032_v3, 0 }
  0xc2   :  { %12354 = vst [vmem:[#allocation132_spill] sm:$0xff] %v7691_v4  ;;  %1523 = vmatpush.bf16.xpose.msrb.mxu3 %v7645_v6  ;;  %v1789_v6 = vrot.slane %v6080_v24, 5  ;;  %v12357_v24 = vmov 0  ;;  %v5727_v29 = vrot.slane %v6085_v21, 9  ;;  %v1735_v17 = vrot.slane %v1733_v34, 4 }
  0xc3   :  { %1483 = vmatpush.bf16.xpose.msrb.mxu0 %v7654_v54  ;;  %12356 = vst [vmem:[#allocation134_spill] sm:$0xff] %v7726_v51  ;;  %v12358_v24 = vsel %vm7731_vm6, 4294967295, %v12357_v24  ;;  %v1624_v54 = vrot.slane %v7738_v61, 5  ;;  %v1678_v60 = vsel %vm7731_vm6, %v5719_v59, %v1677_v5  ;;  %v7774_v21 = vld [vmem:[%s11547_s0 + $0x14c] sm:$0x3] }
  0xc4   :  { %12359 = vst [vmem:[#allocation135_spill] sm:$0xff] %v12358_v24  ;;  %v1734_v15 = vsel %vm7731_vm6, %v5727_v29, %v1733_v34  ;;  %v7786_v34 = vld [vmem:[%s11547_s0 + $0x1ac] sm:$0x3] }
  0xc5   :  { %1510 = vmatpush.bf16.xpose.msrb.mxu2 %v7648_v57  ;;  %v1680_v57 = vrot.slane %v7753_v14, 5  ;;  %v1625_v31 = vsel %vm7731_vm6, %v1623_v33, %v1624_v54  ;;  %12360 = vst [vmem:[#allocation136_spill] sm:$0xff] %v7762_v28  ;;  %v1829_v33 = vunpack.c.l.b16 %v1678_v60  ;;  %v1845_v53 = vunpack.c.l.b16 %v1734_v15 }
  0xc6   :  { %v1814_v18 = vunpack.c.l.b16 %v1625_v31  ;;  %v1736_v31 = vrot.slane %v7774_v21, 5 }
  0xc7   :  { %v1681_v27 = vsel %vm7731_vm6, %v1679_v39, %v1680_v57  ;;  %v6087_v39 = vld [vmem:[%s11547_s0 + $0x1a4] sm:$0xf]  ;;  %v1791_v57 = vrot.slane %v1789_v6, 4 }
  0xc8   :  { %1497 = vmatpush.bf16.xpose.msrb.mxu1 %v7662_v52  ;;  %v1830_v54 = vunpack.c.l.b16 %v1681_v27  ;;  %v1870_v3 = vpack.c.b16 %v1814_v18, %v1813_v22  ;;  %v5735_v59 = vrot.slane %v6087_v39, 9  ;;  %v1737_v27 = vsel %vm7731_vm6, %v1735_v17, %v1736_v31  ;;  %v6089_v22 = vld [vmem:[%s11547_s0 + $0x4c] sm:$0xf]  ;;  %v5570_v17 = vld [vmem:[%s11548_s1] sm:$0xf] }
  0xc9   :  { %v1792_v18 = vrot.slane %v7786_v34, 5  ;;  %v1614_v5 = vrot.slane %v6089_v22, 5  ;;  %v1846_v15 = vunpack.c.l.b16 %v1737_v27  ;;  %v6090_v31 = vld [vmem:[%s11547_s0 + $0x48] sm:$0xf] }
  0xca   :  { %1524 = vmatpush.bf16.xpose.msrb.mxu3 %v7651_v49  ;;  %v1878_v60 = vpack.c.b16 %v1830_v54, %v1829_v33  ;;  %v7793_v29 = vsel %vm1059_vm2, %v1870_v3, 0  ;;  %v1790_v33 = vsel %vm7731_vm6, %v5735_v59, %v1789_v6  ;;  %v6044_v54 = vld [vmem:[%s11548_s1] sm:$0x30]  ;;  %v5710_v39 = vrot.slane %v6090_v31, 9  ;;  %v7820_v31 = vld [vmem:[%s11547_s0 + $0x50] sm:$0x3] }
  0xcb   :  { %12361 = vst [vmem:[#allocation137_spill] sm:$0xff] %v7793_v29  ;;  %1484 = vmatpush.bf16.xpose.msrb.mxu0 %v7671_v8  ;;  %v1793_v6 = vsel %vm7731_vm6, %v1791_v57, %v1792_v18  ;;  %v1861_v59 = vunpack.c.l.b16 %v1790_v33  ;;  %v7812_v27 = vor.u32 %v6044_v54, %v5570_v17  ;;  %v1886_v22 = vpack.c.b16 %v1846_v15, %v1845_v53  ;;  %v6092_v57 = vld [vmem:[%s11547_s0 + $0xa8] sm:$0xf]  ;;  %v6093_v53 = vld [vmem:[%s11547_s0 + $0xac] sm:$0xf] }
  0xcc   :  { %v7808_v3 = vsel %vm1059_vm2, %v1878_v60, 0  ;;  %v1862_v52 = vunpack.c.l.b16 %v1793_v6  ;;  %v1615_v49 = vsel %vm7731_vm6, %v5710_v39, %v1614_v5  ;;  %v1616_v46 = vrot.slane %v1614_v5, 4  ;;  %v7835_v17 = vld [vmem:[%s11547_s0 + $0xb0] sm:$0x3]  ;;  %v6095_v54 = vld [vmem:[%s11547_s0 + $0x138] sm:$0xf] }
  0xcd   :  { %12362 = vst [vmem:[#allocation138_spill] sm:$0xff] %v7808_v3  ;;  %1511 = vmatpush.bf16.xpose.msrb.mxu2 %v7665_v11  ;;  %v1617_v60 = vrot.slane %v7820_v31, 5  ;;  %v1811_v8 = vunpack.c.l.b16 %v1615_v49  ;;  %v5718_v18 = vrot.slane %v6092_v57, 9  ;;  %v1670_v15 = vrot.slane %v6093_v53, 5 }
  0xce   :  { %v7830_v5 = vsel %vm1059_vm2, %v1886_v22, 0  ;;  %v1894_v33 = vpack.c.b16 %v1862_v52, %v1861_v59  ;;  %v1673_v49 = vrot.slane %v7835_v17, 5  ;;  %v5726_v39 = vrot.slane %v6095_v54, 9  ;;  %v6096_v22 = vld [vmem:[%s11547_s0 + $0x13c] sm:$0xf] }
  0xcf   :  { %12363 = vst [vmem:[#allocation139_spill] sm:$0xff] %v7830_v5  ;;  %v1618_v6 = vsel %vm7731_vm6, %v1616_v46, %v1617_v60  ;;  %v1671_v52 = vsel %vm7731_vm6, %v5718_v18, %v1670_v15  ;;  %v1672_v59 = vrot.slane %v1670_v15, 4  ;;  %v1726_v57 = vrot.slane %v6096_v22, 5  ;;  %v7855_v54 = vld [vmem:[%s11547_s0 + $0x140] sm:$0x3] }
  0xd0   :  { %1498 = vmatpush.bf16.xpose.msrb.mxu1 %v7676_v48  ;;  %v7850_v53 = vsel %vm1059_vm2, %v1894_v33, 0  ;;  %v1812_v11 = vunpack.c.l.b16 %v1618_v6  ;;  %v1827_v37 = vunpack.c.l.b16 %v1671_v52  ;;  %12365 = vst [vmem:[#allocation141_spill] sm:$0xff] %v7855_v54  ;;  %v1729_v46 = vrot.slane %v7855_v54, 5  ;;  %v6098_v33 = vld [vmem:[%s11547_s0 + $0x198] sm:$0xf] }
  0xd1   :  { %12364 = vst [vmem:[#allocation140_spill] sm:$0xff] %v7850_v53  ;;  %v1674_v60 = vsel %vm7731_vm6, %v1672_v59, %v1673_v49  ;;  %v1727_v18 = vsel %vm7731_vm6, %v5726_v39, %v1726_v57  ;;  %v1728_v15 = vrot.slane %v1726_v57, 4  ;;  %v5734_v6 = vrot.slane %v6098_v33, 9  ;;  %v6099_v54 = vld [vmem:[%s11547_s0 + $0x19c] sm:$0xf] }
  0xd2   :  { %1525 = vmatpush.bf16.xpose.msrb.mxu3 %v7668_v41  ;;  %v1869_v52 = vpack.c.b16 %v1812_v11, %v1811_v8  ;;  %v1828_v22 = vunpack.c.l.b16 %v1674_v60  ;;  %v1843_v48 = vunpack.c.l.b16 %v1727_v18  ;;  %v1782_v41 = vrot.slane %v6099_v54, 5  ;;  %v7875_v39 = vld [vmem:[%s11547_s0 + $0x1a0] sm:$0x3]  ;;  %v6101_v11 = vld [vmem:[%s11547_s0 + $0x3c] sm:$0xf] }
  0xd3   :  { %1485 = vmatpush.bf16.xpose.msrb.mxu0 %v7685_v20  ;;  %v1730_v49 = vsel %vm7731_vm6, %v1728_v15, %v1729_v46  ;;  %12366 = vst [vmem:[#allocation142_spill] sm:$0xff] %v7875_v39  ;;  %v1785_v59 = vrot.slane %v7875_v39, 5  ;;  %v5709_v8 = vrot.slane %v6101_v11, 9  ;;  %v6102_v57 = vld [vmem:[%s11547_s0 + $0x40] sm:$0xf] }
  0xd4   :  { %v1607_v54 = vrot.slane %v6102_v57, 5  ;;  %v7886_v46 = vsel %vm1059_vm2, %v1869_v52, 0  ;;  %v1877_v60 = vpack.c.b16 %v1828_v22, %v1827_v37  ;;  %v1844_v18 = vunpack.c.l.b16 %v1730_v49  ;;  %v7898_v52 = vld [vmem:[%s11547_s0 + $0x44] sm:$0x3] }
  0xd5   :  { %1512 = vmatpush.bf16.xpose.msrb.mxu2 %v7679_v30  ;;  %12367 = vst [vmem:[#allocation143_spill] sm:$0xff] %v7886_v46  ;;  %v1783_v15 = vsel %vm7731_vm6, %v5734_v6, %v1782_v41  ;;  %v1784_v33 = vrot.slane %v1782_v41, 4  ;;  %v1610_v37 = vrot.slane %v7898_v52, 5  ;;  %v6104_v6 = vld [vmem:[%s11547_s0 + $0x9c] sm:$0xf] }
  0xd6   :  { %v1859_v20 = vunpack.c.l.b16 %v1783_v15  ;;  %v1608_v11 = vsel %vm7731_vm6, %v5709_v8, %v1607_v54  ;;  %v1609_v39 = vrot.slane %v1607_v54, 4  ;;  %v7893_v42 = vsel %vm1059_vm2, %v1877_v60, 0  ;;  %v7913_v54 = vld [vmem:[%s11547_s0 + $0xa4] sm:$0x3] }
  0xd7   :  { %12368 = vst [vmem:[#allocation144_spill] sm:$0xff] %v7893_v42  ;;  %v1885_v57 = vpack.c.b16 %v1844_v18, %v1843_v48  ;;  %v1809_v22 = vunpack.c.l.b16 %v1608_v11  ;;  %v1786_v41 = vsel %vm7731_vm6, %v1784_v33, %v1785_v59  ;;  %v5717_v49 = vrot.slane %v6104_v6, 9  ;;  %v6105_v48 = vld [vmem:[%s11547_s0 + $0xa0] sm:$0xf]  ;;  %v6107_v33 = vld [vmem:[%s11547_s0 + $0x12c] sm:$0xf] }
  0xd8   :  { %1499 = vmatpush.bf16.xpose.msrb.mxu1 %v7688_v26  ;;  %v1663_v8 = vrot.slane %v6105_v48, 5  ;;  %12369 = vst [vmem:[#allocation145_spill] sm:$0xff] %v7913_v54  ;;  %v1666_v60 = vrot.slane %v7913_v54, 5  ;;  %v1860_v59 = vunpack.c.l.b16 %v1786_v41  ;;  %v1611_v15 = vsel %vm7731_vm6, %v1609_v39, %v1610_v37  ;;  %v7933_v39 = vld [vmem:[%s11547_s0 + $0x134] sm:$0x3] }
  0xd9   :  { %v7917_v18 = vsel %vm1059_vm2, %v1885_v57, 0  ;;  %v5725_v11 = vrot.slane %v6107_v33, 9  ;;  %v1810_v6 = vunpack.c.l.b16 %v1611_v15  ;;  %v6108_v57 = vld [vmem:[%s11547_s0 + $0x130] sm:$0xf]  ;;  %v1722_v37 = vrot.slane %v7933_v39, 5 }
  0xda   :  { %12370 = vst [vmem:[#allocation146_spill] sm:$0xff] %v7917_v18  ;;  %1526 = vmatpush.bf16.xpose.msrb.mxu3 %v7682_v50  ;;  %v1664_v48 = vsel %vm7731_vm6, %v5717_v49, %v1663_v8  ;;  %v1665_v26 = vrot.slane %v1663_v8, 4  ;;  %v1719_v41 = vrot.slane %v6108_v57, 5  ;;  %v1893_v30 = vpack.c.b16 %v1860_v59, %v1859_v20  ;;  %v6110_v15 = vld [vmem:[%s11547_s0 + $0x18c] sm:$0xf] }
  0xdb   :  { %v1825_v54 = vunpack.c.l.b16 %v1664_v48  ;;  %v5733_v49 = vrot.slane %v6110_v15, 9  ;;  %1486 = vmatpush.bf16.xpose.msrb.mxu0 %v7723_v35  ;;  %v1868_v8 = vpack.c.b16 %v1810_v6, %v1809_v22  ;;  %v6111_v35 = vld [vmem:[%s11547_s0 + $0x190] sm:$0xf] }
  0xdc   :  { %v1667_v33 = vsel %vm7731_vm6, %v1665_v26, %v1666_v60  ;;  %v1720_v20 = vsel %vm7731_vm6, %v5725_v11, %v1719_v41  ;;  %v1721_v59 = vrot.slane %v1719_v41, 4  ;;  %v7947_v48 = vsel %vm1059_vm2, %v1893_v30, 0  ;;  %v7960_v11 = vld [vmem:[%s11547_s0 + $0x194] sm:$0x3]  ;;  %v6113_v6 = vld [vmem:[%s11547_s0 + $0x30] sm:$0xf] }
  0xdd   :  { %1513 = vmatpush.bf16.xpose.msrb.mxu2 %v7691_v4  ;;  %12371 = vst [vmem:[#allocation147_spill] sm:$0xff] %v7947_v48  ;;  %v1826_v57 = vunpack.c.l.b16 %v1667_v33  ;;  %v1841_v50 = vunpack.c.l.b16 %v1720_v20  ;;  %v1775_v22 = vrot.slane %v6111_v35, 5  ;;  %v7953_v26 = vsel %vm1059_vm2, %v1868_v8, 0 }
  0xde   :  { %12372 = vst [vmem:[#allocation148_spill] sm:$0xff] %v7953_v26  ;;  %v1723_v60 = vsel %vm7731_vm6, %v1721_v59, %v1722_v37  ;;  %v1778_v30 = vrot.slane %v7960_v11, 5  ;;  %v5708_v41 = vrot.slane %v6113_v6, 9  ;;  %v6114_v59 = vld [vmem:[%s11547_s0 + $0x34] sm:$0xf] }
  0xdf   :  { %v1876_v15 = vpack.c.b16 %v1826_v57, %v1825_v54  ;;  %v1842_v33 = vunpack.c.l.b16 %v1723_v60  ;;  %v1776_v8 = vsel %vm7731_vm6, %v5733_v49, %v1775_v22  ;;  %v1777_v20 = vrot.slane %v1775_v22, 4  ;;  %v6116_v49 = vld [vmem:[%s11547_s0 + $0x90] sm:$0xf] }
  0xe0   :  { %1500 = vmatpush.bf16.xpose.msrb.mxu1 %v7726_v51  ;;  %v1857_v37 = vunpack.c.l.b16 %v1776_v8  ;;  %v1600_v35 = vrot.slane %v6114_v59, 5  ;;  %v5716_v57 = vrot.slane %v6116_v49, 9  ;;  %v6117_v8 = vld [vmem:[%s11547_s0 + $0x94] sm:$0xf] }
  0xe1   :  { %v7983_v22 = vsel %vm1059_vm2, %v1876_v15, 0  ;;  %v1884_v60 = vpack.c.b16 %v1842_v33, %v1841_v50  ;;  %v1779_v6 = vsel %vm7731_vm6, %v1777_v20, %v1778_v30  ;;  %v1656_v59 = vrot.slane %v6117_v8, 5  ;;  %v7996_v15 = vld [vmem:[%s11547_s0 + $0x98] sm:$0x3] }
  0xe2   :  { %12373 = vst [vmem:[#allocation149_spill] sm:$0xff] %v7983_v22  ;;  %1527 = vmatpush.bf16.xpose.msrb.mxu3 %v7701_v19  ;;  %v1858_v4 = vunpack.c.l.b16 %v1779_v6  ;;  %v1601_v49 = vsel %vm7731_vm6, %v5708_v41, %v1600_v35  ;;  %v1602_v51 = vrot.slane %v1600_v35, 4  ;;  %v1659_v50 = vrot.slane %v7996_v15, 5  ;;  %5700 = vmatmul.msk.bf16.vlgmr.msrb.gmra.mxu0 %vm1059_vm2, %v7812_v27 }
  0xe3   :  { %1994 = vmatpush.bf16.xpose.msra.mxu0 %v7793_v29  ;;  %v7975_v29 = vld [vmem:[%s11547_s0 + $0x38] sm:$0x3]  ;;  %v8002_v30 = vsel %vm1059_vm2, %v1884_v60, 0  ;;  %v1807_v33 = vunpack.c.l.b16 %v1601_v49  ;;  %v1657_v20 = vsel %vm7731_vm6, %v5716_v57, %v1656_v59  ;;  %v1658_v6 = vrot.slane %v1656_v59, 4  ;;  %v6122_v57 = vld [vmem:[%s11547_s0 + $0x180] sm:$0xf] }
  0xe4   :  { %v1603_v54 = vrot.slane %v7975_v29, 5  ;;  %12374 = vst [vmem:[#allocation150_spill] sm:$0xff] %v8002_v30  ;;  %v1892_v41 = vpack.c.b16 %v1858_v4, %v1857_v37  ;;  %v1823_v8 = vunpack.c.l.b16 %v1657_v20  ;;  %v6120_v4 = vld [vmem:[%s11547_s0 + $0x124] sm:$0xf]  ;;  %v5732_v59 = vrot.slane %v6122_v57, 9 }
  0xe5   :  { %1514 = vmatpush.bf16.xpose.msrb.mxu2 %v7729_v55  ;;  %v1660_v49 = vsel %vm7731_vm6, %v1658_v6, %v1659_v50  ;;  %v1712_v37 = vrot.slane %v6120_v4, 5  ;;  %v6123_v50 = vld [vmem:[%s11547_s0 + $0x184] sm:$0xf] }
  0xe6   :  { %v1604_v35 = vsel %vm7731_vm6, %v1602_v51, %v1603_v54  ;;  %v8021_v51 = vld [vmem:[%s11547_s0 + $0x128] sm:$0x3]  ;;  %v8026_v55 = vsel %vm1059_vm2, %v1892_v41, 0  ;;  %v1824_v54 = vunpack.c.l.b16 %v1660_v49  ;;  %v1768_v20 = vrot.slane %v6123_v50, 5 }
  0xe7   :  { %v1808_v60 = vunpack.c.l.b16 %v1604_v35  ;;  %12375 = vst [vmem:[#allocation151_spill] sm:$0xff] %v8026_v55  ;;  %5701 = vmatmul.msk.bf16.vlgmr.msrb.gmra.mxu1 %vm1059_vm2, %v7812_v27  ;;  %v1714_v41 = vrot.slane %v1712_v37, 4  ;;  %v8041_v49 = vld [vmem:[%s11547_s0 + $0x188] sm:$0x3] }
  0xe8   :  { %2008 = vmatpush.bf16.xpose.msra.mxu1 %v7808_v3  ;;  %v6119_v3 = vld [vmem:[%s11547_s0 + $0x120] sm:$0xf]  ;;  %12376 = vst [vmem:[#allocation152_spill] sm:$0xff] %v8041_v49  ;;  %v1771_v4 = vrot.slane %v8041_v49, 5  ;;  %v1875_v57 = vpack.c.b16 %v1824_v54, %v1823_v8  ;;  %v1769_v50 = vsel %vm7731_vm6, %v5732_v59, %v1768_v20 }
  0xe9   :  { %v5724_v19 = vrot.slane %v6119_v3, 9  ;;  %v1715_v3 = vrot.slane %v8021_v51, 5  ;;  %v1867_v6 = vpack.c.b16 %v1808_v60, %v1807_v33  ;;  %v1855_v60 = vunpack.c.l.b16 %v1769_v50 }
  0xea   :  { %1528 = vmatpush.bf16.xpose.msrb.mxu3 %v7762_v28  ;;  %v8057_v8 = vsel %vm1059_vm2, %v1875_v57, 0  ;;  %v6128_v57 = vld [vmem:[%s11547_s0 + $0x84] sm:$0xf] }
  0xeb   :  { %1995 = vmatpush.bf16.xpose.msra.mxu0 %v7886_v46  ;;  %v1713_v35 = vsel %vm7731_vm6, %v5724_v19, %v1712_v37  ;;  %v8048_v33 = vsel %vm1059_vm2, %v1867_v6, 0  ;;  %v1716_v19 = vsel %vm7731_vm6, %v1714_v41, %v1715_v3  ;;  %v6125_v37 = vld [vmem:[%s11547_s0 + $0x24] sm:$0xf]  ;;  %12378 = vst [vmem:[#allocation154_spill] sm:$0xff] %v8057_v8 }
  0xec   :  { %v1839_v46 = vunpack.c.l.b16 %v1713_v35  ;;  %12377 = vst [vmem:[#allocation153_spill] sm:$0xff] %v8048_v33  ;;  %v5707_v49 = vrot.slane %v6125_v37, 9  ;;  %v1840_v54 = vunpack.c.l.b16 %v1716_v19  ;;  %v8068_v35 = vld [vmem:[%s11547_s0 + $0x2c] sm:$0x3]  ;;  %5702 = vmatmul.msk.bf16.vlgmr.msrb.gmra.mxu2 %vm1059_vm2, %v7812_v27 }
  0xed   :  { %2022 = vmatpush.bf16.xpose.msra.mxu2 %v7830_v5  ;;  %v1770_v5 = vrot.slane %v1768_v20, 4  ;;  %v6126_v20 = vld [vmem:[%s11547_s0 + $0x28] sm:$0xf]  ;;  %v1596_v41 = vrot.slane %v8068_v35, 5 }
  0xee   :  { %v1593_v3 = vrot.slane %v6126_v20, 5  ;;  %v1883_v19 = vpack.c.b16 %v1840_v54, %v1839_v46  ;;  %v6130_v20 = vld [vmem:[%s11547_s0 + $0x8c] sm:$0x3] }
  0xef   :  { %v1772_v59 = vsel %vm7731_vm6, %v1770_v5, %v1771_v4  ;;  %v5715_v5 = vrot.slane %v6128_v57, 9  ;;  %v6129_v4 = vld [vmem:[%s11547_s0 + $0x88] sm:$0xf] }
  0xf0   :  { %2009 = vmatpush.bf16.xpose.msra.mxu1 %v7893_v42  ;;  %v1856_v6 = vunpack.c.l.b16 %v1772_v59  ;;  %v1649_v50 = vrot.slane %v6129_v4, 5  ;;  %v1594_v37 = vsel %vm7731_vm6, %v5707_v49, %v1593_v3  ;;  %v1595_v59 = vrot.slane %v1593_v3, 4  ;;  %v6131_v3 = vld [vmem:[%s11547_s0 + $0x114] sm:$0xf] }
  0xf1   :  { %v1652_v42 = vrot.slane %v6130_v20, 5  ;;  %v8089_v46 = vsel %vm1059_vm2, %v1883_v19, 0  ;;  %v5723_v20 = vrot.slane %v6131_v3, 9  ;;  %5703 = vmatmul.msk.bf16.vlgmr.msrb.gmra.mxu3 %vm1059_vm2, %v7812_v27 }
  0xf2   :  { %2036 = vmatpush.bf16.xpose.msra.mxu3 %v7850_v53  ;;  %v1891_v57 = vpack.c.b16 %v1856_v6, %v1855_v60  ;;  %v1805_v53 = vunpack.c.l.b16 %v1594_v37  ;;  %v1650_v4 = vsel %vm7731_vm6, %v5715_v5, %v1649_v50  ;;  %v1651_v28 = vrot.slane %v1649_v50, 4  ;;  %12379 = vst [vmem:[#allocation155_spill] sm:$0xff] %v8089_v46  ;;  %v6132_v50 = vld [vmem:[%s11547_s0 + $0x118] sm:$0xf] }
  0xf3   :  { %1996 = vmatpush.bf16.xpose.msra.mxu0 %v7953_v26  ;;  %v1597_v49 = vsel %vm7731_vm6, %v1595_v59, %v1596_v41  ;;  %v1821_v54 = vunpack.c.l.b16 %v1650_v4  ;;  %v1705_v19 = vrot.slane %v6132_v50, 5  ;;  %v6133_v41 = vld [vmem:[%s11547_s0 + $0x11c] sm:$0x3] }
  0xf4   :  { %v8097_v60 = vsel %vm1059_vm2, %v1891_v57, 0  ;;  %v1806_v6 = vunpack.c.l.b16 %v1597_v49  ;;  %v1653_v5 = vsel %vm7731_vm6, %v1651_v28, %v1652_v42  ;;  %v1708_v59 = vrot.slane %v6133_v41, 5  ;;  %v6134_v57 = vld [vmem:[%s11547_s0 + $0x174] sm:$0xf]  ;;  %v6135_v42 = vld [vmem:[%s11547_s0 + $0x178] sm:$0xf] }
  0xf5   :  { %2023 = vmatpush.bf16.xpose.msra.mxu2 %v7917_v18  ;;  %12380 = vst [vmem:[#allocation156_spill] sm:$0xff] %v8097_v60  ;;  %v1822_v37 = vunpack.c.l.b16 %v1653_v5  ;;  %v5731_v4 = vrot.slane %v6134_v57, 9  ;;  %v1761_v28 = vrot.slane %v6135_v42, 5  ;;  %v1706_v3 = vsel %vm7731_vm6, %v5723_v20, %v1705_v19  ;;  %v6136_v50 = vld [vmem:[%s11547_s0 + $0x17c] sm:$0x3] }
  0xf6   :  { %v1866_v49 = vpack.c.b16 %v1806_v6, %v1805_v53  ;;  %v1707_v5 = vrot.slane %v1705_v19, 4  ;;  %v1764_v41 = vrot.slane %v6136_v50, 5  ;;  %v1837_v26 = vunpack.c.l.b16 %v1706_v3  ;;  %v6137_v6 = vld [vmem:[%s11547_s0 + $0x18] sm:$0xf]  ;;  %v6139_v3 = vld [vmem:[%s11547_s0 + $0x20] sm:$0x3] }
  0xf7   :  { %v1874_v57 = vpack.c.b16 %v1822_v37, %v1821_v54  ;;  %v1762_v42 = vsel %vm7731_vm6, %v5731_v4, %v1761_v28  ;;  %v1763_v18 = vrot.slane %v1761_v28, 4  ;;  %v5706_v19 = vrot.slane %v6137_v6, 9  ;;  %v6138_v28 = vld [vmem:[%s11547_s0 + $0x1c] sm:$0xf]  ;;  %v6140_v50 = vld [vmem:[%s11547_s0 + $0x78] sm:$0xf] }
  0xf8   :  { %2010 = vmatpush.bf16.xpose.msra.mxu1 %v7983_v22  ;;  %v8125_v27 = vsel %vm1059_vm2, %v1866_v49, 0  ;;  %v1709_v53 = vsel %vm7731_vm6, %v1707_v5, %v1708_v59  ;;  %v1853_v20 = vunpack.c.l.b16 %v1762_v42  ;;  %v1586_v49 = vrot.slane %v6138_v28, 5 }
  0xf9   :  { %12381 = vst [vmem:[#allocation157_spill] sm:$0xff] %v8125_v27  ;;  %v8133_v54 = vsel %vm1059_vm2, %v1874_v57, 0  ;;  %v1838_v37 = vunpack.c.l.b16 %v1709_v53  ;;  %v1765_v4 = vsel %vm7731_vm6, %v1763_v18, %v1764_v41  ;;  %v1589_v5 = vrot.slane %v6139_v3, 5  ;;  %v6141_v18 = vld [vmem:[%s11547_s0 + $0x7c] sm:$0xf] }
  0xfa   :  { %2037 = vmatpush.bf16.xpose.msra.mxu3 %v7947_v48  ;;  %12382 = vst [vmem:[#allocation158_spill] sm:$0xff] %v8133_v54  ;;  %v1854_v59 = vunpack.c.l.b16 %v1765_v4  ;;  %v5714_v57 = vrot.slane %v6140_v50, 9  ;;  %v1642_v41 = vrot.slane %v6141_v18, 5  ;;  %v1587_v53 = vsel %vm7731_vm6, %v5706_v19, %v1586_v49  ;;  %v6142_v4 = vld [vmem:[%s11547_s0 + $0x80] sm:$0x3] }
  0xfb   :  { %1997 = vmatpush.bf16.xpose.msra.mxu0 %v8048_v33  ;;  %v1882_v42 = vpack.c.b16 %v1838_v37, %v1837_v26  ;;  %v1588_v6 = vrot.slane %v1586_v49, 4  ;;  %v1645_v28 = vrot.slane %v6142_v4, 5  ;;  %v1803_v33 = vunpack.c.l.b16 %v1587_v53  ;;  %v6143_v19 = vld [vmem:[%s11547_s0 + $0x108] sm:$0xf]  ;;  %v6145_v53 = vld [vmem:[%s11547_s0 + $0x110] sm:$0x3] }
  0xfc   :  { %v1890_v3 = vpack.c.b16 %v1854_v59, %v1853_v20  ;;  %v1643_v50 = vsel %vm7731_vm6, %v5714_v57, %v1642_v41  ;;  %v1644_v22 = vrot.slane %v1642_v41, 4  ;;  %v5722_v49 = vrot.slane %v6143_v19, 9  ;;  %v6144_v41 = vld [vmem:[%s11547_s0 + $0x10c] sm:$0xf]  ;;  %v6146_v4 = vld [vmem:[%s11547_s0 + $0x168] sm:$0xf] }
  0xfd   :  { %2024 = vmatpush.bf16.xpose.msra.mxu2 %v8002_v30  ;;  %v8159_v18 = vsel %vm1059_vm2, %v1882_v42, 0  ;;  %v1590_v26 = vsel %vm7731_vm6, %v1588_v6, %v1589_v5  ;;  %v1819_v37 = vunpack.c.l.b16 %v1643_v50  ;;  %v1698_v5 = vrot.slane %v6144_v41, 5 }
  0xfe   :  { %12383 = vst [vmem:[#allocation159_spill] sm:$0xff] %v8159_v18  ;;  %v8168_v20 = vsel %vm1059_vm2, %v1890_v3, 0  ;;  %v1804_v59 = vunpack.c.l.b16 %v1590_v26  ;;  %v1646_v57 = vsel %vm7731_vm6, %v1644_v22, %v1645_v28  ;;  %v1701_v6 = vrot.slane %v6145_v53, 5  ;;  %v6147_v22 = vld [vmem:[%s11547_s0 + $0x16c] sm:$0xf] }
  0xff   :  { %v1820_v42 = vunpack.c.l.b16 %v1646_v57  ;;  %v5730_v3 = vrot.slane %v6146_v4, 9  ;;  %v1754_v28 = vrot.slane %v6147_v22, 5  ;;  %v1699_v26 = vsel %vm7731_vm6, %v5722_v49, %v1698_v5  ;;  %v6148_v57 = vld [vmem:[%s11547_s0 + $0x170] sm:$0x3] }
 0x100   :  { %2011 = vmatpush.bf16.xpose.msra.mxu1 %v8057_v8  ;;  %v1865_v50 = vpack.c.b16 %v1804_v59, %v1803_v33  ;;  %v1700_v19 = vrot.slane %v1698_v5, 4  ;;  %v1757_v41 = vrot.slane %v6148_v57, 5  ;;  %v1835_v8 = vunpack.c.l.b16 %v1699_v26  ;;  %v6149_v59 = vld [vmem:[%s11547_s0 + $0xc] sm:$0xf]  ;;  %v6151_v26 = vld [vmem:[%s11547_s0 + $0x14] sm:$0x3] }
 0x101   :  { %v1873_v53 = vpack.c.b16 %v1820_v42, %v1819_v37  ;;  %v1755_v4 = vsel %vm7731_vm6, %v5730_v3, %v1754_v28  ;;  %v1756_v30 = vrot.slane %v1754_v28, 4  ;;  %v5705_v5 = vrot.slane %v6149_v59, 9  ;;  %v6150_v28 = vld [vmem:[%s11547_s0 + $0x10] sm:$0xf]  ;;  %v6152_v57 = vld [vmem:[%s11547_s0 + $0x6c] sm:$0xf] }
 0x102   :  { %2038 = vmatpush.bf16.xpose.msra.mxu3 %v8026_v55  ;;  %v8194_v22 = vsel %vm1059_vm2, %v1865_v50, 0  ;;  %v1702_v33 = vsel %vm7731_vm6, %v1700_v19, %v1701_v6  ;;  %v1851_v49 = vunpack.c.l.b16 %v1755_v4  ;;  %v1579_v6 = vrot.slane %v6150_v28, 5 }
 0x103   :  { %1998 = vmatpush.bf16.xpose.msra.mxu0 %v8125_v27  ;;  %12384 = vst [vmem:[#allocation160_spill] sm:$0xff] %v8194_v22  ;;  %v8203_v37 = vsel %vm1059_vm2, %v1873_v53, 0  ;;  %v1836_v42 = vunpack.c.l.b16 %v1702_v33  ;;  %v1758_v3 = vsel %vm7731_vm6, %v1756_v30, %v1757_v41  ;;  %v1582_v19 = vrot.slane %v6151_v26, 5  ;;  %v6153_v30 = vld [vmem:[%s11547_s0 + $0x70] sm:$0xf] }
 0x104   :  { %12385 = vst [vmem:[#allocation161_spill] sm:$0xff] %v8203_v37  ;;  %v1852_v50 = vunpack.c.l.b16 %v1758_v3  ;;  %v5713_v53 = vrot.slane %v6152_v57, 9  ;;  %v1635_v41 = vrot.slane %v6153_v30, 5  ;;  %v1580_v33 = vsel %vm7731_vm6, %v5705_v5, %v1579_v6  ;;  %v6154_v3 = vld [vmem:[%s11547_s0 + $0x74] sm:$0x3] }
 0x105   :  { %2025 = vmatpush.bf16.xpose.msra.mxu2 %v8089_v46  ;;  %v1881_v4 = vpack.c.b16 %v1836_v42, %v1835_v8  ;;  %v1581_v59 = vrot.slane %v1579_v6, 4  ;;  %v1638_v28 = vrot.slane %v6154_v3, 5  ;;  %v1801_v27 = vunpack.c.l.b16 %v1580_v33  ;;  %v6155_v42 = vld [vmem:[%s11547_s0 + $0xfc] sm:$0xf]  ;;  %v6157_v33 = vld [vmem:[%s11547_s0 + $0x104] sm:$0x3] }
 0x106   :  { %v1889_v26 = vpack.c.b16 %v1852_v50, %v1851_v49  ;;  %v1636_v57 = vsel %vm7731_vm6, %v5713_v53, %v1635_v41  ;;  %v1637_v46 = vrot.slane %v1635_v41, 4  ;;  %v5721_v6 = vrot.slane %v6155_v42, 9  ;;  %v6156_v41 = vld [vmem:[%s11547_s0 + $0x100] sm:$0xf]  ;;  %v6158_v3 = vld [vmem:[%s11547_s0 + $0x15c] sm:$0xf] }
 0x107   :  { %v8228_v30 = vsel %vm1059_vm2, %v1881_v4, 0  ;;  %v1583_v8 = vsel %vm7731_vm6, %v1581_v59, %v1582_v19  ;;  %v1817_v5 = vunpack.c.l.b16 %v1636_v57  ;;  %v1691_v19 = vrot.slane %v6156_v41, 5 }
 0x108   :  { %2012 = vmatpush.bf16.xpose.msra.mxu1 %v8133_v54  ;;  %12386 = vst [vmem:[#allocation162_spill] sm:$0xff] %v8228_v30  ;;  %v8237_v49 = vsel %vm1059_vm2, %v1889_v26, 0  ;;  %v1802_v50 = vunpack.c.l.b16 %v1583_v8  ;;  %v1639_v53 = vsel %vm7731_vm6, %v1637_v46, %v1638_v28  ;;  %v1694_v59 = vrot.slane %v6157_v33, 5  ;;  %v6159_v46 = vld [vmem:[%s11547_s0 + $0x160] sm:$0xf] }
 0x109   :  { %12387 = vst [vmem:[#allocation163_spill] sm:$0xff] %v8237_v49  ;;  %v1818_v4 = vunpack.c.l.b16 %v1639_v53  ;;  %v5729_v26 = vrot.slane %v6158_v3, 9  ;;  %v1747_v28 = vrot.slane %v6159_v46, 5  ;;  %v1692_v8 = vsel %vm7731_vm6, %v5721_v6, %v1691_v19  ;;  %v6160_v53 = vld [vmem:[%s11547_s0 + $0x164] sm:$0x3] }
 0x10a   :  { %2039 = vmatpush.bf16.xpose.msra.mxu3 %v8097_v60  ;;  %v1864_v57 = vpack.c.b16 %v1802_v50, %v1801_v27  ;;  %v1693_v42 = vrot.slane %v1691_v19, 4  ;;  %v1750_v41 = vrot.slane %v6160_v53, 5  ;;  %v1833_v3 = vunpack.c.l.b16 %v1692_v8  ;;  %v6161_v50 = vld [vmem:[%s11547_s0] sm:$0xf] }
 0x10b   :  { %1999 = vmatpush.bf16.xpose.msra.mxu0 %v8194_v22  ;;  %v1872_v33 = vpack.c.b16 %v1818_v4, %v1817_v5  ;;  %v1748_v54 = vsel %vm7731_vm6, %v5729_v26, %v1747_v28  ;;  %v1749_v46 = vrot.slane %v1747_v28, 4  ;;  %v5704_v19 = vrot.slane %v6161_v50, 9  ;;  %v6162_v26 = vld [vmem:[%s11547_s0 + $0x4] sm:$0xf]  ;;  %v6164_v8 = vld [vmem:[%s11547_s0 + $0x60] sm:$0xf] }
 0x10c   :  { %v8263_v22 = vsel %vm1059_vm2, %v1864_v57, 0  ;;  %v1695_v27 = vsel %vm7731_vm6, %v1693_v42, %v1694_v59  ;;  %v1849_v6 = vunpack.c.l.b16 %v1748_v54  ;;  %v1572_v28 = vrot.slane %v6162_v26, 5  ;;  %v6163_v59 = vld [vmem:[%s11547_s0 + $0x8] sm:$0x3] }
 0x10d   :  { %2026 = vmatpush.bf16.xpose.msra.mxu2 %v8159_v18  ;;  %12388 = vst [vmem:[#allocation164_spill] sm:$0xff] %v8263_v22  ;;  %v8271_v53 = vsel %vm1059_vm2, %v1872_v33, 0  ;;  %v1834_v5 = vunpack.c.l.b16 %v1695_v27  ;;  %v1751_v4 = vsel %vm7731_vm6, %v1749_v46, %v1750_v41  ;;  %v1575_v57 = vrot.slane %v6163_v59, 5  ;;  %v6165_v41 = vld [vmem:[%s11547_s0 + $0x64] sm:$0xf] }
 0x10e   :  { %12389 = vst [vmem:[#allocation165_spill] sm:$0xff] %v8271_v53  ;;  %v1850_v54 = vunpack.c.l.b16 %v1751_v4  ;;  %v5712_v42 = vrot.slane %v6164_v8, 9  ;;  %v1628_v33 = vrot.slane %v6165_v41, 5  ;;  %v1573_v27 = vsel %vm7731_vm6, %v5704_v19, %v1572_v28  ;;  %v6166_v19 = vld [vmem:[%s11547_s0 + $0xf0] sm:$0xf] }
 0x10f   :  { %v1880_v46 = vpack.c.b16 %v1834_v5, %v1833_v3  ;;  %v1574_v50 = vrot.slane %v1572_v28, 4  ;;  %v1631_v4 = vrot.slane %v7398_v23, 5  ;;  %v1799_v59 = vunpack.c.l.b16 %v1573_v27 }
 0x110   :  { %2013 = vmatpush.bf16.xpose.msra.mxu1 %v8203_v37  ;;  %v1888_v26 = vpack.c.b16 %v1850_v54, %v1849_v6  ;;  %v1629_v37 = vsel %vm7731_vm6, %v5712_v42, %v1628_v33  ;;  %v1630_v8 = vrot.slane %v1628_v33, 4  ;;  %v5720_v28 = vrot.slane %v6166_v19, 9 }
 0x111   :  { %v8295_v18 = vsel %vm1059_vm2, %v1880_v46, 0  ;;  %v1576_v3 = vsel %vm7731_vm6, %v1574_v50, %v1575_v57  ;;  %v1815_v5 = vunpack.c.l.b16 %v1629_v37  ;;  %v1684_v41 = vrot.slane %v7415_v12, 5 }
 0x112   :  { %2040 = vmatpush.bf16.xpose.msra.mxu3 %v8168_v20  ;;  %v8304_v6 = vsel %vm1059_vm2, %v1888_v26, 0  ;;  %v1800_v54 = vunpack.c.l.b16 %v1576_v3  ;;  %v1632_v42 = vsel %vm7731_vm6, %v1630_v8, %v1631_v4  ;;  %v1687_v37 = vrot.slane %v7425_v43, 5 }
 0x113   :  { %2000 = vmatpush.bf16.xpose.msra.mxu0 %v8263_v22  ;;  %12390 = vst [vmem:[#allocation166_spill] sm:$0xff] %v8304_v6  ;;  %v1816_v57 = vunpack.c.l.b16 %v1632_v42  ;;  %v5728_v33 = vrot.slane %v7438_v40, 9  ;;  %v1740_v46 = vrot.slane %v7458_v58, 5  ;;  %v1685_v50 = vsel %vm7731_vm6, %v5720_v28, %v1684_v41 }
 0x114   :  { %v1863_v27 = vpack.c.b16 %v1800_v54, %v1799_v59  ;;  %v1686_v26 = vrot.slane %v1684_v41, 4  ;;  %v1743_v3 = vrot.slane %v7472_v45, 5  ;;  %v1831_v4 = vunpack.c.l.b16 %v1685_v50 }
 0x115   :  { %2027 = vmatpush.bf16.xpose.msra.mxu2 %v8228_v30  ;;  %v1871_v19 = vpack.c.b16 %v1816_v57, %v1815_v5  ;;  %v1741_v8 = vsel %vm7731_vm6, %v5728_v33, %v1740_v46  ;;  %v1742_v22 = vrot.slane %v1740_v46, 4  ;;  %v12392_v57 = vshrl.u32 %v6292_v0, 16 }
 0x116   :  { %v1899_v42 = vsel %vm1059_vm2, %v1863_v27, 0  ;;  %v1688_v30 = vsel %vm7731_vm6, %v1686_v26, %v1687_v37  ;;  %v1847_v59 = vunpack.c.l.b16 %v1741_v8  ;;  %v12393_v46 = vshll.u32 %v6292_v0, 16 }
 0x117   :  { %v8323_v28 = vsel %vm1059_vm2, %v1871_v19, 0  ;;  %v1832_v54 = vunpack.c.l.b16 %v1688_v30  ;;  %v1744_v5 = vsel %vm7731_vm6, %v1742_v22, %v1743_v3  ;;  %v2166_v33 = vrot.slane %v12392_v57, 5 }
 0x118   :  { %2014 = vmatpush.bf16.xpose.msra.mxu1 %v8271_v53  ;;  %12391 = vst [vmem:[#allocation167_spill] sm:$0xff] %v8323_v28  ;;  %v1848_v41 = vunpack.c.l.b16 %v1744_v5  ;;  %v2167_v27 = vrot.slane %v12393_v46, 6  ;;  %v12394_v37 = vshrl.u32 %v6297_v1, 16  ;;  %v12395_v19 = vshll.u32 %v6297_v1, 16 }
 0x119   :  { %v1879_v26 = vpack.c.b16 %v1832_v54, %v1831_v4  ;;  %v2175_v8 = vshrl.u32 %v7738_v61, 16  ;;  %v12396_v22 = vshll.u32 %v6302_v2, 16  ;;  %v12397_v57 = vshrl.u32 %v6311_v7, 16 }
 0x11a   :  { %2041 = vmatpush.bf16.xpose.msra.mxu3 %v8237_v49  ;;  %v2170_v50 = vrot.slane %v12394_v37, 5  ;;  %v2171_v30 = vrot.slane %v12395_v19, 6  ;;  %v1887_v5 = vpack.c.b16 %v1848_v41, %v1847_v59  ;;  %v2168_v53 = vor.u32 %v2167_v27, %v2166_v33 }
 0x11b   :  { %v2178_v3 = vrot.slane %v12396_v22, 6  ;;  %2001 = vmatpush.bf16.xpose.msra.mxu0 %v1899_v42  ;;  %v2286_v49 = vrot.slane %v12397_v57, 5  ;;  %v12398_v0 = vshll.u32 %v6311_v7, 16  ;;  %v1947_v4 = vsel %vm1059_vm2, %v1879_v26, 0 }
 0x11c   :  { %v2172_v2 = vor.u32 %v2171_v30, %v2170_v50  ;;  %v2177_v61 = vrot.slane %v2175_v8, 5  ;;  %v12401_v42 = vshrl.u32 %v6317_v9, 16  ;;  %v8354_v54 = vsel %vm1059_vm2, %v1887_v5, 0 }
 0x11d   :  { %v2287_v46 = vrot.slane %v12398_v0, 6  ;;  %2028 = vmatpush.bf16.xpose.msra.mxu2 %v8295_v18  ;;  %12402 = vst [vmem:[#allocation168_spill] sm:$0xff] %v8354_v54  ;;  %v2169_v7 = vrot.slane %v2168_v53, 4  ;;  %v12403_v33 = vshll.u32 %v6317_v9, 16  ;;  %v2295_v19 = vshrl.u32 %v7753_v14, 16 }
 0x11e   :  { %v2290_v59 = vrot.slane %v12401_v42, 5  ;;  %v2174_v37 = vrot.slane %v2172_v2, 4  ;;  %v2179_v26 = vor.u32 %v2178_v3, %v2177_v61  ;;  %v12404_v22 = vshll.u32 %v6322_v10, 16 }
 0x11f   :  { %v2288_v41 = vor.u32 %v2287_v46, %v2286_v49  ;;  %v2291_v27 = vrot.slane %v12403_v33, 6  ;;  %v2173_v50 = vsel %vm8347_vm9, %v2169_v7, %v2172_v2  ;;  %v12405_v53 = vshrl.u32 %v6336_v16, 16 }
 0x120   :  { %v2298_v57 = vrot.slane %v12404_v22, 6  ;;  %2015 = vmatpush.bf16.xpose.msra.mxu1 %v8323_v28  ;;  %v2180_v9 = vsel %vm8347_vm9, %v2174_v37, %v2179_v26  ;;  %v2560_v5 = vunpack.c.l.b16 %v2173_v50  ;;  %v2297_v3 = vrot.slane %v2295_v19, 5 }
 0x121   :  { %v2289_v30 = vrot.slane %v2288_v41, 4  ;;  %v2292_v8 = vor.u32 %v2291_v27, %v2290_v59  ;;  %v2406_v49 = vrot.slane %v12405_v53, 5  ;;  %v12406_v14 = vshll.u32 %v6336_v16, 16 }
 0x122   :  { %2042 = vmatpush.bf16.xpose.msra.mxu3 %v8304_v6  ;;  %v2561_v10 = vunpack.c.l.b16 %v2180_v9  ;;  %v12407_v61 = vshrl.u32 %v6349_v25, 16  ;;  %v2299_v59 = vor.u32 %v2298_v57, %v2297_v3  ;;  %v12408_v33 = vshll.u32 %v6349_v25, 16  ;;  %v5738_v25 = vld [vmem:[%s11548_s1 + $0x10] sm:$0xf]  ;;  %v6046_v3 = vld [vmem:[%s11548_s1 + $0x10] sm:$0x30] }
 0x123   :  { %v2407_v0 = vrot.slane %v12406_v14, 6  ;;  %v2293_v46 = vsel %vm8347_vm9, %v2289_v30, %v2292_v8  ;;  %v2294_v2 = vrot.slane %v2292_v8, 4  ;;  %v2415_v16 = vshrl.u32 %v7774_v21, 16 }
 0x124   :  { %v2410_v42 = vrot.slane %v12407_v61, 5  ;;  %v2576_v7 = vunpack.c.l.b16 %v2293_v46  ;;  %v2411_v27 = vrot.slane %v12408_v33, 6  ;;  %v2617_v37 = vpack.c.b16 %v2561_v10, %v2560_v5 }
 0x125   :  { %v2408_v41 = vor.u32 %v2407_v0, %v2406_v49  ;;  %v12409_v26 = vshll.u32 %v6370_v36, 16  ;;  %v12410_v22 = vshrl.u32 %v6385_v44, 16  ;;  %2029 = vmatpush.bf16.xpose.msra.mxu2 %v1947_v4  ;;  %v2300_v30 = vsel %vm8347_vm9, %v2294_v2, %v2299_v59 }
 0x126   :  { %v2412_v57 = vor.u32 %v2411_v27, %v2410_v42  ;;  %v12411_v53 = vshll.u32 %v6385_v44, 16  ;;  %v8390_v21 = vsel %vm1059_vm2, %v2617_v37, 0  ;;  %v2577_v36 = vunpack.c.l.b16 %v2300_v30 }
 0x127   :  { %v2418_v19 = vrot.slane %v12409_v26, 6  ;;  %v2526_v50 = vrot.slane %v12410_v22, 5  ;;  %v2409_v8 = vrot.slane %v2408_v41, 4  ;;  %12412 = vst [vmem:[#allocation169_spill] sm:$0xff] %v8390_v21  ;;  %v2417_v9 = vrot.slane %v2415_v16, 5  ;;  %2741 = vmatpush.bf16.xpose.msrb.mxu0 %v8390_v21 }
 0x128   :  { %v2527_v49 = vrot.slane %v12411_v53, 6  ;;  %v12413_v5 = vshrl.u32 %v6397_v56, 16  ;;  %v2414_v14 = vrot.slane %v2412_v57, 4  ;;  %v12414_v10 = vshll.u32 %v6397_v56, 16 }
 0x129   :  { %v2413_v44 = vsel %vm8347_vm9, %v2409_v8, %v2412_v57  ;;  %v2625_v2 = vpack.c.b16 %v2577_v36, %v2576_v7  ;;  %v2419_v61 = vor.u32 %v2418_v19, %v2417_v9  ;;  %v2535_v59 = vshrl.u32 %v7786_v34, 16 }
 0x12a   :  { %v2530_v4 = vrot.slane %v12413_v5, 5  ;;  %v2528_v0 = vor.u32 %v2527_v49, %v2526_v50  ;;  %v2531_v46 = vrot.slane %v12414_v10, 6  ;;  %v2592_v42 = vunpack.c.l.b16 %v2413_v44  ;;  %2043 = vmatpush.bf16.xpose.msra.mxu3 %v8354_v54 }
 0x12b   :  { %v12415_v27 = vshll.u32 %v6407_v62, 16  ;;  %v5739_v16 = vor.u32 %v6046_v3, %v5738_v25  ;;  %v8407_v26 = vsel %vm1059_vm2, %v2625_v2, 0  ;;  %v2420_v56 = vsel %vm8347_vm9, %v2414_v14, %v2419_v61 }
 0x12c   :  { %v2529_v41 = vrot.slane %v2528_v0, 4  ;;  %v2532_v33 = vor.u32 %v2531_v46, %v2530_v4  ;;  %12416 = vst [vmem:[#allocation170_spill] sm:$0xff] %v8407_v26  ;;  %v2537_v22 = vrot.slane %v2535_v59, 5  ;;  %v12417_v7 = vshrl.u32 %v6412_v63, 16  ;;  %2755 = vmatpush.bf16.xpose.msrb.mxu1 %v8407_v26 }
 0x12d   :  { %v2538_v37 = vrot.slane %v12415_v27, 6  ;;  %v2593_v34 = vunpack.c.l.b16 %v2420_v56  ;;  %5740 = vmatmul.msk.bf16.vlgmr.msra.gmra.mxu0 %vm1059_vm2, %v5739_v16  ;;  %v12418_v30 = vshll.u32 %v6412_v63, 16  ;;  %5741 = vmatmul.msk.bf16.vlgmr.msra.gmra.mxu1 %vm1059_vm2, %v5739_v16  ;;  %v12419_v49 = vshrl.u32 %v6429_v32, 16 }
 0x12e   :  { %v2151_v19 = vrot.slane %v12417_v7, 5  ;;  %v2533_v62 = vsel %vm8347_vm9, %v2529_v41, %v2532_v33  ;;  %v2534_v50 = vrot.slane %v2532_v33, 4  ;;  %5742 = vmatmul.msk.bf16.vlgmr.msra.gmra.mxu2 %vm1059_vm2, %v5739_v16  ;;  %v12420_v36 = vshll.u32 %v6429_v32, 16 }
 0x12f   :  { %v2152_v8 = vrot.slane %v12418_v30, 6  ;;  %v2539_v57 = vor.u32 %v2538_v37, %v2537_v22  ;;  %v2608_v53 = vunpack.c.l.b16 %v2533_v62  ;;  %v2155_v25 = vrot.slane %v12419_v49, 5  ;;  %v12427_v30 = vld [vmem:[#allocation6_spill] sm:$0xff] }
 0x130   :  { %v2156_v9 = vrot.slane %v12420_v36, 6  ;;  %v2633_v5 = vpack.c.b16 %v2593_v34, %v2592_v42  ;;  %v2160_v3 = vshrl.u32 %v7820_v31, 16  ;;  %v12421_v44 = vshll.u32 %v6441_v38, 16 }
 0x131   :  { %v2153_v4 = vor.u32 %v2152_v8, %v2151_v19  ;;  %v2540_v14 = vsel %vm8347_vm9, %v2534_v50, %v2539_v57  ;;  %v12422_v10 = vshrl.u32 %v6454_v47, 16  ;;  %v12423_v2 = vshll.u32 %v6454_v47, 16  ;;  %5743 = vmatmul.msk.bf16.vlgmr.msra.gmra.mxu3 %vm1059_vm2, %v5739_v16  ;;  %v12430_v16 = vld [vmem:[#allocation7_spill] sm:$0xff] }
 0x132   :  { %v2163_v63 = vrot.slane %v12421_v44, 6  ;;  %v2157_v0 = vor.u32 %v2156_v9, %v2155_v25  ;;  %v8435_v32 = vsel %vm1059_vm2, %v2633_v5, 0  ;;  %v2609_v42 = vunpack.c.l.b16 %v2540_v14  ;;  %v12433_v14 = vld [vmem:[#allocation8_spill] sm:$0xff] }
 0x133   :  { %v2271_v46 = vrot.slane %v12422_v10, 5  ;;  %v2272_v61 = vrot.slane %v12423_v2, 6  ;;  %12424 = vst [vmem:[#allocation171_spill] sm:$0xff] %v8435_v32  ;;  %v2154_v59 = vrot.slane %v2153_v4, 4  ;;  %v2162_v41 = vrot.slane %v2160_v3, 5  ;;  %2769 = vmatpush.bf16.xpose.msrb.mxu2 %v8435_v32 }
 0x134   :  { %v2159_v38 = vrot.slane %v2157_v0, 4  ;;  %v12425_v33 = vshrl.u32 %v6469_v13, 16  ;;  %v12426_v37 = vshll.u32 %v6469_v13, 16  ;;  %v2641_v22 = vpack.c.b16 %v2609_v42, %v2608_v53 }
 0x135   :  { %v2273_v31 = vor.u32 %v2272_v61, %v2271_v46  ;;  %v2158_v47 = vsel %vm8347_vm9, %v2154_v59, %v2157_v0  ;;  %v2164_v7 = vor.u32 %v2163_v63, %v2162_v41  ;;  %v2280_v19 = vshrl.u32 %v7835_v17, 16  ;;  %v12436_v59 = vld [vmem:[#allocation141_spill] sm:$0xff] }
 0x136   :  { %v2275_v27 = vrot.slane %v12425_v33, 5  ;;  %v2276_v56 = vrot.slane %v12426_v37, 6  ;;  %v2558_v34 = vunpack.c.l.b16 %v2158_v47  ;;  %v12428_v8 = vshll.u32 %v12427_v30, 16 }
 0x137   :  { %v2274_v62 = vrot.slane %v2273_v31, 4  ;;  %v8449_v49 = vsel %vm1059_vm2, %v2641_v22, 0  ;;  %v2165_v13 = vsel %vm8347_vm9, %v2159_v38, %v2164_v7  ;;  %v2282_v53 = vrot.slane %v2280_v19, 5  ;;  %v12437_v38 = vld [vmem:[#allocation9_spill] sm:$0xff] }
 0x138   :  { %v2277_v50 = vor.u32 %v2276_v56, %v2275_v27  ;;  %v2283_v57 = vrot.slane %v12428_v8, 6  ;;  %12429 = vst [vmem:[#allocation6_spill] sm:$0xff] %v8449_v49  ;;  %v12431_v25 = vshrl.u32 %v12430_v16, 16  ;;  %2783 = vmatpush.bf16.xpose.msrb.mxu3 %v8449_v49  ;;  %v2559_v9 = vunpack.c.l.b16 %v2165_v13  ;;  %v12439_v56 = vld [vmem:[#allocation11_spill] sm:$0xff]  ;;  %v12443_v13 = vld [vmem:[#allocation12_spill] sm:$0xff] }
 0x139   :  { %v12432_v4 = vshll.u32 %v12430_v16, 16  ;;  %v12434_v0 = vshrl.u32 %v12433_v14, 16  ;;  %v12435_v46 = vshll.u32 %v12433_v14, 16  ;;  %v2400_v41 = vshrl.u32 %v12436_v59, 16 }
 0x13a   :  { %v2391_v36 = vrot.slane %v12431_v25, 5  ;;  %v2278_v17 = vsel %vm8347_vm9, %v2274_v62, %v2277_v50  ;;  %v2279_v5 = vrot.slane %v2277_v50, 4  ;;  %v2284_v44 = vor.u32 %v2283_v57, %v2282_v53 }
 0x13b   :  { %v2392_v3 = vrot.slane %v12432_v4, 6  ;;  %v2574_v63 = vunpack.c.l.b16 %v2278_v17  ;;  %v2395_v10 = vrot.slane %v12434_v0, 5  ;;  %v2396_v2 = vrot.slane %v12435_v46, 6  ;;  %v12446_v4 = vld [vmem:[#allocation142_spill] sm:$0xff] }
 0x13c   :  { %v2616_v61 = vpack.c.b16 %v2559_v9, %v2558_v34  ;;  %v12438_v31 = vshll.u32 %v12437_v38, 16  ;;  %v2285_v27 = vsel %vm8347_vm9, %v2279_v5, %v2284_v44  ;;  %v12440_v22 = vshrl.u32 %v12439_v56, 16 }
 0x13d   :  { %v2393_v42 = vor.u32 %v2392_v3, %v2391_v36  ;;  %v2397_v37 = vor.u32 %v2396_v2, %v2395_v10  ;;  %v12441_v7 = vshll.u32 %v12439_v56, 16  ;;  %v2575_v34 = vunpack.c.l.b16 %v2285_v27  ;;  %v12447_v10 = vld [vmem:[#allocation13_spill] sm:$0xff] }
 0x13e   :  { %v2403_v33 = vrot.slane %v12438_v31, 6  ;;  %v2511_v47 = vrot.slane %v12440_v22, 5  ;;  %v8474_v62 = vsel %vm1059_vm2, %v2616_v61, 0  ;;  %v2402_v30 = vrot.slane %v2400_v41, 5 }
 0x13f   :  { %v2512_v19 = vrot.slane %v12441_v7, 6  ;;  %12442 = vst [vmem:[#allocation7_spill] sm:$0xff] %v8474_v62  ;;  %v2394_v50 = vrot.slane %v2393_v42, 4  ;;  %2742 = vmatpush.bf16.xpose.msrb.mxu0 %v8474_v62  ;;  %v2399_v8 = vrot.slane %v2397_v37, 4  ;;  %v12444_v53 = vshrl.u32 %v12443_v13, 16  ;;  %v12453_v7 = vld [vmem:[#allocation16_spill] sm:$0xff] }
 0x140   :  { %v12445_v25 = vshll.u32 %v12443_v13, 16  ;;  %v2624_v9 = vpack.c.b16 %v2575_v34, %v2574_v63  ;;  %v2404_v5 = vor.u32 %v2403_v33, %v2402_v30  ;;  %v2520_v3 = vshrl.u32 %v12446_v4, 16  ;;  %v12450_v63 = vld [vmem:[#allocation15_spill] sm:$0xff] }
 0x141   :  { %v2513_v57 = vor.u32 %v2512_v19, %v2511_v47  ;;  %v2515_v16 = vrot.slane %v12444_v53, 5  ;;  %v2398_v17 = vsel %vm8347_vm9, %v2394_v50, %v2397_v37  ;;  %v12448_v46 = vshll.u32 %v12447_v10, 16  ;;  %v12456_v53 = vld [vmem:[#allocation17_spill] sm:$0xff] }
 0x142   :  { %v2516_v36 = vrot.slane %v12445_v25, 6  ;;  %v2590_v44 = vunpack.c.l.b16 %v2398_v17  ;;  %v8487_v61 = vsel %vm1059_vm2, %v2624_v9, 0  ;;  %v2405_v42 = vsel %vm8347_vm9, %v2399_v8, %v2404_v5  ;;  %v12458_v17 = vld [vmem:[#allocation18_spill] sm:$0xff] }
 0x143   :  { %v2514_v14 = vrot.slane %v2513_v57, 4  ;;  %v2523_v2 = vrot.slane %v12448_v46, 6  ;;  %12449 = vst [vmem:[#allocation8_spill] sm:$0xff] %v8487_v61  ;;  %v2522_v59 = vrot.slane %v2520_v3, 5  ;;  %v12451_v41 = vshrl.u32 %v12450_v63, 16  ;;  %2756 = vmatpush.bf16.xpose.msrb.mxu1 %v8487_v61 }
 0x144   :  { %v2517_v0 = vor.u32 %v2516_v36, %v2515_v16  ;;  %v2591_v31 = vunpack.c.l.b16 %v2405_v42  ;;  %v12452_v37 = vshll.u32 %v12450_v63, 16  ;;  %v12454_v19 = vshrl.u32 %v12453_v7, 16  ;;  %v12462_v42 = vld [vmem:[#allocation20_spill] sm:$0xff] }
 0x145   :  { %v2136_v38 = vrot.slane %v12451_v41, 5  ;;  %v2524_v22 = vor.u32 %v2523_v2, %v2522_v59  ;;  %v12455_v50 = vshll.u32 %v12453_v7, 16  ;;  %v2145_v13 = vshrl.u32 %v7898_v52, 16 }
 0x146   :  { %v2518_v33 = vsel %vm8347_vm9, %v2514_v14, %v2517_v0  ;;  %v2519_v27 = vrot.slane %v2517_v0, 4  ;;  %v2137_v56 = vrot.slane %v12452_v37, 6  ;;  %v2140_v34 = vrot.slane %v12454_v19, 5  ;;  %v12465_v37 = vld [vmem:[#allocation145_spill] sm:$0xff] }
 0x147   :  { %v2606_v47 = vunpack.c.l.b16 %v2518_v33  ;;  %v2141_v30 = vrot.slane %v12455_v50, 6  ;;  %v2632_v8 = vpack.c.b16 %v2591_v31, %v2590_v44  ;;  %v12457_v16 = vshll.u32 %v12456_v53, 16 }
 0x148   :  { %v2138_v57 = vor.u32 %v2137_v56, %v2136_v38  ;;  %v2525_v36 = vsel %vm8347_vm9, %v2519_v27, %v2524_v22  ;;  %v12459_v5 = vshrl.u32 %v12458_v17, 16  ;;  %v12460_v3 = vshll.u32 %v12458_v17, 16 }
 0x149   :  { %v2148_v25 = vrot.slane %v12457_v16, 6  ;;  %v2142_v9 = vor.u32 %v2141_v30, %v2140_v34  ;;  %v8512_v0 = vsel %vm1059_vm2, %v2632_v8, 0  ;;  %v2607_v44 = vunpack.c.l.b16 %v2525_v36  ;;  %v12466_v34 = vld [vmem:[#allocation21_spill] sm:$0xff] }
 0x14a   :  { %v2256_v4 = vrot.slane %v12459_v5, 5  ;;  %v2257_v14 = vrot.slane %v12460_v3, 6  ;;  %12461 = vst [vmem:[#allocation141_spill] sm:$0xff] %v8512_v0  ;;  %v2139_v10 = vrot.slane %v2138_v57, 4  ;;  %v2147_v46 = vrot.slane %v2145_v13, 5  ;;  %2770 = vmatpush.bf16.xpose.msrb.mxu2 %v8512_v0 }
 0x14b   :  { %v2144_v52 = vrot.slane %v2142_v9, 4  ;;  %v12463_v59 = vshrl.u32 %v12462_v42, 16  ;;  %v12464_v41 = vshll.u32 %v12462_v42, 16  ;;  %v2640_v31 = vpack.c.b16 %v2607_v44, %v2606_v47  ;;  %v12469_v47 = vld [vmem:[#allocation22_spill] sm:$0xff] }
 0x14c   :  { %v2258_v2 = vor.u32 %v2257_v14, %v2256_v4  ;;  %v2143_v33 = vsel %vm8347_vm9, %v2139_v10, %v2142_v9  ;;  %v2149_v27 = vor.u32 %v2148_v25, %v2147_v46  ;;  %v2265_v56 = vshrl.u32 %v12465_v37, 16  ;;  %v12472_v14 = vld [vmem:[#allocation24_spill] sm:$0xff] }
 0x14d   :  { %v2260_v63 = vrot.slane %v12463_v59, 5  ;;  %v2261_v38 = vrot.slane %v12464_v41, 6  ;;  %v2556_v22 = vunpack.c.l.b16 %v2143_v33  ;;  %v12467_v50 = vshll.u32 %v12466_v34, 16 }
 0x14e   :  { %v2259_v7 = vrot.slane %v2258_v2, 4  ;;  %v8525_v8 = vsel %vm1059_vm2, %v2640_v31, 0  ;;  %v2150_v57 = vsel %vm8347_vm9, %v2144_v52, %v2149_v27  ;;  %v2267_v13 = vrot.slane %v2265_v56, 5  ;;  %v12477_v27 = vld [vmem:[#allocation26_spill] sm:$0xff] }
 0x14f   :  { %v2262_v19 = vor.u32 %v2261_v38, %v2260_v63  ;;  %v2268_v30 = vrot.slane %v12467_v50, 6  ;;  %12468 = vst [vmem:[#allocation9_spill] sm:$0xff] %v8525_v8  ;;  %v12470_v53 = vshrl.u32 %v12469_v47, 16  ;;  %2784 = vmatpush.bf16.xpose.msrb.mxu3 %v8525_v8  ;;  %v2557_v25 = vunpack.c.l.b16 %v2150_v57  ;;  %v12475_v63 = vld [vmem:[#allocation25_spill] sm:$0xff] }
 0x150   :  { %v12471_v17 = vshll.u32 %v12469_v47, 16  ;;  %v12473_v44 = vshrl.u32 %v12472_v14, 16  ;;  %v12474_v46 = vshll.u32 %v12472_v14, 16  ;;  %v2385_v59 = vshrl.u32 %v7933_v39, 16 }
 0x151   :  { %v2376_v16 = vrot.slane %v12470_v53, 5  ;;  %v2263_v36 = vsel %vm8347_vm9, %v2259_v7, %v2262_v19  ;;  %v2264_v9 = vrot.slane %v2262_v19, 4  ;;  %v2269_v4 = vor.u32 %v2268_v30, %v2267_v13  ;;  %v12481_v13 = vld [vmem:[#allocation28_spill] sm:$0xff] }
 0x152   :  { %v2377_v5 = vrot.slane %v12471_v17, 6  ;;  %v2572_v3 = vunpack.c.l.b16 %v2263_v36  ;;  %v2380_v10 = vrot.slane %v12473_v44, 5  ;;  %v2381_v52 = vrot.slane %v12474_v46, 6 }
 0x153   :  { %v2615_v2 = vpack.c.b16 %v2557_v25, %v2556_v22  ;;  %v12476_v41 = vshll.u32 %v12475_v63, 16  ;;  %v2270_v31 = vsel %vm8347_vm9, %v2264_v9, %v2269_v4  ;;  %v12478_v37 = vshrl.u32 %v12477_v27, 16 }
 0x154   :  { %v2378_v42 = vor.u32 %v2377_v5, %v2376_v16  ;;  %v2382_v33 = vor.u32 %v2381_v52, %v2380_v10  ;;  %v12479_v7 = vshll.u32 %v12477_v27, 16  ;;  %v2573_v22 = vunpack.c.l.b16 %v2270_v31  ;;  %v12484_v10 = vld [vmem:[#allocation29_spill] sm:$0xff] }
 0x155   :  { %v2388_v38 = vrot.slane %v12476_v41, 6  ;;  %v2496_v56 = vrot.slane %v12478_v37, 5  ;;  %v8550_v34 = vsel %vm1059_vm2, %v2615_v2, 0  ;;  %v2387_v30 = vrot.slane %v2385_v59, 5 }
 0x156   :  { %v2497_v19 = vrot.slane %v12479_v7, 6  ;;  %12480 = vst [vmem:[#allocation11_spill] sm:$0xff] %v8550_v34  ;;  %v2379_v50 = vrot.slane %v2378_v42, 4  ;;  %2743 = vmatpush.bf16.xpose.msrb.mxu0 %v8550_v34  ;;  %v2384_v39 = vrot.slane %v2382_v33, 4  ;;  %v12482_v47 = vshrl.u32 %v12481_v13, 16  ;;  %v12490_v7 = vld [vmem:[#allocation32_spill] sm:$0xff] }
 0x157   :  { %v12483_v16 = vshll.u32 %v12481_v13, 16  ;;  %v2623_v36 = vpack.c.b16 %v2573_v22, %v2572_v3  ;;  %v2389_v17 = vor.u32 %v2388_v38, %v2387_v30  ;;  %v2505_v5 = vshrl.u32 %v7960_v11, 16  ;;  %v12487_v3 = vld [vmem:[#allocation30_spill] sm:$0xff] }
 0x158   :  { %v2498_v57 = vor.u32 %v2497_v19, %v2496_v56  ;;  %v2500_v53 = vrot.slane %v12482_v47, 5  ;;  %v2383_v9 = vsel %vm8347_vm9, %v2379_v50, %v2382_v33  ;;  %v12485_v46 = vshll.u32 %v12484_v10, 16  ;;  %v12493_v47 = vld [vmem:[#allocation34_spill] sm:$0xff] }
 0x159   :  { %v2501_v25 = vrot.slane %v12483_v16, 6  ;;  %v2588_v4 = vunpack.c.l.b16 %v2383_v9  ;;  %v8563_v2 = vsel %vm1059_vm2, %v2623_v36, 0  ;;  %v2390_v42 = vsel %vm8347_vm9, %v2384_v39, %v2389_v17  ;;  %v12495_v9 = vld [vmem:[#allocation33_spill] sm:$0xff] }
 0x15a   :  { %v2499_v14 = vrot.slane %v2498_v57, 4  ;;  %v2508_v52 = vrot.slane %v12485_v46, 6  ;;  %12486 = vst [vmem:[#allocation12_spill] sm:$0xff] %v8563_v2  ;;  %v2507_v59 = vrot.slane %v2505_v5, 5  ;;  %v12488_v63 = vshrl.u32 %v12487_v3, 16  ;;  %2757 = vmatpush.bf16.xpose.msrb.mxu1 %v8563_v2 }
 0x15b   :  { %v2502_v44 = vor.u32 %v2501_v25, %v2500_v53  ;;  %v2589_v38 = vunpack.c.l.b16 %v2390_v42  ;;  %v12489_v33 = vshll.u32 %v12487_v3, 16  ;;  %v12491_v19 = vshrl.u32 %v12490_v7, 16 }
 0x15c   :  { %v2121_v41 = vrot.slane %v12488_v63, 5  ;;  %v2509_v37 = vor.u32 %v2508_v52, %v2507_v59  ;;  %v12492_v50 = vshll.u32 %v12490_v7, 16  ;;  %v2130_v13 = vshrl.u32 %v7975_v29, 16  ;;  %v12499_v59 = vld [vmem:[#allocation36_spill] sm:$0xff] }
 0x15d   :  { %v2503_v11 = vsel %vm8347_vm9, %v2499_v14, %v2502_v44  ;;  %v2504_v31 = vrot.slane %v2502_v44, 4  ;;  %v2122_v27 = vrot.slane %v12489_v33, 6  ;;  %v2125_v22 = vrot.slane %v12491_v19, 5 }
 0x15e   :  { %v2604_v56 = vunpack.c.l.b16 %v2503_v11  ;;  %v2126_v30 = vrot.slane %v12492_v50, 6  ;;  %v2631_v39 = vpack.c.b16 %v2589_v38, %v2588_v4  ;;  %v12494_v53 = vshll.u32 %v12493_v47, 16 }
 0x15f   :  { %v2123_v57 = vor.u32 %v2122_v27, %v2121_v41  ;;  %v2510_v25 = vsel %vm8347_vm9, %v2504_v31, %v2509_v37  ;;  %v12496_v17 = vshrl.u32 %v12495_v9, 16  ;;  %v12497_v14 = vshll.u32 %v12495_v9, 16 }
 0x160   :  { %v2133_v16 = vrot.slane %v12494_v53, 6  ;;  %v2127_v36 = vor.u32 %v2126_v30, %v2125_v22  ;;  %v8588_v10 = vsel %vm1059_vm2, %v2631_v39, 0  ;;  %v2605_v4 = vunpack.c.l.b16 %v2510_v25  ;;  %v12502_v22 = vld [vmem:[#allocation38_spill] sm:$0xff] }
 0x161   :  { %v2241_v5 = vrot.slane %v12496_v17, 5  ;;  %v2242_v44 = vrot.slane %v12497_v14, 6  ;;  %12498 = vst [vmem:[#allocation142_spill] sm:$0xff] %v8588_v10  ;;  %v2124_v46 = vrot.slane %v2123_v57, 4  ;;  %v2132_v52 = vrot.slane %v2130_v13, 5  ;;  %2771 = vmatpush.bf16.xpose.msrb.mxu2 %v8588_v10  ;;  %v12508_v14 = vld [vmem:[#allocation40_spill] sm:$0xff] }
 0x162   :  { %v2129_v29 = vrot.slane %v2127_v36, 4  ;;  %v12500_v3 = vshrl.u32 %v12499_v59, 16  ;;  %v12501_v41 = vshll.u32 %v12499_v59, 16  ;;  %v2639_v11 = vpack.c.b16 %v2605_v4, %v2604_v56  ;;  %v12505_v56 = vld [vmem:[#allocation37_spill] sm:$0xff] }
 0x163   :  { %v2243_v42 = vor.u32 %v2242_v44, %v2241_v5  ;;  %v2128_v31 = vsel %vm8347_vm9, %v2124_v46, %v2127_v36  ;;  %v2134_v33 = vor.u32 %v2133_v16, %v2132_v52  ;;  %v2250_v27 = vshrl.u32 %v7996_v15, 16 }
 0x164   :  { %v2245_v63 = vrot.slane %v12500_v3, 5  ;;  %v2246_v38 = vrot.slane %v12501_v41, 6  ;;  %v2554_v37 = vunpack.c.l.b16 %v2128_v31  ;;  %v12503_v50 = vshll.u32 %v12502_v22, 16  ;;  %v12511_v3 = vld [vmem:[#allocation41_spill] sm:$0xff]  ;;  %v12513_v31 = vld [vmem:[#allocation42_spill] sm:$0xff] }
 0x165   :  { %v2244_v7 = vrot.slane %v2243_v42, 4  ;;  %v8601_v39 = vsel %vm1059_vm2, %v2639_v11, 0  ;;  %v2135_v57 = vsel %vm8347_vm9, %v2129_v29, %v2134_v33  ;;  %v2252_v13 = vrot.slane %v2250_v27, 5 }
 0x166   :  { %v2247_v19 = vor.u32 %v2246_v38, %v2245_v63  ;;  %v2253_v30 = vrot.slane %v12503_v50, 6  ;;  %12504 = vst [vmem:[#allocation13_spill] sm:$0xff] %v8601_v39  ;;  %v12506_v47 = vshrl.u32 %v12505_v56, 16  ;;  %2785 = vmatpush.bf16.xpose.msrb.mxu3 %v8601_v39  ;;  %v2555_v16 = vunpack.c.l.b16 %v2135_v57 }
 0x167   :  { %v12507_v36 = vshll.u32 %v12505_v56, 16  ;;  %v12509_v44 = vshrl.u32 %v12508_v14, 16  ;;  %v12510_v46 = vshll.u32 %v12508_v14, 16  ;;  %v2370_v59 = vshrl.u32 %v8021_v51, 16 }
 0x168   :  { %v2361_v53 = vrot.slane %v12506_v47, 5  ;;  %v2248_v15 = vsel %vm8347_vm9, %v2244_v7, %v2247_v19  ;;  %v2249_v25 = vrot.slane %v2247_v19, 4  ;;  %v2254_v17 = vor.u32 %v2253_v30, %v2252_v13  ;;  %v12517_v13 = vld [vmem:[#allocation44_spill] sm:$0xff] }
 0x169   :  { %v2362_v9 = vrot.slane %v12507_v36, 6  ;;  %v2570_v5 = vunpack.c.l.b16 %v2248_v15  ;;  %v2365_v4 = vrot.slane %v12509_v44, 5  ;;  %v2366_v52 = vrot.slane %v12510_v46, 6  ;;  %v12521_v46 = vld [vmem:[#allocation45_spill] sm:$0xff] }
 0x16a   :  { %v2614_v29 = vpack.c.b16 %v2555_v16, %v2554_v37  ;;  %v12512_v63 = vshll.u32 %v12511_v3, 16  ;;  %v2255_v38 = vsel %vm8347_vm9, %v2249_v25, %v2254_v17  ;;  %v12514_v33 = vshrl.u32 %v12513_v31, 16 }
 0x16b   :  { %v2363_v42 = vor.u32 %v2362_v9, %v2361_v53  ;;  %v2367_v11 = vor.u32 %v2366_v52, %v2365_v4  ;;  %v12515_v7 = vshll.u32 %v12513_v31, 16  ;;  %v2571_v37 = vunpack.c.l.b16 %v2255_v38  ;;  %v12520_v9 = vld [vmem:[#allocation152_spill] sm:$0xff] }
 0x16c   :  { %v2373_v41 = vrot.slane %v12512_v63, 6  ;;  %v2481_v27 = vrot.slane %v12514_v33, 5  ;;  %v8626_v22 = vsel %vm1059_vm2, %v2614_v29, 0  ;;  %v2372_v30 = vrot.slane %v2370_v59, 5 }
 0x16d   :  { %v2482_v19 = vrot.slane %v12515_v7, 6  ;;  %12516 = vst [vmem:[#allocation15_spill] sm:$0xff] %v8626_v22  ;;  %v2364_v50 = vrot.slane %v2363_v42, 4  ;;  %2744 = vmatpush.bf16.xpose.msrb.mxu0 %v8626_v22  ;;  %v2369_v51 = vrot.slane %v2367_v11, 4  ;;  %v12518_v56 = vshrl.u32 %v12517_v13, 16 }
 0x16e   :  { %v12519_v53 = vshll.u32 %v12517_v13, 16  ;;  %v2622_v15 = vpack.c.b16 %v2571_v37, %v2570_v5  ;;  %v2374_v36 = vor.u32 %v2373_v41, %v2372_v30  ;;  %v2490_v17 = vshrl.u32 %v12520_v9, 16  ;;  %v12524_v5 = vld [vmem:[#allocation46_spill] sm:$0xff]  ;;  %v12527_v37 = vld [vmem:[#allocation48_spill] sm:$0xff]  ;;  %v12532_v9 = vld [vmem:[#allocation49_spill] sm:$0xff] }
 0x16f   :  { %v2483_v57 = vor.u32 %v2482_v19, %v2481_v27  ;;  %v2485_v47 = vrot.slane %v12518_v56, 5  ;;  %v2368_v25 = vsel %vm8347_vm9, %v2364_v50, %v2367_v11  ;;  %v12522_v52 = vshll.u32 %v12521_v46, 16 }
 0x170   :  { %v2486_v16 = vrot.slane %v12519_v53, 6  ;;  %v2586_v14 = vunpack.c.l.b16 %v2368_v25  ;;  %v8639_v42 = vsel %vm1059_vm2, %v2622_v15, 0  ;;  %v2375_v59 = vsel %vm8347_vm9, %v2369_v51, %v2374_v36  ;;  %v12530_v53 = vld [vmem:[#allocation50_spill] sm:$0xff] }
 0x171   :  { %v2484_v44 = vrot.slane %v2483_v57, 4  ;;  %v2493_v29 = vrot.slane %v12522_v52, 6  ;;  %12523 = vst [vmem:[#allocation16_spill] sm:$0xff] %v8639_v42  ;;  %v2492_v3 = vrot.slane %v2490_v17, 5  ;;  %v12525_v63 = vshrl.u32 %v12524_v5, 16  ;;  %2758 = vmatpush.bf16.xpose.msrb.mxu1 %v8639_v42  ;;  %v12644_v42 = vld [vmem:[#allocation100_spill] sm:$0xff] }
 0x172   :  { %v2487_v4 = vor.u32 %v2486_v16, %v2485_v47  ;;  %v2587_v41 = vunpack.c.l.b16 %v2375_v59  ;;  %v12526_v33 = vshll.u32 %v12524_v5, 16  ;;  %v12528_v50 = vshrl.u32 %v12527_v37, 16  ;;  %v12536_v5 = vld [vmem:[#allocation52_spill] sm:$0xff] }
 0x173   :  { %v2106_v38 = vrot.slane %v12525_v63, 5  ;;  %v2494_v7 = vor.u32 %v2493_v29, %v2492_v3  ;;  %v12529_v51 = vshll.u32 %v12527_v37, 16  ;;  %v2115_v47 = vshrl.u32 %v8068_v35, 16 }
 0x174   :  { %v2488_v11 = vsel %vm8347_vm9, %v2484_v44, %v2487_v4  ;;  %v2489_v31 = vrot.slane %v2487_v4, 4  ;;  %v2107_v27 = vrot.slane %v12526_v33, 6  ;;  %v2110_v30 = vrot.slane %v12528_v50, 5 }
 0x175   :  { %v2602_v19 = vunpack.c.l.b16 %v2488_v11  ;;  %v2111_v57 = vrot.slane %v12529_v51, 6  ;;  %v2630_v13 = vpack.c.b16 %v2587_v41, %v2586_v14  ;;  %v12531_v16 = vshll.u32 %v12530_v53, 16 }
 0x176   :  { %v2108_v56 = vor.u32 %v2107_v27, %v2106_v38  ;;  %v2495_v25 = vsel %vm8347_vm9, %v2489_v31, %v2494_v7  ;;  %v12533_v17 = vshrl.u32 %v12532_v9, 16  ;;  %v12534_v4 = vshll.u32 %v12532_v9, 16  ;;  %v8676_v7 = vld [vmem:[%s11547_s0 + $0x8c] sm:$0x3] }
 0x177   :  { %v2118_v15 = vrot.slane %v12531_v16, 6  ;;  %v2112_v36 = vor.u32 %v2111_v57, %v2110_v30  ;;  %v8664_v52 = vsel %vm1059_vm2, %v2630_v13, 0  ;;  %v2603_v14 = vunpack.c.l.b16 %v2495_v25  ;;  %v12539_v57 = vld [vmem:[#allocation54_spill] sm:$0xff]  ;;  %v12542_v16 = vld [vmem:[#allocation53_spill] sm:$0xff] }
 0x178   :  { %v2226_v44 = vrot.slane %v12533_v17, 5  ;;  %v2227_v46 = vrot.slane %v12534_v4, 6  ;;  %12535 = vst [vmem:[#allocation17_spill] sm:$0xff] %v8664_v52  ;;  %v2109_v29 = vrot.slane %v2108_v56, 4  ;;  %v2117_v59 = vrot.slane %v2115_v47, 5  ;;  %2772 = vmatpush.bf16.xpose.msrb.mxu2 %v8664_v52 }
 0x179   :  { %v2114_v35 = vrot.slane %v2112_v36, 4  ;;  %v12537_v63 = vshrl.u32 %v12536_v5, 16  ;;  %v12538_v41 = vshll.u32 %v12536_v5, 16  ;;  %v2638_v31 = vpack.c.b16 %v2603_v14, %v2602_v19 }
 0x17a   :  { %v2228_v3 = vor.u32 %v2227_v46, %v2226_v44  ;;  %v2113_v33 = vsel %vm8347_vm9, %v2109_v29, %v2112_v36  ;;  %v2119_v27 = vor.u32 %v2118_v15, %v2117_v59  ;;  %v2235_v37 = vshrl.u32 %v8676_v7, 16  ;;  %v12545_v29 = vld [vmem:[#allocation56_spill] sm:$0xff] }
 0x17b   :  { %v2230_v38 = vrot.slane %v12537_v63, 5  ;;  %v2231_v11 = vrot.slane %v12538_v41, 6  ;;  %v2552_v50 = vunpack.c.l.b16 %v2113_v33  ;;  %v12540_v13 = vshll.u32 %v12539_v57, 16  ;;  %v8700_v41 = vld [vmem:[%s11547_s0 + $0x11c] sm:$0x3] }
 0x17c   :  { %v2229_v30 = vrot.slane %v2228_v3, 4  ;;  %v8682_v47 = vsel %vm1059_vm2, %v2638_v31, 0  ;;  %v2120_v19 = vsel %vm8347_vm9, %v2114_v35, %v2119_v27  ;;  %v2237_v53 = vrot.slane %v2235_v37, 5  ;;  %v12548_v31 = vld [vmem:[#allocation57_spill] sm:$0xff] }
 0x17d   :  { %v2232_v51 = vor.u32 %v2231_v11, %v2230_v38  ;;  %v2238_v56 = vrot.slane %v12540_v13, 6  ;;  %12541 = vst [vmem:[#allocation18_spill] sm:$0xff] %v8682_v47  ;;  %v12543_v15 = vshrl.u32 %v12542_v16, 16  ;;  %2786 = vmatpush.bf16.xpose.msrb.mxu3 %v8682_v47  ;;  %v2553_v36 = vunpack.c.l.b16 %v2120_v19 }
 0x17e   :  { %v12544_v44 = vshll.u32 %v12542_v16, 16  ;;  %v12546_v59 = vshrl.u32 %v12545_v29, 16  ;;  %v12547_v35 = vshll.u32 %v12545_v29, 16  ;;  %v2355_v11 = vshrl.u32 %v8700_v41, 16 }
 0x17f   :  { %v2346_v25 = vrot.slane %v12543_v15, 5  ;;  %v2233_v9 = vsel %vm8347_vm9, %v2229_v30, %v2232_v51  ;;  %v2234_v17 = vrot.slane %v2232_v51, 4  ;;  %v2239_v46 = vor.u32 %v2238_v56, %v2237_v53  ;;  %v12550_v51 = vld [vmem:[#allocation58_spill] sm:$0xff] }
 0x180   :  { %v2347_v4 = vrot.slane %v12544_v44, 6  ;;  %v2568_v14 = vunpack.c.l.b16 %v2233_v9  ;;  %v2350_v3 = vrot.slane %v12546_v59, 5  ;;  %v2351_v5 = vrot.slane %v12547_v35, 6  ;;  %v12554_v9 = vld [vmem:[#allocation60_spill] sm:$0xff]  ;;  %v8724_v35 = vld [vmem:[%s11547_s0 + $0x17c] sm:$0x3] }
 0x181   :  { %v2613_v63 = vpack.c.b16 %v2553_v36, %v2552_v50  ;;  %v12549_v33 = vshll.u32 %v12548_v31, 16  ;;  %v2240_v37 = vsel %vm8347_vm9, %v2234_v17, %v2239_v46  ;;  %v12551_v57 = vshrl.u32 %v12550_v51, 16  ;;  %v12557_v31 = vld [vmem:[#allocation61_spill] sm:$0xff] }
 0x182   :  { %v2348_v38 = vor.u32 %v2347_v4, %v2346_v25  ;;  %v2352_v30 = vor.u32 %v2351_v5, %v2350_v3  ;;  %v12552_v50 = vshll.u32 %v12550_v51, 16  ;;  %v2569_v53 = vunpack.c.l.b16 %v2240_v37 }
 0x183   :  { %v2358_v27 = vrot.slane %v12549_v33, 6  ;;  %v2466_v13 = vrot.slane %v12551_v57, 5  ;;  %v8712_v19 = vsel %vm1059_vm2, %v2613_v63, 0  ;;  %v2357_v15 = vrot.slane %v2355_v11, 5 }
 0x184   :  { %v2467_v56 = vrot.slane %v12552_v50, 6  ;;  %12553 = vst [vmem:[#allocation20_spill] sm:$0xff] %v8712_v19  ;;  %v2349_v16 = vrot.slane %v2348_v38, 4  ;;  %2745 = vmatpush.bf16.xpose.msrb.mxu0 %v8712_v19  ;;  %v2354_v25 = vrot.slane %v2352_v30, 4  ;;  %v12555_v44 = vshrl.u32 %v12554_v9, 16  ;;  %v12626_v19 = vld [vmem:[#allocation92_spill] sm:$0xff] }
 0x185   :  { %v12556_v4 = vshll.u32 %v12554_v9, 16  ;;  %v2621_v29 = vpack.c.b16 %v2569_v53, %v2568_v14  ;;  %v2359_v3 = vor.u32 %v2358_v27, %v2357_v15  ;;  %v2475_v5 = vshrl.u32 %v8724_v35, 16 }
 0x186   :  { %v2468_v36 = vor.u32 %v2467_v56, %v2466_v13  ;;  %v2470_v17 = vrot.slane %v12555_v44, 5  ;;  %v2353_v59 = vsel %vm8347_vm9, %v2349_v16, %v2352_v30  ;;  %v12558_v33 = vshll.u32 %v12557_v31, 16  ;;  %v12560_v30 = vld [vmem:[#allocation62_spill] sm:$0xff]  ;;  %v12563_v44 = vld [vmem:[#allocation64_spill] sm:$0xff] }
 0x187   :  { %v2471_v46 = vrot.slane %v12556_v4, 6  ;;  %v2584_v63 = vunpack.c.l.b16 %v2353_v59  ;;  %v8730_v51 = vsel %vm1059_vm2, %v2621_v29, 0  ;;  %v2360_v14 = vsel %vm8347_vm9, %v2354_v25, %v2359_v3  ;;  %v8748_v3 = vld [vmem:[%s11547_s0 + $0x20] sm:$0x3] }
 0x188   :  { %v2469_v38 = vrot.slane %v2468_v36, 4  ;;  %v2478_v37 = vrot.slane %v12558_v33, 6  ;;  %12559 = vst [vmem:[#allocation145_spill] sm:$0xff] %v8730_v51  ;;  %v2477_v27 = vrot.slane %v2475_v5, 5  ;;  %v12561_v57 = vshrl.u32 %v12560_v30, 16  ;;  %2759 = vmatpush.bf16.xpose.msrb.mxu1 %v8730_v51  ;;  %v12608_v51 = vld [vmem:[#allocation84_spill] sm:$0xff] }
 0x189   :  { %v2472_v11 = vor.u32 %v2471_v46, %v2470_v17  ;;  %v2585_v50 = vunpack.c.l.b16 %v2360_v14  ;;  %v12562_v16 = vshll.u32 %v12560_v30, 16  ;;  %v12564_v17 = vshrl.u32 %v12563_v44, 16  ;;  %v12568_v14 = vld [vmem:[#allocation65_spill] sm:$0xff] }
 0x18a   :  { %v2091_v13 = vrot.slane %v12561_v57, 5  ;;  %v2479_v36 = vor.u32 %v2478_v37, %v2477_v27  ;;  %v12565_v25 = vshll.u32 %v12563_v44, 16  ;;  %v2100_v5 = vshrl.u32 %v8748_v3, 16 }
 0x18b   :  { %v2473_v56 = vsel %vm8347_vm9, %v2469_v38, %v2472_v11  ;;  %v2474_v53 = vrot.slane %v2472_v11, 4  ;;  %v2092_v15 = vrot.slane %v12562_v16, 6  ;;  %v2095_v4 = vrot.slane %v12564_v17, 5  ;;  %v12566_v38 = vld [vmem:[#allocation66_spill] sm:$0xff]  ;;  %v12572_v17 = vld [vmem:[#allocation68_spill] sm:$0xff] }
 0x18c   :  { %v2600_v9 = vunpack.c.l.b16 %v2473_v56  ;;  %v2096_v46 = vrot.slane %v12565_v25, 6  ;;  %v2629_v29 = vpack.c.b16 %v2585_v50, %v2584_v63  ;;  %v12567_v11 = vshll.u32 %v12566_v38, 16 }
 0x18d   :  { %v2093_v59 = vor.u32 %v2092_v15, %v2091_v13  ;;  %v2480_v33 = vsel %vm8347_vm9, %v2474_v53, %v2479_v36  ;;  %v12569_v27 = vshrl.u32 %v12568_v14, 16  ;;  %v12570_v63 = vshll.u32 %v12568_v14, 16 }
 0x18e   :  { %v2103_v31 = vrot.slane %v12567_v11, 6  ;;  %v2097_v37 = vor.u32 %v2096_v46, %v2095_v4  ;;  %v8760_v13 = vsel %vm1059_vm2, %v2629_v29, 0  ;;  %v2601_v50 = vunpack.c.l.b16 %v2480_v33  ;;  %v8772_v29 = vld [vmem:[%s11547_s0 + $0x80] sm:$0x3] }
 0x18f   :  { %v2211_v30 = vrot.slane %v12569_v27, 5  ;;  %v2212_v57 = vrot.slane %v12570_v63, 6  ;;  %12571 = vst [vmem:[#allocation21_spill] sm:$0xff] %v8760_v13  ;;  %v2094_v56 = vrot.slane %v2093_v59, 4  ;;  %v2102_v16 = vrot.slane %v2100_v5, 5  ;;  %2773 = vmatpush.bf16.xpose.msrb.mxu2 %v8760_v13  ;;  %v12575_v27 = vld [vmem:[#allocation70_spill] sm:$0xff] }
 0x190   :  { %v2099_v15 = vrot.slane %v2097_v37, 4  ;;  %v12573_v25 = vshrl.u32 %v12572_v17, 16  ;;  %v12574_v36 = vshll.u32 %v12572_v17, 16  ;;  %v2637_v46 = vpack.c.b16 %v2601_v50, %v2600_v9 }
 0x191   :  { %v2213_v44 = vor.u32 %v2212_v57, %v2211_v30  ;;  %v2098_v38 = vsel %vm8347_vm9, %v2094_v56, %v2097_v37  ;;  %v2104_v11 = vor.u32 %v2103_v31, %v2102_v16  ;;  %v2220_v59 = vshrl.u32 %v8772_v29, 16  ;;  %v12578_v37 = vld [vmem:[#allocation69_spill] sm:$0xff] }
 0x192   :  { %v2215_v53 = vrot.slane %v12573_v25, 5  ;;  %v2216_v4 = vrot.slane %v12574_v36, 6  ;;  %v2550_v5 = vunpack.c.l.b16 %v2098_v38  ;;  %v12576_v30 = vshll.u32 %v12575_v27, 16 }
 0x193   :  { %v2214_v33 = vrot.slane %v2213_v44, 4  ;;  %v8778_v57 = vsel %vm1059_vm2, %v2637_v46, 0  ;;  %v2105_v9 = vsel %vm8347_vm9, %v2099_v15, %v2104_v11  ;;  %v2222_v31 = vrot.slane %v2220_v59, 5  ;;  %v12581_v46 = vld [vmem:[#allocation72_spill] sm:$0xff] }
 0x194   :  { %v2217_v14 = vor.u32 %v2216_v4, %v2215_v53  ;;  %v2223_v63 = vrot.slane %v12576_v30, 6  ;;  %12577 = vst [vmem:[#allocation22_spill] sm:$0xff] %v8778_v57  ;;  %v12579_v50 = vshrl.u32 %v12578_v37, 16  ;;  %2787 = vmatpush.bf16.xpose.msrb.mxu3 %v8778_v57  ;;  %v2551_v16 = vunpack.c.l.b16 %v2105_v9  ;;  %v8796_v9 = vld [vmem:[%s11547_s0 + $0x110] sm:$0x3] }
 0x195   :  { %v12580_v25 = vshll.u32 %v12578_v37, 16  ;;  %v12582_v38 = vshrl.u32 %v12581_v46, 16  ;;  %v12583_v15 = vshll.u32 %v12581_v46, 16  ;;  %v12590_v57 = vld [vmem:[#allocation76_spill] sm:$0xff]  ;;  %v12609_v47 = vshrl.u32 %v12608_v51, 16 }
 0x196   :  { %v2331_v56 = vrot.slane %v12579_v50, 5  ;;  %v2218_v44 = vsel %vm8347_vm9, %v2214_v33, %v2217_v14  ;;  %v2219_v17 = vrot.slane %v2217_v14, 4  ;;  %v2224_v36 = vor.u32 %v2223_v63, %v2222_v31  ;;  %v12584_v14 = vld [vmem:[#allocation73_spill] sm:$0xff] }
 0x197   :  { %v2332_v53 = vrot.slane %v12580_v25, 6  ;;  %v2566_v4 = vunpack.c.l.b16 %v2218_v44  ;;  %v2335_v27 = vrot.slane %v12582_v38, 5  ;;  %v2336_v11 = vrot.slane %v12583_v15, 6  ;;  %v12586_v44 = vld [vmem:[#allocation74_spill] sm:$0xff] }
 0x198   :  { %v2612_v59 = vpack.c.b16 %v2551_v16, %v2550_v5  ;;  %v2340_v33 = vshrl.u32 %v8796_v9, 16  ;;  %v12585_v37 = vshll.u32 %v12584_v14, 16  ;;  %v2225_v63 = vsel %vm8347_vm9, %v2219_v17, %v2224_v36 }
 0x199   :  { %v2333_v30 = vor.u32 %v2332_v53, %v2331_v56  ;;  %v2337_v31 = vor.u32 %v2336_v11, %v2335_v27  ;;  %v12587_v25 = vshrl.u32 %v12586_v44, 16  ;;  %v12588_v5 = vshll.u32 %v12586_v44, 16 }
 0x19a   :  { %v2343_v50 = vrot.slane %v12585_v37, 6  ;;  %v8808_v16 = vsel %vm1059_vm2, %v2612_v59, 0  ;;  %v2567_v53 = vunpack.c.l.b16 %v2225_v63  ;;  %v2342_v15 = vrot.slane %v2340_v33, 5  ;;  %v8820_v59 = vld [vmem:[%s11547_s0 + $0x170] sm:$0x3] }
 0x19b   :  { %v2451_v46 = vrot.slane %v12587_v25, 5  ;;  %v2452_v56 = vrot.slane %v12588_v5, 6  ;;  %12589 = vst [vmem:[#allocation24_spill] sm:$0xff] %v8808_v16  ;;  %v2334_v38 = vrot.slane %v2333_v30, 4  ;;  %2746 = vmatpush.bf16.xpose.msrb.mxu0 %v8808_v16  ;;  %v2339_v14 = vrot.slane %v2337_v31, 4  ;;  %v12593_v5 = vld [vmem:[#allocation77_spill] sm:$0xff] }
 0x19c   :  { %v12591_v13 = vshrl.u32 %v12590_v57, 16  ;;  %v12592_v36 = vshll.u32 %v12590_v57, 16  ;;  %v2620_v11 = vpack.c.b16 %v2567_v53, %v2566_v4  ;;  %v2344_v25 = vor.u32 %v2343_v50, %v2342_v15 }
 0x19d   :  { %v2453_v37 = vor.u32 %v2452_v56, %v2451_v46  ;;  %v2338_v44 = vsel %vm8347_vm9, %v2334_v38, %v2337_v31  ;;  %v2460_v30 = vshrl.u32 %v8820_v59, 16  ;;  %v12596_v31 = vld [vmem:[#allocation78_spill] sm:$0xff]  ;;  %v12627_v52 = vshrl.u32 %v12626_v19, 16 }
 0x19e   :  { %v2455_v17 = vrot.slane %v12591_v13, 5  ;;  %v2456_v27 = vrot.slane %v12592_v36, 6  ;;  %v2582_v33 = vunpack.c.l.b16 %v2338_v44  ;;  %v12594_v13 = vshll.u32 %v12593_v5, 16  ;;  %v12599_v5 = vld [vmem:[#allocation80_spill] sm:$0xff] }
 0x19f   :  { %v2454_v63 = vrot.slane %v2453_v37, 4  ;;  %v8826_v57 = vsel %vm1059_vm2, %v2620_v11, 0  ;;  %v2345_v4 = vsel %vm8347_vm9, %v2339_v14, %v2344_v25  ;;  %v2462_v50 = vrot.slane %v2460_v30, 5 }
 0x1a0   :  { %v2457_v46 = vor.u32 %v2456_v27, %v2455_v17  ;;  %v2463_v56 = vrot.slane %v12594_v13, 6  ;;  %12595 = vst [vmem:[#allocation25_spill] sm:$0xff] %v8826_v57  ;;  %v12597_v53 = vshrl.u32 %v12596_v31, 16  ;;  %2760 = vmatpush.bf16.xpose.msrb.mxu1 %v8826_v57  ;;  %v2583_v15 = vunpack.c.l.b16 %v2345_v4  ;;  %v8844_v4 = vld [vmem:[%s11547_s0 + $0x14] sm:$0x3] }
 0x1a1   :  { %v12598_v36 = vshll.u32 %v12596_v31, 16  ;;  %v12600_v13 = vshrl.u32 %v12599_v5, 16  ;;  %v12601_v14 = vshll.u32 %v12599_v5, 16  ;;  %v12645_v39 = vshrl.u32 %v12644_v42, 16 }
 0x1a2   :  { %v2076_v38 = vrot.slane %v12597_v53, 5  ;;  %v2458_v37 = vsel %vm8347_vm9, %v2454_v63, %v2457_v46  ;;  %v2459_v17 = vrot.slane %v2457_v46, 4  ;;  %v2464_v44 = vor.u32 %v2463_v56, %v2462_v50  ;;  %v12602_v46 = vld [vmem:[#allocation82_spill] sm:$0xff] }
 0x1a3   :  { %v2077_v27 = vrot.slane %v12598_v36, 6  ;;  %v2598_v11 = vunpack.c.l.b16 %v2458_v37  ;;  %v2080_v16 = vrot.slane %v12600_v13, 5  ;;  %v2081_v25 = vrot.slane %v12601_v14, 6  ;;  %v12604_v37 = vld [vmem:[#allocation81_spill] sm:$0xff] }
 0x1a4   :  { %v2628_v30 = vpack.c.b16 %v2583_v15, %v2582_v33  ;;  %v2085_v63 = vshrl.u32 %v8844_v4, 16  ;;  %v12603_v31 = vshll.u32 %v12602_v46, 16  ;;  %v2465_v56 = vsel %vm8347_vm9, %v2459_v17, %v2464_v44 }
 0x1a5   :  { %v2078_v53 = vor.u32 %v2077_v27, %v2076_v38  ;;  %v2082_v50 = vor.u32 %v2081_v25, %v2080_v16  ;;  %v12605_v13 = vshrl.u32 %v12604_v37, 16  ;;  %v12606_v33 = vshll.u32 %v12604_v37, 16 }
 0x1a6   :  { %v2088_v36 = vrot.slane %v12603_v31, 6  ;;  %v8856_v15 = vsel %vm1059_vm2, %v2628_v30, 0  ;;  %v2599_v27 = vunpack.c.l.b16 %v2465_v56  ;;  %v2087_v57 = vrot.slane %v2085_v63, 5  ;;  %v8868_v30 = vld [vmem:[%s11547_s0 + $0x74] sm:$0x3] }
 0x1a7   :  { %v2196_v5 = vrot.slane %v12605_v13, 5  ;;  %v2197_v38 = vrot.slane %v12606_v33, 6  ;;  %12607 = vst [vmem:[#allocation26_spill] sm:$0xff] %v8856_v15  ;;  %v2079_v14 = vrot.slane %v2078_v53, 4  ;;  %2774 = vmatpush.bf16.xpose.msrb.mxu2 %v8856_v15  ;;  %v2084_v46 = vrot.slane %v2082_v50, 4  ;;  %v12611_v33 = vld [vmem:[#allocation86_spill] sm:$0xff] }
 0x1a8   :  { %v2200_v17 = vrot.slane %v12609_v47, 5  ;;  %v12610_v16 = vshll.u32 %v12608_v51, 16  ;;  %v2636_v25 = vpack.c.b16 %v2599_v27, %v2598_v11  ;;  %v2089_v13 = vor.u32 %v2088_v36, %v2087_v57  ;;  %v12614_v36 = vld [vmem:[#allocation85_spill] sm:$0xff] }
 0x1a9   :  { %v2198_v31 = vor.u32 %v2197_v38, %v2196_v5  ;;  %v2083_v37 = vsel %vm8347_vm9, %v2079_v14, %v2082_v50  ;;  %v2205_v53 = vshrl.u32 %v8868_v30, 16  ;;  %v12612_v47 = vshll.u32 %v12611_v33, 16  ;;  %v12617_v33 = vld [vmem:[#allocation88_spill] sm:$0xff] }
 0x1aa   :  { %v2201_v44 = vrot.slane %v12610_v16, 6  ;;  %v2548_v63 = vunpack.c.l.b16 %v2083_v37  ;;  %v8874_v51 = vsel %vm1059_vm2, %v2636_v25, 0  ;;  %v2090_v11 = vsel %vm8347_vm9, %v2084_v46, %v2089_v13 }
 0x1ab   :  { %v2199_v56 = vrot.slane %v2198_v31, 4  ;;  %v2208_v38 = vrot.slane %v12612_v47, 6  ;;  %12613 = vst [vmem:[#allocation28_spill] sm:$0xff] %v8874_v51  ;;  %v2207_v57 = vrot.slane %v2205_v53, 5  ;;  %v12615_v50 = vshrl.u32 %v12614_v36, 16  ;;  %2788 = vmatpush.bf16.xpose.msrb.mxu3 %v8874_v51 }
 0x1ac   :  { %v2202_v5 = vor.u32 %v2201_v44, %v2200_v17  ;;  %v2549_v14 = vunpack.c.l.b16 %v2090_v11  ;;  %v12616_v16 = vshll.u32 %v12614_v36, 16  ;;  %v12618_v47 = vshrl.u32 %v12617_v33, 16  ;;  %v8892_v11 = vld [vmem:[%s11547_s0 + $0x104] sm:$0x3] }
 0x1ad   :  { %v2316_v27 = vrot.slane %v12615_v50, 5  ;;  %v2209_v37 = vor.u32 %v2208_v38, %v2207_v57  ;;  %v12619_v46 = vshll.u32 %v12617_v33, 16 }
 0x1ae   :  { %v2203_v31 = vsel %vm8347_vm9, %v2199_v56, %v2202_v5  ;;  %v2204_v17 = vrot.slane %v2202_v5, 4  ;;  %v2317_v44 = vrot.slane %v12616_v16, 6  ;;  %v2320_v15 = vrot.slane %v12618_v47, 5  ;;  %v12620_v5 = vld [vmem:[#allocation89_spill] sm:$0xff] }
 0x1af   :  { %v2564_v25 = vunpack.c.l.b16 %v2203_v31  ;;  %v2321_v13 = vrot.slane %v12619_v46, 6  ;;  %v2611_v53 = vpack.c.b16 %v2549_v14, %v2548_v63  ;;  %v2325_v56 = vshrl.u32 %v8892_v11, 16  ;;  %v12622_v31 = vld [vmem:[#allocation90_spill] sm:$0xff] }
 0x1b0   :  { %v2318_v50 = vor.u32 %v2317_v44, %v2316_v27  ;;  %v12621_v36 = vshll.u32 %v12620_v5, 16  ;;  %v2210_v38 = vsel %vm8347_vm9, %v2204_v17, %v2209_v37  ;;  %v12623_v47 = vshrl.u32 %v12622_v31, 16 }
 0x1b1   :  { %v2322_v57 = vor.u32 %v2321_v13, %v2320_v15  ;;  %v12624_v63 = vshll.u32 %v12622_v31, 16  ;;  %v8904_v14 = vsel %vm1059_vm2, %v2611_v53, 0  ;;  %v2565_v44 = vunpack.c.l.b16 %v2210_v38  ;;  %v8916_v53 = vld [vmem:[%s11547_s0 + $0x164] sm:$0x3] }
 0x1b2   :  { %v2328_v16 = vrot.slane %v12621_v36, 6  ;;  %v2436_v33 = vrot.slane %v12623_v47, 5  ;;  %12625 = vst [vmem:[#allocation29_spill] sm:$0xff] %v8904_v14  ;;  %v2319_v46 = vrot.slane %v2318_v50, 4  ;;  %v2327_v51 = vrot.slane %v2325_v56, 5  ;;  %2747 = vmatpush.bf16.xpose.msrb.mxu0 %v8904_v14 }
 0x1b3   :  { %v2437_v27 = vrot.slane %v12624_v63, 6  ;;  %v2324_v5 = vrot.slane %v2322_v57, 4  ;;  %v2440_v17 = vrot.slane %v12627_v52, 5  ;;  %v12628_v15 = vshll.u32 %v12626_v19, 16  ;;  %v12629_v63 = vld [vmem:[#allocation93_spill] sm:$0xff] }
 0x1b4   :  { %v2619_v13 = vpack.c.b16 %v2565_v44, %v2564_v25  ;;  %v2323_v31 = vsel %vm8347_vm9, %v2319_v46, %v2322_v57  ;;  %v2329_v47 = vor.u32 %v2328_v16, %v2327_v51  ;;  %v2445_v50 = vshrl.u32 %v8916_v53, 16  ;;  %v12632_v16 = vld [vmem:[#allocation94_spill] sm:$0xff] }
 0x1b5   :  { %v2438_v36 = vor.u32 %v2437_v27, %v2436_v33  ;;  %v2441_v37 = vrot.slane %v12628_v15, 6  ;;  %v2580_v56 = vunpack.c.l.b16 %v2323_v31  ;;  %v12630_v52 = vshll.u32 %v12629_v63, 16  ;;  %v12635_v63 = vld [vmem:[#allocation96_spill] sm:$0xff] }
 0x1b6   :  { %v8922_v19 = vsel %vm1059_vm2, %v2619_v13, 0  ;;  %v2330_v25 = vsel %vm8347_vm9, %v2324_v5, %v2329_v47  ;;  %v2447_v51 = vrot.slane %v2445_v50, 5  ;;  %v12633_v57 = vshrl.u32 %v12632_v16, 16 }
 0x1b7   :  { %v2439_v38 = vrot.slane %v2438_v36, 4  ;;  %v2442_v33 = vor.u32 %v2441_v37, %v2440_v17  ;;  %v2448_v27 = vrot.slane %v12630_v52, 6  ;;  %12631 = vst [vmem:[#allocation30_spill] sm:$0xff] %v8922_v19  ;;  %2761 = vmatpush.bf16.xpose.msrb.mxu1 %v8922_v19  ;;  %v2581_v46 = vunpack.c.l.b16 %v2330_v25  ;;  %v8940_v25 = vld [vmem:[%s11547_s0 + $0x8] sm:$0x3] }
 0x1b8   :  { %v2061_v44 = vrot.slane %v12633_v57, 5  ;;  %v12634_v15 = vshll.u32 %v12632_v16, 16  ;;  %v12636_v52 = vshrl.u32 %v12635_v63, 16  ;;  %v12637_v5 = vshll.u32 %v12635_v63, 16 }
 0x1b9   :  { %v2443_v36 = vsel %vm8347_vm9, %v2439_v38, %v2442_v33  ;;  %v2444_v17 = vrot.slane %v2442_v33, 4  ;;  %v2449_v31 = vor.u32 %v2448_v27, %v2447_v51  ;;  %v2627_v50 = vpack.c.b16 %v2581_v46, %v2580_v56  ;;  %v12638_v33 = vld [vmem:[#allocation98_spill] sm:$0xff] }
 0x1ba   :  { %v2062_v37 = vrot.slane %v12634_v15, 6  ;;  %v2596_v13 = vunpack.c.l.b16 %v2443_v36  ;;  %v2065_v14 = vrot.slane %v12636_v52, 5  ;;  %v2066_v47 = vrot.slane %v12637_v5, 6  ;;  %v12640_v36 = vld [vmem:[#allocation97_spill] sm:$0xff] }
 0x1bb   :  { %v2070_v38 = vshrl.u32 %v8940_v25, 16  ;;  %v12639_v16 = vshll.u32 %v12638_v33, 16  ;;  %v2450_v27 = vsel %vm8347_vm9, %v2444_v17, %v2449_v31  ;;  %v12641_v52 = vshrl.u32 %v12640_v36, 16 }
 0x1bc   :  { %v2063_v57 = vor.u32 %v2062_v37, %v2061_v44  ;;  %v2067_v51 = vor.u32 %v2066_v47, %v2065_v14  ;;  %v12642_v56 = vshll.u32 %v12640_v36, 16  ;;  %v8952_v46 = vsel %vm1059_vm2, %v2627_v50, 0  ;;  %v8964_v50 = vld [vmem:[%s11547_s0 + $0x68] sm:$0x3] }
 0x1bd   :  { %v2073_v15 = vrot.slane %v12639_v16, 6  ;;  %v2181_v63 = vrot.slane %v12641_v52, 5  ;;  %12643 = vst [vmem:[#allocation32_spill] sm:$0xff] %v8952_v46  ;;  %v2597_v37 = vunpack.c.l.b16 %v2450_v27  ;;  %v2072_v19 = vrot.slane %v2070_v38, 5  ;;  %2775 = vmatpush.bf16.xpose.msrb.mxu2 %v8952_v46  ;;  %v9093_v46 = vpop.f32.mrf.mxu3 }
 0x1be   :  { %v2182_v44 = vrot.slane %v12642_v56, 6  ;;  %v2064_v5 = vrot.slane %v2063_v57, 4  ;;  %v2069_v33 = vrot.slane %v2067_v51, 4  ;;  %v2185_v17 = vrot.slane %v12645_v39, 5 }
 0x1bf   :  { %v12646_v14 = vshll.u32 %v12644_v42, 16  ;;  %v2635_v47 = vpack.c.b16 %v2597_v37, %v2596_v13  ;;  %v2074_v52 = vor.u32 %v2073_v15, %v2072_v19  ;;  %v2190_v57 = vshrl.u32 %v8964_v50, 16  ;;  %v12649_v15 = vld [vmem:[#allocation101_spill] sm:$0xff] }
 0x1c0   :  { %v2183_v16 = vor.u32 %v2182_v44, %v2181_v63  ;;  %v2068_v36 = vsel %vm8347_vm9, %v2064_v5, %v2067_v51  ;;  %v12647_v39 = vshll.u32 %v7398_v23, 16  ;;  %v12650_v51 = vshrl.u32 %v12649_v15, 16 }
 0x1c1   :  { %v2186_v31 = vrot.slane %v12646_v14, 6  ;;  %v2546_v38 = vunpack.c.l.b16 %v2068_v36  ;;  %v8970_v42 = vsel %vm1059_vm2, %v2635_v47, 0  ;;  %v2075_v13 = vsel %vm8347_vm9, %v2069_v33, %v2074_v52 }
 0x1c2   :  { %v2184_v27 = vrot.slane %v2183_v16, 4  ;;  %v2193_v56 = vrot.slane %v12647_v39, 6  ;;  %12648 = vst [vmem:[#allocation34_spill] sm:$0xff] %v8970_v42  ;;  %v2192_v19 = vrot.slane %v2190_v57, 5  ;;  %v2301_v44 = vrot.slane %v12650_v51, 5  ;;  %2789 = vmatpush.bf16.xpose.msrb.mxu3 %v8970_v42 }
 0x1c3   :  { %v2187_v63 = vor.u32 %v2186_v31, %v2185_v17  ;;  %v2547_v37 = vunpack.c.l.b16 %v2075_v13  ;;  %v12651_v23 = vshll.u32 %v12649_v15, 16  ;;  %v12652_v47 = vshrl.u32 %v7415_v12, 16  ;;  %v8988_v13 = vld [vmem:[%s11547_s0 + $0xf8] sm:$0x3] }
 0x1c4   :  { %v2194_v14 = vor.u32 %v2193_v56, %v2192_v19  ;;  %v12653_v33 = vshll.u32 %v7415_v12, 16  ;;  %v12655_v51 = vshrl.u32 %v7438_v40, 16 }
 0x1c5   :  { %v2188_v5 = vsel %vm8347_vm9, %v2184_v27, %v2187_v63  ;;  %v2189_v16 = vrot.slane %v2187_v63, 4  ;;  %v2302_v17 = vrot.slane %v12651_v23, 6  ;;  %v2305_v36 = vrot.slane %v12652_v47, 5 }
 0x1c6   :  { %v2562_v31 = vunpack.c.l.b16 %v2188_v5  ;;  %v2306_v52 = vrot.slane %v12653_v33, 6  ;;  %v2610_v57 = vpack.c.b16 %v2547_v37, %v2546_v38  ;;  %v2310_v27 = vshrl.u32 %v8988_v13, 16 }
 0x1c7   :  { %v2303_v39 = vor.u32 %v2302_v17, %v2301_v44  ;;  %v12654_v63 = vshll.u32 %v7425_v43, 16  ;;  %v2195_v56 = vsel %vm8347_vm9, %v2189_v16, %v2194_v14  ;;  %v2421_v12 = vrot.slane %v12655_v51, 5 }
 0x1c8   :  { %v2307_v19 = vor.u32 %v2306_v52, %v2305_v36  ;;  %v12656_v38 = vshll.u32 %v7438_v40, 16  ;;  %v2646_v37 = vsel %vm1059_vm2, %v2610_v57, 0  ;;  %v2563_v5 = vunpack.c.l.b16 %v2195_v56  ;;  %v9009_v57 = vld [vmem:[%s11547_s0 + $0x158] sm:$0x3] }
 0x1c9   :  { %v2313_v15 = vrot.slane %v12654_v63, 6  ;;  %v2304_v23 = vrot.slane %v2303_v39, 4  ;;  %v2312_v17 = vrot.slane %v2310_v27, 5  ;;  %2748 = vmatpush.bf16.xpose.msrb.mxu0 %v2646_v37  ;;  %v12657_v43 = vshrl.u32 %v7458_v58, 16 }
 0x1ca   :  { %v2422_v44 = vrot.slane %v12656_v38, 6  ;;  %v2309_v47 = vrot.slane %v2307_v19, 4  ;;  %v12658_v16 = vshll.u32 %v7458_v58, 16  ;;  %v2618_v36 = vpack.c.b16 %v2563_v5, %v2562_v31 }
 0x1cb   :  { %v2425_v63 = vrot.slane %v12657_v43, 5  ;;  %v2308_v52 = vsel %vm8347_vm9, %v2304_v23, %v2307_v19  ;;  %v2314_v40 = vor.u32 %v2313_v15, %v2312_v17  ;;  %v2430_v39 = vshrl.u32 %v9009_v57, 16  ;;  %v6182_v17 = vld [vmem:[%s11547_s0 + $0x54] sm:$0xf] }
 0x1cc   :  { %v2423_v33 = vor.u32 %v2422_v44, %v2421_v12  ;;  %v2426_v14 = vrot.slane %v12658_v16, 6  ;;  %v2578_v27 = vunpack.c.l.b16 %v2308_v52  ;;  %v12659_v12 = vshll.u32 %v7472_v45, 16  ;;  %v6184_v16 = vld [vmem:[%s11547_s0 + $0x5c] sm:$0x3] }
 0x1cd   :  { %v9015_v58 = vsel %vm1059_vm2, %v2618_v36, 0  ;;  %v2315_v31 = vsel %vm8347_vm9, %v2309_v47, %v2314_v40  ;;  %v2432_v15 = vrot.slane %v2430_v39, 5  ;;  %v12661_v45 = vmov 0  ;;  %v6185_v36 = vld [vmem:[%s11547_s0 + $0xb4] sm:$0xf] }
 0x1ce   :  { %v2424_v56 = vrot.slane %v2423_v33, 4  ;;  %v2427_v51 = vor.u32 %v2426_v14, %v2425_v63  ;;  %v2433_v38 = vrot.slane %v12659_v12, 6  ;;  %12660 = vst [vmem:[#allocation33_spill] sm:$0xff] %v9015_v58  ;;  %2762 = vmatpush.bf16.xpose.msrb.mxu1 %v9015_v58  ;;  %v2579_v19 = vunpack.c.l.b16 %v2315_v31  ;;  %v6183_v33 = vld [vmem:[%s11547_s0 + $0x58] sm:$0xf] }
 0x1cf   :  { %v12662_v45 = vsel %vm9022_vm12, 4294967295, %v12661_v45  ;;  %v5759_v47 = vrot.slane %v6182_v17, 10  ;;  %v2859_v43 = vrot.slane %v6183_v33, 6  ;;  %v2862_v14 = vrot.slane %v6184_v16, 6  ;;  %v6186_v40 = vld [vmem:[%s11547_s0 + $0xb8] sm:$0xf] }
 0x1d0   :  { %v2428_v44 = vsel %vm8347_vm9, %v2424_v56, %v2427_v51  ;;  %v2429_v37 = vrot.slane %v2427_v51, 4  ;;  %v2434_v5 = vor.u32 %v2433_v38, %v2432_v15  ;;  %12663 = vst [vmem:[#allocation36_spill] sm:$0xff] %v12662_v45  ;;  %v2626_v63 = vpack.c.b16 %v2579_v19, %v2578_v27  ;;  %v6187_v12 = vld [vmem:[%s11547_s0 + $0xbc] sm:$0x3] }
 0x1d1   :  { %v2594_v23 = vunpack.c.l.b16 %v2428_v44  ;;  %v5767_v52 = vrot.slane %v6185_v36, 10  ;;  %v2915_v39 = vrot.slane %v6186_v40, 6  ;;  %v2860_v27 = vsel %vm9022_vm12, %v5759_v47, %v2859_v43  ;;  %v6188_v47 = vld [vmem:[%s11547_s0 + $0x144] sm:$0xf] }
 0x1d2   :  { %v2435_v56 = vsel %vm8347_vm9, %v2429_v37, %v2434_v5  ;;  %v2861_v51 = vrot.slane %v2859_v43, 4  ;;  %v2918_v38 = vrot.slane %v6187_v12, 6  ;;  %v2694_v31 = vsel %vm1059_vm2, %v2626_v63, 0  ;;  %v6189_v63 = vld [vmem:[%s11547_s0 + $0x148] sm:$0xf] }
 0x1d3   :  { %v2595_v15 = vunpack.c.l.b16 %v2435_v56  ;;  %v3051_v19 = vunpack.c.l.b16 %v2860_v27  ;;  %v2916_v44 = vsel %vm9022_vm12, %v5767_v52, %v2915_v39  ;;  %2776 = vmatpush.bf16.xpose.msrb.mxu2 %v2694_v31  ;;  %v2917_v5 = vrot.slane %v2915_v39, 4  ;;  %v6190_v52 = vld [vmem:[%s11547_s0 + $0x14c] sm:$0x3]  ;;  %v6192_v27 = vld [vmem:[%s11547_s0 + $0x1a8] sm:$0xf] }
 0x1d4   :  { %v2863_v37 = vsel %vm9022_vm12, %v2861_v51, %v2862_v14  ;;  %v3067_v17 = vunpack.c.l.b16 %v2916_v44  ;;  %v5775_v33 = vrot.slane %v6188_v47, 10  ;;  %v2971_v36 = vrot.slane %v6189_v63, 6  ;;  %v5746_v14 = vld [vmem:[%s11548_s1 + $0x18] sm:$0xf]  ;;  %v6193_v12 = vld [vmem:[%s11547_s0 + $0x1ac] sm:$0x3]  ;;  %v9078_v44 = vpop.f32.mrf.mxu1 }
 0x1d5   :  { %v2634_v43 = vpack.c.b16 %v2595_v15, %v2594_v23  ;;  %v3052_v16 = vunpack.c.l.b16 %v2863_v37  ;;  %v2974_v40 = vrot.slane %v6190_v52, 6  ;;  %v2919_v39 = vsel %vm9022_vm12, %v2917_v5, %v2918_v38  ;;  %v6191_v23 = vld [vmem:[%s11547_s0 + $0x1a4] sm:$0xf]  ;;  %v9076_v15 = vpop.f32.mrf.mxu0  ;;  %v6047_v38 = vld [vmem:[%s11548_s1 + $0x18] sm:$0x30]  ;;  %v9088_v52 = vpop.f32.mrf.mxu2 }
 0x1d6   :  { %v5783_v56 = vrot.slane %v6191_v23, 10  ;;  %v3027_v51 = vrot.slane %v6192_v27, 6  ;;  %v3030_v31 = vrot.slane %v6193_v12, 6  ;;  %v3068_v47 = vunpack.c.l.b16 %v2919_v39 }
 0x1d7   :  { %v9084_v37 = vsel %vm1059_vm2, %v2634_v43, 0  ;;  %v3108_v5 = vpack.c.b16 %v3052_v16, %v3051_v19  ;;  %v2972_v63 = vsel %vm9022_vm12, %v5775_v33, %v2971_v36  ;;  %v2973_v23 = vrot.slane %v2971_v36, 4 }
 0x1d8   :  { %12664 = vst [vmem:[#allocation38_spill] sm:$0xff] %v9084_v37  ;;  %2790 = vmatpush.bf16.xpose.msrb.mxu3 %v9084_v37  ;;  %v3083_v27 = vunpack.c.l.b16 %v2972_v63  ;;  %v3028_v12 = vsel %vm9022_vm12, %v5783_v56, %v3027_v51  ;;  %v3029_v42 = vrot.slane %v3027_v51, 4  ;;  %v3116_v19 = vpack.c.b16 %v3068_v47, %v3067_v17  ;;  %v6194_v56 = vld [vmem:[%s11547_s0 + $0x48] sm:$0xf] }
 0x1d9   :  { %v9096_v43 = vsel %vm1059_vm2, %v3108_v5, 0  ;;  %v3099_v16 = vunpack.c.l.b16 %v3028_v12  ;;  %v5747_v39 = vor.u32 %v6047_v38, %v5746_v14  ;;  %v2975_v33 = vsel %vm9022_vm12, %v2973_v23, %v2974_v40  ;;  %v6195_v5 = vld [vmem:[%s11547_s0 + $0x4c] sm:$0xf]  ;;  %v6197_v23 = vld [vmem:[%s11547_s0 + $0xa8] sm:$0xf] }
 0x1da   :  { %12665 = vst [vmem:[#allocation37_spill] sm:$0xff] %v9096_v43  ;;  %3232 = vmatpush.bf16.xpose.msra.mxu0 %v9096_v43  ;;  %v3031_v36 = vsel %vm9022_vm12, %v3029_v42, %v3030_v31  ;;  %v5758_v51 = vrot.slane %v6194_v56, 10  ;;  %v2852_v17 = vrot.slane %v6195_v5, 6  ;;  %v9110_v14 = vsel %vm1059_vm2, %v3116_v19, 0  ;;  %v6196_v42 = vld [vmem:[%s11547_s0 + $0x50] sm:$0x3] }
 0x1db   :  { %12666 = vst [vmem:[#allocation40_spill] sm:$0xff] %v9110_v14  ;;  %v3084_v38 = vunpack.c.l.b16 %v2975_v33  ;;  %v3100_v47 = vunpack.c.l.b16 %v3031_v36  ;;  %5748 = vmatmul.msk.bf16.vlgmr.msrb.gmra.mxu0 %vm1059_vm2, %v5747_v39  ;;  %5749 = vmatmul.msk.bf16.vlgmr.msrb.gmra.mxu1 %vm1059_vm2, %v5747_v39  ;;  %v2855_v40 = vrot.slane %v6196_v42, 6  ;;  %v5766_v12 = vrot.slane %v6197_v23, 10  ;;  %v6198_v19 = vld [vmem:[%s11547_s0 + $0xac] sm:$0xf] }
 0x1dc   :  { %3246 = vmatpush.bf16.xpose.msra.mxu1 %v9110_v14  ;;  %5750 = vmatmul.msk.bf16.vlgmr.msrb.gmra.mxu2 %vm1059_vm2, %v5747_v39  ;;  %v2853_v31 = vsel %vm9022_vm12, %v5758_v51, %v2852_v17  ;;  %v2854_v63 = vrot.slane %v2852_v17, 4  ;;  %v2908_v33 = vrot.slane %v6198_v19, 6  ;;  %v6199_v42 = vld [vmem:[%s11547_s0 + $0xb0] sm:$0x3]  ;;  %v6200_v43 = vld [vmem:[%s11547_s0 + $0x138] sm:$0xf] }
 0x1dd   :  { %v3124_v36 = vpack.c.b16 %v3084_v38, %v3083_v27  ;;  %v3132_v56 = vpack.c.b16 %v3100_v47, %v3099_v16  ;;  %v3049_v5 = vunpack.c.l.b16 %v2853_v31  ;;  %v2911_v14 = vrot.slane %v6199_v42, 6 }
 0x1de   :  { %v2856_v51 = vsel %vm9022_vm12, %v2854_v63, %v2855_v40  ;;  %v2909_v17 = vsel %vm9022_vm12, %v5766_v12, %v2908_v33  ;;  %v2910_v23 = vrot.slane %v2908_v33, 4  ;;  %v5774_v19 = vrot.slane %v6200_v43, 10  ;;  %v6201_v43 = vld [vmem:[%s11547_s0 + $0x13c] sm:$0xf]  ;;  %v6202_v63 = vld [vmem:[%s11547_s0 + $0x140] sm:$0x3] }
 0x1df   :  { %v9138_v27 = vsel %vm1059_vm2, %v3124_v36, 0  ;;  %v9141_v16 = vsel %vm1059_vm2, %v3132_v56, 0  ;;  %5751 = vmatmul.msk.bf16.vlgmr.msrb.gmra.mxu3 %vm1059_vm2, %v5747_v39  ;;  %v3050_v38 = vunpack.c.l.b16 %v2856_v51  ;;  %v3065_v47 = vunpack.c.l.b16 %v2909_v17  ;;  %v6203_v39 = vld [vmem:[%s11547_s0 + $0x198] sm:$0xf]  ;;  %v9157_v36 = vpop.f32.mrf.mxu0  ;;  %v9159_v56 = vpop.f32.mrf.mxu1  ;;  %v6204_v51 = vld [vmem:[%s11547_s0 + $0x19c] sm:$0xf] }
 0x1e0   :  { %12667 = vst [vmem:[#allocation41_spill] sm:$0xff] %v9138_v27  ;;  %3260 = vmatpush.bf16.xpose.msra.mxu2 %v9138_v27  ;;  %3274 = vmatpush.bf16.xpose.msra.mxu3 %v9141_v16  ;;  %v2912_v40 = vsel %vm9022_vm12, %v2910_v23, %v2911_v14  ;;  %v2964_v31 = vrot.slane %v6201_v43, 6  ;;  %v2967_v12 = vrot.slane %v6202_v63, 6  ;;  %v5782_v33 = vrot.slane %v6203_v39, 10  ;;  %v6205_v23 = vld [vmem:[%s11547_s0 + $0x1a0] sm:$0x3]  ;;  %v9167_v63 = vpop.f32.mrf.mxu2 }
 0x1e1   :  { %12668 = vst [vmem:[#allocation42_spill] sm:$0xff] %v9141_v16  ;;  %v3107_v14 = vpack.c.b16 %v3050_v38, %v3049_v5  ;;  %v3066_v42 = vunpack.c.l.b16 %v2912_v40  ;;  %v3020_v17 = vrot.slane %v6204_v51, 6  ;;  %v3023_v43 = vrot.slane %v6205_v23, 6  ;;  %v9171_v16 = vpop.f32.mrf.mxu3  ;;  %v6206_v5 = vld [vmem:[%s11547_s0 + $0x3c] sm:$0xf] }
 0x1e2   :  { %12669 = vst [vmem:[#allocation44_spill] sm:$0xff] %v9157_v36  ;;  %v2965_v39 = vsel %vm9022_vm12, %v5774_v19, %v2964_v31  ;;  %v2966_v36 = vrot.slane %v2964_v31, 4  ;;  %v5757_v38 = vrot.slane %v6206_v5, 10  ;;  %v6207_v40 = vld [vmem:[%s11547_s0 + $0x40] sm:$0xf] }
 0x1e3   :  { %12670 = vst [vmem:[#allocation152_spill] sm:$0xff] %v9159_v56  ;;  %v2845_v51 = vrot.slane %v6207_v40, 6  ;;  %v9180_v23 = vsel %vm1059_vm2, %v3107_v14, 0  ;;  %v3081_v56 = vunpack.c.l.b16 %v2965_v39  ;;  %v3021_v19 = vsel %vm9022_vm12, %v5782_v33, %v3020_v17 }
 0x1e4   :  { %12671 = vst [vmem:[#allocation45_spill] sm:$0xff] %v9167_v63  ;;  %v3115_v63 = vpack.c.b16 %v3066_v42, %v3065_v47  ;;  %3233 = vmatpush.bf16.xpose.msra.mxu0 %v9180_v23  ;;  %v2968_v31 = vsel %vm9022_vm12, %v2966_v36, %v2967_v12  ;;  %v3097_v5 = vunpack.c.l.b16 %v3021_v19  ;;  %v6208_v47 = vld [vmem:[%s11547_s0 + $0x44] sm:$0x3]  ;;  %v6209_v42 = vld [vmem:[%s11547_s0 + $0x9c] sm:$0xf] }
 0x1e5   :  { %12672 = vst [vmem:[#allocation46_spill] sm:$0xff] %v9171_v16  ;;  %v3022_v16 = vrot.slane %v3020_v17, 4  ;;  %v2846_v27 = vsel %vm9022_vm12, %v5757_v38, %v2845_v51  ;;  %v3082_v14 = vunpack.c.l.b16 %v2968_v31  ;;  %v2847_v22 = vrot.slane %v2845_v51, 4 }
 0x1e6   :  { %12673 = vst [vmem:[#allocation48_spill] sm:$0xff] %v9180_v23  ;;  %v9190_v40 = vsel %vm1059_vm2, %v3115_v63, 0  ;;  %v2848_v33 = vrot.slane %v6208_v47, 6  ;;  %v3047_v36 = vunpack.c.l.b16 %v2846_v27  ;;  %v5765_v17 = vrot.slane %v6209_v42, 10  ;;  %v6210_v63 = vld [vmem:[%s11547_s0 + $0xa0] sm:$0xf] }
 0x1e7   :  { %12674 = vst [vmem:[#allocation50_spill] sm:$0xff] %v9190_v40  ;;  %3247 = vmatpush.bf16.xpose.msra.mxu1 %v9190_v40  ;;  %v3024_v12 = vsel %vm9022_vm12, %v3022_v16, %v3023_v43  ;;  %v2901_v39 = vrot.slane %v6210_v63, 6  ;;  %v3123_v38 = vpack.c.b16 %v3082_v14, %v3081_v56  ;;  %v6211_v16 = vld [vmem:[%s11547_s0 + $0xa4] sm:$0x3]  ;;  %v6212_v42 = vld [vmem:[%s11547_s0 + $0x12c] sm:$0xf] }
 0x1e8   :  { %v3098_v51 = vunpack.c.l.b16 %v3024_v12  ;;  %v2849_v19 = vsel %vm9022_vm12, %v2847_v22, %v2848_v33  ;;  %v2904_v27 = vrot.slane %v6211_v16, 6  ;;  %v5773_v63 = vrot.slane %v6212_v42, 10  ;;  %v6213_v33 = vld [vmem:[%s11547_s0 + $0x130] sm:$0xf] }
 0x1e9   :  { %v3048_v43 = vunpack.c.l.b16 %v2849_v19  ;;  %v2902_v31 = vsel %vm9022_vm12, %v5765_v17, %v2901_v39  ;;  %v2903_v47 = vrot.slane %v2901_v39, 4  ;;  %v9215_v56 = vsel %vm1059_vm2, %v3123_v38, 0  ;;  %v6214_v39 = vld [vmem:[%s11547_s0 + $0x134] sm:$0x3]  ;;  %v1530_v40 = vpop.f32.mrf.mxu3 }
 0x1ea   :  { %12675 = vst [vmem:[#allocation49_spill] sm:$0xff] %v9215_v56  ;;  %v3131_v14 = vpack.c.b16 %v3098_v51, %v3097_v5  ;;  %v3063_v22 = vunpack.c.l.b16 %v2902_v31  ;;  %v2957_v12 = vrot.slane %v6213_v33, 6  ;;  %3261 = vmatpush.bf16.xpose.msra.mxu2 %v9215_v56  ;;  %v2960_v16 = vrot.slane %v6214_v39, 6  ;;  %v6215_v5 = vld [vmem:[%s11547_s0 + $0x18c] sm:$0xf]  ;;  %v1488_v51 = vpop.f32.mrf.mxu0  ;;  %v1502_v31 = vpop.f32.mrf.mxu1 }
 0x1eb   :  { %v3106_v19 = vpack.c.b16 %v3048_v43, %v3047_v36  ;;  %v2905_v17 = vsel %vm9022_vm12, %v2903_v47, %v2904_v27  ;;  %v5781_v38 = vrot.slane %v6215_v5, 10  ;;  %v1516_v43 = vpop.f32.mrf.mxu2  ;;  %v6216_v5 = vld [vmem:[%s11547_s0 + $0x190] sm:$0xf] }
 0x1ec   :  { %v9230_v42 = vsel %vm1059_vm2, %v3131_v14, 0  ;;  %v3064_v33 = vunpack.c.l.b16 %v2905_v17  ;;  %v2958_v36 = vsel %vm9022_vm12, %v5773_v63, %v2957_v12  ;;  %v2959_v27 = vrot.slane %v2957_v12, 4  ;;  %v6217_v14 = vld [vmem:[%s11547_s0 + $0x194] sm:$0x3] }
 0x1ed   :  { %12676 = vst [vmem:[#allocation52_spill] sm:$0xff] %v9230_v42  ;;  %3275 = vmatpush.bf16.xpose.msra.mxu3 %v9230_v42  ;;  %v9236_v47 = vsel %vm1059_vm2, %v3106_v19, 0  ;;  %v3079_v39 = vunpack.c.l.b16 %v2958_v36  ;;  %v3013_v56 = vrot.slane %v6216_v5, 6  ;;  %v3016_v17 = vrot.slane %v6217_v14, 6 }
 0x1ee   :  { %12677 = vst [vmem:[#allocation54_spill] sm:$0xff] %v9236_v47  ;;  %3234 = vmatpush.bf16.xpose.msra.mxu0 %v9236_v47  ;;  %v3114_v63 = vpack.c.b16 %v3064_v33, %v3063_v22  ;;  %v2961_v12 = vsel %vm9022_vm12, %v2959_v27, %v2960_v16  ;;  %v9248_v19 = vadd.f32 %v1488_v51, %v9076_v15  ;;  %v6218_v15 = vld [vmem:[%s11547_s0 + $0x30] sm:$0xf] }
 0x1ef   :  { %v9251_v36 = vadd.f32 %v1502_v31, %v9078_v44  ;;  %v3080_v42 = vunpack.c.l.b16 %v2961_v12  ;;  %v3014_v5 = vsel %vm9022_vm12, %v5781_v38, %v3013_v56  ;;  %v3015_v23 = vrot.slane %v3013_v56, 4  ;;  %v6221_v33 = vld [vmem:[%s11547_s0 + $0x90] sm:$0xf] }
 0x1f0   :  { %v9256_v14 = vadd.f32 %v1516_v43, %v9088_v52  ;;  %v9259_v47 = vsel %vm1059_vm2, %v3114_v63, 0  ;;  %v3095_v22 = vunpack.c.l.b16 %v3014_v5  ;;  %v9262_v16 = vadd.f32 %v1530_v40, %v9093_v46  ;;  %v6219_v52 = vld [vmem:[%s11547_s0 + $0x34] sm:$0xf]  ;;  %v6220_v46 = vld [vmem:[%s11547_s0 + $0x38] sm:$0x3] }
 0x1f1   :  { %12678 = vst [vmem:[#allocation53_spill] sm:$0xff] %v9259_v47  ;;  %v5756_v44 = vrot.slane %v6218_v15, 10  ;;  %3248 = vmatpush.bf16.xpose.msra.mxu1 %v9259_v47  ;;  %v3122_v51 = vpack.c.b16 %v3080_v42, %v3079_v39  ;;  %v3017_v56 = vsel %vm9022_vm12, %v3015_v23, %v3016_v17  ;;  %v2838_v38 = vrot.slane %v6219_v52, 6  ;;  %v6222_v23 = vld [vmem:[%s11547_s0 + $0x94] sm:$0xf] }
 0x1f2   :  { %v2841_v40 = vrot.slane %v6220_v46, 6  ;;  %v3096_v31 = vunpack.c.l.b16 %v3017_v56  ;;  %v5764_v27 = vrot.slane %v6221_v33, 10  ;;  %v2894_v42 = vrot.slane %v6222_v23, 6  ;;  %v6223_v43 = vld [vmem:[%s11547_s0 + $0x98] sm:$0x3] }
 0x1f3   :  { %v2897_v39 = vrot.slane %v6223_v43, 6  ;;  %v9286_v17 = vsel %vm1059_vm2, %v3122_v51, 0  ;;  %v2839_v63 = vsel %vm9022_vm12, %v5756_v44, %v2838_v38  ;;  %v2840_v12 = vrot.slane %v2838_v38, 4  ;;  %v6224_v5 = vld [vmem:[%s11547_s0 + $0x120] sm:$0xf] }
 0x1f4   :  { %12679 = vst [vmem:[#allocation56_spill] sm:$0xff] %v9286_v17  ;;  %v5772_v15 = vrot.slane %v6224_v5, 10  ;;  %3262 = vmatpush.bf16.xpose.msra.mxu2 %v9286_v17  ;;  %v3130_v56 = vpack.c.b16 %v3096_v31, %v3095_v22  ;;  %v3045_v52 = vunpack.c.l.b16 %v2839_v63  ;;  %v2895_v46 = vsel %vm9022_vm12, %v5764_v27, %v2894_v42  ;;  %v6225_v44 = vld [vmem:[%s11547_s0 + $0x124] sm:$0xf]  ;;  %v6226_v43 = vld [vmem:[%s11547_s0 + $0x128] sm:$0x3] }
 0x1f5   :  { %v2896_v33 = vrot.slane %v2894_v42, 4  ;;  %v2842_v51 = vsel %vm9022_vm12, %v2840_v12, %v2841_v40  ;;  %v3061_v23 = vunpack.c.l.b16 %v2895_v46  ;;  %v2950_v38 = vrot.slane %v6225_v44, 6  ;;  %v6227_v40 = vld [vmem:[%s11547_s0 + $0x180] sm:$0xf] }
 0x1f6   :  { %v2953_v5 = vrot.slane %v6226_v43, 6  ;;  %v9305_v22 = vsel %vm1059_vm2, %v3130_v56, 0  ;;  %v3046_v31 = vunpack.c.l.b16 %v2842_v51  ;;  %v5780_v42 = vrot.slane %v6227_v40, 10  ;;  %v6228_v56 = vld [vmem:[%s11547_s0 + $0x184] sm:$0xf] }
 0x1f7   :  { %12680 = vst [vmem:[#allocation57_spill] sm:$0xff] %v9305_v22  ;;  %v2898_v27 = vsel %vm9022_vm12, %v2896_v33, %v2897_v39  ;;  %3276 = vmatpush.bf16.xpose.msra.mxu3 %v9305_v22  ;;  %v2951_v12 = vsel %vm9022_vm12, %v5772_v15, %v2950_v38  ;;  %v2952_v46 = vrot.slane %v2950_v38, 4  ;;  %v3006_v51 = vrot.slane %v6228_v56, 6  ;;  %v6229_v39 = vld [vmem:[%s11547_s0 + $0x188] sm:$0x3] }
 0x1f8   :  { %v3062_v63 = vunpack.c.l.b16 %v2898_v27  ;;  %v3105_v44 = vpack.c.b16 %v3046_v31, %v3045_v52  ;;  %v3077_v43 = vunpack.c.l.b16 %v2951_v12  ;;  %v3009_v33 = vrot.slane %v6229_v39, 6  ;;  %v6231_v12 = vld [vmem:[%s11547_s0 + $0x28] sm:$0xf] }
 0x1f9   :  { %v2954_v27 = vsel %vm9022_vm12, %v2952_v46, %v2953_v5  ;;  %v3007_v15 = vsel %vm9022_vm12, %v5780_v42, %v3006_v51  ;;  %v3008_v38 = vrot.slane %v3006_v51, 4  ;;  %v6230_v42 = vld [vmem:[%s11547_s0 + $0x24] sm:$0xf]  ;;  %v2831_v46 = vrot.slane %v6231_v12, 6  ;;  %v6232_v51 = vld [vmem:[%s11547_s0 + $0x2c] sm:$0x3] }
 0x1fa   :  { %v3113_v40 = vpack.c.b16 %v3062_v63, %v3061_v23  ;;  %v9326_v22 = vsel %vm1059_vm2, %v3105_v44, 0  ;;  %v3078_v17 = vunpack.c.l.b16 %v2954_v27  ;;  %v3093_v56 = vunpack.c.l.b16 %v3007_v15  ;;  %v6234_v39 = vld [vmem:[%s11547_s0 + $0x88] sm:$0xf] }
 0x1fb   :  { %12681 = vst [vmem:[#allocation58_spill] sm:$0xff] %v9326_v22  ;;  %3235 = vmatpush.bf16.xpose.msra.mxu0 %v9326_v22  ;;  %v3010_v23 = vsel %vm9022_vm12, %v3008_v38, %v3009_v33  ;;  %v5755_v63 = vrot.slane %v6230_v42, 10  ;;  %v2834_v44 = vrot.slane %v6232_v51, 6  ;;  %v2887_v33 = vrot.slane %v6234_v39, 6 }
 0x1fc   :  { %v9330_v52 = vsel %vm1059_vm2, %v3113_v40, 0  ;;  %v3121_v5 = vpack.c.b16 %v3078_v17, %v3077_v43  ;;  %v3094_v31 = vunpack.c.l.b16 %v3010_v23  ;;  %v6233_v17 = vld [vmem:[%s11547_s0 + $0x84] sm:$0xf]  ;;  %v2890_v40 = vrot.slane %v8676_v7, 6 }
 0x1fd   :  { %12682 = vst [vmem:[#allocation60_spill] sm:$0xff] %v9330_v52  ;;  %3249 = vmatpush.bf16.xpose.msra.mxu1 %v9330_v52  ;;  %v5763_v43 = vrot.slane %v6233_v17, 10  ;;  %v2832_v38 = vsel %vm9022_vm12, %v5755_v63, %v2831_v46  ;;  %v2833_v23 = vrot.slane %v2831_v46, 4  ;;  %v2889_v51 = vrot.slane %v2887_v33, 4  ;;  %v6235_v17 = vld [vmem:[%s11547_s0 + $0x114] sm:$0xf] }
 0x1fe   :  { %v9352_v27 = vsel %vm1059_vm2, %v3121_v5, 0  ;;  %v3129_v15 = vpack.c.b16 %v3094_v31, %v3093_v56  ;;  %v3043_v42 = vunpack.c.l.b16 %v2832_v38  ;;  %v5771_v7 = vrot.slane %v6235_v17, 10  ;;  %v6236_v63 = vld [vmem:[%s11547_s0 + $0x118] sm:$0xf] }
 0x1ff   :  { %12683 = vst [vmem:[#allocation61_spill] sm:$0xff] %v9352_v27  ;;  %3263 = vmatpush.bf16.xpose.msra.mxu2 %v9352_v27  ;;  %v2888_v12 = vsel %vm9022_vm12, %v5763_v43, %v2887_v33  ;;  %v2835_v56 = vsel %vm9022_vm12, %v2833_v23, %v2834_v44  ;;  %v2943_v46 = vrot.slane %v6236_v63, 6  ;;  %v2891_v39 = vsel %vm9022_vm12, %v2889_v51, %v2890_v40  ;;  %v6238_v17 = vld [vmem:[%s11547_s0 + $0x178] sm:$0xf] }
 0x200   :  { %v9363_v5 = vsel %vm1059_vm2, %v3129_v15, 0  ;;  %v3059_v31 = vunpack.c.l.b16 %v2888_v12  ;;  %v3044_v43 = vunpack.c.l.b16 %v2835_v56  ;;  %v2946_v33 = vrot.slane %v8700_v41, 6  ;;  %v6237_v15 = vld [vmem:[%s11547_s0 + $0x174] sm:$0xf]  ;;  %v6239_v41 = vld [vmem:[%s11547_s0 + $0x18] sm:$0xf] }
 0x201   :  { %12684 = vst [vmem:[#allocation62_spill] sm:$0xff] %v9363_v5  ;;  %3277 = vmatpush.bf16.xpose.msra.mxu3 %v9363_v5  ;;  %v5779_v38 = vrot.slane %v6237_v15, 10  ;;  %v3060_v44 = vunpack.c.l.b16 %v2891_v39  ;;  %v2944_v23 = vsel %vm9022_vm12, %v5771_v7, %v2943_v46  ;;  %v2945_v12 = vrot.slane %v2943_v46, 4 }
 0x202   :  { %v2999_v56 = vrot.slane %v6238_v17, 6  ;;  %v3104_v63 = vpack.c.b16 %v3044_v43, %v3043_v42  ;;  %v3075_v5 = vunpack.c.l.b16 %v2944_v23  ;;  %v3002_v40 = vrot.slane %v8724_v35, 6  ;;  %v6240_v35 = vld [vmem:[%s11547_s0 + $0x1c] sm:$0xf] }
 0x203   :  { %v5754_v51 = vrot.slane %v6239_v41, 10  ;;  %v3112_v15 = vpack.c.b16 %v3060_v44, %v3059_v31  ;;  %v2947_v39 = vsel %vm9022_vm12, %v2945_v12, %v2946_v33  ;;  %v2824_v23 = vrot.slane %v6240_v35, 6  ;;  %v6241_v44 = vld [vmem:[%s11547_s0 + $0x78] sm:$0xf]  ;;  %v6244_v35 = vld [vmem:[%s11547_s0 + $0x10c] sm:$0xf] }
 0x204   :  { %v3000_v7 = vsel %vm9022_vm12, %v5779_v38, %v2999_v56  ;;  %v3001_v46 = vrot.slane %v2999_v56, 4  ;;  %v9391_v27 = vsel %vm1059_vm2, %v3104_v63, 0  ;;  %v3076_v42 = vunpack.c.l.b16 %v2947_v39 }
 0x205   :  { %12685 = vst [vmem:[#allocation64_spill] sm:$0xff] %v9391_v27  ;;  %v3091_v43 = vunpack.c.l.b16 %v3000_v7  ;;  %3236 = vmatpush.bf16.xpose.msra.mxu0 %v9391_v27  ;;  %v9398_v31 = vsel %vm1059_vm2, %v3112_v15, 0  ;;  %v2827_v38 = vrot.slane %v8748_v3, 6  ;;  %v5762_v12 = vrot.slane %v6241_v44, 10  ;;  %v6243_v7 = vld [vmem:[%s11547_s0 + $0x108] sm:$0xf] }
 0x206   :  { %12686 = vst [vmem:[#allocation66_spill] sm:$0xff] %v9398_v31  ;;  %v3003_v33 = vsel %vm9022_vm12, %v3001_v46, %v3002_v40  ;;  %3250 = vmatpush.bf16.xpose.msra.mxu1 %v9398_v31  ;;  %v3120_v17 = vpack.c.b16 %v3076_v42, %v3075_v5  ;;  %v2825_v63 = vsel %vm9022_vm12, %v5754_v51, %v2824_v23  ;;  %v2826_v41 = vrot.slane %v2824_v23, 4  ;;  %v6242_v40 = vld [vmem:[%s11547_s0 + $0x7c] sm:$0xf] }
 0x207   :  { %v3092_v56 = vunpack.c.l.b16 %v3003_v33  ;;  %v3041_v15 = vunpack.c.l.b16 %v2825_v63  ;;  %v2880_v39 = vrot.slane %v6242_v40, 6  ;;  %v2883_v3 = vrot.slane %v8772_v29, 6 }
 0x208   :  { %v5770_v46 = vrot.slane %v6243_v7, 10  ;;  %v9417_v5 = vsel %vm1059_vm2, %v3120_v17, 0  ;;  %v2828_v51 = vsel %vm9022_vm12, %v2826_v41, %v2827_v38  ;;  %v2936_v23 = vrot.slane %v6244_v35, 6 }
 0x209   :  { %12687 = vst [vmem:[#allocation65_spill] sm:$0xff] %v9417_v5  ;;  %v3128_v42 = vpack.c.b16 %v3092_v56, %v3091_v43  ;;  %3264 = vmatpush.bf16.xpose.msra.mxu2 %v9417_v5  ;;  %v3042_v29 = vunpack.c.l.b16 %v2828_v51  ;;  %v2881_v33 = vsel %vm9022_vm12, %v5762_v12, %v2880_v39  ;;  %v2882_v44 = vrot.slane %v2880_v39, 4  ;;  %v6245_v12 = vld [vmem:[%s11547_s0 + $0x168] sm:$0xf] }
 0x20a   :  { %v2939_v63 = vrot.slane %v8796_v9, 6  ;;  %v3057_v43 = vunpack.c.l.b16 %v2881_v33  ;;  %v2937_v38 = vsel %vm9022_vm12, %v5770_v46, %v2936_v23  ;;  %v2938_v56 = vrot.slane %v2936_v23, 4  ;;  %v6246_v46 = vld [vmem:[%s11547_s0 + $0x16c] sm:$0xf]  ;;  %v6248_v33 = vld [vmem:[%s11547_s0 + $0x10] sm:$0xf] }
 0x20b   :  { %v9429_v17 = vsel %vm1059_vm2, %v3128_v42, 0  ;;  %v3103_v41 = vpack.c.b16 %v3042_v29, %v3041_v15  ;;  %v2884_v40 = vsel %vm9022_vm12, %v2882_v44, %v2883_v3  ;;  %v3073_v7 = vunpack.c.l.b16 %v2937_v38  ;;  %v6247_v23 = vld [vmem:[%s11547_s0 + $0xc] sm:$0xf] }
 0x20c   :  { %12688 = vst [vmem:[#allocation68_spill] sm:$0xff] %v9429_v17  ;;  %3278 = vmatpush.bf16.xpose.msra.mxu3 %v9429_v17  ;;  %v5778_v9 = vrot.slane %v6245_v12, 10  ;;  %v3058_v39 = vunpack.c.l.b16 %v2884_v40  ;;  %v2940_v42 = vsel %vm9022_vm12, %v2938_v56, %v2939_v63  ;;  %v2992_v51 = vrot.slane %v6246_v46, 6 }
 0x20d   :  { %v2995_v15 = vrot.slane %v8820_v59, 6  ;;  %v9446_v35 = vsel %vm1059_vm2, %v3103_v41, 0  ;;  %v3074_v3 = vunpack.c.l.b16 %v2940_v42  ;;  %v5753_v29 = vrot.slane %v6247_v23, 10 }
 0x20e   :  { %12689 = vst [vmem:[#allocation70_spill] sm:$0xff] %v9446_v35  ;;  %v2817_v44 = vrot.slane %v6248_v33, 6  ;;  %3237 = vmatpush.bf16.xpose.msra.mxu0 %v9446_v35  ;;  %v3111_v63 = vpack.c.b16 %v3058_v39, %v3057_v43  ;;  %v2993_v59 = vsel %vm9022_vm12, %v5778_v9, %v2992_v51  ;;  %v2994_v38 = vrot.slane %v2992_v51, 4  ;;  %v6249_v43 = vld [vmem:[%s11547_s0 + $0x6c] sm:$0xf] }
 0x20f   :  { %v2820_v56 = vrot.slane %v8844_v4, 6  ;;  %v3119_v41 = vpack.c.b16 %v3074_v3, %v3073_v7  ;;  %v3089_v40 = vunpack.c.l.b16 %v2993_v59  ;;  %v5761_v9 = vrot.slane %v6249_v43, 10  ;;  %v6250_v51 = vld [vmem:[%s11547_s0 + $0x70] sm:$0xf]  ;;  %v6252_v59 = vld [vmem:[%s11547_s0 + $0x100] sm:$0xf] }
 0x210   :  { %v2818_v12 = vsel %vm9022_vm12, %v5753_v29, %v2817_v44  ;;  %v2819_v42 = vrot.slane %v2817_v44, 4  ;;  %v9461_v46 = vsel %vm1059_vm2, %v3111_v63, 0  ;;  %v2996_v23 = vsel %vm9022_vm12, %v2994_v38, %v2995_v15  ;;  %v6251_v44 = vld [vmem:[%s11547_s0 + $0xfc] sm:$0xf] }
 0x211   :  { %12690 = vst [vmem:[#allocation69_spill] sm:$0xff] %v9461_v46  ;;  %v3039_v33 = vunpack.c.l.b16 %v2818_v12  ;;  %3251 = vmatpush.bf16.xpose.msra.mxu1 %v9461_v46  ;;  %v9470_v4 = vsel %vm1059_vm2, %v3119_v41, 0  ;;  %v3090_v7 = vunpack.c.l.b16 %v2996_v23  ;;  %v2873_v15 = vrot.slane %v6250_v51, 6 }
 0x212   :  { %12691 = vst [vmem:[#allocation72_spill] sm:$0xff] %v9470_v4  ;;  %v2821_v39 = vsel %vm9022_vm12, %v2819_v42, %v2820_v56  ;;  %3265 = vmatpush.bf16.xpose.msra.mxu2 %v9470_v4  ;;  %v2876_v29 = vrot.slane %v8868_v30, 6  ;;  %v5769_v63 = vrot.slane %v6251_v44, 10  ;;  %v2929_v38 = vrot.slane %v6252_v59, 6 }
 0x213   :  { %v3040_v3 = vunpack.c.l.b16 %v2821_v39  ;;  %v3127_v56 = vpack.c.b16 %v3090_v7, %v3089_v40  ;;  %v2874_v41 = vsel %vm9022_vm12, %v5761_v9, %v2873_v15  ;;  %v2875_v12 = vrot.slane %v2873_v15, 4  ;;  %v6253_v40 = vld [vmem:[%s11547_s0 + $0x15c] sm:$0xf]  ;;  %v6254_v15 = vld [vmem:[%s11547_s0 + $0x160] sm:$0xf] }
 0x214   :  { %v2932_v42 = vrot.slane %v8892_v11, 6  ;;  %v3055_v43 = vunpack.c.l.b16 %v2874_v41  ;;  %v2930_v30 = vsel %vm9022_vm12, %v5769_v63, %v2929_v38  ;;  %v2931_v39 = vrot.slane %v2929_v38, 4  ;;  %v6255_v38 = vld [vmem:[%s11547_s0] sm:$0xf]  ;;  %v6256_v41 = vld [vmem:[%s11547_s0 + $0x4] sm:$0xf] }
 0x215   :  { %v3102_v23 = vpack.c.b16 %v3040_v3, %v3039_v33  ;;  %v9491_v51 = vsel %vm1059_vm2, %v3127_v56, 0  ;;  %v2877_v44 = vsel %vm9022_vm12, %v2875_v12, %v2876_v29  ;;  %v3071_v59 = vunpack.c.l.b16 %v2930_v30 }
 0x216   :  { %12692 = vst [vmem:[#allocation73_spill] sm:$0xff] %v9491_v51  ;;  %v5777_v9 = vrot.slane %v6253_v40, 10  ;;  %3279 = vmatpush.bf16.xpose.msra.mxu3 %v9491_v51  ;;  %v3056_v33 = vunpack.c.l.b16 %v2877_v44  ;;  %v2933_v7 = vsel %vm9022_vm12, %v2931_v39, %v2932_v42  ;;  %v2985_v3 = vrot.slane %v6254_v15, 6  ;;  %v9515_v42 = vpop.f32.mrf.mxu0  ;;  %v9522_v40 = vpop.f32.mrf.mxu2 }
 0x217   :  { %v9500_v11 = vsel %vm1059_vm2, %v3102_v23, 0  ;;  %v3072_v29 = vunpack.c.l.b16 %v2933_v7  ;;  %v2988_v63 = vrot.slane %v8916_v53, 6  ;;  %v5752_v56 = vrot.slane %v6255_v38, 10  ;;  %12694 = vst [vmem:[#allocation76_spill] sm:$0xff] %v9515_v42  ;;  %v9517_v23 = vpop.f32.mrf.mxu1  ;;  %v9524_v7 = vpop.f32.mrf.mxu3 }
 0x218   :  { %12693 = vst [vmem:[#allocation74_spill] sm:$0xff] %v9500_v11  ;;  %3238 = vmatpush.bf16.xpose.msra.mxu0 %v9500_v11  ;;  %v2810_v12 = vrot.slane %v6256_v41, 6  ;;  %v3110_v30 = vpack.c.b16 %v3056_v33, %v3055_v43  ;;  %v2986_v39 = vsel %vm9022_vm12, %v5777_v9, %v2985_v3  ;;  %v2987_v44 = vrot.slane %v2985_v3, 4  ;;  %v12728_v11 = vld [vmem:[#allocation124_spill] sm:$0xff] }
 0x219   :  { %12695 = vst [vmem:[#allocation77_spill] sm:$0xff] %v9517_v23  ;;  %v2813_v53 = vrot.slane %v8940_v25, 6  ;;  %v3118_v15 = vpack.c.b16 %v3072_v29, %v3071_v59  ;;  %v3087_v38 = vunpack.c.l.b16 %v2986_v39  ;;  %v6257_v25 = vld [vmem:[%s11547_s0 + $0x60] sm:$0xf]  ;;  %v6259_v39 = vld [vmem:[%s11547_s0 + $0xf0] sm:$0xf] }
 0x21a   :  { %12696 = vst [vmem:[#allocation78_spill] sm:$0xff] %v9522_v40  ;;  %v2811_v41 = vsel %vm9022_vm12, %v5752_v56, %v2810_v12  ;;  %v2812_v51 = vrot.slane %v2810_v12, 4  ;;  %v9529_v42 = vsel %vm1059_vm2, %v3110_v30, 0  ;;  %v2989_v43 = vsel %vm9022_vm12, %v2987_v44, %v2988_v63  ;;  %v6258_v56 = vld [vmem:[%s11547_s0 + $0x64] sm:$0xf] }
 0x21b   :  { %12697 = vst [vmem:[#allocation80_spill] sm:$0xff] %v9524_v7  ;;  %v3037_v9 = vunpack.c.l.b16 %v2811_v41  ;;  %v5760_v33 = vrot.slane %v6257_v25, 10  ;;  %3252 = vmatpush.bf16.xpose.msra.mxu1 %v9529_v42  ;;  %v9538_v59 = vsel %vm1059_vm2, %v3118_v15, 0  ;;  %v3088_v3 = vunpack.c.l.b16 %v2989_v43  ;;  %v6260_v15 = vld [vmem:[%s11547_s0 + $0xf4] sm:$0xf] }
 0x21c   :  { %12698 = vst [vmem:[#allocation82_spill] sm:$0xff] %v9529_v42  ;;  %v2814_v29 = vsel %vm9022_vm12, %v2812_v51, %v2813_v53  ;;  %v2866_v63 = vrot.slane %v6258_v56, 6  ;;  %3266 = vmatpush.bf16.xpose.msra.mxu2 %v9538_v59  ;;  %v2869_v30 = vrot.slane %v8964_v50, 6  ;;  %v5768_v44 = vrot.slane %v6259_v39, 10  ;;  %v6020_v50 = vld [vmem:[%s11547_s0 + $0xc0] sm:$0xff] }
 0x21d   :  { %12699 = vst [vmem:[#allocation81_spill] sm:$0xff] %v9538_v59  ;;  %v3038_v12 = vunpack.c.l.b16 %v2814_v29  ;;  %v2922_v51 = vrot.slane %v6260_v15, 6  ;;  %v3126_v53 = vpack.c.b16 %v3088_v3, %v3087_v38  ;;  %v2925_v25 = vrot.slane %v8988_v13, 6  ;;  %v6261_v13 = vld [vmem:[%s11547_s0 + $0x150] sm:$0xf] }
 0x21e   :  { %v2867_v41 = vsel %vm9022_vm12, %v5760_v33, %v2866_v63  ;;  %v2868_v43 = vrot.slane %v2866_v63, 4  ;;  %v5776_v3 = vrot.slane %v6261_v13, 10  ;;  %v6048_v63 = vld [vmem:[%s11548_s1 + $0x20] sm:$0x30]  ;;  %v6262_v15 = vld [vmem:[%s11547_s0 + $0x154] sm:$0xf]  ;;  %v2031_v23 = vpop.f32.mrf.mxu2 }
 0x21f   :  { %v3101_v29 = vpack.c.b16 %v3038_v12, %v3037_v9  ;;  %v3053_v56 = vunpack.c.l.b16 %v2867_v41  ;;  %v2923_v39 = vsel %vm9022_vm12, %v5768_v44, %v2922_v51  ;;  %v2924_v7 = vrot.slane %v2922_v51, 4  ;;  %v5786_v9 = vld [vmem:[%s11548_s1 + $0x20] sm:$0xf]  ;;  %v2017_v41 = vpop.f32.mrf.mxu1 }
 0x220   :  { %v9562_v40 = vsel %vm1059_vm2, %v3126_v53, 0  ;;  %v2870_v38 = vsel %vm9022_vm12, %v2868_v43, %v2869_v30  ;;  %v3069_v33 = vunpack.c.l.b16 %v2923_v39  ;;  %v2978_v51 = vrot.slane %v6262_v15, 6  ;;  %v2003_v53 = vpop.f32.mrf.mxu0 }
 0x221   :  { %12700 = vst [vmem:[#allocation84_spill] sm:$0xff] %v9562_v40  ;;  %3280 = vmatpush.bf16.xpose.msra.mxu3 %v9562_v40  ;;  %v3137_v12 = vsel %vm1059_vm2, %v3101_v29, 0  ;;  %v3054_v44 = vunpack.c.l.b16 %v2870_v38  ;;  %v2926_v30 = vsel %vm9022_vm12, %v2924_v7, %v2925_v25  ;;  %v2981_v39 = vrot.slane %v9009_v57, 6  ;;  %v2045_v29 = vpop.f32.mrf.mxu3  ;;  %v12702_v40 = vld [vmem:[#allocation134_spill] sm:$0xff] }
 0x222   :  { %3239 = vmatpush.bf16.xpose.msra.mxu0 %v3137_v12  ;;  %v3070_v43 = vunpack.c.l.b16 %v2926_v30  ;;  %v9584_v13 = vsel %vm1059_vm2, %v6020_v50, 0  ;;  %v2979_v7 = vsel %vm9022_vm12, %v5776_v3, %v2978_v51  ;;  %v2980_v25 = vrot.slane %v2978_v51, 4  ;;  %v6040_v3 = vld [vmem:[%s11547_s0 + $0x1b0] sm:$0xff]  ;;  %v12710_v51 = vld [vmem:[#allocation107_spill] sm:$0xff] }
 0x223   :  { %12701 = vst [vmem:[#allocation86_spill] sm:$0xff] %v9584_v13  ;;  %v3109_v38 = vpack.c.b16 %v3054_v44, %v3053_v56  ;;  %v5787_v59 = vor.u32 %v6048_v63, %v5786_v9  ;;  %v3085_v42 = vunpack.c.l.b16 %v2979_v7  ;;  %v9590_v12 = vadd.f32 %v2003_v53, %v9248_v19  ;;  %v12704_v44 = vld [vmem:[#allocation136_spill] sm:$0xff]  ;;  %v12711_v53 = vld [vmem:[#allocation110_spill] sm:$0xff] }
 0x224   :  { %v3117_v15 = vpack.c.b16 %v3070_v43, %v3069_v33  ;;  %v9593_v57 = vadd.f32 %v2017_v41, %v9251_v36  ;;  %v2982_v56 = vsel %vm9022_vm12, %v2980_v25, %v2981_v39  ;;  %v9604_v9 = vadd.f32 %v2031_v23, %v9256_v14  ;;  %v12709_v23 = vld [vmem:[#allocation108_spill] sm:$0xff]  ;;  %v12712_v41 = vld [vmem:[#allocation109_spill] sm:$0xff]  ;;  %v9638_v7 = vld [vmem:[%s11547_s0 + $0xc0] sm:$0xf] }
 0x225   :  { %v9596_v50 = vsel %vm1059_vm2, %v3109_v38, 0  ;;  %v9607_v33 = vadd.f32 %v2045_v29, %v9262_v16  ;;  %v3086_v36 = vunpack.c.l.b16 %v2982_v56  ;;  %v9614_v30 = vsel %vm1059_vm2, %v6040_v3, 0  ;;  %v12707_v16 = vld [vmem:[#allocation104_spill] sm:$0xff]  ;;  %v12713_v43 = vld [vmem:[#allocation113_spill] sm:$0xff]  ;;  %v12715_v29 = vld [vmem:[#allocation115_spill] sm:$0xff] }
 0x226   :  { %12703 = vst [vmem:[#allocation85_spill] sm:$0xff] %v9596_v50  ;;  %3253 = vmatpush.bf16.xpose.msra.mxu1 %v9596_v50  ;;  %v3185_v19 = vsel %vm1059_vm2, %v3117_v15, 0  ;;  %v12714_v39 = vld [vmem:[#allocation112_spill] sm:$0xff]  ;;  %v12716_v38 = vld [vmem:[#allocation114_spill] sm:$0xff]  ;;  %v12717_v25 = vld [vmem:[#allocation117_spill] sm:$0xff]  ;;  %v12064_v15 = vshrl.u32 %v9638_v7, 16 }
 0x227   :  { %3267 = vmatpush.bf16.xpose.msra.mxu2 %v3185_v19  ;;  %v3125_v63 = vpack.c.b16 %v3086_v36, %v3085_v42  ;;  %12705 = vst [vmem:[#allocation88_spill] sm:$0xff] %v9614_v30  ;;  %v12708_v42 = vld [vmem:[#allocation105_spill] sm:$0xff]  ;;  %v12718_v36 = vld [vmem:[#allocation116_spill] sm:$0xff]  ;;  %v12720_v3 = vshll.u32 %v9638_v7, 16 }
 0x228   :  { %v3387_v56 = vrot.slane %v12064_v15, 4 }
 0x229   :  { %5788 = vmatmul.msk.bf16.vlgmr.msra.gmra.mxu0 %vm1059_vm2, %v5787_v59  ;;  %v9618_v14 = vsel %vm1059_vm2, %v3125_v63, 0  ;;  %v12719_v63 = vld [vmem:[#allocation119_spill] sm:$0xff]  ;;  %v3390_v19 = vrot.slane %v12720_v3, 5 }
 0x22a   :  { %3320 = vmatpush.bf16.xpose.msrb.mxu0 %v12702_v40  ;;  %12706 = vst [vmem:[#allocation89_spill] sm:$0xff] %v9618_v14  ;;  %3281 = vmatpush.bf16.xpose.msra.mxu3 %v9618_v14  ;;  %v12726_v40 = vld [vmem:[#allocation121_spill] sm:$0xff] }
 0x22d   :  { %5789 = vmatmul.msk.bf16.vlgmr.msra.gmra.mxu1 %vm1059_vm2, %v5787_v59 }
 0x22e   :  { %3334 = vmatpush.bf16.xpose.msrb.mxu1 %v9584_v13  ;;  %5790 = vmatmul.msk.bf16.vlgmr.msra.gmra.mxu2 %vm1059_vm2, %v5787_v59 }
 0x22f   :  { %3348 = vmatpush.bf16.xpose.msrb.mxu2 %v12704_v44 }
 0x231   :  { %5791 = vmatmul.msk.bf16.vlgmr.msra.gmra.mxu3 %vm1059_vm2, %v5787_v59  ;;  %v9643_v59 = vld [vmem:[%s11547_s0 + $0xc4] sm:$0xf] }
 0x232   :  { %3321 = vmatpush.bf16.xpose.msrb.mxu0 %v12707_v16  ;;  %3362 = vmatpush.bf16.xpose.msrb.mxu3 %v9614_v30 }
 0x236   :  { %3335 = vmatpush.bf16.xpose.msrb.mxu1 %v12708_v42 }
 0x237   :  { %3349 = vmatpush.bf16.xpose.msrb.mxu2 %v12709_v23  ;;  %v12724_v23 = vld [vmem:[#allocation120_spill] sm:$0xff] }
 0x23a   :  { %3322 = vmatpush.bf16.xpose.msrb.mxu0 %v12710_v51  ;;  %3363 = vmatpush.bf16.xpose.msrb.mxu3 %v12711_v53 }
 0x23e   :  { %3336 = vmatpush.bf16.xpose.msrb.mxu1 %v12712_v41  ;;  %v9674_v41 = vld [vmem:[%s11547_s0 + $0xc8] sm:$0x3] }
 0x23f   :  { %3350 = vmatpush.bf16.xpose.msrb.mxu2 %v12713_v43  ;;  %v12723_v43 = vld [vmem:[#allocation118_spill] sm:$0xff] }
 0x242   :  { %3323 = vmatpush.bf16.xpose.msrb.mxu0 %v12714_v39  ;;  %3364 = vmatpush.bf16.xpose.msrb.mxu3 %v12715_v29 }
 0x246   :  { %3337 = vmatpush.bf16.xpose.msrb.mxu1 %v12716_v38  ;;  %v9655_v38 = vld [vmem:[%s11547_s0 + $0x1b0] sm:$0xf] }
 0x247   :  { %3351 = vmatpush.bf16.xpose.msrb.mxu2 %v12717_v25  ;;  %v9660_v25 = vld [vmem:[%s11547_s0 + $0x1b4] sm:$0xf]  ;;  %v12069_v53 = vshrl.u32 %v9655_v38, 16  ;;  %v12070_v15 = vshll.u32 %v9655_v38, 16 }
 0x248   :  { %v12071_v51 = vshll.u32 %v9660_v25, 16  ;;  %v12073_v3 = vshrl.u32 %v9660_v25, 16 }
 0x249   :  { %v3411_v30 = vrot.slane %v12069_v53, 4  ;;  %v3414_v16 = vrot.slane %v12070_v15, 5 }
 0x24a   :  { %3324 = vmatpush.bf16.xpose.msrb.mxu0 %v12718_v36  ;;  %3365 = vmatpush.bf16.xpose.msrb.mxu3 %v12719_v63  ;;  %v12721_v36 = vshll.u32 %v9643_v59, 16  ;;  %v12722_v63 = vshrl.u32 %v9643_v59, 16  ;;  %v3420_v44 = vrot.slane %v12071_v51, 5  ;;  %v3424_v13 = vrot.slane %v12073_v3, 4  ;;  %v9702_v3 = vpop.f32.mrf.mxu0 }
 0x24b   :  { %v3415_v15 = vor.u32 %v3414_v16, %v3411_v30  ;;  %12729 = vst [vmem:[#allocation90_spill] sm:$0xff] %v9702_v3  ;;  %v12733_v30 = vld [vmem:[#allocation125_spill] sm:$0xff]  ;;  %v12734_v3 = vld [vmem:[#allocation127_spill] sm:$0xff] }
 0x24c   :  { %v3396_v29 = vrot.slane %v12721_v36, 5  ;;  %v3400_v39 = vrot.slane %v12722_v63, 4  ;;  %v3391_v36 = vor.u32 %v3390_v19, %v3387_v56  ;;  %v12078_v63 = vshll.u32 %v9674_v41, 16 }
 0x24e   :  { %3338 = vmatpush.bf16.xpose.msrb.mxu1 %v12723_v43  ;;  %v3401_v42 = vor.u32 %v3400_v39, %v3396_v29  ;;  %v12725_v43 = vld [vmem:[#allocation122_spill] sm:$0xff]  ;;  %v9695_v39 = vld [vmem:[%s11547_s0 + $0x1b8] sm:$0x3]  ;;  %v3392_v56 = vrot.slane %v3391_v36, 4  ;;  %v3406_v53 = vrot.slane %v12078_v63, 5  ;;  %v3416_v63 = vrot.slane %v3415_v15, 4 }
 0x24f   :  { %3352 = vmatpush.bf16.xpose.msrb.mxu2 %v12724_v23  ;;  %v3425_v23 = vor.u32 %v3424_v13, %v3420_v44  ;;  %v12079_v51 = vshll.u32 %v9695_v39, 16  ;;  %v12732_v36 = vld [vmem:[#allocation126_spill] sm:$0xff]  ;;  %v3640_v24 = vshrl.u32 %v9695_v39, 16 }
 0x250   :  { %v3402_v19 = vrot.slane %v3401_v42, 4  ;;  %v3397_v46 = vsel %vm6353_vm3, %v3392_v56, %v3396_v29  ;;  %v12736_v56 = vld [vmem:[#allocation128_spill] sm:$0xff] }
 0x251   :  { %v3430_v13 = vrot.slane %v12079_v51, 5  ;;  %v3437_v16 = vunpack.c.l.b16 %v3397_v46 }
 0x252   :  { %3325 = vmatpush.bf16.xpose.msrb.mxu0 %v12725_v43  ;;  %3366 = vmatpush.bf16.xpose.msrb.mxu3 %v12726_v40  ;;  %v12727_v43 = vld [vmem:[#allocation123_spill] sm:$0xff]  ;;  %v9704_v40 = vpop.f32.mrf.mxu1  ;;  %v3407_v42 = vsel %vm6353_vm3, %v3402_v19, %v3406_v53  ;;  %v9719_v53 = vpop.f32.mrf.mxu2 }
 0x253   :  { %12730 = vst [vmem:[#allocation92_spill] sm:$0xff] %v9704_v40  ;;  %v3421_v40 = vsel %vm6353_vm3, %v3416_v63, %v3420_v44  ;;  %v12738_v44 = vld [vmem:[#allocation130_spill] sm:$0xff] }
 0x254   :  { %12735 = vst [vmem:[#allocation93_spill] sm:$0xff] %v9719_v53  ;;  %v3439_v51 = vunpack.c.l.b16 %v3421_v40  ;;  %v12739_v40 = vld [vmem:[#allocation129_spill] sm:$0xff]  ;;  %v12740_v63 = vld [vmem:[#allocation106_spill] sm:$0xff]  ;;  %v12755_v53 = vld [vmem:[#allocation27_spill] sm:$0xff] }
 0x256   :  { %3339 = vmatpush.bf16.xpose.msrb.mxu1 %v12727_v43  ;;  %v3426_v43 = vrot.slane %v3425_v23, 4 }
 0x257   :  { %3353 = vmatpush.bf16.xpose.msrb.mxu2 %v12728_v11  ;;  %v3438_v11 = vunpack.c.l.b16 %v3407_v42 }
 0x258   :  { %v3431_v29 = vsel %vm6353_vm3, %v3426_v43, %v3430_v13  ;;  %v2750_v15 = vpop.f32.mrf.mxu0  ;;  %v5794_v43 = vld [vmem:[%s11548_s1 + $0x28] sm:$0xf] }
 0x259   :  { %v3441_v23 = vpack.c.b16 %v3438_v11, %v3437_v16  ;;  %v9723_v46 = vadd.f32 %v2750_v15, %v9590_v12  ;;  %v6049_v11 = vld [vmem:[%s11548_s1 + $0x28] sm:$0x30] }
 0x25a   :  { %3326 = vmatpush.bf16.xpose.msrb.mxu0 %v12732_v36  ;;  %3367 = vmatpush.bf16.xpose.msrb.mxu3 %v12733_v30  ;;  %v2764_v19 = vpop.f32.mrf.mxu1  ;;  %v3440_v36 = vunpack.c.l.b16 %v3431_v29  ;;  %v5795_v13 = vor.u32 %v6049_v11, %v5794_v43  ;;  %v12742_v16 = vld [vmem:[#allocation131_spill] sm:$0xff]  ;;  %v12743_v29 = vld [vmem:[#allocation132_spill] sm:$0xff]  ;;  %v12749_v11 = vld [vmem:[#allocation5_spill] sm:$0xff] }
 0x25b   :  { %v9726_v42 = vadd.f32 %v2764_v19, %v9593_v57  ;;  %v9740_v12 = vsel %vm1059_vm2, %v3441_v23, 0  ;;  %v12744_v19 = vld [vmem:[#allocation111_spill] sm:$0xff] }
 0x25c   :  { %12741 = vst [vmem:[#allocation96_spill] sm:$0xff] %v9740_v12  ;;  %v3442_v57 = vpack.c.b16 %v3440_v36, %v3439_v51  ;;  %v12746_v51 = vld [vmem:[#allocation133_spill] sm:$0xff]  ;;  %v12747_v36 = vld [vmem:[#allocation3_spill] sm:$0xff] }
 0x25d   :  { %v12770_v30 = vld [vmem:[#allocation95_spill] sm:$0xff] }
 0x25e   :  { %3340 = vmatpush.bf16.xpose.msrb.mxu1 %v12734_v3  ;;  %v9728_v3 = vpop.f32.mrf.mxu3 }
 0x25f   :  { %3354 = vmatpush.bf16.xpose.msrb.mxu2 %v12736_v56  ;;  %12737 = vst [vmem:[#allocation94_spill] sm:$0xff] %v9728_v3  ;;  %v2778_v15 = vpop.f32.mrf.mxu2  ;;  %v9750_v3 = vsel %vm1059_vm2, %v3442_v57, 0  ;;  %v12750_v57 = vld [vmem:[#allocation14_spill] sm:$0xff]  ;;  %v12768_v56 = vld [vmem:[#allocation83_spill] sm:$0xff] }
 0x260   :  { %12745 = vst [vmem:[#allocation98_spill] sm:$0xff] %v9750_v3 }
 0x262   :  { %3327 = vmatpush.bf16.xpose.msrb.mxu0 %v12738_v44  ;;  %3368 = vmatpush.bf16.xpose.msrb.mxu3 %v12739_v40  ;;  %v9747_v44 = vadd.f32 %v2778_v15, %v9604_v9  ;;  %v12748_v9 = vld [vmem:[#allocation4_spill] sm:$0xff]  ;;  %v12752_v15 = vld [vmem:[#allocation19_spill] sm:$0xff] }
 0x266   :  { %3341 = vmatpush.bf16.xpose.msrb.mxu1 %v12742_v16  ;;  %v2792_v23 = vpop.f32.mrf.mxu3 }
 0x267   :  { %3355 = vmatpush.bf16.xpose.msrb.mxu2 %v12743_v29  ;;  %v9756_v43 = vadd.f32 %v2792_v23, %v9607_v33  ;;  %v12751_v29 = vld [vmem:[#allocation10_spill] sm:$0xff]  ;;  %v12753_v33 = vld [vmem:[#allocation23_spill] sm:$0xff] }
 0x268   :  { %v12754_v23 = vld [vmem:[#allocation31_spill] sm:$0xff] }
 0x269   :  { %5804 = vmatmul.msk.bf16.vlgmr.msrb.gmra.mxu0 %vm1059_vm2, %v5795_v13 }
 0x26a   :  { %3452 = vmatpush.bf16.xpose.msra.mxu0 %v12740_v63  ;;  %3369 = vmatpush.bf16.xpose.msrb.mxu3 %v12746_v51  ;;  %v12767_v63 = vld [vmem:[#allocation75_spill] sm:$0xff] }
 0x26d   :  { %5805 = vmatmul.msk.bf16.vlgmr.msrb.gmra.mxu1 %vm1059_vm2, %v5795_v13 }
 0x26e   :  { %3466 = vmatpush.bf16.xpose.msra.mxu1 %v9740_v12  ;;  %5806 = vmatmul.msk.bf16.vlgmr.msrb.gmra.mxu2 %vm1059_vm2, %v5795_v13  ;;  %v3530_v12 = vrot.slane %v9695_v39, 5 }
 0x26f   :  { %3480 = vmatpush.bf16.xpose.msra.mxu2 %v12744_v19 }
 0x271   :  { %5807 = vmatmul.msk.bf16.vlgmr.msrb.gmra.mxu3 %vm1059_vm2, %v5795_v13  ;;  %v12760_v13 = vld [vmem:[#allocation51_spill] sm:$0xff] }
 0x272   :  { %3453 = vmatpush.bf16.xpose.msra.mxu0 %v12747_v36  ;;  %3494 = vmatpush.bf16.xpose.msra.mxu3 %v9750_v3  ;;  %v12756_v3 = vld [vmem:[#allocation35_spill] sm:$0xff] }
 0x273   :  { %v12757_v36 = vld [vmem:[#allocation39_spill] sm:$0xff] }
 0x276   :  { %3467 = vmatpush.bf16.xpose.msra.mxu1 %v12748_v9  ;;  %v12758_v9 = vld [vmem:[#allocation47_spill] sm:$0xff] }
 0x277   :  { %3481 = vmatpush.bf16.xpose.msra.mxu2 %v12749_v11  ;;  %v12759_v11 = vld [vmem:[#allocation43_spill] sm:$0xff] }
 0x27a   :  { %3454 = vmatpush.bf16.xpose.msra.mxu0 %v12750_v57  ;;  %3495 = vmatpush.bf16.xpose.msra.mxu3 %v12751_v29  ;;  %v12761_v57 = vld [vmem:[#allocation55_spill] sm:$0xff] }
 0x27b   :  { %v12762_v29 = vld [vmem:[#allocation63_spill] sm:$0xff] }
 0x27e   :  { %3468 = vmatpush.bf16.xpose.msra.mxu1 %v12752_v15  ;;  %v3520_v15 = vrot.slane %v9643_v59, 5 }
 0x27f   :  { %3482 = vmatpush.bf16.xpose.msra.mxu2 %v12753_v33  ;;  %v12763_v33 = vld [vmem:[#allocation59_spill] sm:$0xff] }
 0x282   :  { %3455 = vmatpush.bf16.xpose.msra.mxu0 %v12754_v23  ;;  %3496 = vmatpush.bf16.xpose.msra.mxu3 %v12755_v53  ;;  %v5816_v53 = vrot.slane %v9638_v7, 9  ;;  %v3522_v23 = vrot.slane %v3520_v15, 4 }
 0x286   :  { %3469 = vmatpush.bf16.xpose.msra.mxu1 %v12756_v3  ;;  %v3523_v3 = vrot.slane %v9674_v41, 5 }
 0x287   :  { %3483 = vmatpush.bf16.xpose.msra.mxu2 %v12757_v36  ;;  %v12764_v36 = vld [vmem:[#allocation67_spill] sm:$0xff] }
 0x28a   :  { %3456 = vmatpush.bf16.xpose.msra.mxu0 %v12758_v9  ;;  %3497 = vmatpush.bf16.xpose.msra.mxu3 %v12759_v11  ;;  %v3527_v9 = vrot.slane %v9660_v25, 5  ;;  %v12765_v11 = vld [vmem:[#allocation71_spill] sm:$0xff] }
 0x28c   :  { %v3529_v19 = vrot.slane %v3527_v9, 4 }
 0x28e   :  { %3470 = vmatpush.bf16.xpose.msra.mxu1 %v12760_v13  ;;  %v3524_v13 = vsel %vm7731_vm6, %v3522_v23, %v3523_v3  ;;  %v12769_v3 = vld [vmem:[#allocation87_spill] sm:$0xff] }
 0x28f   :  { %3484 = vmatpush.bf16.xpose.msra.mxu2 %v12761_v57  ;;  %v3521_v57 = vsel %vm7731_vm6, %v5816_v53, %v3520_v15  ;;  %v3538_v40 = vunpack.c.l.b16 %v3524_v13  ;;  %v3531_v53 = vsel %vm7731_vm6, %v3529_v19, %v3530_v12  ;;  %v6050_v13 = vld [vmem:[%s11548_s1 + $0x30] sm:$0x30] }
 0x292   :  { %3457 = vmatpush.bf16.xpose.msra.mxu0 %v12762_v29  ;;  %3498 = vmatpush.bf16.xpose.msra.mxu3 %v12763_v33  ;;  %v12766_v29 = vld [vmem:[#allocation79_spill] sm:$0xff]  ;;  %v5817_v33 = vrot.slane %v9655_v38, 9 }
 0x296   :  { %3471 = vmatpush.bf16.xpose.msra.mxu1 %v12764_v36  ;;  %v3537_v36 = vunpack.c.l.b16 %v3521_v57  ;;  %v5810_v57 = vld [vmem:[%s11548_s1 + $0x30] sm:$0xf] }
 0x297   :  { %3485 = vmatpush.bf16.xpose.msra.mxu2 %v12765_v11  ;;  %v3528_v11 = vsel %vm7731_vm6, %v5817_v33, %v3527_v9  ;;  %v5811_v19 = vor.u32 %v6050_v13, %v5810_v57  ;;  %v12777_v33 = vld [vmem:[#allocation137_spill] sm:$0xff]  ;;  %v12782_v57 = vld [vmem:[#allocation143_spill] sm:$0xff]  ;;  %v12783_v13 = vld [vmem:[#allocation140_spill] sm:$0xff] }
 0x298   :  { %v3541_v15 = vpack.c.b16 %v3538_v40, %v3537_v36  ;;  %v3539_v23 = vunpack.c.l.b16 %v3528_v11  ;;  %v12773_v36 = vld [vmem:[#allocation99_spill] sm:$0xff] }
 0x299   :  { %v12776_v11 = vld [vmem:[#allocation103_spill] sm:$0xff] }
 0x29a   :  { %3458 = vmatpush.bf16.xpose.msra.mxu0 %v12766_v29  ;;  %3499 = vmatpush.bf16.xpose.msra.mxu3 %v12767_v63  ;;  %v3540_v29 = vunpack.c.l.b16 %v3531_v53  ;;  %v9808_v12 = vsel %vm1059_vm2, %v3541_v15, 0  ;;  %v9820_v53 = vpop.f32.mrf.mxu0  ;;  %v9826_v15 = vpop.f32.mrf.mxu1 }
 0x29b   :  { %12772 = vst [vmem:[#allocation97_spill] sm:$0xff] %v9808_v12 }
 0x29c   :  { %v3542_v40 = vpack.c.b16 %v3540_v29, %v3539_v23  ;;  %12778 = vst [vmem:[#allocation101_spill] sm:$0xff] %v9820_v53  ;;  %v12779_v29 = vld [vmem:[#allocation138_spill] sm:$0xff]  ;;  %v12781_v23 = vld [vmem:[#allocation139_spill] sm:$0xff]  ;;  %v9835_v53 = vpop.f32.mrf.mxu2 }
 0x29d   :  { %12780 = vst [vmem:[#allocation130_spill] sm:$0xff] %v9826_v15 }
 0x29e   :  { %3472 = vmatpush.bf16.xpose.msra.mxu1 %v12768_v56  ;;  %v12771_v56 = vld [vmem:[#allocation91_spill] sm:$0xff]  ;;  %v9815_v9 = vsel %vm1059_vm2, %v3542_v40, 0  ;;  %12784 = vst [vmem:[#allocation132_spill] sm:$0xff] %v9835_v53 }
 0x29f   :  { %3486 = vmatpush.bf16.xpose.msra.mxu2 %v12769_v3  ;;  %12775 = vst [vmem:[#allocation100_spill] sm:$0xff] %v9815_v9  ;;  %v12802_v3 = vshrl.u32 %v9660_v25, 16 }
 0x2a1   :  { %v3635_v63 = vrot.slane %v12802_v3, 5 }
 0x2a2   :  { %3459 = vmatpush.bf16.xpose.msra.mxu0 %v12770_v30  ;;  %3500 = vmatpush.bf16.xpose.msra.mxu3 %v12771_v56  ;;  %v12774_v30 = vld [vmem:[#allocation102_spill] sm:$0xff]  ;;  %v12800_v56 = vld [vmem:[#allocation157_spill] sm:$0xff] }
 0x2a6   :  { %3473 = vmatpush.bf16.xpose.msra.mxu1 %v12773_v36  ;;  %v3241_v40 = vpop.f32.mrf.mxu0 }
 0x2a7   :  { %3487 = vmatpush.bf16.xpose.msra.mxu2 %v12774_v30  ;;  %v9833_v30 = vadd.f32 %v3241_v40, %v9723_v46  ;;  %v12790_v40 = vld [vmem:[#allocation150_spill] sm:$0xff] }
 0x2a9   :  { %5812 = vmatmul.msk.bf16.vlgmr.msra.gmra.mxu0 %vm1059_vm2, %v5811_v19 }
 0x2aa   :  { %3552 = vmatpush.bf16.xpose.msrb.mxu0 %v8323_v28  ;;  %3501 = vmatpush.bf16.xpose.msra.mxu3 %v12776_v11  ;;  %v12806_v11 = vld [vmem:[#allocation159_spill] sm:$0xff] }
 0x2ad   :  { %5813 = vmatmul.msk.bf16.vlgmr.msra.gmra.mxu1 %vm1059_vm2, %v5811_v19 }
 0x2ae   :  { %3566 = vmatpush.bf16.xpose.msrb.mxu1 %v9808_v12  ;;  %5814 = vmatmul.msk.bf16.vlgmr.msra.gmra.mxu2 %vm1059_vm2, %v5811_v19 }
 0x2af   :  { %3580 = vmatpush.bf16.xpose.msrb.mxu2 %v8354_v54 }
 0x2b1   :  { %5815 = vmatmul.msk.bf16.vlgmr.msra.gmra.mxu3 %vm1059_vm2, %v5811_v19  ;;  %v12788_v19 = vld [vmem:[#allocation148_spill] sm:$0xff] }
 0x2b2   :  { %3553 = vmatpush.bf16.xpose.msrb.mxu0 %v12777_v33  ;;  %3594 = vmatpush.bf16.xpose.msrb.mxu3 %v9815_v9  ;;  %v12785_v9 = vld [vmem:[#allocation144_spill] sm:$0xff]  ;;  %v12786_v33 = vld [vmem:[#allocation146_spill] sm:$0xff] }
 0x2b6   :  { %3567 = vmatpush.bf16.xpose.msrb.mxu1 %v12779_v29  ;;  %v3255_v29 = vpop.f32.mrf.mxu1 }
 0x2b7   :  { %3581 = vmatpush.bf16.xpose.msrb.mxu2 %v12781_v23  ;;  %v9840_v15 = vadd.f32 %v3255_v29, %v9726_v42  ;;  %v9842_v23 = vpop.f32.mrf.mxu3  ;;  %v12792_v29 = vshrl.u32 %v9638_v7, 16 }
 0x2b8   :  { %12787 = vst [vmem:[#allocation95_spill] sm:$0xff] %v9842_v23 }
 0x2b9   :  { %v3616_v23 = vrot.slane %v12792_v29, 5 }
 0x2ba   :  { %3554 = vmatpush.bf16.xpose.msrb.mxu0 %v12782_v57  ;;  %3595 = vmatpush.bf16.xpose.msrb.mxu3 %v12783_v13  ;;  %v3269_v13 = vpop.f32.mrf.mxu2  ;;  %v12789_v57 = vld [vmem:[#allocation149_spill] sm:$0xff] }
 0x2bb   :  { %v9848_v46 = vadd.f32 %v3269_v13, %v9747_v44  ;;  %v12795_v13 = vshll.u32 %v9643_v59, 16 }
 0x2be   :  { %3568 = vmatpush.bf16.xpose.msrb.mxu1 %v12785_v9  ;;  %v3625_v9 = vshrl.u32 %v9674_v41, 16 }
 0x2bf   :  { %3582 = vmatpush.bf16.xpose.msrb.mxu2 %v12786_v33  ;;  %v3283_v53 = vpop.f32.mrf.mxu3  ;;  %v12791_v33 = vld [vmem:[#allocation153_spill] sm:$0xff] }
 0x2c0   :  { %v9853_v42 = vadd.f32 %v3283_v53, %v9756_v43  ;;  %v12797_v43 = vld [vmem:[#allocation155_spill] sm:$0xff]  ;;  %v12798_v53 = vshrl.u32 %v9655_v38, 16  ;;  %v3627_v12 = vrot.slane %v3625_v9, 5 }
 0x2c2   :  { %3555 = vmatpush.bf16.xpose.msrb.mxu0 %v12788_v19  ;;  %3596 = vmatpush.bf16.xpose.msrb.mxu3 %v7947_v48  ;;  %v12793_v48 = vshll.u32 %v9638_v7, 16 }
 0x2c4   :  { %v3617_v19 = vrot.slane %v12793_v48, 6  ;;  %v12799_v48 = vshll.u32 %v9674_v41, 16 }
 0x2c6   :  { %3569 = vmatpush.bf16.xpose.msrb.mxu1 %v12789_v57  ;;  %v12794_v57 = vshrl.u32 %v9643_v59, 16  ;;  %v3618_v54 = vor.u32 %v3617_v19, %v3616_v23  ;;  %v3628_v28 = vrot.slane %v12799_v48, 6  ;;  %v3642_v48 = vrot.slane %v3640_v24, 5 }
 0x2c7   :  { %3583 = vmatpush.bf16.xpose.msrb.mxu2 %v12790_v40  ;;  %v3621_v40 = vrot.slane %v12795_v13, 6 }
 0x2c8   :  { %v3620_v44 = vrot.slane %v12794_v57, 5  ;;  %v12801_v57 = vshll.u32 %v9655_v38, 16  ;;  %v3619_v23 = vrot.slane %v3618_v54, 4  ;;  %v3629_v19 = vor.u32 %v3628_v28, %v3627_v12 }
 0x2ca   :  { %3556 = vmatpush.bf16.xpose.msrb.mxu0 %v12791_v33  ;;  %3597 = vmatpush.bf16.xpose.msrb.mxu3 %v8026_v55  ;;  %v12796_v33 = vld [vmem:[#allocation154_spill] sm:$0xff]  ;;  %v3631_v55 = vrot.slane %v12798_v53, 5  ;;  %v3622_v29 = vor.u32 %v3621_v40, %v3620_v44  ;;  %v3632_v13 = vrot.slane %v12801_v57, 6  ;;  %v12805_v57 = vshll.u32 %v9695_v39, 16 }
 0x2cb   :  { %v12804_v40 = vld [vmem:[#allocation158_spill] sm:$0xff] }
 0x2cc   :  { %v3624_v9 = vrot.slane %v3622_v29, 4  ;;  %v3633_v44 = vor.u32 %v3632_v13, %v3631_v55  ;;  %v3623_v3 = vsel %vm8347_vm9, %v3619_v23, %v3622_v29  ;;  %v12809_v13 = vld [vmem:[#allocation162_spill] sm:$0xff] }
 0x2cd   :  { %v3651_v55 = vunpack.c.l.b16 %v3623_v3 }
 0x2ce   :  { %3570 = vmatpush.bf16.xpose.msrb.mxu1 %v12796_v33  ;;  %v12803_v33 = vshll.u32 %v9660_v25, 16  ;;  %v3634_v54 = vrot.slane %v3633_v44, 4  ;;  %v12810_v44 = vld [vmem:[#allocation164_spill] sm:$0xff] }
 0x2cf   :  { %3584 = vmatpush.bf16.xpose.msrb.mxu2 %v12797_v43 }
 0x2d0   :  { %v3636_v43 = vrot.slane %v12803_v33, 6  ;;  %v3630_v33 = vsel %vm8347_vm9, %v3624_v9, %v3629_v19 }
 0x2d1   :  { %v3652_v24 = vunpack.c.l.b16 %v3630_v33 }
 0x2d2   :  { %3557 = vmatpush.bf16.xpose.msrb.mxu0 %v12800_v56  ;;  %3598 = vmatpush.bf16.xpose.msrb.mxu3 %v8097_v60  ;;  %v3637_v53 = vor.u32 %v3636_v43, %v3635_v63  ;;  %v3643_v56 = vrot.slane %v12805_v57, 6  ;;  %v12807_v60 = vld [vmem:[#allocation160_spill] sm:$0xff]  ;;  %v12808_v63 = vld [vmem:[#allocation161_spill] sm:$0xff]  ;;  %v12811_v57 = vld [vmem:[#allocation163_spill] sm:$0xff] }
 0x2d3   :  { %v3655_v23 = vpack.c.b16 %v3652_v24, %v3651_v55 }
 0x2d4   :  { %v3639_v28 = vrot.slane %v3637_v53, 4  ;;  %v3644_v12 = vor.u32 %v3643_v56, %v3642_v48  ;;  %v3638_v43 = vsel %vm8347_vm9, %v3634_v54, %v3637_v53  ;;  %v5820_v56 = vld [vmem:[%s11548_s1 + $0x38] sm:$0xf]  ;;  %v6051_v48 = vld [vmem:[%s11548_s1 + $0x38] sm:$0x30] }
 0x2d5   :  { %v3653_v9 = vunpack.c.l.b16 %v3638_v43  ;;  %v9906_v53 = vsel %vm1059_vm2, %v3655_v23, 0  ;;  %v5821_v33 = vor.u32 %v6051_v48, %v5820_v56  ;;  %v12813_v54 = vld [vmem:[#allocation165_spill] sm:$0xff]  ;;  %v9933_v43 = vpop.f32.mrf.mxu2  ;;  %v12819_v56 = vld [vmem:[#allocation15_spill] sm:$0xff] }
 0x2d6   :  { %3571 = vmatpush.bf16.xpose.msrb.mxu1 %v12804_v40  ;;  %v3645_v29 = vsel %vm8347_vm9, %v3639_v28, %v3644_v12  ;;  %12812 = vst [vmem:[#allocation102_spill] sm:$0xff] %v9906_v53  ;;  %v9918_v12 = vpop.f32.mrf.mxu0  ;;  %v12820_v48 = vld [vmem:[#allocation13_spill] sm:$0xff] }
 0x2d7   :  { %3585 = vmatpush.bf16.xpose.msrb.mxu2 %v12806_v11  ;;  %v3654_v19 = vunpack.c.l.b16 %v3645_v29  ;;  %12815 = vst [vmem:[#allocation159_spill] sm:$0xff] %v9918_v12 }
 0x2d8   :  { %12817 = vst [vmem:[#allocation162_spill] sm:$0xff] %v9933_v43  ;;  %v3735_v43 = vrot.slane %v9674_v41, 6  ;;  %v12828_v41 = vld [vmem:[#allocation22_spill] sm:$0xff] }
 0x2d9   :  { %v3656_v3 = vpack.c.b16 %v3654_v19, %v3653_v9  ;;  %v9940_v9 = vpop.f32.mrf.mxu3 }
 0x2da   :  { %3558 = vmatpush.bf16.xpose.msrb.mxu0 %v12807_v60  ;;  %3599 = vmatpush.bf16.xpose.msrb.mxu3 %v8168_v20  ;;  %12818 = vst [vmem:[#allocation164_spill] sm:$0xff] %v9940_v9 }
 0x2db   :  { %v9913_v28 = vsel %vm1059_vm2, %v3656_v3, 0  ;;  %v12821_v3 = vld [vmem:[#allocation16_spill] sm:$0xff] }
 0x2dc   :  { %12814 = vst [vmem:[#allocation158_spill] sm:$0xff] %v9913_v28 }
 0x2de   :  { %3572 = vmatpush.bf16.xpose.msrb.mxu1 %v12808_v63 }
 0x2df   :  { %3586 = vmatpush.bf16.xpose.msrb.mxu2 %v12809_v13 }
 0x2e2   :  { %3559 = vmatpush.bf16.xpose.msrb.mxu0 %v12810_v44  ;;  %3600 = vmatpush.bf16.xpose.msrb.mxu3 %v12811_v57 }
 0x2e6   :  { %3573 = vmatpush.bf16.xpose.msrb.mxu1 %v12813_v54  ;;  %v3329_v55 = vpop.f32.mrf.mxu0 }
 0x2e7   :  { %3587 = vmatpush.bf16.xpose.msrb.mxu2 %v8295_v18  ;;  %v9924_v18 = vpop.f32.mrf.mxu1  ;;  %v9931_v24 = vadd.f32 %v3329_v55, %v9833_v30  ;;  %v3732_v55 = vrot.slane %v9643_v59, 6 }
 0x2e8   :  { %12816 = vst [vmem:[#allocation160_spill] sm:$0xff] %v9924_v18  ;;  %v12825_v18 = vld [vmem:[#allocation145_spill] sm:$0xff] }
 0x2e9   :  { %5822 = vmatmul.msk.bf16.vlgmr.msrb.gmra.mxu0 %vm1059_vm2, %v5821_v33  ;;  %v3734_v9 = vrot.slane %v3732_v55, 4 }
 0x2ea   :  { %3666 = vmatpush.bf16.xpose.msra.mxu0 %v9015_v58  ;;  %3601 = vmatpush.bf16.xpose.msrb.mxu3 %v8304_v6 }
 0x2eb   :  { %v3736_v59 = vsel %vm9022_vm12, %v3734_v9, %v3735_v43  ;;  %v12830_v43 = vld [vmem:[#allocation26_spill] sm:$0xff] }
 0x2ed   :  { %5823 = vmatmul.msk.bf16.vlgmr.msrb.gmra.mxu1 %vm1059_vm2, %v5821_v33 }
 0x2ee   :  { %3680 = vmatpush.bf16.xpose.msra.mxu1 %v9906_v53  ;;  %5824 = vmatmul.msk.bf16.vlgmr.msrb.gmra.mxu2 %vm1059_vm2, %v5821_v33 }
 0x2ef   :  { %3694 = vmatpush.bf16.xpose.msra.mxu2 %v9084_v37  ;;  %v3343_v29 = vpop.f32.mrf.mxu1 }
 0x2f0   :  { %v9938_v23 = vadd.f32 %v3343_v29, %v9840_v15  ;;  %v12823_v29 = vld [vmem:[#allocation20_spill] sm:$0xff] }
 0x2f1   :  { %5825 = vmatmul.msk.bf16.vlgmr.msrb.gmra.mxu3 %vm1059_vm2, %v5821_v33  ;;  %v3357_v19 = vpop.f32.mrf.mxu2  ;;  %v12822_v33 = vld [vmem:[#allocation17_spill] sm:$0xff] }
 0x2f2   :  { %3667 = vmatpush.bf16.xpose.msra.mxu0 %v8390_v21  ;;  %3708 = vmatpush.bf16.xpose.msra.mxu3 %v9913_v28  ;;  %v9946_v30 = vadd.f32 %v3357_v19, %v9848_v46  ;;  %v12824_v46 = vld [vmem:[#allocation18_spill] sm:$0xff]  ;;  %v5834_v19 = vrot.slane %v9638_v7, 10 }
 0x2f4   :  { %v3371_v44 = vpop.f32.mrf.mxu3  ;;  %v3733_v12 = vsel %vm9022_vm12, %v5834_v19, %v3732_v55 }
 0x2f5   :  { %v9951_v15 = vadd.f32 %v3371_v44, %v9853_v42  ;;  %v3739_v42 = vrot.slane %v9660_v25, 6  ;;  %v12826_v44 = vld [vmem:[#allocation21_spill] sm:$0xff] }
 0x2f6   :  { %3681 = vmatpush.bf16.xpose.msra.mxu1 %v8407_v26  ;;  %v12829_v25 = vld [vmem:[#allocation25_spill] sm:$0xff] }
 0x2f7   :  { %3695 = vmatpush.bf16.xpose.msra.mxu2 %v8435_v32  ;;  %v3741_v7 = vrot.slane %v3739_v42, 4 }
 0x2fa   :  { %3668 = vmatpush.bf16.xpose.msra.mxu0 %v8474_v62  ;;  %3709 = vmatpush.bf16.xpose.msra.mxu3 %v8449_v49 }
 0x2fe   :  { %3682 = vmatpush.bf16.xpose.msra.mxu1 %v8487_v61 }
 0x2ff   :  { %3696 = vmatpush.bf16.xpose.msra.mxu2 %v8512_v0 }
 0x302   :  { %3669 = vmatpush.bf16.xpose.msra.mxu0 %v8550_v34  ;;  %3710 = vmatpush.bf16.xpose.msra.mxu3 %v8525_v8 }
 0x306   :  { %3683 = vmatpush.bf16.xpose.msra.mxu1 %v8563_v2 }
 0x307   :  { %3697 = vmatpush.bf16.xpose.msra.mxu2 %v8588_v10 }
 0x30a   :  { %3670 = vmatpush.bf16.xpose.msra.mxu0 %v12819_v56  ;;  %3711 = vmatpush.bf16.xpose.msra.mxu3 %v12820_v48 }
 0x30e   :  { %3684 = vmatpush.bf16.xpose.msra.mxu1 %v12821_v3  ;;  %v3750_v3 = vunpack.c.l.b16 %v3736_v59  ;;  %v12832_v59 = vld [vmem:[#allocation28_spill] sm:$0xff] }
 0x30f   :  { %3698 = vmatpush.bf16.xpose.msra.mxu2 %v12822_v33  ;;  %v3742_v33 = vrot.slane %v9695_v39, 6  ;;  %v5828_v39 = vld [vmem:[%s11548_s1 + $0x40] sm:$0xf] }
 0x311   :  { %v3743_v55 = vsel %vm9022_vm12, %v3741_v7, %v3742_v33  ;;  %v12838_v7 = vld [vmem:[#allocation37_spill] sm:$0xff] }
 0x312   :  { %3671 = vmatpush.bf16.xpose.msra.mxu0 %v12823_v29  ;;  %3712 = vmatpush.bf16.xpose.msra.mxu3 %v12824_v46  ;;  %v12827_v29 = vld [vmem:[#allocation24_spill] sm:$0xff]  ;;  %v5835_v46 = vrot.slane %v9655_v38, 10  ;;  %v3752_v38 = vunpack.c.l.b16 %v3743_v55  ;;  %v10000_v55 = vpop.f32.mrf.mxu0 }
 0x316   :  { %3685 = vmatpush.bf16.xpose.msra.mxu1 %v12825_v18  ;;  %v3749_v18 = vunpack.c.l.b16 %v3733_v12  ;;  %v6052_v12 = vld [vmem:[%s11548_s1 + $0x40] sm:$0x30] }
 0x317   :  { %3699 = vmatpush.bf16.xpose.msra.mxu2 %v12826_v44  ;;  %v3740_v44 = vsel %vm9022_vm12, %v5835_v46, %v3739_v42  ;;  %v12834_v46 = vld [vmem:[#allocation30_spill] sm:$0xff] }
 0x318   :  { %v3753_v9 = vpack.c.b16 %v3750_v3, %v3749_v18  ;;  %v3751_v19 = vunpack.c.l.b16 %v3740_v44  ;;  %v5829_v3 = vor.u32 %v6052_v12, %v5828_v39  ;;  %v12837_v44 = vld [vmem:[#allocation34_spill] sm:$0xff]  ;;  %12839 = vst [vmem:[#allocation30_spill] sm:$0xff] %v10000_v55  ;;  %v12843_v39 = vld [vmem:[#allocation48_spill] sm:$0xff]  ;;  %v10013_v55 = vpop.f32.mrf.mxu2 }
 0x319   :  { %v12844_v12 = vld [vmem:[#allocation42_spill] sm:$0xff]  ;;  %12845 = vst [vmem:[#allocation172_spill] sm:$0xff] %v10013_v55 }
 0x31a   :  { %3672 = vmatpush.bf16.xpose.msra.mxu0 %v12827_v29  ;;  %3713 = vmatpush.bf16.xpose.msra.mxu3 %v12828_v41  ;;  %v12831_v29 = vld [vmem:[#allocation29_spill] sm:$0xff]  ;;  %v9988_v33 = vsel %vm1059_vm2, %v3753_v9, 0  ;;  %v3754_v18 = vpack.c.b16 %v3752_v38, %v3751_v19  ;;  %v12840_v9 = vld [vmem:[#allocation40_spill] sm:$0xff]  ;;  %v10006_v19 = vpop.f32.mrf.mxu1 }
 0x31b   :  { %12833 = vst [vmem:[#allocation25_spill] sm:$0xff] %v9988_v33  ;;  %v12842_v38 = vld [vmem:[#allocation41_spill] sm:$0xff] }
 0x31c   :  { %v9995_v42 = vsel %vm1059_vm2, %v3754_v18, 0 }
 0x31d   :  { %12836 = vst [vmem:[#allocation29_spill] sm:$0xff] %v9995_v42 }
 0x31e   :  { %3686 = vmatpush.bf16.xpose.msra.mxu1 %v12829_v25 }
 0x31f   :  { %3700 = vmatpush.bf16.xpose.msra.mxu2 %v12830_v43  ;;  %v12889_v43 = vld [vmem:[#allocation122_spill] sm:$0xff] }
 0x322   :  { %3673 = vmatpush.bf16.xpose.msra.mxu0 %v12831_v29  ;;  %3714 = vmatpush.bf16.xpose.msra.mxu3 %v12832_v59  ;;  %v12835_v29 = vld [vmem:[#allocation32_spill] sm:$0xff]  ;;  %v12886_v59 = vld [vmem:[#allocation119_spill] sm:$0xff] }
 0x323   :  { %12841 = vst [vmem:[#allocation32_spill] sm:$0xff] %v10006_v19 }
 0x326   :  { %3687 = vmatpush.bf16.xpose.msra.mxu1 %v12834_v46  ;;  %v3461_v18 = vpop.f32.mrf.mxu0 }
 0x327   :  { %3701 = vmatpush.bf16.xpose.msra.mxu2 %v12835_v29  ;;  %v3508_v29 = vadd.f32 %v3461_v18, %v9931_v24  ;;  %v12851_v18 = vld [vmem:[#allocation56_spill] sm:$0xff] }
 0x329   :  { %5830 = vmatmul.msk.bf16.vlgmr.msra.gmra.mxu0 %vm1059_vm2, %v5829_v3 }
 0x32a   :  { %3764 = vmatpush.bf16.xpose.msrb.mxu0 %v9596_v50  ;;  %3715 = vmatpush.bf16.xpose.msra.mxu3 %v12837_v44 }
 0x32d   :  { %5831 = vmatmul.msk.bf16.vlgmr.msra.gmra.mxu1 %vm1059_vm2, %v5829_v3 }
 0x32e   :  { %3778 = vmatpush.bf16.xpose.msrb.mxu1 %v9988_v33  ;;  %5832 = vmatmul.msk.bf16.vlgmr.msra.gmra.mxu2 %vm1059_vm2, %v5829_v3 }
 0x32f   :  { %3792 = vmatpush.bf16.xpose.msrb.mxu2 %v9618_v14  ;;  %v10018_v14 = vpop.f32.mrf.mxu3 }
 0x330   :  { %12848 = vst [vmem:[#allocation173_spill] sm:$0xff] %v10018_v14  ;;  %v5838_v14 = vld [vmem:[%s11548_s1 + $0x48] sm:$0xf] }
 0x331   :  { %5833 = vmatmul.msk.bf16.vlgmr.msra.gmra.mxu3 %vm1059_vm2, %v5829_v3  ;;  %v12850_v3 = vld [vmem:[#allocation52_spill] sm:$0xff] }
 0x332   :  { %3765 = vmatpush.bf16.xpose.msrb.mxu0 %v12838_v7  ;;  %3806 = vmatpush.bf16.xpose.msrb.mxu3 %v9995_v42  ;;  %v12846_v42 = vld [vmem:[#allocation50_spill] sm:$0xff]  ;;  %v12847_v7 = vld [vmem:[#allocation49_spill] sm:$0xff] }
 0x336   :  { %3779 = vmatpush.bf16.xpose.msrb.mxu1 %v12840_v9  ;;  %v3475_v9 = vpop.f32.mrf.mxu1 }
 0x337   :  { %3793 = vmatpush.bf16.xpose.msrb.mxu2 %v12842_v38  ;;  %v3509_v19 = vadd.f32 %v3475_v9, %v9938_v23  ;;  %v12849_v38 = vld [vmem:[#allocation54_spill] sm:$0xff]  ;;  %v3503_v55 = vpop.f32.mrf.mxu3  ;;  %v12853_v23 = vld [vmem:[#allocation61_spill] sm:$0xff] }
 0x338   :  { %v12854_v9 = vld [vmem:[#allocation62_spill] sm:$0xff] }
 0x33a   :  { %3766 = vmatpush.bf16.xpose.msrb.mxu0 %v12843_v39  ;;  %3807 = vmatpush.bf16.xpose.msrb.mxu3 %v12844_v12  ;;  %v3489_v39 = vpop.f32.mrf.mxu2 }
 0x33b   :  { %v3510_v24 = vadd.f32 %v3489_v39, %v9946_v30  ;;  %v12855_v30 = vld [vmem:[#allocation69_spill] sm:$0xff]  ;;  %v12857_v39 = vld [vmem:[#allocation74_spill] sm:$0xff] }
 0x33e   :  { %3780 = vmatpush.bf16.xpose.msrb.mxu1 %v12846_v42  ;;  %v12852_v42 = vld [vmem:[#allocation57_spill] sm:$0xff] }
 0x33f   :  { %3794 = vmatpush.bf16.xpose.msrb.mxu2 %v12847_v7  ;;  %v3511_v7 = vadd.f32 %v3503_v55, %v9951_v15  ;;  %v12856_v15 = vld [vmem:[#allocation72_spill] sm:$0xff] }
 0x340   :  { %v6021_v55 = vld [vmem:[%s11547_s0 + $0xcc] sm:$0xff] }
 0x342   :  { %3767 = vmatpush.bf16.xpose.msrb.mxu0 %v12849_v38  ;;  %3808 = vmatpush.bf16.xpose.msrb.mxu3 %v12850_v3 }
 0x346   :  { %3781 = vmatpush.bf16.xpose.msrb.mxu1 %v9259_v47  ;;  %v12884_v47 = vld [vmem:[#allocation117_spill] sm:$0xff] }
 0x347   :  { %3795 = vmatpush.bf16.xpose.msrb.mxu2 %v12851_v18 }
 0x34a   :  { %3768 = vmatpush.bf16.xpose.msrb.mxu0 %v9326_v22  ;;  %3809 = vmatpush.bf16.xpose.msrb.mxu3 %v12852_v42  ;;  %v10134_v42 = vld [vmem:[%s11547_s0 + $0xd4] sm:$0x3] }
 0x34e   :  { %3782 = vmatpush.bf16.xpose.msrb.mxu1 %v9330_v52  ;;  %v12880_v52 = vld [vmem:[#allocation115_spill] sm:$0xff] }
 0x34f   :  { %3796 = vmatpush.bf16.xpose.msrb.mxu2 %v12853_v23 }
 0x352   :  { %3769 = vmatpush.bf16.xpose.msrb.mxu0 %v9391_v27  ;;  %3810 = vmatpush.bf16.xpose.msrb.mxu3 %v12854_v9  ;;  %v10066_v9 = vpop.f32.mrf.mxu0  ;;  %v12873_v27 = vld [vmem:[#allocation108_spill] sm:$0xff] }
 0x353   :  { %12865 = vst [vmem:[#allocation174_spill] sm:$0xff] %v10066_v9 }
 0x356   :  { %3783 = vmatpush.bf16.xpose.msrb.mxu1 %v9398_v31  ;;  %v12861_v31 = vld [vmem:[#allocation81_spill] sm:$0xff] }
 0x357   :  { %3797 = vmatpush.bf16.xpose.msrb.mxu2 %v9417_v5  ;;  %v12858_v5 = vld [vmem:[#allocation73_spill] sm:$0xff] }
 0x35a   :  { %3770 = vmatpush.bf16.xpose.msrb.mxu0 %v9446_v35  ;;  %3811 = vmatpush.bf16.xpose.msrb.mxu3 %v9429_v17  ;;  %v6053_v35 = vld [vmem:[%s11548_s1 + $0x48] sm:$0x30]  ;;  %v12860_v17 = vld [vmem:[#allocation82_spill] sm:$0xff] }
 0x35e   :  { %3784 = vmatpush.bf16.xpose.msrb.mxu1 %v12855_v30  ;;  %v6041_v30 = vld [vmem:[%s11547_s0 + $0x1bc] sm:$0xff] }
 0x35f   :  { %3798 = vmatpush.bf16.xpose.msrb.mxu2 %v12856_v15  ;;  %v10051_v15 = vsel %vm1059_vm2, %v6021_v55, 0  ;;  %v12863_v55 = vld [vmem:[#allocation84_spill] sm:$0xff] }
 0x360   :  { %12859 = vst [vmem:[#allocation74_spill] sm:$0xff] %v10051_v15 }
 0x362   :  { %3771 = vmatpush.bf16.xpose.msrb.mxu0 %v12857_v39  ;;  %3812 = vmatpush.bf16.xpose.msrb.mxu3 %v12858_v5  ;;  %v5839_v39 = vor.u32 %v6053_v35, %v5838_v14  ;;  %v10061_v5 = vsel %vm1059_vm2, %v6041_v30, 0  ;;  %v10072_v35 = vpop.f32.mrf.mxu1  ;;  %v12868_v14 = vld [vmem:[#allocation136_spill] sm:$0xff] }
 0x363   :  { %12862 = vst [vmem:[#allocation81_spill] sm:$0xff] %v10061_v5  ;;  %v12869_v30 = vld [vmem:[#allocation104_spill] sm:$0xff] }
 0x364   :  { %12867 = vst [vmem:[#allocation175_spill] sm:$0xff] %v10072_v35  ;;  %v10086_v35 = vpop.f32.mrf.mxu3 }
 0x365   :  { %12874 = vst [vmem:[#allocation177_spill] sm:$0xff] %v10086_v35 }
 0x366   :  { %3785 = vmatpush.bf16.xpose.msrb.mxu1 %v12860_v17 }
 0x367   :  { %3799 = vmatpush.bf16.xpose.msrb.mxu2 %v12861_v31  ;;  %v12866_v31 = vld [vmem:[#allocation86_spill] sm:$0xff] }
 0x369   :  { %5840 = vmatmul.msk.bf16.vlgmr.msrb.gmra.mxu0 %vm1059_vm2, %v5839_v39 }
 0x36a   :  { %3852 = vmatpush.bf16.xpose.msra.mxu0 %v12742_v16  ;;  %3813 = vmatpush.bf16.xpose.msrb.mxu3 %v12863_v55  ;;  %v12864_v16 = vld [vmem:[#allocation134_spill] sm:$0xff]  ;;  %v12888_v55 = vld [vmem:[#allocation120_spill] sm:$0xff] }
 0x36d   :  { %5841 = vmatmul.msk.bf16.vlgmr.msrb.gmra.mxu1 %vm1059_vm2, %v5839_v39 }
 0x36e   :  { %3866 = vmatpush.bf16.xpose.msra.mxu1 %v10051_v15  ;;  %5842 = vmatmul.msk.bf16.vlgmr.msrb.gmra.mxu2 %vm1059_vm2, %v5839_v39  ;;  %v12872_v15 = vld [vmem:[#allocation105_spill] sm:$0xff] }
 0x36f   :  { %3880 = vmatpush.bf16.xpose.msra.mxu2 %v12746_v51  ;;  %v12870_v51 = vld [vmem:[#allocation88_spill] sm:$0xff] }
 0x371   :  { %5843 = vmatmul.msk.bf16.vlgmr.msrb.gmra.mxu3 %vm1059_vm2, %v5839_v39  ;;  %v12876_v39 = vld [vmem:[#allocation110_spill] sm:$0xff] }
 0x372   :  { %3853 = vmatpush.bf16.xpose.msra.mxu0 %v12864_v16  ;;  %3894 = vmatpush.bf16.xpose.msra.mxu3 %v10061_v5  ;;  %v3561_v16 = vpop.f32.mrf.mxu0  ;;  %v10080_v5 = vpop.f32.mrf.mxu2 }
 0x373   :  { %v10078_v9 = vadd.f32 %v3561_v16, %v3508_v29  ;;  %12871 = vst [vmem:[#allocation176_spill] sm:$0xff] %v10080_v5  ;;  %v10094_v16 = vld [vmem:[%s11547_s0 + $0xcc] sm:$0xf]  ;;  %v10099_v29 = vld [vmem:[%s11547_s0 + $0xd0] sm:$0xf] }
 0x374   :  { %v12123_v35 = vshrl.u32 %v10094_v16, 16  ;;  %v12124_v5 = vshll.u32 %v10094_v16, 16 }
 0x376   :  { %3867 = vmatpush.bf16.xpose.msra.mxu1 %v12866_v31  ;;  %v3575_v31 = vpop.f32.mrf.mxu1 }
 0x377   :  { %3881 = vmatpush.bf16.xpose.msra.mxu2 %v12868_v14  ;;  %v10084_v23 = vadd.f32 %v3575_v31, %v3509_v19  ;;  %v12875_v14 = vld [vmem:[#allocation107_spill] sm:$0xff]  ;;  %v12878_v31 = vld [vmem:[#allocation113_spill] sm:$0xff] }
 0x37a   :  { %3854 = vmatpush.bf16.xpose.msra.mxu0 %v12869_v30  ;;  %3895 = vmatpush.bf16.xpose.msra.mxu3 %v12870_v51  ;;  %v3589_v30 = vpop.f32.mrf.mxu2  ;;  %v12877_v51 = vld [vmem:[#allocation109_spill] sm:$0xff] }
 0x37b   :  { %v10101_v19 = vadd.f32 %v3589_v30, %v3510_v24  ;;  %v10115_v24 = vld [vmem:[%s11547_s0 + $0x1bc] sm:$0xf]  ;;  %v10120_v30 = vld [vmem:[%s11547_s0 + $0x1c0] sm:$0xf] }
 0x37c   :  { %v12131_v22 = vshrl.u32 %v10115_v24, 16  ;;  %v12133_v18 = vshll.u32 %v10120_v30, 16 }
 0x37e   :  { %3868 = vmatpush.bf16.xpose.msra.mxu1 %v12872_v15  ;;  %v3943_v38 = vrot.slane %v12131_v22, 4  ;;  %v3952_v33 = vrot.slane %v12133_v18, 5 }
 0x37f   :  { %3882 = vmatpush.bf16.xpose.msra.mxu2 %v12873_v27  ;;  %v12879_v27 = vld [vmem:[#allocation112_spill] sm:$0xff] }
 0x382   :  { %3855 = vmatpush.bf16.xpose.msra.mxu0 %v12875_v14  ;;  %3896 = vmatpush.bf16.xpose.msra.mxu3 %v12876_v39  ;;  %v3603_v14 = vpop.f32.mrf.mxu3  ;;  %v3919_v39 = vrot.slane %v12123_v35, 4  ;;  %v12132_v35 = vshll.u32 %v10115_v24, 16 }
 0x383   :  { %v10109_v15 = vadd.f32 %v3603_v14, %v3511_v7  ;;  %v12881_v7 = vshll.u32 %v10099_v29, 16 }
 0x384   :  { %v3946_v12 = vrot.slane %v12132_v35, 5 }
 0x385   :  { %v3928_v14 = vrot.slane %v12881_v7, 5 }
 0x386   :  { %3869 = vmatpush.bf16.xpose.msra.mxu1 %v12877_v51  ;;  %v3922_v51 = vrot.slane %v12124_v5, 5  ;;  %v12134_v5 = vshrl.u32 %v10120_v30, 16  ;;  %v3947_v35 = vor.u32 %v3946_v12, %v3943_v38  ;;  %v12891_v12 = vld [vmem:[#allocation123_spill] sm:$0xff] }
 0x387   :  { %3883 = vmatpush.bf16.xpose.msra.mxu2 %v12878_v31  ;;  %v12883_v31 = vld [vmem:[#allocation114_spill] sm:$0xff] }
 0x388   :  { %v3923_v7 = vor.u32 %v3922_v51, %v3919_v39  ;;  %v3956_v50 = vrot.slane %v12134_v5, 4 }
 0x38a   :  { %3856 = vmatpush.bf16.xpose.msra.mxu0 %v12879_v27  ;;  %3897 = vmatpush.bf16.xpose.msra.mxu3 %v12880_v52  ;;  %v12882_v52 = vshrl.u32 %v10099_v29, 16  ;;  %v3924_v51 = vrot.slane %v3923_v7, 4 }
 0x38c   :  { %v3932_v27 = vrot.slane %v12882_v52, 4  ;;  %v12135_v52 = vshll.u32 %v10134_v42, 16  ;;  %v3929_v5 = vsel %vm6353_vm3, %v3924_v51, %v3928_v14 }
 0x38e   :  { %3870 = vmatpush.bf16.xpose.msra.mxu1 %v12883_v31  ;;  %v3933_v3 = vor.u32 %v3932_v27, %v3928_v14  ;;  %v12885_v31 = vld [vmem:[#allocation116_spill] sm:$0xff]  ;;  %v10155_v27 = vld [vmem:[%s11547_s0 + $0x1c4] sm:$0x3]  ;;  %v3938_v22 = vrot.slane %v12135_v52, 5 }
 0x38f   :  { %3884 = vmatpush.bf16.xpose.msra.mxu2 %v12884_v47  ;;  %v3957_v47 = vor.u32 %v3956_v50, %v3952_v33  ;;  %v12136_v18 = vshll.u32 %v10155_v27, 16  ;;  %v3969_v50 = vunpack.c.l.b16 %v3929_v5  ;;  %v5846_v5 = vld [vmem:[%s11548_s1 + $0x50] sm:$0xf] }
 0x390   :  { %v3934_v39 = vrot.slane %v3933_v3, 4  ;;  %v3948_v3 = vrot.slane %v3947_v35, 4 }
 0x391   :  { %v3958_v7 = vrot.slane %v3957_v47, 4  ;;  %v3962_v52 = vrot.slane %v12136_v18, 5  ;;  %v12894_v18 = vld [vmem:[#allocation125_spill] sm:$0xff] }
 0x392   :  { %3857 = vmatpush.bf16.xpose.msra.mxu0 %v12885_v31  ;;  %3898 = vmatpush.bf16.xpose.msra.mxu3 %v12886_v59  ;;  %v12887_v31 = vld [vmem:[#allocation118_spill] sm:$0xff]  ;;  %v3939_v59 = vsel %vm6353_vm3, %v3934_v39, %v3938_v22  ;;  %v12892_v22 = vld [vmem:[#allocation124_spill] sm:$0xff] }
 0x393   :  { %v3970_v38 = vunpack.c.l.b16 %v3939_v59  ;;  %v3963_v14 = vsel %vm6353_vm3, %v3958_v7, %v3962_v52  ;;  %v12893_v39 = vld [vmem:[#allocation126_spill] sm:$0xff]  ;;  %v6054_v59 = vld [vmem:[%s11548_s1 + $0x50] sm:$0x30] }
 0x394   :  { %v3972_v47 = vunpack.c.l.b16 %v3963_v14  ;;  %v12897_v7 = vld [vmem:[#allocation128_spill] sm:$0xff]  ;;  %v12900_v14 = vld [vmem:[#allocation129_spill] sm:$0xff] }
 0x395   :  { %v3973_v51 = vpack.c.b16 %v3970_v38, %v3969_v50  ;;  %v12898_v50 = vld [vmem:[#allocation103_spill] sm:$0xff] }
 0x396   :  { %3871 = vmatpush.bf16.xpose.msra.mxu1 %v12887_v31  ;;  %v12890_v31 = vld [vmem:[#allocation121_spill] sm:$0xff] }
 0x397   :  { %3885 = vmatpush.bf16.xpose.msra.mxu2 %v12888_v55  ;;  %v3953_v55 = vsel %vm6353_vm3, %v3948_v3, %v3952_v33  ;;  %v10186_v33 = vsel %vm1059_vm2, %v3973_v51, 0  ;;  %v12896_v3 = vld [vmem:[#allocation127_spill] sm:$0xff]  ;;  %v10198_v51 = vpop.f32.mrf.mxu0 }
 0x398   :  { %v3971_v35 = vunpack.c.l.b16 %v3953_v55  ;;  %12895 = vst [vmem:[#allocation126_spill] sm:$0xff] %v10186_v33  ;;  %v5847_v55 = vor.u32 %v6054_v59, %v5846_v5  ;;  %v12905_v5 = vld [vmem:[#allocation111_spill] sm:$0xff] }
 0x399   :  { %12902 = vst [vmem:[#allocation178_spill] sm:$0xff] %v10198_v51  ;;  %v12906_v59 = vld [vmem:[#allocation3_spill] sm:$0xff] }
 0x39a   :  { %3858 = vmatpush.bf16.xpose.msra.mxu0 %v12889_v43  ;;  %3899 = vmatpush.bf16.xpose.msra.mxu3 %v12890_v31  ;;  %v3974_v52 = vpack.c.b16 %v3972_v47, %v3971_v35  ;;  %v12903_v35 = vld [vmem:[#allocation96_spill] sm:$0xff]  ;;  %v10204_v47 = vpop.f32.mrf.mxu1  ;;  %v12927_v31 = vld [vmem:[#allocation67_spill] sm:$0xff] }
 0x39b   :  { %12904 = vst [vmem:[#allocation179_spill] sm:$0xff] %v10204_v47  ;;  %v12929_v43 = vld [vmem:[#allocation79_spill] sm:$0xff] }
 0x39c   :  { %v10193_v38 = vsel %vm1059_vm2, %v3974_v52, 0  ;;  %v12907_v52 = vld [vmem:[#allocation98_spill] sm:$0xff] }
 0x39d   :  { %12899 = vst [vmem:[#allocation128_spill] sm:$0xff] %v10193_v38 }
 0x39e   :  { %3872 = vmatpush.bf16.xpose.msra.mxu1 %v12891_v12 }
 0x39f   :  { %3886 = vmatpush.bf16.xpose.msra.mxu2 %v12892_v22  ;;  %v12926_v22 = vld [vmem:[#allocation59_spill] sm:$0xff] }
 0x3a2   :  { %3859 = vmatpush.bf16.xpose.msra.mxu0 %v12893_v39  ;;  %3900 = vmatpush.bf16.xpose.msra.mxu3 %v12894_v18  ;;  %v12901_v39 = vld [vmem:[#allocation106_spill] sm:$0xff]  ;;  %v4062_v18 = vrot.slane %v10155_v27, 5 }
 0x3a6   :  { %3873 = vmatpush.bf16.xpose.msra.mxu1 %v12896_v3 }
 0x3a7   :  { %3887 = vmatpush.bf16.xpose.msra.mxu2 %v12897_v7  ;;  %v3675_v7 = vpop.f32.mrf.mxu0 }
 0x3a8   :  { %v10211_v51 = vadd.f32 %v3675_v7, %v10078_v9  ;;  %v12915_v7 = vld [vmem:[#allocation23_spill] sm:$0xff] }
 0x3a9   :  { %5856 = vmatmul.msk.bf16.vlgmr.msra.gmra.mxu0 %vm1059_vm2, %v5847_v55 }
 0x3aa   :  { %3984 = vmatpush.bf16.xpose.msrb.mxu0 %v12773_v36  ;;  %3901 = vmatpush.bf16.xpose.msra.mxu3 %v12900_v14  ;;  %v12968_v14 = vld [vmem:[#allocation155_spill] sm:$0xff] }
 0x3ad   :  { %5857 = vmatmul.msk.bf16.vlgmr.msra.gmra.mxu1 %vm1059_vm2, %v5847_v55 }
 0x3ae   :  { %3998 = vmatpush.bf16.xpose.msrb.mxu1 %v10186_v33  ;;  %5858 = vmatmul.msk.bf16.vlgmr.msra.gmra.mxu2 %vm1059_vm2, %v5847_v55  ;;  %v12914_v33 = vld [vmem:[#allocation19_spill] sm:$0xff] }
 0x3af   :  { %4012 = vmatpush.bf16.xpose.msrb.mxu2 %v12898_v50  ;;  %v12910_v50 = vld [vmem:[#allocation5_spill] sm:$0xff] }
 0x3b1   :  { %5859 = vmatmul.msk.bf16.vlgmr.msra.gmra.mxu3 %vm1059_vm2, %v5847_v55  ;;  %v12912_v55 = vld [vmem:[#allocation14_spill] sm:$0xff] }
 0x3b2   :  { %3985 = vmatpush.bf16.xpose.msrb.mxu0 %v12901_v39  ;;  %4026 = vmatpush.bf16.xpose.msrb.mxu3 %v10193_v38  ;;  %v10213_v38 = vpop.f32.mrf.mxu2  ;;  %v12909_v39 = vld [vmem:[#allocation4_spill] sm:$0xff] }
 0x3b3   :  { %12908 = vst [vmem:[#allocation180_spill] sm:$0xff] %v10213_v38 }
 0x3b6   :  { %3999 = vmatpush.bf16.xpose.msrb.mxu1 %v12903_v35  ;;  %v3689_v35 = vpop.f32.mrf.mxu1 }
 0x3b7   :  { %4013 = vmatpush.bf16.xpose.msrb.mxu2 %v12905_v5  ;;  %v10218_v47 = vadd.f32 %v3689_v35, %v10084_v23  ;;  %v10220_v5 = vpop.f32.mrf.mxu3  ;;  %v12917_v35 = vld [vmem:[#allocation27_spill] sm:$0xff] }
 0x3b8   :  { %12911 = vst [vmem:[#allocation181_spill] sm:$0xff] %v10220_v5  ;;  %v12918_v5 = vld [vmem:[#allocation35_spill] sm:$0xff] }
 0x3ba   :  { %3986 = vmatpush.bf16.xpose.msrb.mxu0 %v12906_v59  ;;  %4027 = vmatpush.bf16.xpose.msrb.mxu3 %v12907_v52  ;;  %v12913_v59 = vld [vmem:[#allocation10_spill] sm:$0xff]  ;;  %v3703_v52 = vpop.f32.mrf.mxu2 }
 0x3bb   :  { %v10226_v9 = vadd.f32 %v3703_v52, %v10101_v19  ;;  %v12921_v19 = vld [vmem:[#allocation43_spill] sm:$0xff]  ;;  %v5868_v52 = vrot.slane %v10094_v16, 9 }
 0x3be   :  { %4000 = vmatpush.bf16.xpose.msrb.mxu1 %v12909_v39  ;;  %v12922_v39 = vld [vmem:[#allocation51_spill] sm:$0xff] }
 0x3bf   :  { %4014 = vmatpush.bf16.xpose.msrb.mxu2 %v12910_v50  ;;  %v3717_v38 = vpop.f32.mrf.mxu3  ;;  %v12916_v50 = vld [vmem:[#allocation31_spill] sm:$0xff] }
 0x3c0   :  { %v10231_v23 = vadd.f32 %v3717_v38, %v10109_v15  ;;  %v4059_v15 = vrot.slane %v10120_v30, 5  ;;  %v12923_v38 = vld [vmem:[#allocation55_spill] sm:$0xff] }
 0x3c2   :  { %3987 = vmatpush.bf16.xpose.msrb.mxu0 %v12912_v55  ;;  %4028 = vmatpush.bf16.xpose.msrb.mxu3 %v12913_v59  ;;  %v12919_v55 = vld [vmem:[#allocation39_spill] sm:$0xff]  ;;  %v4052_v59 = vrot.slane %v10099_v29, 5  ;;  %v4061_v36 = vrot.slane %v4059_v15, 4 }
 0x3c6   :  { %4001 = vmatpush.bf16.xpose.msrb.mxu1 %v12914_v33  ;;  %v12920_v33 = vld [vmem:[#allocation47_spill] sm:$0xff] }
 0x3c7   :  { %4015 = vmatpush.bf16.xpose.msrb.mxu2 %v12915_v7  ;;  %v4054_v7 = vrot.slane %v4052_v59, 4 }
 0x3ca   :  { %3988 = vmatpush.bf16.xpose.msrb.mxu0 %v12916_v50  ;;  %4029 = vmatpush.bf16.xpose.msrb.mxu3 %v12917_v35  ;;  %v4055_v50 = vrot.slane %v10134_v42, 5 }
 0x3cc   :  { %v4056_v35 = vsel %vm7731_vm6, %v4054_v7, %v4055_v50  ;;  %v12928_v50 = vld [vmem:[#allocation71_spill] sm:$0xff] }
 0x3cd   :  { %v4070_v12 = vunpack.c.l.b16 %v4056_v35  ;;  %v6055_v35 = vld [vmem:[%s11548_s1 + $0x58] sm:$0x30] }
 0x3ce   :  { %4002 = vmatpush.bf16.xpose.msrb.mxu1 %v12918_v5  ;;  %v12963_v5 = vshrl.u32 %v10120_v30, 16 }
 0x3cf   :  { %4016 = vmatpush.bf16.xpose.msrb.mxu2 %v12919_v55  ;;  %v4053_v55 = vsel %vm7731_vm6, %v5868_v52, %v4052_v59  ;;  %v4063_v59 = vsel %vm7731_vm6, %v4061_v36, %v4062_v18 }
 0x3d2   :  { %3989 = vmatpush.bf16.xpose.msrb.mxu0 %v12920_v33  ;;  %4030 = vmatpush.bf16.xpose.msrb.mxu3 %v12921_v19  ;;  %v12925_v33 = vld [vmem:[#allocation63_spill] sm:$0xff]  ;;  %v5869_v19 = vrot.slane %v10115_v24, 9 }
 0x3d6   :  { %4003 = vmatpush.bf16.xpose.msrb.mxu1 %v12922_v39  ;;  %v4069_v39 = vunpack.c.l.b16 %v4053_v55  ;;  %v5862_v55 = vld [vmem:[%s11548_s1 + $0x58] sm:$0xf] }
 0x3d7   :  { %4017 = vmatpush.bf16.xpose.msrb.mxu2 %v12923_v38  ;;  %v4060_v38 = vsel %vm7731_vm6, %v5869_v19, %v4059_v15  ;;  %v12935_v15 = vld [vmem:[#allocation91_spill] sm:$0xff] }
 0x3d8   :  { %v4073_v7 = vpack.c.b16 %v4070_v12, %v4069_v39  ;;  %v4071_v52 = vunpack.c.l.b16 %v4060_v38  ;;  %v5863_v12 = vor.u32 %v6055_v35, %v5862_v55  ;;  %v12932_v39 = vld [vmem:[#allocation83_spill] sm:$0xff]  ;;  %v12941_v55 = vld [vmem:[#allocation137_spill] sm:$0xff]  ;;  %v12942_v35 = vld [vmem:[#allocation100_spill] sm:$0xff] }
 0x3d9   :  { %v12936_v38 = vld [vmem:[#allocation167_spill] sm:$0xff] }
 0x3da   :  { %3990 = vmatpush.bf16.xpose.msrb.mxu0 %v12925_v33  ;;  %4031 = vmatpush.bf16.xpose.msrb.mxu3 %v12926_v22  ;;  %v4072_v33 = vunpack.c.l.b16 %v4063_v59  ;;  %v10268_v36 = vsel %vm1059_vm2, %v4073_v7, 0  ;;  %v10280_v59 = vpop.f32.mrf.mxu0  ;;  %v10286_v7 = vpop.f32.mrf.mxu1  ;;  %v12961_v22 = vld [vmem:[#allocation153_spill] sm:$0xff] }
 0x3db   :  { %12931 = vst [vmem:[#allocation79_spill] sm:$0xff] %v10268_v36 }
 0x3dc   :  { %v4074_v18 = vpack.c.b16 %v4072_v33, %v4071_v52  ;;  %12937 = vst [vmem:[#allocation182_spill] sm:$0xff] %v10280_v59  ;;  %v12938_v33 = vld [vmem:[#allocation97_spill] sm:$0xff]  ;;  %v12940_v52 = vld [vmem:[#allocation168_spill] sm:$0xff]  ;;  %v12945_v59 = vld [vmem:[#allocation139_spill] sm:$0xff] }
 0x3dd   :  { %12939 = vst [vmem:[#allocation183_spill] sm:$0xff] %v10286_v7 }
 0x3de   :  { %4004 = vmatpush.bf16.xpose.msrb.mxu1 %v12927_v31  ;;  %v12930_v31 = vld [vmem:[#allocation75_spill] sm:$0xff]  ;;  %v10275_v19 = vsel %vm1059_vm2, %v4074_v18, 0 }
 0x3df   :  { %4018 = vmatpush.bf16.xpose.msrb.mxu2 %v12928_v50 }
 0x3e2   :  { %3991 = vmatpush.bf16.xpose.msrb.mxu0 %v12929_v43  ;;  %4032 = vmatpush.bf16.xpose.msrb.mxu3 %v12930_v31  ;;  %v12933_v43 = vld [vmem:[#allocation87_spill] sm:$0xff] }
 0x3e3   :  { %12934 = vst [vmem:[#allocation87_spill] sm:$0xff] %v10275_v19 }
 0x3e6   :  { %4005 = vmatpush.bf16.xpose.msrb.mxu1 %v12932_v39  ;;  %v3773_v18 = vpop.f32.mrf.mxu0  ;;  %v4172_v39 = vshrl.u32 %v10155_v27, 16 }
 0x3e7   :  { %4019 = vmatpush.bf16.xpose.msrb.mxu2 %v12933_v43  ;;  %v10293_v43 = vadd.f32 %v3773_v18, %v10211_v51  ;;  %v12950_v18 = vld [vmem:[#allocation146_spill] sm:$0xff] }
 0x3e9   :  { %5864 = vmatmul.msk.bf16.vlgmr.msrb.gmra.mxu0 %vm1059_vm2, %v5863_v12 }
 0x3ea   :  { %4084 = vmatpush.bf16.xpose.msra.mxu0 %v12813_v54  ;;  %4033 = vmatpush.bf16.xpose.msrb.mxu3 %v12935_v15  ;;  %v4167_v15 = vrot.slane %v12963_v5, 5 }
 0x3ed   :  { %5865 = vmatmul.msk.bf16.vlgmr.msrb.gmra.mxu1 %vm1059_vm2, %v5863_v12 }
 0x3ee   :  { %4098 = vmatpush.bf16.xpose.msra.mxu1 %v10268_v36  ;;  %5866 = vmatmul.msk.bf16.vlgmr.msrb.gmra.mxu2 %vm1059_vm2, %v5863_v12  ;;  %v4157_v36 = vshrl.u32 %v10134_v42, 16 }
 0x3ef   :  { %4112 = vmatpush.bf16.xpose.msra.mxu2 %v8304_v6  ;;  %v12949_v6 = vld [vmem:[#allocation144_spill] sm:$0xff] }
 0x3f0   :  { %v4159_v31 = vrot.slane %v4157_v36, 5 }
 0x3f1   :  { %5867 = vmatmul.msk.bf16.vlgmr.msrb.gmra.mxu3 %vm1059_vm2, %v5863_v12  ;;  %v12947_v12 = vld [vmem:[#allocation143_spill] sm:$0xff] }
 0x3f2   :  { %4085 = vmatpush.bf16.xpose.msra.mxu0 %v12936_v38  ;;  %4126 = vmatpush.bf16.xpose.msra.mxu3 %v10275_v19  ;;  %v10295_v19 = vpop.f32.mrf.mxu2  ;;  %v12944_v38 = vld [vmem:[#allocation138_spill] sm:$0xff] }
 0x3f3   :  { %12943 = vst [vmem:[#allocation184_spill] sm:$0xff] %v10295_v19 }
 0x3f6   :  { %4099 = vmatpush.bf16.xpose.msra.mxu1 %v12938_v33  ;;  %v3787_v33 = vpop.f32.mrf.mxu1 }
 0x3f7   :  { %4113 = vmatpush.bf16.xpose.msra.mxu2 %v12940_v52  ;;  %v10300_v7 = vadd.f32 %v3787_v33, %v10218_v47  ;;  %v10302_v52 = vpop.f32.mrf.mxu3  ;;  %v12952_v33 = vld [vmem:[#allocation147_spill] sm:$0xff] }
 0x3f8   :  { %12946 = vst [vmem:[#allocation185_spill] sm:$0xff] %v10302_v52 }
 0x3fa   :  { %4086 = vmatpush.bf16.xpose.msra.mxu0 %v12941_v55  ;;  %4127 = vmatpush.bf16.xpose.msra.mxu3 %v12942_v35  ;;  %v12948_v55 = vld [vmem:[#allocation140_spill] sm:$0xff]  ;;  %v3801_v35 = vpop.f32.mrf.mxu2 }
 0x3fb   :  { %v10308_v51 = vadd.f32 %v3801_v35, %v10226_v9  ;;  %v12956_v35 = vshll.u32 %v10099_v29, 16 }
 0x3fe   :  { %4100 = vmatpush.bf16.xpose.msra.mxu1 %v12944_v38 }
 0x3ff   :  { %4114 = vmatpush.bf16.xpose.msra.mxu2 %v12945_v59  ;;  %v3815_v38 = vpop.f32.mrf.mxu3  ;;  %v12951_v59 = vld [vmem:[#allocation148_spill] sm:$0xff] }
 0x400   :  { %v10313_v47 = vadd.f32 %v3815_v38, %v10231_v23  ;;  %v12958_v23 = vld [vmem:[#allocation150_spill] sm:$0xff]  ;;  %v12959_v38 = vshrl.u32 %v10115_v24, 16 }
 0x402   :  { %4087 = vmatpush.bf16.xpose.msra.mxu0 %v12947_v12  ;;  %4128 = vmatpush.bf16.xpose.msra.mxu3 %v12948_v55  ;;  %v12953_v12 = vshrl.u32 %v10094_v16, 16  ;;  %v12954_v55 = vshll.u32 %v10094_v16, 16 }
 0x404   :  { %v4148_v52 = vrot.slane %v12953_v12, 5  ;;  %v4149_v19 = vrot.slane %v12954_v55, 6  ;;  %v12960_v55 = vshll.u32 %v10134_v42, 16 }
 0x406   :  { %4101 = vmatpush.bf16.xpose.msra.mxu1 %v12949_v6  ;;  %v12955_v6 = vshrl.u32 %v10099_v29, 16  ;;  %v4150_v54 = vor.u32 %v4149_v19, %v4148_v52  ;;  %v4160_v50 = vrot.slane %v12960_v55, 6 }
 0x407   :  { %4115 = vmatpush.bf16.xpose.msra.mxu2 %v12950_v18  ;;  %v4153_v18 = vrot.slane %v12956_v35, 6 }
 0x408   :  { %v4152_v9 = vrot.slane %v12955_v6, 5  ;;  %v12962_v6 = vshll.u32 %v10115_v24, 16  ;;  %v4151_v19 = vrot.slane %v4150_v54, 4  ;;  %v4161_v52 = vor.u32 %v4160_v50, %v4159_v31 }
 0x40a   :  { %4088 = vmatpush.bf16.xpose.msra.mxu0 %v12951_v59  ;;  %4129 = vmatpush.bf16.xpose.msra.mxu3 %v12952_v33  ;;  %v12957_v59 = vld [vmem:[#allocation149_spill] sm:$0xff]  ;;  %v4163_v33 = vrot.slane %v12959_v38, 5  ;;  %v4154_v12 = vor.u32 %v4153_v18, %v4152_v9  ;;  %v4164_v35 = vrot.slane %v12962_v6, 6  ;;  %v12965_v38 = vld [vmem:[#allocation151_spill] sm:$0xff]  ;;  %v12966_v18 = vld [vmem:[#allocation154_spill] sm:$0xff]  ;;  %v12967_v6 = vshll.u32 %v10155_v27, 16 }
 0x40c   :  { %v4156_v36 = vrot.slane %v4154_v12, 4  ;;  %v4165_v9 = vor.u32 %v4164_v35, %v4163_v33  ;;  %v4175_v4 = vrot.slane %v12967_v6, 6  ;;  %v4155_v5 = vsel %vm8347_vm9, %v4151_v19, %v4154_v12 }
 0x40e   :  { %4102 = vmatpush.bf16.xpose.msra.mxu1 %v12957_v59  ;;  %v12964_v59 = vshll.u32 %v10120_v30, 16  ;;  %v4166_v54 = vrot.slane %v4165_v9, 4 }
 0x40f   :  { %4116 = vmatpush.bf16.xpose.msra.mxu2 %v12958_v23 }
 0x410   :  { %v4168_v23 = vrot.slane %v12964_v59, 6  ;;  %v4162_v59 = vsel %vm8347_vm9, %v4156_v36, %v4161_v52 }
 0x412   :  { %4089 = vmatpush.bf16.xpose.msra.mxu0 %v12961_v22  ;;  %4130 = vmatpush.bf16.xpose.msra.mxu3 %v12965_v38  ;;  %v4169_v55 = vor.u32 %v4168_v23, %v4167_v15  ;;  %v4174_v22 = vrot.slane %v4172_v39, 5  ;;  %v12969_v38 = vld [vmem:[#allocation157_spill] sm:$0xff]  ;;  %v4183_v15 = vunpack.c.l.b16 %v4155_v5  ;;  %v4184_v39 = vunpack.c.l.b16 %v4162_v59  ;;  %v10393_v59 = vpop.f32.mrf.mxu2 }
 0x414   :  { %v4171_v31 = vrot.slane %v4169_v55, 4  ;;  %v4176_v50 = vor.u32 %v4175_v4, %v4174_v22  ;;  %v4170_v33 = vsel %vm8347_vm9, %v4166_v54, %v4169_v55  ;;  %v4187_v12 = vpack.c.b16 %v4184_v39, %v4183_v15  ;;  %v5872_v4 = vld [vmem:[%s11548_s1 + $0x60] sm:$0xf]  ;;  %v6056_v22 = vld [vmem:[%s11548_s1 + $0x60] sm:$0x30]  ;;  %v10378_v55 = vpop.f32.mrf.mxu0 }
 0x415   :  { %v4185_v35 = vunpack.c.l.b16 %v4170_v33  ;;  %v5873_v9 = vor.u32 %v6056_v22, %v5872_v4  ;;  %v4264_v33 = vrot.slane %v10099_v29, 6  ;;  %v12975_v22 = vld [vmem:[#allocation20_spill] sm:$0xff] }
 0x416   :  { %4103 = vmatpush.bf16.xpose.msra.mxu1 %v12966_v18  ;;  %v12970_v18 = vld [vmem:[#allocation156_spill] sm:$0xff]  ;;  %v4177_v23 = vsel %vm8347_vm9, %v4171_v31, %v4176_v50  ;;  %v10366_v36 = vsel %vm1059_vm2, %v4187_v12, 0  ;;  %v10400_v50 = vpop.f32.mrf.mxu3  ;;  %v4267_v12 = vrot.slane %v10134_v42, 6  ;;  %v12976_v42 = vld [vmem:[#allocation18_spill] sm:$0xff] }
 0x417   :  { %4117 = vmatpush.bf16.xpose.msra.mxu2 %v12968_v14  ;;  %v4186_v19 = vunpack.c.l.b16 %v4177_v23  ;;  %12971 = vst [vmem:[#allocation155_spill] sm:$0xff] %v10366_v36  ;;  %v4266_v23 = vrot.slane %v4264_v33, 4 }
 0x419   :  { %v4188_v52 = vpack.c.b16 %v4186_v19, %v4185_v35  ;;  %v12973_v35 = vld [vmem:[#allocation16_spill] sm:$0xff]  ;;  %v12974_v19 = vld [vmem:[#allocation17_spill] sm:$0xff]  ;;  %v4268_v29 = vsel %vm9022_vm12, %v4266_v23, %v4267_v12 }
 0x41a   :  { %4090 = vmatpush.bf16.xpose.msra.mxu0 %v12969_v38  ;;  %4131 = vmatpush.bf16.xpose.msra.mxu3 %v12970_v18  ;;  %v12979_v12 = vld [vmem:[#allocation24_spill] sm:$0xff] }
 0x41e   :  { %4104 = vmatpush.bf16.xpose.msra.mxu1 %v12804_v40 }
 0x41f   :  { %4118 = vmatpush.bf16.xpose.msra.mxu2 %v12806_v11 }
 0x422   :  { %4091 = vmatpush.bf16.xpose.msra.mxu0 %v12807_v60  ;;  %4132 = vmatpush.bf16.xpose.msra.mxu3 %v8168_v20  ;;  %v10373_v60 = vsel %vm1059_vm2, %v4188_v52, 0  ;;  %v5887_v52 = vrot.slane %v10115_v24, 10 }
 0x423   :  { %12972 = vst [vmem:[#allocation157_spill] sm:$0xff] %v10373_v60 }
 0x426   :  { %4105 = vmatpush.bf16.xpose.msra.mxu1 %v12808_v63  ;;  %v3861_v6 = vpop.f32.mrf.mxu0 }
 0x427   :  { %4119 = vmatpush.bf16.xpose.msra.mxu2 %v12809_v13  ;;  %v10384_v13 = vpop.f32.mrf.mxu1  ;;  %v10391_v5 = vadd.f32 %v3861_v6, %v10293_v43 }
 0x429   :  { %5874 = vmatmul.msk.bf16.vlgmr.msra.gmra.mxu0 %vm1059_vm2, %v5873_v9 }
 0x42a   :  { %4198 = vmatpush.bf16.xpose.msrb.mxu0 %v12834_v46  ;;  %4133 = vmatpush.bf16.xpose.msra.mxu3 %v12811_v57 }
 0x42d   :  { %5875 = vmatmul.msk.bf16.vlgmr.msra.gmra.mxu1 %vm1059_vm2, %v5873_v9 }
 0x42e   :  { %4212 = vmatpush.bf16.xpose.msrb.mxu1 %v10366_v36  ;;  %5876 = vmatmul.msk.bf16.vlgmr.msra.gmra.mxu2 %vm1059_vm2, %v5873_v9 }
 0x42f   :  { %4226 = vmatpush.bf16.xpose.msrb.mxu2 %v12837_v44  ;;  %v3875_v54 = vpop.f32.mrf.mxu1 }
 0x430   :  { %v10398_v31 = vadd.f32 %v3875_v54, %v10300_v7  ;;  %v4282_v54 = vunpack.c.l.b16 %v4268_v29 }
 0x431   :  { %5877 = vmatmul.msk.bf16.vlgmr.msra.gmra.mxu3 %vm1059_vm2, %v5873_v9  ;;  %v3889_v15 = vpop.f32.mrf.mxu2  ;;  %v4274_v9 = vrot.slane %v10155_v27, 6  ;;  %v5880_v27 = vld [vmem:[%s11548_s1 + $0x68] sm:$0xf] }
 0x432   :  { %4199 = vmatpush.bf16.xpose.msrb.mxu0 %v9015_v58  ;;  %4240 = vmatpush.bf16.xpose.msrb.mxu3 %v10373_v60  ;;  %v10406_v43 = vadd.f32 %v3889_v15, %v10308_v51  ;;  %v5886_v51 = vrot.slane %v10094_v16, 10 }
 0x434   :  { %v3903_v39 = vpop.f32.mrf.mxu3  ;;  %v4265_v4 = vsel %vm9022_vm12, %v5886_v51, %v4264_v33  ;;  %v12978_v33 = vld [vmem:[#allocation21_spill] sm:$0xff] }
 0x435   :  { %v10411_v7 = vadd.f32 %v3903_v39, %v10313_v47  ;;  %v4271_v47 = vrot.slane %v10120_v30, 6  ;;  %v4281_v6 = vunpack.c.l.b16 %v4265_v4  ;;  %v12977_v30 = vld [vmem:[#allocation145_spill] sm:$0xff]  ;;  %v6057_v4 = vld [vmem:[%s11548_s1 + $0x68] sm:$0x30] }
 0x436   :  { %4213 = vmatpush.bf16.xpose.msrb.mxu1 %v9906_v53  ;;  %v13107_v53 = vld [vmem:[#allocation94_spill] sm:$0xff] }
 0x437   :  { %4227 = vmatpush.bf16.xpose.msrb.mxu2 %v9084_v37  ;;  %v4273_v16 = vrot.slane %v4271_v47, 4  ;;  %v4272_v15 = vsel %vm9022_vm12, %v5887_v52, %v4271_v47  ;;  %v4285_v51 = vpack.c.b16 %v4282_v54, %v4281_v6  ;;  %v5881_v52 = vor.u32 %v6057_v4, %v5880_v27  ;;  %v12984_v54 = vld [vmem:[#allocation28_spill] sm:$0xff]  ;;  %v12989_v27 = vld [vmem:[#allocation29_spill] sm:$0xff]  ;;  %v13085_v37 = vld [vmem:[#allocation71_spill] sm:$0xff] }
 0x438   :  { %v4283_v23 = vunpack.c.l.b16 %v4272_v15  ;;  %v12985_v15 = vld [vmem:[#allocation85_spill] sm:$0xff] }
 0x439   :  { %v4275_v39 = vsel %vm9022_vm12, %v4273_v16, %v4274_v9  ;;  %v10448_v47 = vsel %vm1059_vm2, %v4285_v51, 0  ;;  %v12981_v16 = vld [vmem:[#allocation26_spill] sm:$0xff]  ;;  %v12982_v9 = vld [vmem:[#allocation84_spill] sm:$0xff]  ;;  %v12986_v51 = vld [vmem:[#allocation25_spill] sm:$0xff] }
 0x43a   :  { %4200 = vmatpush.bf16.xpose.msrb.mxu0 %v8390_v21  ;;  %4241 = vmatpush.bf16.xpose.msrb.mxu3 %v9913_v28  ;;  %v4284_v24 = vunpack.c.l.b16 %v4275_v39  ;;  %12980 = vst [vmem:[#allocation156_spill] sm:$0xff] %v10448_v47  ;;  %v10460_v39 = vpop.f32.mrf.mxu0  ;;  %v13084_v28 = vld [vmem:[#allocation101_spill] sm:$0xff] }
 0x43c   :  { %v4286_v29 = vpack.c.b16 %v4284_v24, %v4283_v23  ;;  %v10466_v23 = vpop.f32.mrf.mxu1  ;;  %v12987_v24 = vld [vmem:[#allocation89_spill] sm:$0xff] }
 0x43e   :  { %4214 = vmatpush.bf16.xpose.msrb.mxu1 %v8407_v26  ;;  %v10455_v6 = vsel %vm1059_vm2, %v4286_v29, 0  ;;  %v13075_v26 = vld [vmem:[#allocation63_spill] sm:$0xff] }
 0x43f   :  { %4228 = vmatpush.bf16.xpose.msrb.mxu2 %v8435_v32  ;;  %12983 = vst [vmem:[#allocation24_spill] sm:$0xff] %v10455_v6  ;;  %v13073_v32 = vld [vmem:[#allocation51_spill] sm:$0xff] }
 0x442   :  { %4201 = vmatpush.bf16.xpose.msrb.mxu0 %v8474_v62  ;;  %4242 = vmatpush.bf16.xpose.msrb.mxu3 %v8449_v49  ;;  %v13038_v62 = vld [vmem:[#allocation116_spill] sm:$0xff] }
 0x446   :  { %4215 = vmatpush.bf16.xpose.msrb.mxu1 %v8487_v61  ;;  %v13036_v61 = vld [vmem:[#allocation117_spill] sm:$0xff] }
 0x447   :  { %4229 = vmatpush.bf16.xpose.msrb.mxu2 %v8512_v0  ;;  %v13034_v0 = vld [vmem:[#allocation115_spill] sm:$0xff] }
 0x44a   :  { %4202 = vmatpush.bf16.xpose.msrb.mxu0 %v8550_v34  ;;  %4243 = vmatpush.bf16.xpose.msrb.mxu3 %v8525_v8 }
 0x44e   :  { %4216 = vmatpush.bf16.xpose.msrb.mxu1 %v8563_v2 }
 0x44f   :  { %4230 = vmatpush.bf16.xpose.msrb.mxu2 %v8588_v10 }
 0x452   :  { %4203 = vmatpush.bf16.xpose.msrb.mxu0 %v12819_v56  ;;  %4244 = vmatpush.bf16.xpose.msrb.mxu3 %v12820_v48  ;;  %v13032_v56 = vld [vmem:[#allocation113_spill] sm:$0xff] }
 0x456   :  { %4217 = vmatpush.bf16.xpose.msrb.mxu1 %v12973_v35 }
 0x457   :  { %4231 = vmatpush.bf16.xpose.msrb.mxu2 %v12974_v19  ;;  %v10594_v19 = vld [vmem:[%s11547_s0 + $0xe0] sm:$0x3] }
 0x45a   :  { %4204 = vmatpush.bf16.xpose.msrb.mxu0 %v12975_v22  ;;  %4245 = vmatpush.bf16.xpose.msrb.mxu3 %v12976_v42  ;;  %v13028_v22 = vld [vmem:[#allocation110_spill] sm:$0xff] }
 0x45e   :  { %4218 = vmatpush.bf16.xpose.msrb.mxu1 %v12977_v30 }
 0x45f   :  { %4232 = vmatpush.bf16.xpose.msrb.mxu2 %v12978_v33 }
 0x462   :  { %4205 = vmatpush.bf16.xpose.msrb.mxu0 %v12979_v12  ;;  %4246 = vmatpush.bf16.xpose.msrb.mxu3 %v12828_v41  ;;  %v12988_v12 = vld [vmem:[#allocation37_spill] sm:$0xff]  ;;  %v12997_v41 = vld [vmem:[#allocation52_spill] sm:$0xff] }
 0x466   :  { %4219 = vmatpush.bf16.xpose.msrb.mxu1 %v12829_v25  ;;  %v3993_v4 = vpop.f32.mrf.mxu0 }
 0x467   :  { %4233 = vmatpush.bf16.xpose.msrb.mxu2 %v12981_v16  ;;  %v4040_v29 = vadd.f32 %v3993_v4, %v10391_v5  ;;  %v10473_v16 = vpop.f32.mrf.mxu2  ;;  %v12995_v4 = vld [vmem:[#allocation49_spill] sm:$0xff] }
 0x469   :  { %5882 = vmatmul.msk.bf16.vlgmr.msrb.gmra.mxu0 %vm1059_vm2, %v5881_v52 }
 0x46a   :  { %4296 = vmatpush.bf16.xpose.msra.mxu0 %v12860_v17  ;;  %4247 = vmatpush.bf16.xpose.msrb.mxu3 %v12984_v54 }
 0x46d   :  { %5883 = vmatmul.msk.bf16.vlgmr.msrb.gmra.mxu1 %vm1059_vm2, %v5881_v52 }
 0x46e   :  { %4310 = vmatpush.bf16.xpose.msra.mxu1 %v10448_v47  ;;  %5884 = vmatmul.msk.bf16.vlgmr.msrb.gmra.mxu2 %vm1059_vm2, %v5881_v52  ;;  %v10478_v47 = vpop.f32.mrf.mxu3 }
 0x46f   :  { %4324 = vmatpush.bf16.xpose.msra.mxu2 %v12982_v9 }
 0x471   :  { %5885 = vmatmul.msk.bf16.vlgmr.msrb.gmra.mxu3 %vm1059_vm2, %v5881_v52  ;;  %v12993_v52 = vld [vmem:[#allocation42_spill] sm:$0xff] }
 0x472   :  { %4297 = vmatpush.bf16.xpose.msra.mxu0 %v12985_v15  ;;  %4338 = vmatpush.bf16.xpose.msra.mxu3 %v10455_v6  ;;  %v12990_v6 = vld [vmem:[#allocation40_spill] sm:$0xff]  ;;  %v12991_v15 = vld [vmem:[#allocation41_spill] sm:$0xff] }
 0x476   :  { %4311 = vmatpush.bf16.xpose.msra.mxu1 %v12986_v51  ;;  %v4007_v51 = vpop.f32.mrf.mxu1  ;;  %v4035_v17 = vpop.f32.mrf.mxu3 }
 0x477   :  { %4325 = vmatpush.bf16.xpose.msra.mxu2 %v12987_v24  ;;  %v4041_v9 = vadd.f32 %v4007_v51, %v10398_v31  ;;  %v12992_v24 = vld [vmem:[#allocation48_spill] sm:$0xff]  ;;  %v12998_v31 = vld [vmem:[#allocation53_spill] sm:$0xff] }
 0x478   :  { %v12999_v51 = vld [vmem:[#allocation56_spill] sm:$0xff] }
 0x47a   :  { %4298 = vmatpush.bf16.xpose.msra.mxu0 %v12988_v12  ;;  %4339 = vmatpush.bf16.xpose.msra.mxu3 %v12989_v27  ;;  %v4021_v12 = vpop.f32.mrf.mxu2  ;;  %v12994_v27 = vld [vmem:[#allocation50_spill] sm:$0xff] }
 0x47b   :  { %v4042_v5 = vadd.f32 %v4021_v12, %v10406_v43  ;;  %v13003_v43 = vld [vmem:[#allocation61_spill] sm:$0xff]  ;;  %v13004_v12 = vld [vmem:[#allocation64_spill] sm:$0xff] }
 0x47e   :  { %4312 = vmatpush.bf16.xpose.msra.mxu1 %v12990_v6  ;;  %v12996_v6 = vld [vmem:[#allocation54_spill] sm:$0xff]  ;;  %v10546_v30 = vpop.f32.mrf.mxu3 }
 0x47f   :  { %4326 = vmatpush.bf16.xpose.msra.mxu2 %v12991_v15  ;;  %v4043_v15 = vadd.f32 %v4035_v17, %v10411_v7  ;;  %v13007_v17 = vld [vmem:[#allocation65_spill] sm:$0xff] }
 0x480   :  { %v6022_v7 = vld [vmem:[%s11547_s0 + $0xd8] sm:$0xff] }
 0x482   :  { %4299 = vmatpush.bf16.xpose.msra.mxu0 %v12992_v24  ;;  %4340 = vmatpush.bf16.xpose.msra.mxu3 %v12993_v52  ;;  %v13000_v24 = vld [vmem:[#allocation58_spill] sm:$0xff]  ;;  %v13001_v52 = vld [vmem:[#allocation57_spill] sm:$0xff] }
 0x486   :  { %4313 = vmatpush.bf16.xpose.msra.mxu1 %v12994_v27  ;;  %v13002_v27 = vld [vmem:[#allocation60_spill] sm:$0xff] }
 0x487   :  { %4327 = vmatpush.bf16.xpose.msra.mxu2 %v12995_v4  ;;  %v13005_v4 = vld [vmem:[#allocation62_spill] sm:$0xff] }
 0x48a   :  { %4300 = vmatpush.bf16.xpose.msra.mxu0 %v12996_v6  ;;  %4341 = vmatpush.bf16.xpose.msra.mxu3 %v12997_v41  ;;  %v13006_v6 = vld [vmem:[#allocation66_spill] sm:$0xff] }
 0x48b   :  { %v13021_v41 = vld [vmem:[#allocation86_spill] sm:$0xff] }
 0x48e   :  { %4314 = vmatpush.bf16.xpose.msra.mxu1 %v12998_v31  ;;  %v10526_v31 = vpop.f32.mrf.mxu0 }
 0x48f   :  { %4328 = vmatpush.bf16.xpose.msra.mxu2 %v12999_v51  ;;  %v13008_v51 = vld [vmem:[#allocation70_spill] sm:$0xff] }
 0x492   :  { %4301 = vmatpush.bf16.xpose.msra.mxu0 %v13000_v24  ;;  %4342 = vmatpush.bf16.xpose.msra.mxu3 %v13001_v52  ;;  %v13012_v52 = vld [vmem:[#allocation72_spill] sm:$0xff]  ;;  %v13013_v24 = vld [vmem:[#allocation129_spill] sm:$0xff] }
 0x496   :  { %4315 = vmatpush.bf16.xpose.msra.mxu1 %v13002_v27  ;;  %v5890_v27 = vld [vmem:[%s11548_s1 + $0x70] sm:$0xf] }
 0x497   :  { %4329 = vmatpush.bf16.xpose.msra.mxu2 %v13003_v43  ;;  %v13009_v43 = vld [vmem:[#allocation68_spill] sm:$0xff] }
 0x49a   :  { %4302 = vmatpush.bf16.xpose.msra.mxu0 %v13004_v12  ;;  %4343 = vmatpush.bf16.xpose.msra.mxu3 %v13005_v4  ;;  %v6058_v12 = vld [vmem:[%s11548_s1 + $0x70] sm:$0x30]  ;;  %v13011_v4 = vld [vmem:[#allocation69_spill] sm:$0xff] }
 0x49e   :  { %4316 = vmatpush.bf16.xpose.msra.mxu1 %v13006_v6  ;;  %v6042_v6 = vld [vmem:[%s11547_s0 + $0x1c8] sm:$0xff] }
 0x49f   :  { %4330 = vmatpush.bf16.xpose.msra.mxu2 %v13007_v17  ;;  %v10511_v17 = vsel %vm1059_vm2, %v6022_v7, 0  ;;  %v13015_v7 = vld [vmem:[#allocation73_spill] sm:$0xff] }
 0x4a0   :  { %13010 = vst [vmem:[#allocation26_spill] sm:$0xff] %v10511_v17 }
 0x4a2   :  { %4303 = vmatpush.bf16.xpose.msra.mxu0 %v13008_v51  ;;  %4344 = vmatpush.bf16.xpose.msra.mxu3 %v13009_v43  ;;  %v5891_v51 = vor.u32 %v6058_v12, %v5890_v27  ;;  %v10521_v43 = vsel %vm1059_vm2, %v6042_v6, 0  ;;  %v13017_v27 = vld [vmem:[#allocation74_spill] sm:$0xff]  ;;  %v13018_v6 = vld [vmem:[#allocation133_spill] sm:$0xff] }
 0x4a3   :  { %13014 = vst [vmem:[#allocation28_spill] sm:$0xff] %v10521_v43  ;;  %v13019_v12 = vld [vmem:[#allocation134_spill] sm:$0xff] }
 0x4a6   :  { %4317 = vmatpush.bf16.xpose.msra.mxu1 %v13011_v4  ;;  %v13027_v4 = vld [vmem:[#allocation107_spill] sm:$0xff] }
 0x4a7   :  { %4331 = vmatpush.bf16.xpose.msra.mxu2 %v13012_v52  ;;  %v10532_v52 = vpop.f32.mrf.mxu1 }
 0x4a9   :  { %5892 = vmatmul.msk.bf16.vlgmr.msra.gmra.mxu0 %vm1059_vm2, %v5891_v51 }
 0x4aa   :  { %4384 = vmatpush.bf16.xpose.msrb.mxu0 %v12896_v3  ;;  %4345 = vmatpush.bf16.xpose.msra.mxu3 %v13015_v7  ;;  %v13016_v3 = vld [vmem:[#allocation131_spill] sm:$0xff]  ;;  %v13022_v7 = vld [vmem:[#allocation136_spill] sm:$0xff] }
 0x4ad   :  { %5893 = vmatmul.msk.bf16.vlgmr.msra.gmra.mxu1 %vm1059_vm2, %v5891_v51 }
 0x4ae   :  { %4398 = vmatpush.bf16.xpose.msrb.mxu1 %v10511_v17  ;;  %5894 = vmatmul.msk.bf16.vlgmr.msra.gmra.mxu2 %vm1059_vm2, %v5891_v51 }
 0x4af   :  { %4412 = vmatpush.bf16.xpose.msrb.mxu2 %v13013_v24  ;;  %v13020_v24 = vld [vmem:[#allocation81_spill] sm:$0xff] }
 0x4b1   :  { %5895 = vmatmul.msk.bf16.vlgmr.msra.gmra.mxu3 %vm1059_vm2, %v5891_v51  ;;  %v13024_v51 = vld [vmem:[#allocation88_spill] sm:$0xff] }
 0x4b2   :  { %4385 = vmatpush.bf16.xpose.msrb.mxu0 %v13016_v3  ;;  %4426 = vmatpush.bf16.xpose.msrb.mxu3 %v10521_v43  ;;  %v4093_v3 = vpop.f32.mrf.mxu0  ;;  %v10540_v43 = vpop.f32.mrf.mxu2 }
 0x4b3   :  { %v10538_v17 = vadd.f32 %v4093_v3, %v4040_v29  ;;  %v10554_v3 = vld [vmem:[%s11547_s0 + $0xd8] sm:$0xf]  ;;  %v10559_v29 = vld [vmem:[%s11547_s0 + $0xdc] sm:$0xf] }
 0x4b6   :  { %4399 = vmatpush.bf16.xpose.msrb.mxu1 %v13017_v27  ;;  %v4107_v27 = vpop.f32.mrf.mxu1 }
 0x4b7   :  { %4413 = vmatpush.bf16.xpose.msrb.mxu2 %v13018_v6  ;;  %v10544_v33 = vadd.f32 %v4107_v27, %v4041_v9  ;;  %v13023_v6 = vld [vmem:[#allocation104_spill] sm:$0xff] }
 0x4b8   :  { %v13026_v27 = vld [vmem:[#allocation108_spill] sm:$0xff] }
 0x4ba   :  { %4386 = vmatpush.bf16.xpose.msrb.mxu0 %v13019_v12  ;;  %4427 = vmatpush.bf16.xpose.msrb.mxu3 %v13020_v24  ;;  %v4121_v12 = vpop.f32.mrf.mxu2  ;;  %v13025_v24 = vld [vmem:[#allocation105_spill] sm:$0xff] }
 0x4bb   :  { %v10561_v9 = vadd.f32 %v4121_v12, %v4042_v5  ;;  %v10575_v5 = vld [vmem:[%s11547_s0 + $0x1c8] sm:$0xf]  ;;  %v10580_v12 = vld [vmem:[%s11547_s0 + $0x1cc] sm:$0xf] }
 0x4bc   :  { %v12176_v35 = vshrl.u32 %v10575_v5, 16  ;;  %v12178_v48 = vshll.u32 %v10580_v12, 16 }
 0x4be   :  { %4400 = vmatpush.bf16.xpose.msrb.mxu1 %v13021_v41  ;;  %v4135_v41 = vpop.f32.mrf.mxu3  ;;  %v4475_v10 = vrot.slane %v12176_v35, 4  ;;  %v4484_v8 = vrot.slane %v12178_v48, 5 }
 0x4bf   :  { %4414 = vmatpush.bf16.xpose.msrb.mxu2 %v13022_v7  ;;  %v10569_v42 = vadd.f32 %v4135_v41, %v4043_v15  ;;  %v13029_v41 = vshll.u32 %v10559_v29, 16 }
 0x4c1   :  { %v4460_v15 = vrot.slane %v13029_v41, 5 }
 0x4c2   :  { %4387 = vmatpush.bf16.xpose.msrb.mxu0 %v13023_v6  ;;  %4428 = vmatpush.bf16.xpose.msrb.mxu3 %v13024_v51  ;;  %v12160_v6 = vshrl.u32 %v10554_v3, 16  ;;  %v12162_v51 = vshll.u32 %v10554_v3, 16 }
 0x4c4   :  { %v4451_v7 = vrot.slane %v12160_v6, 4  ;;  %v12177_v6 = vshll.u32 %v10575_v5, 16 }
 0x4c6   :  { %4401 = vmatpush.bf16.xpose.msrb.mxu1 %v13025_v24  ;;  %v4454_v24 = vrot.slane %v12162_v51, 5  ;;  %v12181_v51 = vshrl.u32 %v10580_v12, 16  ;;  %v4478_v2 = vrot.slane %v12177_v6, 5 }
 0x4c7   :  { %4415 = vmatpush.bf16.xpose.msrb.mxu2 %v13026_v27  ;;  %v13031_v27 = vld [vmem:[#allocation109_spill] sm:$0xff] }
 0x4c8   :  { %v4455_v41 = vor.u32 %v4454_v24, %v4451_v7  ;;  %v4488_v34 = vrot.slane %v12181_v51, 4  ;;  %v10615_v24 = vld [vmem:[%s11547_s0 + $0x1d0] sm:$0x3]  ;;  %v4479_v6 = vor.u32 %v4478_v2, %v4475_v10  ;;  %v13040_v10 = vld [vmem:[#allocation118_spill] sm:$0xff] }
 0x4c9   :  { %v12187_v48 = vshll.u32 %v10615_v24, 16  ;;  %v4594_v51 = vrot.slane %v10615_v24, 5 }
 0x4ca   :  { %4388 = vmatpush.bf16.xpose.msrb.mxu0 %v13027_v4  ;;  %4429 = vmatpush.bf16.xpose.msrb.mxu3 %v13028_v22  ;;  %v13030_v22 = vshrl.u32 %v10559_v29, 16 }
 0x4cc   :  { %v4464_v4 = vrot.slane %v13030_v22, 4  ;;  %v12186_v22 = vshll.u32 %v10594_v19, 16 }
 0x4ce   :  { %4402 = vmatpush.bf16.xpose.msrb.mxu1 %v13031_v27  ;;  %v4465_v45 = vor.u32 %v4464_v4, %v4460_v15  ;;  %v13033_v27 = vld [vmem:[#allocation112_spill] sm:$0xff]  ;;  %v4456_v4 = vrot.slane %v4455_v41, 4  ;;  %v4470_v35 = vrot.slane %v12186_v22, 5  ;;  %v4494_v22 = vrot.slane %v12187_v48, 5  ;;  %v13043_v48 = vld [vmem:[#allocation121_spill] sm:$0xff] }
 0x4cf   :  { %4416 = vmatpush.bf16.xpose.msrb.mxu2 %v13032_v56  ;;  %v4489_v56 = vor.u32 %v4488_v34, %v4484_v8 }
 0x4d0   :  { %v4466_v7 = vrot.slane %v4465_v45, 4  ;;  %v4480_v45 = vrot.slane %v4479_v6, 4 }
 0x4d1   :  { %v4490_v41 = vrot.slane %v4489_v56, 4 }
 0x4d2   :  { %4389 = vmatpush.bf16.xpose.msrb.mxu0 %v13033_v27  ;;  %4430 = vmatpush.bf16.xpose.msrb.mxu3 %v13034_v0  ;;  %v13035_v27 = vld [vmem:[#allocation114_spill] sm:$0xff]  ;;  %v4461_v0 = vsel %vm6353_vm3, %v4456_v4, %v4460_v15  ;;  %v4471_v49 = vsel %vm6353_vm3, %v4466_v7, %v4470_v35  ;;  %v13041_v35 = vld [vmem:[#allocation120_spill] sm:$0xff] }
 0x4d3   :  { %v4501_v34 = vunpack.c.l.b16 %v4461_v0  ;;  %v4502_v2 = vunpack.c.l.b16 %v4471_v49  ;;  %v4495_v15 = vsel %vm6353_vm3, %v4490_v41, %v4494_v22  ;;  %v13042_v7 = vld [vmem:[#allocation122_spill] sm:$0xff]  ;;  %v5898_v0 = vld [vmem:[%s11548_s1 + $0x78] sm:$0xf]  ;;  %v6059_v49 = vld [vmem:[%s11548_s1 + $0x78] sm:$0x30] }
 0x4d4   :  { %v4504_v56 = vunpack.c.l.b16 %v4495_v15  ;;  %v13046_v41 = vld [vmem:[#allocation123_spill] sm:$0xff] }
 0x4d5   :  { %v4505_v4 = vpack.c.b16 %v4502_v2, %v4501_v34  ;;  %v13047_v34 = vld [vmem:[#allocation124_spill] sm:$0xff]  ;;  %v13048_v2 = vld [vmem:[#allocation91_spill] sm:$0xff] }
 0x4d6   :  { %4403 = vmatpush.bf16.xpose.msrb.mxu1 %v13035_v27  ;;  %v13039_v27 = vld [vmem:[#allocation119_spill] sm:$0xff] }
 0x4d7   :  { %4417 = vmatpush.bf16.xpose.msrb.mxu2 %v13036_v61  ;;  %v4485_v61 = vsel %vm6353_vm3, %v4480_v45, %v4484_v8  ;;  %v13044_v8 = vld [vmem:[#allocation83_spill] sm:$0xff]  ;;  %v10646_v22 = vsel %vm1059_vm2, %v4505_v4, 0  ;;  %v10658_v4 = vpop.f32.mrf.mxu0 }
 0x4d8   :  { %v4503_v6 = vunpack.c.l.b16 %v4485_v61  ;;  %13045 = vst [vmem:[#allocation70_spill] sm:$0xff] %v10646_v22  ;;  %v5899_v61 = vor.u32 %v6059_v49, %v5898_v0  ;;  %v13053_v0 = vld [vmem:[#allocation103_spill] sm:$0xff]  ;;  %v13054_v49 = vld [vmem:[#allocation106_spill] sm:$0xff] }
 0x4da   :  { %4390 = vmatpush.bf16.xpose.msrb.mxu0 %v13038_v62  ;;  %4431 = vmatpush.bf16.xpose.msrb.mxu3 %v13039_v27  ;;  %v4506_v45 = vpack.c.b16 %v4504_v56, %v4503_v6  ;;  %v13052_v6 = vld [vmem:[#allocation126_spill] sm:$0xff]  ;;  %v10664_v56 = vpop.f32.mrf.mxu1  ;;  %v13068_v27 = vld [vmem:[#allocation35_spill] sm:$0xff] }
 0x4dc   :  { %v10653_v15 = vsel %vm1059_vm2, %v4506_v45, 0  ;;  %v13055_v45 = vld [vmem:[#allocation128_spill] sm:$0xff] }
 0x4dd   :  { %13049 = vst [vmem:[#allocation72_spill] sm:$0xff] %v10653_v15 }
 0x4de   :  { %4404 = vmatpush.bf16.xpose.msrb.mxu1 %v13040_v10  ;;  %v13064_v10 = vld [vmem:[#allocation19_spill] sm:$0xff] }
 0x4df   :  { %4418 = vmatpush.bf16.xpose.msrb.mxu2 %v13041_v35  ;;  %v13060_v35 = vld [vmem:[#allocation4_spill] sm:$0xff] }
 0x4e2   :  { %4391 = vmatpush.bf16.xpose.msrb.mxu0 %v13042_v7  ;;  %4432 = vmatpush.bf16.xpose.msrb.mxu3 %v13043_v48  ;;  %v13050_v7 = vld [vmem:[#allocation125_spill] sm:$0xff] }
 0x4e6   :  { %4405 = vmatpush.bf16.xpose.msrb.mxu1 %v13046_v41 }
 0x4e7   :  { %4419 = vmatpush.bf16.xpose.msrb.mxu2 %v13047_v34  ;;  %v4207_v34 = vpop.f32.mrf.mxu0 }
 0x4e9   :  { %5908 = vmatmul.msk.bf16.vlgmr.msrb.gmra.mxu0 %vm1059_vm2, %v5899_v61 }
 0x4ea   :  { %4516 = vmatpush.bf16.xpose.msra.mxu0 %v13044_v8  ;;  %4433 = vmatpush.bf16.xpose.msrb.mxu3 %v13050_v7  ;;  %v13051_v8 = vld [vmem:[#allocation99_spill] sm:$0xff] }
 0x4eb   :  { %v13072_v7 = vld [vmem:[#allocation43_spill] sm:$0xff] }
 0x4ed   :  { %5909 = vmatmul.msk.bf16.vlgmr.msrb.gmra.mxu1 %vm1059_vm2, %v5899_v61 }
 0x4ee   :  { %4530 = vmatpush.bf16.xpose.msra.mxu1 %v10646_v22  ;;  %5910 = vmatmul.msk.bf16.vlgmr.msrb.gmra.mxu2 %vm1059_vm2, %v5899_v61  ;;  %v13057_v22 = vld [vmem:[#allocation111_spill] sm:$0xff] }
 0x4ef   :  { %4544 = vmatpush.bf16.xpose.msra.mxu2 %v13048_v2  ;;  %v13056_v2 = vld [vmem:[#allocation96_spill] sm:$0xff] }
 0x4f1   :  { %5911 = vmatmul.msk.bf16.vlgmr.msrb.gmra.mxu3 %vm1059_vm2, %v5899_v61  ;;  %v13058_v61 = vld [vmem:[#allocation3_spill] sm:$0xff] }
 0x4f2   :  { %4517 = vmatpush.bf16.xpose.msra.mxu0 %v13051_v8  ;;  %4558 = vmatpush.bf16.xpose.msra.mxu3 %v10653_v15  ;;  %v10671_v8 = vadd.f32 %v4207_v34, %v10538_v17  ;;  %v10673_v15 = vpop.f32.mrf.mxu2  ;;  %v13061_v34 = vld [vmem:[#allocation5_spill] sm:$0xff] }
 0x4f6   :  { %4531 = vmatpush.bf16.xpose.msra.mxu1 %v13052_v6  ;;  %v4221_v6 = vpop.f32.mrf.mxu1 }
 0x4f7   :  { %4545 = vmatpush.bf16.xpose.msra.mxu2 %v13053_v0  ;;  %v10678_v48 = vadd.f32 %v4221_v6, %v10544_v33  ;;  %v10680_v0 = vpop.f32.mrf.mxu3  ;;  %v13063_v6 = vld [vmem:[#allocation10_spill] sm:$0xff] }
 0x4fa   :  { %4518 = vmatpush.bf16.xpose.msra.mxu0 %v13054_v49  ;;  %4559 = vmatpush.bf16.xpose.msra.mxu3 %v13055_v45  ;;  %v13059_v49 = vld [vmem:[#allocation98_spill] sm:$0xff]  ;;  %v4235_v45 = vpop.f32.mrf.mxu2 }
 0x4fb   :  { %v10686_v17 = vadd.f32 %v4235_v45, %v10561_v9  ;;  %v13067_v9 = vld [vmem:[#allocation27_spill] sm:$0xff]  ;;  %v5920_v45 = vrot.slane %v10554_v3, 9 }
 0x4fe   :  { %4532 = vmatpush.bf16.xpose.msra.mxu1 %v13056_v2 }
 0x4ff   :  { %4546 = vmatpush.bf16.xpose.msra.mxu2 %v13057_v22  ;;  %v4249_v2 = vpop.f32.mrf.mxu3  ;;  %v13062_v22 = vld [vmem:[#allocation14_spill] sm:$0xff] }
 0x500   :  { %v10691_v33 = vadd.f32 %v4249_v2, %v10569_v42  ;;  %v4591_v42 = vrot.slane %v10580_v12, 5  ;;  %v13069_v2 = vld [vmem:[#allocation39_spill] sm:$0xff] }
 0x502   :  { %4519 = vmatpush.bf16.xpose.msra.mxu0 %v13058_v61  ;;  %4560 = vmatpush.bf16.xpose.msra.mxu3 %v13059_v49  ;;  %v13065_v61 = vld [vmem:[#allocation23_spill] sm:$0xff]  ;;  %v4584_v49 = vrot.slane %v10559_v29, 5  ;;  %v4593_v62 = vrot.slane %v4591_v42, 4 }
 0x506   :  { %4533 = vmatpush.bf16.xpose.msra.mxu1 %v13060_v35  ;;  %v13066_v35 = vld [vmem:[#allocation31_spill] sm:$0xff] }
 0x507   :  { %4547 = vmatpush.bf16.xpose.msra.mxu2 %v13061_v34  ;;  %v4586_v34 = vrot.slane %v4584_v49, 4 }
 0x50a   :  { %4520 = vmatpush.bf16.xpose.msra.mxu0 %v13062_v22  ;;  %4561 = vmatpush.bf16.xpose.msra.mxu3 %v13063_v6  ;;  %v4587_v22 = vrot.slane %v10594_v19, 5 }
 0x50c   :  { %v4588_v6 = vsel %vm7731_vm6, %v4586_v34, %v4587_v22  ;;  %v13074_v22 = vld [vmem:[#allocation55_spill] sm:$0xff] }
 0x50d   :  { %v4602_v41 = vunpack.c.l.b16 %v4588_v6  ;;  %v6060_v6 = vld [vmem:[%s11548_s1 + $0x80] sm:$0x30] }
 0x50e   :  { %4534 = vmatpush.bf16.xpose.msra.mxu1 %v13064_v10 }
 0x50f   :  { %4548 = vmatpush.bf16.xpose.msra.mxu2 %v13065_v61  ;;  %v4585_v61 = vsel %vm7731_vm6, %v5920_v45, %v4584_v49  ;;  %v4595_v49 = vsel %vm7731_vm6, %v4593_v62, %v4594_v51  ;;  %v13080_v51 = vld [vmem:[#allocation90_spill] sm:$0xff] }
 0x512   :  { %4521 = vmatpush.bf16.xpose.msra.mxu0 %v13066_v35  ;;  %4562 = vmatpush.bf16.xpose.msra.mxu3 %v13067_v9  ;;  %v13071_v35 = vld [vmem:[#allocation47_spill] sm:$0xff]  ;;  %v5921_v9 = vrot.slane %v10575_v5, 9 }
 0x516   :  { %4535 = vmatpush.bf16.xpose.msra.mxu1 %v13068_v27  ;;  %v4601_v27 = vunpack.c.l.b16 %v4585_v61  ;;  %v5914_v61 = vld [vmem:[%s11548_s1 + $0x80] sm:$0xf] }
 0x517   :  { %4549 = vmatpush.bf16.xpose.msra.mxu2 %v13069_v2  ;;  %v4592_v2 = vsel %vm7731_vm6, %v5921_v9, %v4591_v42  ;;  %v13077_v9 = vld [vmem:[#allocation76_spill] sm:$0xff] }
 0x518   :  { %v4605_v34 = vpack.c.b16 %v4602_v41, %v4601_v27  ;;  %v4603_v45 = vunpack.c.l.b16 %v4592_v2  ;;  %v5915_v41 = vor.u32 %v6060_v6, %v5914_v61  ;;  %v13081_v2 = vld [vmem:[#allocation67_spill] sm:$0xff] }
 0x51a   :  { %4522 = vmatpush.bf16.xpose.msra.mxu0 %v13071_v35  ;;  %4563 = vmatpush.bf16.xpose.msra.mxu3 %v13072_v7  ;;  %v4604_v35 = vunpack.c.l.b16 %v4595_v49  ;;  %v13078_v7 = vld [vmem:[#allocation59_spill] sm:$0xff]  ;;  %v10730_v62 = vsel %vm1059_vm2, %v4605_v34, 0  ;;  %v13082_v49 = vld [vmem:[#allocation152_spill] sm:$0xff] }
 0x51b   :  { %13079 = vst [vmem:[#allocation122_spill] sm:$0xff] %v10730_v62 }
 0x51c   :  { %v4606_v27 = vpack.c.b16 %v4604_v35, %v4603_v45  ;;  %v13089_v45 = vld [vmem:[#allocation130_spill] sm:$0xff] }
 0x51e   :  { %4536 = vmatpush.bf16.xpose.msra.mxu1 %v13073_v32  ;;  %v13076_v32 = vld [vmem:[#allocation44_spill] sm:$0xff]  ;;  %v10743_v35 = vsel %vm1059_vm2, %v4606_v27, 0  ;;  %v13096_v27 = vld [vmem:[#allocation174_spill] sm:$0xff] }
 0x51f   :  { %4550 = vmatpush.bf16.xpose.msra.mxu2 %v13074_v22  ;;  %v1491_v42 = vadd.f32 %v13077_v9, %v13076_v32  ;;  %v13083_v22 = vld [vmem:[#allocation77_spill] sm:$0xff]  ;;  %v13086_v32 = vld [vmem:[#allocation92_spill] sm:$0xff]  ;;  %v13087_v9 = vld [vmem:[#allocation159_spill] sm:$0xff]  ;;  %13088 = vst [vmem:[#allocation124_spill] sm:$0xff] %v10743_v35 }
 0x520   :  { %v1505_v10 = vadd.f32 %v13083_v22, %v13082_v49  ;;  %v13090_v22 = vld [vmem:[#allocation30_spill] sm:$0xff] }
 0x522   :  { %4523 = vmatpush.bf16.xpose.msra.mxu0 %v13075_v26  ;;  %4564 = vmatpush.bf16.xpose.msra.mxu3 %v13078_v7  ;;  %v2054_v26 = vadd.f32 %v13080_v51, %v1491_v42  ;;  %v2055_v34 = vadd.f32 %v13086_v32, %v1505_v10  ;;  %v4209_v42 = vpop.f32.mrf.mxu0  ;;  %v13093_v51 = vld [vmem:[#allocation45_spill] sm:$0xff]  ;;  %v13094_v10 = vld [vmem:[#allocation78_spill] sm:$0xff] }
 0x524   :  { %v2801_v21 = vadd.f32 %v13084_v28, %v2054_v26  ;;  %v2802_v61 = vadd.f32 %v13089_v45, %v2055_v34  ;;  %v13091_v28 = vld [vmem:[#allocation75_spill] sm:$0xff]  ;;  %v1519_v26 = vadd.f32 %v13094_v10, %v13093_v51  ;;  %v13097_v34 = vld [vmem:[#allocation93_spill] sm:$0xff]  ;;  %v4223_v51 = vpop.f32.mrf.mxu1  ;;  %v13103_v10 = vld [vmem:[#allocation166_spill] sm:$0xff] }
 0x526   :  { %4537 = vmatpush.bf16.xpose.msra.mxu1 %v13081_v2 }
 0x527   :  { %4551 = vmatpush.bf16.xpose.msra.mxu2 %v13085_v37  ;;  %v13092_v37 = vld [vmem:[#allocation165_spill] sm:$0xff] }
 0x529   :  { %5916 = vmatmul.msk.bf16.vlgmr.msra.gmra.mxu0 %vm1059_vm2, %v5915_v41 }
 0x52a   :  { %4616 = vmatpush.bf16.xpose.msrb.mxu0 %v12808_v63  ;;  %v3292_v63 = vadd.f32 %v13087_v9, %v2801_v21  ;;  %4565 = vmatpush.bf16.xpose.msra.mxu3 %v13091_v28  ;;  %v13095_v21 = vld [vmem:[#allocation160_spill] sm:$0xff]  ;;  %v13106_v28 = vld [vmem:[#allocation182_spill] sm:$0xff] }
 0x52b   :  { %v3293_v49 = vadd.f32 %v13095_v21, %v2802_v61  ;;  %v13098_v9 = vld [vmem:[#allocation32_spill] sm:$0xff]  ;;  %v13105_v21 = vld [vmem:[#allocation175_spill] sm:$0xff] }
 0x52c   :  { %v3380_v6 = vadd.f32 %v13090_v22, %v3292_v63  ;;  %v2056_v63 = vadd.f32 %v13097_v34, %v1519_v26  ;;  %v13099_v22 = vld [vmem:[#allocation178_spill] sm:$0xff]  ;;  %v13104_v61 = vld [vmem:[#allocation132_spill] sm:$0xff]  ;;  %v13109_v34 = vld [vmem:[#allocation179_spill] sm:$0xff] }
 0x52d   :  { %5917 = vmatmul.msk.bf16.vlgmr.msra.gmra.mxu1 %vm1059_vm2, %v5915_v41  ;;  %v3381_v45 = vadd.f32 %v13098_v9, %v3293_v49  ;;  %v13108_v49 = vld [vmem:[#allocation162_spill] sm:$0xff] }
 0x52e   :  { %4630 = vmatpush.bf16.xpose.msrb.mxu1 %v10730_v62  ;;  %v3512_v32 = vadd.f32 %v13096_v27, %v3380_v6  ;;  %5918 = vmatmul.msk.bf16.vlgmr.msra.gmra.mxu2 %vm1059_vm2, %v5915_v41  ;;  %v13102_v62 = vld [vmem:[#allocation80_spill] sm:$0xff]  ;;  %v2803_v6 = vadd.f32 %v13104_v61, %v2056_v63  ;;  %v4305_v63 = vpop.f32.mrf.mxu0 }
 0x52f   :  { %4644 = vmatpush.bf16.xpose.msrb.mxu2 %v12811_v57  ;;  %v13100_v57 = vld [vmem:[#allocation79_spill] sm:$0xff]  ;;  %v3513_v27 = vadd.f32 %v13105_v21, %v3381_v45  ;;  %v13113_v45 = vld [vmem:[#allocation172_spill] sm:$0xff] }
 0x530   :  { %v13116_v21 = vld [vmem:[#allocation176_spill] sm:$0xff] }
 0x531   :  { %5919 = vmatmul.msk.bf16.vlgmr.msra.gmra.mxu3 %vm1059_vm2, %v5915_v41  ;;  %v3613_v9 = vadd.f32 %v13109_v34, %v3513_v27  ;;  %v13115_v41 = vld [vmem:[#allocation164_spill] sm:$0xff]  ;;  %v13118_v34 = vld [vmem:[#allocation173_spill] sm:$0xff] }
 0x532   :  { %4617 = vmatpush.bf16.xpose.msrb.mxu0 %v13092_v37  ;;  %4658 = vmatpush.bf16.xpose.msrb.mxu3 %v10743_v35  ;;  %v3612_v37 = vadd.f32 %v13099_v22, %v3512_v32  ;;  %v13101_v35 = vld [vmem:[#allocation46_spill] sm:$0xff]  ;;  %v3294_v32 = vadd.f32 %v13108_v49, %v2803_v6  ;;  %v13117_v49 = vld [vmem:[#allocation97_spill] sm:$0xff] }
 0x533   :  { %v1533_v7 = vadd.f32 %v13102_v62, %v13101_v35  ;;  %v13110_v62 = vld [vmem:[#allocation167_spill] sm:$0xff] }
 0x534   :  { %v3726_v2 = vadd.f32 %v13106_v28, %v3612_v37  ;;  %v13111_v35 = vld [vmem:[#allocation95_spill] sm:$0xff]  ;;  %v3382_v61 = vadd.f32 %v13113_v45, %v3294_v32 }
 0x535   :  { %v2057_v26 = vadd.f32 %v13107_v53, %v1533_v7  ;;  %v13114_v28 = vld [vmem:[#allocation183_spill] sm:$0xff]  ;;  %v10779_v7 = vadd.f32 %v4305_v63, %v10671_v8 }
 0x536   :  { %4631 = vmatpush.bf16.xpose.msrb.mxu1 %v13100_v57  ;;  %v3824_v22 = vadd.f32 %v10378_v55, %v3726_v2  ;;  %v13112_v57 = vld [vmem:[#allocation87_spill] sm:$0xff]  ;;  %v3727_v37 = vadd.f32 %v13114_v28, %v3613_v9  ;;  %v3514_v55 = vadd.f32 %v13116_v21, %v3382_v61  ;;  %v4319_v9 = vpop.f32.mrf.mxu1  ;;  %v4307_v21 = vpop.f32.mrf.mxu0 }
 0x537   :  { %4645 = vmatpush.bf16.xpose.msrb.mxu2 %v13103_v10  ;;  %v2804_v10 = vadd.f32 %v13111_v35, %v2057_v26  ;;  %v4237_v26 = vpop.f32.mrf.mxu2  ;;  %v13119_v35 = vld [vmem:[#allocation168_spill] sm:$0xff]  ;;  %v10792_v63 = vadd.f32 %v4319_v9, %v10678_v48  ;;  %v13127_v9 = vld [vmem:[#allocation138_spill] sm:$0xff] }
 0x538   :  { %v3912_v53 = vadd.f32 %v10460_v39, %v3824_v22  ;;  %v3825_v2 = vadd.f32 %v10384_v13, %v3727_v37  ;;  %v13120_v39 = vld [vmem:[#allocation180_spill] sm:$0xff]  ;;  %v13121_v13 = vld [vmem:[#allocation177_spill] sm:$0xff] }
 0x539   :  { %v3295_v6 = vadd.f32 %v13115_v41, %v2804_v10  ;;  %v3614_v22 = vadd.f32 %v13120_v39, %v3514_v55  ;;  %v13123_v41 = vld [vmem:[#allocation137_spill] sm:$0xff] }
 0x53a   :  { %4618 = vmatpush.bf16.xpose.msrb.mxu0 %v13110_v62  ;;  %4659 = vmatpush.bf16.xpose.msrb.mxu3 %v13112_v57  ;;  %v4044_v27 = vadd.f32 %v10526_v31, %v3912_v53  ;;  %v3913_v8 = vadd.f32 %v10466_v23, %v3825_v2  ;;  %v13122_v31 = vld [vmem:[#allocation184_spill] sm:$0xff]  ;;  %v4251_v53 = vpop.f32.mrf.mxu3  ;;  %v13125_v55 = vld [vmem:[#allocation181_spill] sm:$0xff] }
 0x53b   :  { %v3383_v32 = vadd.f32 %v13118_v34, %v3295_v6  ;;  %v3728_v61 = vadd.f32 %v13122_v31, %v3614_v22  ;;  %v13124_v6 = vld [vmem:[#allocation100_spill] sm:$0xff]  ;;  %v13128_v22 = vld [vmem:[#allocation139_spill] sm:$0xff] }
 0x53c   :  { %v4144_v10 = vadd.f32 %v10658_v4, %v4044_v27  ;;  %v4045_v28 = vadd.f32 %v10532_v52, %v3913_v8  ;;  %v13126_v27 = vld [vmem:[#allocation185_spill] sm:$0xff] }
 0x53d   :  { %v3515_v45 = vadd.f32 %v13121_v13, %v3383_v32  ;;  %v3826_v4 = vadd.f32 %v10393_v59, %v3728_v61 }
 0x53e   :  { %4632 = vmatpush.bf16.xpose.msrb.mxu1 %v13117_v49  ;;  %v4258_v37 = vadd.f32 %v4209_v42, %v4144_v10  ;;  %v4145_v48 = vadd.f32 %v10664_v56, %v4045_v28  ;;  %v4321_v8 = vpop.f32.mrf.mxu1 }
 0x53f   :  { %4646 = vmatpush.bf16.xpose.msrb.mxu2 %v13119_v35  ;;  %v3615_v23 = vadd.f32 %v13125_v55, %v3515_v45  ;;  %v3914_v32 = vadd.f32 %v10473_v16, %v3826_v4  ;;  %v4333_v42 = vpop.f32.mrf.mxu2  ;;  %v13129_v45 = vld [vmem:[#allocation143_spill] sm:$0xff]  ;;  %v13134_v55 = vshll.u32 %v10559_v29, 16 }
 0x540   :  { %v10802_v2 = vadd.f32 %v4307_v21, %v4258_v37  ;;  %v4259_v52 = vadd.f32 %v4223_v51, %v4145_v48  ;;  %v10808_v39 = vadd.f32 %v4333_v42, %v10686_v17  ;;  %v13130_v17 = vld [vmem:[#allocation140_spill] sm:$0xff]  ;;  %v13132_v37 = vshll.u32 %v10554_v3, 16 }
 0x541   :  { %v3729_v34 = vadd.f32 %v13126_v27, %v3615_v23  ;;  %v4046_v56 = vadd.f32 %v10540_v43, %v3914_v32  ;;  %v4685_v23 = vrot.slane %v13134_v55, 6  ;;  %v13135_v27 = vld [vmem:[#allocation144_spill] sm:$0xff]  ;;  %v13137_v32 = vshrl.u32 %v10575_v5, 16 }
 0x542   :  { %4619 = vmatpush.bf16.xpose.msrb.mxu0 %v13123_v41  ;;  %4660 = vmatpush.bf16.xpose.msrb.mxu3 %v13124_v6  ;;  %v10813_v10 = vadd.f32 %v4321_v8, %v4259_v52  ;;  %v4347_v51 = vpop.f32.mrf.mxu3  ;;  %v4681_v21 = vrot.slane %v13132_v37, 6 }
 0x543   :  { %v3827_v59 = vadd.f32 %v10400_v50, %v3729_v34  ;;  %v4146_v16 = vadd.f32 %v10673_v15, %v4046_v56  ;;  %v10819_v31 = vadd.f32 %v4347_v51, %v10691_v33  ;;  %v13131_v50 = vshrl.u32 %v10554_v3, 16  ;;  %v13139_v51 = vld [vmem:[#allocation148_spill] sm:$0xff] }
 0x544   :  { %v4689_v33 = vshrl.u32 %v10594_v19, 16  ;;  %v4695_v52 = vrot.slane %v13137_v32, 5  ;;  %v13138_v56 = vshll.u32 %v10594_v19, 16 }
 0x545   :  { %v3915_v13 = vadd.f32 %v10478_v47, %v3827_v59  ;;  %v4260_v28 = vadd.f32 %v4237_v26, %v4146_v16  ;;  %v4680_v43 = vrot.slane %v13131_v50, 5  ;;  %v13133_v47 = vshrl.u32 %v10559_v29, 16  ;;  %v13136_v26 = vld [vmem:[#allocation146_spill] sm:$0xff] }
 0x546   :  { %4633 = vmatpush.bf16.xpose.msrb.mxu1 %v13127_v9  ;;  %v4691_v59 = vrot.slane %v4689_v33, 5  ;;  %v13144_v33 = vld [vmem:[#allocation149_spill] sm:$0xff] }
 0x547   :  { %4647 = vmatpush.bf16.xpose.msrb.mxu2 %v13128_v22  ;;  %v4047_v61 = vadd.f32 %v10546_v30, %v3915_v13  ;;  %v4684_v15 = vrot.slane %v13133_v47, 5  ;;  %v4335_v48 = vpop.f32.mrf.mxu2  ;;  %v4682_v42 = vor.u32 %v4681_v21, %v4680_v43  ;;  %v4692_v13 = vrot.slane %v13138_v56, 6  ;;  %v13143_v21 = vld [vmem:[#allocation147_spill] sm:$0xff] }
 0x548   :  { %v10834_v30 = vadd.f32 %v4335_v48, %v4260_v28  ;;  %v13141_v28 = vshrl.u32 %v10580_v12, 16  ;;  %v4704_v47 = vshrl.u32 %v10615_v24, 16  ;;  %v13145_v56 = vshll.u32 %v10615_v24, 16 }
 0x549   :  { %v4147_v4 = vadd.f32 %v10680_v0, %v4047_v61  ;;  %v4686_v8 = vor.u32 %v4685_v23, %v4684_v15  ;;  %v13140_v0 = vshll.u32 %v10575_v5, 16  ;;  %v4683_v15 = vrot.slane %v4682_v42, 4 }
 0x54a   :  { %4620 = vmatpush.bf16.xpose.msrb.mxu0 %v13129_v45  ;;  %4661 = vmatpush.bf16.xpose.msrb.mxu3 %v13130_v17  ;;  %v4349_v16 = vpop.f32.mrf.mxu3  ;;  %v4699_v50 = vrot.slane %v13141_v28, 5  ;;  %v4693_v23 = vor.u32 %v4692_v13, %v4691_v59  ;;  %v4706_v32 = vrot.slane %v4704_v47, 5  ;;  %v13146_v28 = vld [vmem:[#allocation150_spill] sm:$0xff] }
 0x54b   :  { %v4261_v34 = vadd.f32 %v4251_v53, %v4147_v4  ;;  %v4696_v61 = vrot.slane %v13140_v0, 6  ;;  %v13142_v53 = vshll.u32 %v10580_v12, 16  ;;  %v4688_v55 = vrot.slane %v4686_v8, 4 }
 0x54c   :  { %v4707_v0 = vrot.slane %v13145_v56, 6 }
 0x54d   :  { %v4700_v37 = vrot.slane %v13142_v53, 6  ;;  %v10849_v43 = vadd.f32 %v4349_v16, %v4261_v34  ;;  %v4697_v4 = vor.u32 %v4696_v61, %v4695_v52  ;;  %v4687_v53 = vsel %vm8347_vm9, %v4683_v15, %v4686_v8  ;;  %v13147_v16 = vld [vmem:[#allocation153_spill] sm:$0xff] }
 0x54e   :  { %4634 = vmatpush.bf16.xpose.msrb.mxu1 %v13135_v27  ;;  %v4694_v34 = vsel %vm8347_vm9, %v4688_v55, %v4693_v23  ;;  %v4708_v13 = vor.u32 %v4707_v0, %v4706_v32  ;;  %v4715_v52 = vunpack.c.l.b16 %v4687_v53  ;;  %v5924_v23 = vld [vmem:[%s11548_s1 + $0x88] sm:$0xf]  ;;  %v13150_v53 = vld [vmem:[#allocation102_spill] sm:$0xff] }
 0x54f   :  { %4648 = vmatpush.bf16.xpose.msrb.mxu2 %v13136_v26  ;;  %v4701_v48 = vor.u32 %v4700_v37, %v4699_v50  ;;  %v4698_v42 = vrot.slane %v4697_v4, 4  ;;  %v4716_v61 = vunpack.c.l.b16 %v4694_v34  ;;  %v13149_v50 = vld [vmem:[#allocation154_spill] sm:$0xff]  ;;  %v6061_v4 = vld [vmem:[%s11548_s1 + $0x88] sm:$0x30] }
 0x550   :  { %v5925_v56 = vor.u32 %v6061_v4, %v5924_v23  ;;  %v13151_v34 = vld [vmem:[#allocation38_spill] sm:$0xff]  ;;  %v13156_v4 = vld [vmem:[#allocation7_spill] sm:$0xff] }
 0x551   :  { %v4703_v59 = vrot.slane %v4701_v48, 4  ;;  %v4702_v37 = vsel %vm8347_vm9, %v4698_v42, %v4701_v48  ;;  %v4719_v47 = vpack.c.b16 %v4716_v61, %v4715_v52  ;;  %v13153_v52 = vld [vmem:[#allocation158_spill] sm:$0xff] }
 0x552   :  { %4621 = vmatpush.bf16.xpose.msrb.mxu0 %v13139_v51  ;;  %4662 = vmatpush.bf16.xpose.msrb.mxu3 %v13143_v21  ;;  %v4717_v15 = vunpack.c.l.b16 %v4702_v37 }
 0x553   :  { %v4709_v8 = vsel %vm8347_vm9, %v4703_v59, %v4708_v13  ;;  %v10878_v48 = vsel %vm1059_vm2, %v4719_v47, 0  ;;  %v13152_v13 = vld [vmem:[#allocation169_spill] sm:$0xff]  ;;  %v13154_v47 = vld [vmem:[#allocation170_spill] sm:$0xff] }
 0x554   :  { %v4718_v55 = vunpack.c.l.b16 %v4709_v8 }
 0x556   :  { %4635 = vmatpush.bf16.xpose.msrb.mxu1 %v13144_v33  ;;  %v13148_v33 = vld [vmem:[#allocation151_spill] sm:$0xff]  ;;  %v4720_v32 = vpack.c.b16 %v4718_v55, %v4717_v15 }
 0x557   :  { %4649 = vmatpush.bf16.xpose.msrb.mxu2 %v13146_v28  ;;  %v13155_v15 = vld [vmem:[#allocation171_spill] sm:$0xff] }
 0x55a   :  { %4622 = vmatpush.bf16.xpose.msrb.mxu0 %v13147_v16  ;;  %4663 = vmatpush.bf16.xpose.msrb.mxu3 %v13148_v33 }
 0x55e   :  { %4636 = vmatpush.bf16.xpose.msrb.mxu1 %v13149_v50 }
 0x55f   :  { %4650 = vmatpush.bf16.xpose.msrb.mxu2 %v12968_v14 }
 0x562   :  { %4623 = vmatpush.bf16.xpose.msrb.mxu0 %v12969_v38  ;;  %4664 = vmatpush.bf16.xpose.msrb.mxu3 %v12970_v18  ;;  %v10885_v38 = vsel %vm1059_vm2, %v4720_v32, 0 }
 0x566   :  { %4637 = vmatpush.bf16.xpose.msrb.mxu1 %v12804_v40 }
 0x567   :  { %4651 = vmatpush.bf16.xpose.msrb.mxu2 %v12806_v11  ;;  %v4393_v11 = vpop.f32.mrf.mxu0 }
 0x568   :  { %v10899_v0 = vadd.f32 %v4393_v11, %v10779_v7  ;;  %v13158_v11 = vld [vmem:[#allocation8_spill] sm:$0xff] }
 0x569   :  { %5926 = vmatmul.msk.bf16.vlgmr.msrb.gmra.mxu0 %vm1059_vm2, %v5925_v56 }
 0x56a   :  { %4730 = vmatpush.bf16.xpose.msra.mxu0 %v12829_v25  ;;  %4665 = vmatpush.bf16.xpose.msrb.mxu3 %v8168_v20  ;;  %v4407_v42 = vpop.f32.mrf.mxu1 }
 0x56b   :  { %v10904_v59 = vadd.f32 %v4407_v42, %v10792_v63  ;;  %v13159_v42 = vld [vmem:[#allocation141_spill] sm:$0xff] }
 0x56d   :  { %5927 = vmatmul.msk.bf16.vlgmr.msrb.gmra.mxu1 %vm1059_vm2, %v5925_v56 }
 0x56e   :  { %4744 = vmatpush.bf16.xpose.msra.mxu1 %v10878_v48  ;;  %5928 = vmatmul.msk.bf16.vlgmr.msrb.gmra.mxu2 %vm1059_vm2, %v5925_v56 }
 0x56f   :  { %4758 = vmatpush.bf16.xpose.msra.mxu2 %v12984_v54  ;;  %v4395_v61 = vpop.f32.mrf.mxu0 }
 0x570   :  { %v10909_v37 = vadd.f32 %v4395_v61, %v10802_v2  ;;  %v13157_v2 = vld [vmem:[#allocation6_spill] sm:$0xff]  ;;  %v4796_v61 = vrot.slane %v10559_v29, 6 }
 0x571   :  { %5929 = vmatmul.msk.bf16.vlgmr.msrb.gmra.mxu3 %vm1059_vm2, %v5925_v56  ;;  %v4421_v8 = vpop.f32.mrf.mxu2 }
 0x572   :  { %4731 = vmatpush.bf16.xpose.msra.mxu0 %v12834_v46  ;;  %4772 = vmatpush.bf16.xpose.msra.mxu3 %v10885_v38  ;;  %v10913_v7 = vadd.f32 %v4421_v8, %v10808_v39  ;;  %v4409_v55 = vpop.f32.mrf.mxu1  ;;  %v13160_v8 = vld [vmem:[#allocation11_spill] sm:$0xff] }
 0x573   :  { %v10917_v63 = vadd.f32 %v4409_v55, %v10813_v10 }
 0x574   :  { %v4435_v23 = vpop.f32.mrf.mxu3 }
 0x575   :  { %v10921_v32 = vadd.f32 %v4435_v23, %v10819_v31  ;;  %v13161_v31 = vld [vmem:[#allocation9_spill] sm:$0xff]  ;;  %v5938_v23 = vrot.slane %v10554_v3, 10 }
 0x576   :  { %4745 = vmatpush.bf16.xpose.msra.mxu1 %v10366_v36  ;;  %v13230_v36 = vld [vmem:[#allocation112_spill] sm:$0xff] }
 0x577   :  { %4759 = vmatpush.bf16.xpose.msra.mxu2 %v12837_v44 }
 0x579   :  { %v4423_v56 = vpop.f32.mrf.mxu2 }
 0x57a   :  { %4732 = vmatpush.bf16.xpose.msra.mxu0 %v9015_v58  ;;  %4773 = vmatpush.bf16.xpose.msra.mxu3 %v10373_v60  ;;  %v10926_v39 = vadd.f32 %v4423_v56, %v10834_v30  ;;  %v4803_v30 = vrot.slane %v10580_v12, 6  ;;  %v13163_v56 = vld [vmem:[#allocation142_spill] sm:$0xff]  ;;  %v13167_v12 = vld [vmem:[#allocation16_spill] sm:$0xff] }
 0x57c   :  { %v4437_v10 = vpop.f32.mrf.mxu3  ;;  %v4805_v3 = vrot.slane %v4803_v30, 4 }
 0x57d   :  { %v10932_v55 = vadd.f32 %v4437_v10, %v10849_v43  ;;  %v13165_v10 = vld [vmem:[#allocation15_spill] sm:$0xff] }
 0x57e   :  { %4746 = vmatpush.bf16.xpose.msra.mxu1 %v13150_v53 }
 0x57f   :  { %4760 = vmatpush.bf16.xpose.msra.mxu2 %v13151_v34  ;;  %v13223_v34 = vld [vmem:[#allocation107_spill] sm:$0xff] }
 0x582   :  { %4733 = vmatpush.bf16.xpose.msra.mxu0 %v13152_v13  ;;  %4774 = vmatpush.bf16.xpose.msra.mxu3 %v13153_v52 }
 0x586   :  { %4747 = vmatpush.bf16.xpose.msra.mxu1 %v13154_v47 }
 0x587   :  { %4761 = vmatpush.bf16.xpose.msra.mxu2 %v13155_v15 }
 0x58a   :  { %4734 = vmatpush.bf16.xpose.msra.mxu0 %v13156_v4  ;;  %4775 = vmatpush.bf16.xpose.msra.mxu3 %v13157_v2  ;;  %v4798_v2 = vrot.slane %v4796_v61, 4  ;;  %v13162_v4 = vld [vmem:[#allocation12_spill] sm:$0xff] }
 0x58e   :  { %4748 = vmatpush.bf16.xpose.msra.mxu1 %v13158_v11  ;;  %v4799_v11 = vrot.slane %v10594_v19, 6  ;;  %v13166_v19 = vld [vmem:[#allocation13_spill] sm:$0xff] }
 0x58f   :  { %4762 = vmatpush.bf16.xpose.msra.mxu2 %v13159_v42  ;;  %v4797_v42 = vsel %vm9022_vm12, %v5938_v23, %v4796_v61 }
 0x590   :  { %v4800_v43 = vsel %vm9022_vm12, %v4798_v2, %v4799_v11  ;;  %v13168_v2 = vld [vmem:[#allocation17_spill] sm:$0xff] }
 0x591   :  { %v4814_v15 = vunpack.c.l.b16 %v4800_v43  ;;  %v13170_v43 = vld [vmem:[#allocation18_spill] sm:$0xff] }
 0x592   :  { %4735 = vmatpush.bf16.xpose.msra.mxu0 %v13160_v8  ;;  %4776 = vmatpush.bf16.xpose.msra.mxu3 %v13161_v31  ;;  %v5939_v31 = vrot.slane %v10575_v5, 10  ;;  %v4806_v8 = vrot.slane %v10615_v24, 6  ;;  %v5932_v24 = vld [vmem:[%s11548_s1 + $0x90] sm:$0xf] }
 0x594   :  { %v4807_v61 = vsel %vm9022_vm12, %v4805_v3, %v4806_v8 }
 0x595   :  { %v4816_v5 = vunpack.c.l.b16 %v4807_v61  ;;  %v13177_v61 = vld [vmem:[#allocation22_spill] sm:$0xff] }
 0x596   :  { %4749 = vmatpush.bf16.xpose.msra.mxu1 %v13162_v4  ;;  %v4813_v4 = vunpack.c.l.b16 %v4797_v42  ;;  %v6062_v42 = vld [vmem:[%s11548_s1 + $0x90] sm:$0x30] }
 0x597   :  { %4763 = vmatpush.bf16.xpose.msra.mxu2 %v13163_v56  ;;  %v4804_v56 = vsel %vm9022_vm12, %v5939_v31, %v4803_v30  ;;  %v13171_v31 = vld [vmem:[#allocation69_spill] sm:$0xff] }
 0x598   :  { %v4817_v11 = vpack.c.b16 %v4814_v15, %v4813_v4  ;;  %v4815_v23 = vunpack.c.l.b16 %v4804_v56  ;;  %v5933_v4 = vor.u32 %v6062_v42, %v5932_v24  ;;  %v13173_v30 = vld [vmem:[#allocation145_spill] sm:$0xff]  ;;  %v13182_v24 = vld [vmem:[#allocation24_spill] sm:$0xff] }
 0x599   :  { %v13174_v56 = vld [vmem:[#allocation21_spill] sm:$0xff] }
 0x59a   :  { %4736 = vmatpush.bf16.xpose.msra.mxu0 %v13165_v10  ;;  %4777 = vmatpush.bf16.xpose.msra.mxu3 %v13166_v19  ;;  %v13169_v10 = vld [vmem:[#allocation20_spill] sm:$0xff]  ;;  %v10964_v8 = vsel %vm1059_vm2, %v4817_v11, 0  ;;  %v4818_v15 = vpack.c.b16 %v4816_v5, %v4815_v23  ;;  %v13181_v5 = vld [vmem:[#allocation85_spill] sm:$0xff] }
 0x59b   :  { %13172 = vst [vmem:[#allocation63_spill] sm:$0xff] %v10964_v8  ;;  %v13179_v11 = vld [vmem:[#allocation156_spill] sm:$0xff] }
 0x59c   :  { %v10971_v3 = vsel %vm1059_vm2, %v4818_v15, 0  ;;  %v13180_v23 = vld [vmem:[#allocation84_spill] sm:$0xff] }
 0x59d   :  { %13176 = vst [vmem:[#allocation44_spill] sm:$0xff] %v10971_v3 }
 0x59e   :  { %4750 = vmatpush.bf16.xpose.msra.mxu1 %v13167_v12 }
 0x59f   :  { %4764 = vmatpush.bf16.xpose.msra.mxu2 %v13168_v2  ;;  %v13189_v2 = vld [vmem:[#allocation48_spill] sm:$0xff] }
 0x5a2   :  { %4737 = vmatpush.bf16.xpose.msra.mxu0 %v13169_v10  ;;  %4778 = vmatpush.bf16.xpose.msra.mxu3 %v13170_v43  ;;  %v13175_v10 = vld [vmem:[#allocation73_spill] sm:$0xff]  ;;  %v13187_v43 = vld [vmem:[#allocation40_spill] sm:$0xff] }
 0x5a6   :  { %4751 = vmatpush.bf16.xpose.msra.mxu1 %v13173_v30  ;;  %v4525_v42 = vpop.f32.mrf.mxu0 }
 0x5a7   :  { %4765 = vmatpush.bf16.xpose.msra.mxu2 %v13174_v56  ;;  %v4572_v15 = vadd.f32 %v4525_v42, %v10899_v0  ;;  %v13183_v56 = vld [vmem:[#allocation25_spill] sm:$0xff] }
 0x5a8   :  { %v13188_v0 = vld [vmem:[#allocation41_spill] sm:$0xff] }
 0x5a9   :  { %5934 = vmatmul.msk.bf16.vlgmr.msra.gmra.mxu0 %vm1059_vm2, %v5933_v4 }
 0x5aa   :  { %4828 = vmatpush.bf16.xpose.msrb.mxu0 %v13171_v31  ;;  %4779 = vmatpush.bf16.xpose.msra.mxu3 %v13177_v61  ;;  %v13178_v31 = vld [vmem:[#allocation82_spill] sm:$0xff] }
 0x5ad   :  { %5935 = vmatmul.msk.bf16.vlgmr.msra.gmra.mxu1 %vm1059_vm2, %v5933_v4 }
 0x5ae   :  { %4842 = vmatpush.bf16.xpose.msrb.mxu1 %v10964_v8  ;;  %5936 = vmatmul.msk.bf16.vlgmr.msra.gmra.mxu2 %vm1059_vm2, %v5933_v4  ;;  %v13185_v8 = vld [vmem:[#allocation37_spill] sm:$0xff] }
 0x5af   :  { %4856 = vmatpush.bf16.xpose.msrb.mxu2 %v13175_v10 }
 0x5b1   :  { %5937 = vmatmul.msk.bf16.vlgmr.msra.gmra.mxu3 %vm1059_vm2, %v5933_v4 }
 0x5b2   :  { %4829 = vmatpush.bf16.xpose.msrb.mxu0 %v13178_v31  ;;  %4870 = vmatpush.bf16.xpose.msrb.mxu3 %v10971_v3  ;;  %v13184_v3 = vld [vmem:[#allocation89_spill] sm:$0xff]  ;;  %v4539_v31 = vpop.f32.mrf.mxu1 }
 0x5b3   :  { %v4573_v10 = vadd.f32 %v4539_v31, %v10904_v59  ;;  %v13190_v31 = vld [vmem:[#allocation42_spill] sm:$0xff] }
 0x5b6   :  { %4843 = vmatpush.bf16.xpose.msrb.mxu1 %v13179_v11  ;;  %v13186_v11 = vld [vmem:[#allocation29_spill] sm:$0xff] }
 0x5b7   :  { %4857 = vmatpush.bf16.xpose.msrb.mxu2 %v13180_v23  ;;  %v4527_v23 = vpop.f32.mrf.mxu0 }
 0x5b8   :  { %v4576_v4 = vadd.f32 %v4527_v23, %v10909_v37  ;;  %v13191_v37 = vld [vmem:[#allocation50_spill] sm:$0xff] }
 0x5ba   :  { %4830 = vmatpush.bf16.xpose.msrb.mxu0 %v13181_v5  ;;  %4871 = vmatpush.bf16.xpose.msrb.mxu3 %v13182_v24  ;;  %v4553_v5 = vpop.f32.mrf.mxu2  ;;  %v4541_v42 = vpop.f32.mrf.mxu1 }
 0x5bb   :  { %v4574_v24 = vadd.f32 %v4553_v5, %v10913_v7  ;;  %v13192_v7 = vld [vmem:[#allocation49_spill] sm:$0xff] }
 0x5be   :  { %4844 = vmatpush.bf16.xpose.msrb.mxu1 %v13183_v56  ;;  %v4567_v56 = vpop.f32.mrf.mxu3 }
 0x5bf   :  { %4858 = vmatpush.bf16.xpose.msrb.mxu2 %v13184_v3  ;;  %v4577_v3 = vadd.f32 %v4541_v42, %v10917_v63  ;;  %v10997_v59 = vadd.f32 %v4567_v56, %v10921_v32  ;;  %v13194_v42 = vld [vmem:[#allocation52_spill] sm:$0xff]  ;;  %v13195_v32 = vld [vmem:[#allocation53_spill] sm:$0xff] }
 0x5c0   :  { %v13196_v56 = vld [vmem:[#allocation56_spill] sm:$0xff] }
 0x5c2   :  { %4831 = vmatpush.bf16.xpose.msrb.mxu0 %v13185_v8  ;;  %4872 = vmatpush.bf16.xpose.msrb.mxu3 %v13186_v11  ;;  %v4555_v11 = vpop.f32.mrf.mxu2  ;;  %v13215_v8 = vld [vmem:[#allocation134_spill] sm:$0xff] }
 0x5c3   :  { %v11002_v23 = vadd.f32 %v4555_v11, %v10926_v39  ;;  %v13199_v39 = vld [vmem:[#allocation60_spill] sm:$0xff]  ;;  %v13200_v11 = vld [vmem:[#allocation61_spill] sm:$0xff] }
 0x5c6   :  { %4845 = vmatpush.bf16.xpose.msrb.mxu1 %v13187_v43  ;;  %v4569_v5 = vpop.f32.mrf.mxu3 }
 0x5c7   :  { %4859 = vmatpush.bf16.xpose.msrb.mxu2 %v13188_v0  ;;  %v13193_v0 = vld [vmem:[#allocation54_spill] sm:$0xff]  ;;  %v11007_v63 = vadd.f32 %v4569_v5, %v10932_v55  ;;  %v13201_v55 = vld [vmem:[#allocation64_spill] sm:$0xff]  ;;  %v5942_v5 = vld [vmem:[%s11548_s1 + $0x98] sm:$0xf] }
 0x5ca   :  { %4832 = vmatpush.bf16.xpose.msrb.mxu0 %v13189_v2  ;;  %4873 = vmatpush.bf16.xpose.msrb.mxu3 %v13190_v31  ;;  %v13197_v31 = vld [vmem:[#allocation58_spill] sm:$0xff] }
 0x5ce   :  { %4846 = vmatpush.bf16.xpose.msrb.mxu1 %v13191_v37  ;;  %v13198_v37 = vld [vmem:[#allocation57_spill] sm:$0xff] }
 0x5cf   :  { %4860 = vmatpush.bf16.xpose.msrb.mxu2 %v13192_v7  ;;  %v13206_v7 = vld [vmem:[#allocation125_spill] sm:$0xff] }
 0x5d2   :  { %4833 = vmatpush.bf16.xpose.msrb.mxu0 %v13193_v0  ;;  %4874 = vmatpush.bf16.xpose.msrb.mxu3 %v13194_v42  ;;  %v6023_v0 = vld [vmem:[%s11547_s0 + $0xe4] sm:$0xff]  ;;  %v13205_v42 = vld [vmem:[#allocation65_spill] sm:$0xff] }
 0x5d6   :  { %4847 = vmatpush.bf16.xpose.msrb.mxu1 %v13195_v32 }
 0x5d7   :  { %4861 = vmatpush.bf16.xpose.msrb.mxu2 %v13196_v56  ;;  %v13202_v56 = vld [vmem:[#allocation62_spill] sm:$0xff] }
 0x5da   :  { %4834 = vmatpush.bf16.xpose.msrb.mxu0 %v13197_v31  ;;  %4875 = vmatpush.bf16.xpose.msrb.mxu3 %v13198_v37  ;;  %v6063_v31 = vld [vmem:[%s11548_s1 + $0x98] sm:$0x30]  ;;  %v13203_v37 = vld [vmem:[#allocation123_spill] sm:$0xff] }
 0x5db   :  { %v5943_v32 = vor.u32 %v6063_v31, %v5942_v5  ;;  %v13210_v31 = vld [vmem:[#allocation129_spill] sm:$0xff]  ;;  %v13213_v5 = vld [vmem:[#allocation74_spill] sm:$0xff] }
 0x5de   :  { %4848 = vmatpush.bf16.xpose.msrb.mxu1 %v13199_v39  ;;  %v6043_v39 = vld [vmem:[%s11547_s0 + $0x1d4] sm:$0xff] }
 0x5df   :  { %4862 = vmatpush.bf16.xpose.msrb.mxu2 %v13200_v11  ;;  %v4911_v11 = vsel %vm1059_vm2, %v6023_v0, 0  ;;  %v4914_v2 = vsel %vm1059_vm2, %v6043_v39, 0  ;;  %v13209_v0 = vld [vmem:[#allocation26_spill] sm:$0xff] }
 0x5e2   :  { %4835 = vmatpush.bf16.xpose.msrb.mxu0 %v13201_v55  ;;  %4876 = vmatpush.bf16.xpose.msrb.mxu3 %v13202_v56  ;;  %v13204_v55 = vld [vmem:[#allocation66_spill] sm:$0xff]  ;;  %v13207_v56 = vld [vmem:[#allocation68_spill] sm:$0xff] }
 0x5e6   :  { %4849 = vmatpush.bf16.xpose.msrb.mxu1 %v13204_v55  ;;  %v4625_v39 = vpop.f32.mrf.mxu0  ;;  %v11103_v55 = vld [vmem:[%s11547_s0 + $0xec] sm:$0x3] }
 0x5e7   :  { %4863 = vmatpush.bf16.xpose.msrb.mxu2 %v13205_v42  ;;  %v13212_v42 = vld [vmem:[#allocation28_spill] sm:$0xff]  ;;  %v12221_v52 = vshll.u32 %v11103_v55, 16 }
 0x5e9   :  { %5944 = vmatmul.msk.bf16.vlgmr.msrb.gmra.mxu0 %vm1059_vm2, %v5943_v32 }
 0x5ea   :  { %4916 = vmatpush.bf16.xpose.msra.mxu0 %v13203_v37  ;;  %4877 = vmatpush.bf16.xpose.msrb.mxu3 %v13207_v56  ;;  %v13208_v37 = vld [vmem:[#allocation127_spill] sm:$0xff]  ;;  %v13217_v56 = vld [vmem:[#allocation86_spill] sm:$0xff] }
 0x5ed   :  { %5945 = vmatmul.msk.bf16.vlgmr.msrb.gmra.mxu1 %vm1059_vm2, %v5943_v32 }
 0x5ee   :  { %4930 = vmatpush.bf16.xpose.msra.mxu1 %v4911_v11  ;;  %5946 = vmatmul.msk.bf16.vlgmr.msrb.gmra.mxu2 %vm1059_vm2, %v5943_v32  ;;  %v11046_v11 = vadd.f32 %v4625_v39, %v4572_v15  ;;  %v11060_v15 = vld [vmem:[%s11547_s0 + $0xe4] sm:$0xf] }
 0x5ef   :  { %4944 = vmatpush.bf16.xpose.msra.mxu2 %v13206_v7  ;;  %v13211_v7 = vld [vmem:[#allocation131_spill] sm:$0xff] }
 0x5f1   :  { %5947 = vmatmul.msk.bf16.vlgmr.msrb.gmra.mxu3 %vm1059_vm2, %v5943_v32 }
 0x5f2   :  { %4917 = vmatpush.bf16.xpose.msra.mxu0 %v13208_v37  ;;  %4958 = vmatpush.bf16.xpose.msra.mxu3 %v4914_v2  ;;  %v13214_v2 = vld [vmem:[#allocation133_spill] sm:$0xff]  ;;  %v4639_v37 = vpop.f32.mrf.mxu1 }
 0x5f3   :  { %v11050_v43 = vadd.f32 %v4639_v37, %v4573_v10  ;;  %v11065_v10 = vld [vmem:[%s11547_s0 + $0xe8] sm:$0xf] }
 0x5f4   :  { %v12214_v37 = vshrl.u32 %v11065_v10, 16 }
 0x5f6   :  { %4931 = vmatpush.bf16.xpose.msra.mxu1 %v13209_v0  ;;  %v13216_v0 = vld [vmem:[#allocation81_spill] sm:$0xff] }
 0x5f7   :  { %4945 = vmatpush.bf16.xpose.msra.mxu2 %v13210_v31  ;;  %v4627_v31 = vpop.f32.mrf.mxu0 }
 0x5f8   :  { %v11054_v32 = vadd.f32 %v4627_v31, %v4576_v4  ;;  %v13219_v31 = vld [vmem:[#allocation104_spill] sm:$0xff] }
 0x5fa   :  { %4918 = vmatpush.bf16.xpose.msra.mxu0 %v13211_v7  ;;  %4959 = vmatpush.bf16.xpose.msra.mxu3 %v13212_v42  ;;  %v4653_v7 = vpop.f32.mrf.mxu2  ;;  %v4641_v39 = vpop.f32.mrf.mxu1 }
 0x5fb   :  { %v11067_v42 = vadd.f32 %v4653_v7, %v4574_v24  ;;  %v11070_v4 = vadd.f32 %v4641_v39, %v4577_v3  ;;  %v13220_v24 = vld [vmem:[#allocation88_spill] sm:$0xff]  ;;  %v11089_v7 = vld [vmem:[%s11547_s0 + $0x1d8] sm:$0xf] }
 0x5fc   :  { %v11084_v3 = vld [vmem:[%s11547_s0 + $0x1d4] sm:$0xf]  ;;  %v13224_v29 = vshll.u32 %v11089_v7, 16 }
 0x5fd   :  { %v12217_v19 = vshrl.u32 %v11084_v3, 16 }
 0x5fe   :  { %4932 = vmatpush.bf16.xpose.msra.mxu1 %v13213_v5  ;;  %v12210_v5 = vshrl.u32 %v11060_v15, 16  ;;  %v5016_v60 = vrot.slane %v13224_v29, 5 }
 0x5ff   :  { %4946 = vmatpush.bf16.xpose.msra.mxu2 %v13214_v2  ;;  %v12213_v2 = vshll.u32 %v11065_v10, 16  ;;  %v5007_v53 = vrot.slane %v12217_v19, 4  ;;  %v13227_v19 = vld [vmem:[#allocation109_spill] sm:$0xff] }
 0x602   :  { %4919 = vmatpush.bf16.xpose.msra.mxu0 %v13215_v8  ;;  %4960 = vmatpush.bf16.xpose.msra.mxu3 %v13216_v0  ;;  %v13218_v8 = vld [vmem:[#allocation136_spill] sm:$0xff]  ;;  %v4667_v0 = vpop.f32.mrf.mxu3 }
 0x603   :  { %v11078_v12 = vadd.f32 %v4667_v0, %v10997_v59  ;;  %v4992_v59 = vrot.slane %v12213_v2, 5  ;;  %v4996_v0 = vrot.slane %v12214_v37, 4  ;;  %v13222_v37 = vld [vmem:[#allocation108_spill] sm:$0xff] }
 0x606   :  { %4933 = vmatpush.bf16.xpose.msra.mxu1 %v13217_v56  ;;  %v12211_v56 = vshll.u32 %v11060_v15, 16 }
 0x607   :  { %4947 = vmatpush.bf16.xpose.msra.mxu2 %v13218_v8  ;;  %v4983_v8 = vrot.slane %v12210_v5, 4  ;;  %v12216_v5 = vshll.u32 %v11084_v3, 16 }
 0x608   :  { %v4986_v39 = vrot.slane %v12211_v56, 5 }
 0x609   :  { %v5010_v56 = vrot.slane %v12216_v5, 5  ;;  %v5002_v5 = vrot.slane %v12221_v52, 5 }
 0x60a   :  { %4920 = vmatpush.bf16.xpose.msra.mxu0 %v13219_v31  ;;  %4961 = vmatpush.bf16.xpose.msra.mxu3 %v13220_v24  ;;  %v4655_v31 = vpop.f32.mrf.mxu2  ;;  %v13221_v24 = vld [vmem:[#allocation105_spill] sm:$0xff]  ;;  %v4987_v47 = vor.u32 %v4986_v39, %v4983_v8  ;;  %v4669_v13 = vpop.f32.mrf.mxu3  ;;  %v13226_v8 = vld [vmem:[#allocation110_spill] sm:$0xff] }
 0x60b   :  { %v11110_v2 = vadd.f32 %v4655_v31, %v11002_v23  ;;  %v13225_v23 = vshrl.u32 %v11089_v7, 16  ;;  %v5011_v29 = vor.u32 %v5010_v56, %v5007_v53 }
 0x60c   :  { %v4988_v39 = vrot.slane %v4987_v47, 4 }
 0x60d   :  { %v5020_v31 = vrot.slane %v13225_v23, 4  ;;  %v5012_v47 = vrot.slane %v5011_v29, 4  ;;  %v5950_v29 = vld [vmem:[%s11548_s1 + $0xa0] sm:$0xf] }
 0x60e   :  { %4934 = vmatpush.bf16.xpose.msra.mxu1 %v13221_v24  ;;  %v4997_v24 = vor.u32 %v4996_v0, %v4992_v59 }
 0x60f   :  { %4948 = vmatpush.bf16.xpose.msra.mxu2 %v13222_v37  ;;  %v11124_v37 = vadd.f32 %v4669_v13, %v11007_v63  ;;  %v5021_v58 = vor.u32 %v5020_v31, %v5016_v60  ;;  %v13228_v13 = vld [vmem:[#allocation113_spill] sm:$0xff]  ;;  %v13232_v31 = vld [vmem:[#allocation114_spill] sm:$0xff] }
 0x610   :  { %v4998_v0 = vrot.slane %v4997_v24, 4 }
 0x611   :  { %v5022_v24 = vrot.slane %v5021_v58, 4 }
 0x612   :  { %4921 = vmatpush.bf16.xpose.msra.mxu0 %v13223_v34  ;;  %4962 = vmatpush.bf16.xpose.msra.mxu3 %v13226_v8  ;;  %v11130_v34 = vld [vmem:[%s11547_s0 + $0x1dc] sm:$0x3]  ;;  %v4993_v8 = vsel %vm6353_vm3, %v4988_v39, %v4992_v59  ;;  %v5003_v44 = vsel %vm6353_vm3, %v4998_v0, %v5002_v5  ;;  %v13234_v0 = vld [vmem:[#allocation116_spill] sm:$0xff] }
 0x613   :  { %v5024_v23 = vshll.u32 %v11130_v34, 16  ;;  %v5033_v53 = vunpack.c.l.b16 %v4993_v8  ;;  %v5034_v56 = vunpack.c.l.b16 %v5003_v44  ;;  %v13233_v5 = vld [vmem:[#allocation117_spill] sm:$0xff]  ;;  %v6064_v44 = vld [vmem:[%s11548_s1 + $0xa0] sm:$0x30]  ;;  %v13235_v8 = vld [vmem:[#allocation119_spill] sm:$0xff] }
 0x615   :  { %v5026_v52 = vrot.slane %v5024_v23, 5 }
 0x616   :  { %4935 = vmatpush.bf16.xpose.msra.mxu1 %v13227_v19  ;;  %v13231_v19 = vld [vmem:[#allocation115_spill] sm:$0xff] }
 0x617   :  { %4949 = vmatpush.bf16.xpose.msra.mxu2 %v13228_v13  ;;  %v5017_v13 = vsel %vm6353_vm3, %v5012_v47, %v5016_v60  ;;  %v5027_v59 = vsel %vm6353_vm3, %v5022_v24, %v5026_v52  ;;  %v13236_v60 = vld [vmem:[#allocation67_spill] sm:$0xff]  ;;  %v5951_v47 = vor.u32 %v6064_v44, %v5950_v29  ;;  %v13237_v24 = vld [vmem:[#allocation118_spill] sm:$0xff] }
 0x618   :  { %v5035_v39 = vunpack.c.l.b16 %v5017_v13  ;;  %v5036_v58 = vunpack.c.l.b16 %v5027_v59  ;;  %v13241_v13 = vld [vmem:[#allocation83_spill] sm:$0xff]  ;;  %v13242_v59 = vld [vmem:[#allocation70_spill] sm:$0xff] }
 0x619   :  { %v13246_v29 = vld [vmem:[#allocation126_spill] sm:$0xff]  ;;  %v13247_v44 = vld [vmem:[#allocation103_spill] sm:$0xff] }
 0x61a   :  { %4922 = vmatpush.bf16.xpose.msra.mxu0 %v13230_v36  ;;  %4963 = vmatpush.bf16.xpose.msra.mxu3 %v13231_v19  ;;  %v5037_v36 = vpack.c.b16 %v5034_v56, %v5033_v53  ;;  %v5038_v63 = vpack.c.b16 %v5036_v58, %v5035_v39  ;;  %v13238_v19 = vld [vmem:[#allocation120_spill] sm:$0xff]  ;;  %v13239_v53 = vld [vmem:[#allocation75_spill] sm:$0xff] }
 0x61b   :  { %v13245_v39 = vld [vmem:[#allocation72_spill] sm:$0xff] }
 0x61c   :  { %v5043_v52 = vsel %vm1059_vm2, %v5037_v36, 0  ;;  %v5046_v56 = vsel %vm1059_vm2, %v5038_v63, 0  ;;  %v13244_v36 = vld [vmem:[#allocation99_spill] sm:$0xff]  ;;  %v13249_v63 = vld [vmem:[#allocation128_spill] sm:$0xff] }
 0x61e   :  { %4936 = vmatpush.bf16.xpose.msra.mxu1 %v13232_v31  ;;  %v13240_v31 = vld [vmem:[#allocation121_spill] sm:$0xff] }
 0x61f   :  { %4950 = vmatpush.bf16.xpose.msra.mxu2 %v13233_v5  ;;  %v13243_v5 = vld [vmem:[#allocation91_spill] sm:$0xff] }
 0x622   :  { %4923 = vmatpush.bf16.xpose.msra.mxu0 %v13234_v0  ;;  %4964 = vmatpush.bf16.xpose.msra.mxu3 %v13235_v8 }
 0x626   :  { %4937 = vmatpush.bf16.xpose.msra.mxu1 %v13237_v24  ;;  %v4739_v58 = vpop.f32.mrf.mxu0 }
 0x627   :  { %4951 = vmatpush.bf16.xpose.msra.mxu2 %v13238_v19  ;;  %v11176_v0 = vadd.f32 %v4739_v58, %v11046_v11  ;;  %v13255_v58 = vld [vmem:[#allocation5_spill] sm:$0xff] }
 0x629   :  { %5960 = vmatmul.msk.bf16.vlgmr.msra.gmra.mxu0 %vm1059_vm2, %v5951_v47 }
 0x62a   :  { %5048 = vmatpush.bf16.xpose.msrb.mxu0 %v13236_v60  ;;  %4965 = vmatpush.bf16.xpose.msra.mxu3 %v13240_v31  ;;  %v4753_v8 = vpop.f32.mrf.mxu1 }
 0x62b   :  { %v11181_v60 = vadd.f32 %v4753_v8, %v11050_v43 }
 0x62d   :  { %5961 = vmatmul.msk.bf16.vlgmr.msra.gmra.mxu1 %vm1059_vm2, %v5951_v47 }
 0x62e   :  { %5062 = vmatpush.bf16.xpose.msrb.mxu1 %v5043_v52  ;;  %5962 = vmatmul.msk.bf16.vlgmr.msra.gmra.mxu2 %vm1059_vm2, %v5951_v47  ;;  %v13248_v52 = vld [vmem:[#allocation106_spill] sm:$0xff] }
 0x62f   :  { %5076 = vmatpush.bf16.xpose.msrb.mxu2 %v13239_v53  ;;  %v13250_v53 = vld [vmem:[#allocation96_spill] sm:$0xff] }
 0x631   :  { %5963 = vmatmul.msk.bf16.vlgmr.msra.gmra.mxu3 %vm1059_vm2, %v5951_v47  ;;  %v4741_v47 = vpop.f32.mrf.mxu0  ;;  %v4767_v19 = vpop.f32.mrf.mxu2 }
 0x632   :  { %5049 = vmatpush.bf16.xpose.msrb.mxu0 %v13241_v13  ;;  %5090 = vmatpush.bf16.xpose.msrb.mxu3 %v5046_v56  ;;  %v11186_v24 = vadd.f32 %v4741_v47, %v11054_v32  ;;  %v11190_v11 = vadd.f32 %v4767_v19, %v11067_v42  ;;  %v13251_v56 = vld [vmem:[#allocation111_spill] sm:$0xff]  ;;  %v4755_v31 = vpop.f32.mrf.mxu1  ;;  %v13253_v32 = vld [vmem:[#allocation98_spill] sm:$0xff]  ;;  %v5119_v47 = vrot.slane %v11103_v55, 5 }
 0x633   :  { %v11194_v43 = vadd.f32 %v4755_v31, %v11070_v4  ;;  %v13258_v19 = vld [vmem:[#allocation19_spill] sm:$0xff] }
 0x634   :  { %v4781_v13 = vpop.f32.mrf.mxu3 }
 0x636   :  { %5063 = vmatpush.bf16.xpose.msrb.mxu1 %v13242_v59  ;;  %v13252_v59 = vld [vmem:[#allocation3_spill] sm:$0xff] }
 0x637   :  { %5077 = vmatpush.bf16.xpose.msrb.mxu2 %v13243_v5  ;;  %v11198_v5 = vadd.f32 %v4781_v13, %v11078_v12  ;;  %v13257_v12 = vld [vmem:[#allocation10_spill] sm:$0xff]  ;;  %v13261_v13 = vld [vmem:[#allocation31_spill] sm:$0xff] }
 0x63a   :  { %5050 = vmatpush.bf16.xpose.msrb.mxu0 %v13244_v36  ;;  %5091 = vmatpush.bf16.xpose.msrb.mxu3 %v13245_v39  ;;  %v4769_v36 = vpop.f32.mrf.mxu2  ;;  %v13254_v39 = vld [vmem:[#allocation4_spill] sm:$0xff] }
 0x63b   :  { %v11203_v42 = vadd.f32 %v4769_v36, %v11110_v2  ;;  %v5123_v2 = vrot.slane %v11089_v7, 5  ;;  %v5126_v36 = vrot.slane %v11130_v34, 5 }
 0x63c   :  { %v4783_v4 = vpop.f32.mrf.mxu3 }
 0x63d   :  { %v11209_v8 = vadd.f32 %v4783_v4, %v11124_v37 }
 0x63e   :  { %5064 = vmatpush.bf16.xpose.msrb.mxu1 %v13246_v29  ;;  %v5116_v29 = vrot.slane %v11065_v10, 5 }
 0x63f   :  { %5078 = vmatpush.bf16.xpose.msrb.mxu2 %v13247_v44  ;;  %v13256_v44 = vld [vmem:[#allocation14_spill] sm:$0xff] }
 0x642   :  { %5051 = vmatpush.bf16.xpose.msrb.mxu0 %v13248_v52  ;;  %5092 = vmatpush.bf16.xpose.msrb.mxu3 %v13249_v63  ;;  %v5972_v52 = vrot.slane %v11060_v15, 9  ;;  %v5118_v63 = vrot.slane %v5116_v29, 4 }
 0x644   :  { %v5117_v31 = vsel %vm7731_vm6, %v5972_v52, %v5116_v29  ;;  %v5120_v37 = vsel %vm7731_vm6, %v5118_v63, %v5119_v47  ;;  %v13264_v52 = vld [vmem:[#allocation39_spill] sm:$0xff] }
 0x645   :  { %v5134_v4 = vunpack.c.l.b16 %v5120_v37  ;;  %v6065_v37 = vld [vmem:[%s11548_s1 + $0xa8] sm:$0x30] }
 0x646   :  { %5065 = vmatpush.bf16.xpose.msrb.mxu1 %v13250_v53  ;;  %v13259_v53 = vld [vmem:[#allocation23_spill] sm:$0xff] }
 0x647   :  { %5079 = vmatpush.bf16.xpose.msrb.mxu2 %v13251_v56 }
 0x64a   :  { %5052 = vmatpush.bf16.xpose.msrb.mxu0 %v13252_v59  ;;  %5093 = vmatpush.bf16.xpose.msrb.mxu3 %v13253_v32  ;;  %v5973_v59 = vrot.slane %v11084_v3, 9  ;;  %v5125_v32 = vrot.slane %v5123_v2, 4 }
 0x64c   :  { %v5127_v29 = vsel %vm7731_vm6, %v5125_v32, %v5126_v36  ;;  %v13267_v32 = vld [vmem:[#allocation51_spill] sm:$0xff] }
 0x64d   :  { %v13268_v36 = vld [vmem:[#allocation55_spill] sm:$0xff] }
 0x64e   :  { %5066 = vmatpush.bf16.xpose.msrb.mxu1 %v13254_v39  ;;  %v13262_v39 = vld [vmem:[#allocation27_spill] sm:$0xff] }
 0x64f   :  { %5080 = vmatpush.bf16.xpose.msrb.mxu2 %v13255_v58  ;;  %v5133_v58 = vunpack.c.l.b16 %v5117_v31  ;;  %v5966_v31 = vld [vmem:[%s11548_s1 + $0xa8] sm:$0xf] }
 0x651   :  { %v5137_v63 = vpack.c.b16 %v5134_v4, %v5133_v58  ;;  %v13269_v58 = vld [vmem:[#allocation59_spill] sm:$0xff]  ;;  %v13270_v4 = vld [vmem:[#allocation161_spill] sm:$0xff] }
 0x652   :  { %5053 = vmatpush.bf16.xpose.msrb.mxu0 %v13256_v44  ;;  %5094 = vmatpush.bf16.xpose.msrb.mxu3 %v13257_v12  ;;  %v13263_v44 = vld [vmem:[#allocation35_spill] sm:$0xff]  ;;  %v5124_v12 = vsel %vm7731_vm6, %v5973_v59, %v5123_v2  ;;  %v5967_v59 = vor.u32 %v6065_v37, %v5966_v31 }
 0x653   :  { %v5135_v47 = vunpack.c.l.b16 %v5124_v12  ;;  %v5143_v2 = vsel %vm1059_vm2, %v5137_v63, 0  ;;  %v13274_v12 = vld [vmem:[#allocation124_spill] sm:$0xff]  ;;  %v13275_v63 = vld [vmem:[#allocation79_spill] sm:$0xff] }
 0x656   :  { %5067 = vmatpush.bf16.xpose.msrb.mxu1 %v13258_v19  ;;  %v5136_v19 = vunpack.c.l.b16 %v5127_v29 }
 0x657   :  { %5081 = vmatpush.bf16.xpose.msrb.mxu2 %v13259_v53  ;;  %v13265_v53 = vld [vmem:[#allocation47_spill] sm:$0xff] }
 0x658   :  { %v5138_v56 = vpack.c.b16 %v5136_v19, %v5135_v47  ;;  %v13276_v47 = vld [vmem:[#allocation166_spill] sm:$0xff] }
 0x65a   :  { %5054 = vmatpush.bf16.xpose.msrb.mxu0 %v13261_v13  ;;  %5095 = vmatpush.bf16.xpose.msrb.mxu3 %v13262_v39  ;;  %v13266_v13 = vld [vmem:[#allocation43_spill] sm:$0xff]  ;;  %v5146_v39 = vsel %vm1059_vm2, %v5138_v56, 0 }
 0x65e   :  { %5068 = vmatpush.bf16.xpose.msrb.mxu1 %v13263_v44  ;;  %v13272_v44 = vld [vmem:[#allocation163_spill] sm:$0xff] }
 0x65f   :  { %5082 = vmatpush.bf16.xpose.msrb.mxu2 %v13264_v52 }
 0x662   :  { %5055 = vmatpush.bf16.xpose.msrb.mxu0 %v13265_v53  ;;  %5096 = vmatpush.bf16.xpose.msrb.mxu3 %v13266_v13 }
 0x666   :  { %5069 = vmatpush.bf16.xpose.msrb.mxu1 %v13267_v32  ;;  %v4837_v29 = vpop.f32.mrf.mxu0 }
 0x667   :  { %5083 = vmatpush.bf16.xpose.msrb.mxu2 %v13268_v36  ;;  %v11256_v52 = vadd.f32 %v4837_v29, %v11176_v0  ;;  %v5221_v36 = vshrl.u32 %v11103_v55, 16  ;;  %v13283_v29 = vshll.u32 %v11084_v3, 16 }
 0x669   :  { %5968 = vmatmul.msk.bf16.vlgmr.msrb.gmra.mxu0 %vm1059_vm2, %v5967_v59 }
 0x66a   :  { %5148 = vmatpush.bf16.xpose.msra.mxu0 %v12804_v40  ;;  %5097 = vmatpush.bf16.xpose.msrb.mxu3 %v13269_v58  ;;  %v13271_v40 = vld [vmem:[#allocation122_spill] sm:$0xff]  ;;  %v4851_v19 = vpop.f32.mrf.mxu1 }
 0x66b   :  { %v11261_v53 = vadd.f32 %v4851_v19, %v11181_v60  ;;  %v5236_v19 = vshrl.u32 %v11130_v34, 16 }
 0x66d   :  { %5969 = vmatmul.msk.bf16.vlgmr.msrb.gmra.mxu1 %vm1059_vm2, %v5967_v59 }
 0x66e   :  { %5162 = vmatpush.bf16.xpose.msra.mxu1 %v5143_v2  ;;  %5970 = vmatmul.msk.bf16.vlgmr.msrb.gmra.mxu2 %vm1059_vm2, %v5967_v59  ;;  %v4839_v31 = vpop.f32.mrf.mxu0 }
 0x66f   :  { %5176 = vmatpush.bf16.xpose.msra.mxu2 %v8168_v20  ;;  %v13273_v20 = vld [vmem:[#allocation165_spill] sm:$0xff]  ;;  %v11266_v37 = vadd.f32 %v4839_v31, %v11186_v24  ;;  %v13278_v24 = vshll.u32 %v11060_v15, 16 }
 0x671   :  { %5971 = vmatmul.msk.bf16.vlgmr.msrb.gmra.mxu3 %vm1059_vm2, %v5967_v59  ;;  %v4865_v13 = vpop.f32.mrf.mxu2 }
 0x672   :  { %5149 = vmatpush.bf16.xpose.msra.mxu0 %v13270_v4  ;;  %5190 = vmatpush.bf16.xpose.msra.mxu3 %v5146_v39  ;;  %v11270_v0 = vadd.f32 %v4865_v13, %v11190_v11  ;;  %v4853_v2 = vpop.f32.mrf.mxu1  ;;  %v5213_v11 = vrot.slane %v13278_v24, 6  ;;  %v5239_v24 = vrot.slane %v5024_v23, 6 }
 0x673   :  { %v11274_v60 = vadd.f32 %v4853_v2, %v11194_v43  ;;  %v13280_v43 = vshll.u32 %v11065_v10, 16 }
 0x674   :  { %v4879_v56 = vpop.f32.mrf.mxu3 }
 0x675   :  { %v5217_v32 = vrot.slane %v13280_v43, 6 }
 0x676   :  { %5163 = vmatpush.bf16.xpose.msra.mxu1 %v13271_v40  ;;  %v5223_v40 = vrot.slane %v5221_v36, 5 }
 0x677   :  { %5177 = vmatpush.bf16.xpose.msra.mxu2 %v13272_v44  ;;  %v13282_v44 = vshll.u32 %v11103_v55, 16 }
 0x67a   :  { %5150 = vmatpush.bf16.xpose.msra.mxu0 %v13273_v20  ;;  %5191 = vmatpush.bf16.xpose.msra.mxu3 %v13274_v12  ;;  %v5224_v20 = vrot.slane %v13282_v44, 6  ;;  %v13295_v44 = vld [vmem:[#allocation170_spill] sm:$0xff] }
 0x67c   :  { %v4881_v12 = vpop.f32.mrf.mxu3 }
 0x67d   :  { %v11308_v31 = vadd.f32 %v4881_v12, %v11209_v8  ;;  %v5328_v12 = vrot.slane %v11065_v10, 6 }
 0x67e   :  { %5164 = vmatpush.bf16.xpose.msra.mxu1 %v13275_v63 }
 0x67f   :  { %5178 = vmatpush.bf16.xpose.msra.mxu2 %v13276_v47 }
 0x682   :  { %5151 = vmatpush.bf16.xpose.msra.mxu0 %v13110_v62  ;;  %5192 = vmatpush.bf16.xpose.msra.mxu3 %v13112_v57  ;;  %v11278_v57 = vadd.f32 %v4879_v56, %v11198_v5  ;;  %v13277_v62 = vshrl.u32 %v11060_v15, 16  ;;  %v5225_v56 = vor.u32 %v5224_v20, %v5223_v40  ;;  %v13296_v20 = vld [vmem:[#allocation171_spill] sm:$0xff] }
 0x686   :  { %5165 = vmatpush.bf16.xpose.msra.mxu1 %v13117_v49  ;;  %v5212_v49 = vrot.slane %v13277_v62, 5 }
 0x687   :  { %5179 = vmatpush.bf16.xpose.msra.mxu2 %v13119_v35  ;;  %v13279_v35 = vshrl.u32 %v11065_v10, 16 }
 0x688   :  { %v5214_v58 = vor.u32 %v5213_v11, %v5212_v49  ;;  %v5238_v49 = vrot.slane %v5236_v19, 5  ;;  %v13337_v19 = vld [vmem:[#allocation57_spill] sm:$0xff] }
 0x689   :  { %v5216_v59 = vrot.slane %v13279_v35, 5 }
 0x68a   :  { %5152 = vmatpush.bf16.xpose.msra.mxu0 %v13123_v41  ;;  %5193 = vmatpush.bf16.xpose.msra.mxu3 %v13124_v6  ;;  %v4867_v41 = vpop.f32.mrf.mxu2  ;;  %v13281_v6 = vshrl.u32 %v11084_v3, 16  ;;  %v5215_v13 = vrot.slane %v5214_v58, 4 }
 0x68b   :  { %v11292_v5 = vadd.f32 %v4867_v41, %v11203_v42  ;;  %v5218_v4 = vor.u32 %v5217_v32, %v5216_v59  ;;  %v13284_v42 = vshrl.u32 %v11089_v7, 16  ;;  %v5240_v59 = vor.u32 %v5239_v24, %v5238_v49  ;;  %v13286_v32 = vld [vmem:[#allocation149_spill] sm:$0xff] }
 0x68c   :  { %v5227_v39 = vrot.slane %v13281_v6, 5  ;;  %v6066_v6 = vld [vmem:[%s11548_s1 + $0xb0] sm:$0x30] }
 0x68d   :  { %v5231_v63 = vrot.slane %v13284_v42, 5  ;;  %v5220_v2 = vrot.slane %v5218_v4, 4  ;;  %v5219_v11 = vsel %vm8347_vm9, %v5215_v13, %v5218_v4  ;;  %v13293_v4 = vld [vmem:[#allocation169_spill] sm:$0xff]  ;;  %v5330_v42 = vrot.slane %v5328_v12, 4 }
 0x68e   :  { %5166 = vmatpush.bf16.xpose.msra.mxu1 %v13127_v9  ;;  %v5228_v9 = vrot.slane %v13283_v29, 6  ;;  %v13297_v29 = vld [vmem:[#allocation7_spill] sm:$0xff] }
 0x68f   :  { %5180 = vmatpush.bf16.xpose.msra.mxu2 %v13128_v22  ;;  %v13285_v22 = vshll.u32 %v11089_v7, 16  ;;  %v5226_v8 = vsel %vm8347_vm9, %v5220_v2, %v5225_v56  ;;  %v13302_v2 = vld [vmem:[#allocation11_spill] sm:$0xff]  ;;  %v5991_v56 = vrot.slane %v11084_v3, 10 }
 0x690   :  { %v5248_v43 = vunpack.c.l.b16 %v5226_v8  ;;  %v13305_v8 = vld [vmem:[#allocation142_spill] sm:$0xff] }
 0x691   :  { %v5232_v47 = vrot.slane %v13285_v22, 6  ;;  %v13299_v22 = vld [vmem:[#allocation8_spill] sm:$0xff] }
 0x692   :  { %5153 = vmatpush.bf16.xpose.msra.mxu0 %v13129_v45  ;;  %5194 = vmatpush.bf16.xpose.msra.mxu3 %v13130_v17  ;;  %v5229_v45 = vor.u32 %v5228_v9, %v5227_v39  ;;  %v5990_v9 = vrot.slane %v11060_v15, 10 }
 0x693   :  { %v5233_v62 = vor.u32 %v5232_v47, %v5231_v63  ;;  %v5331_v63 = vrot.slane %v11103_v55, 6  ;;  %v13300_v47 = vld [vmem:[#allocation141_spill] sm:$0xff] }
 0x694   :  { %v5230_v17 = vrot.slane %v5229_v45, 4  ;;  %v5329_v13 = vsel %vm9022_vm12, %v5990_v9, %v5328_v12  ;;  %v5338_v45 = vrot.slane %v11130_v34, 6  ;;  %v13303_v55 = vld [vmem:[#allocation9_spill] sm:$0xff]  ;;  %v13330_v12 = vld [vmem:[#allocation50_spill] sm:$0xff]  ;;  %v13333_v9 = vld [vmem:[#allocation52_spill] sm:$0xff] }
 0x695   :  { %v5235_v35 = vrot.slane %v5233_v62, 4  ;;  %v5332_v10 = vsel %vm9022_vm12, %v5330_v42, %v5331_v63  ;;  %v5984_v34 = vld [vmem:[%s11548_s1 + $0xb8] sm:$0xf]  ;;  %v13335_v63 = vld [vmem:[#allocation56_spill] sm:$0xff] }
 0x696   :  { %5167 = vmatpush.bf16.xpose.msra.mxu1 %v13135_v27  ;;  %v5247_v27 = vunpack.c.l.b16 %v5219_v11  ;;  %v5346_v49 = vunpack.c.l.b16 %v5332_v10  ;;  %v13334_v42 = vld [vmem:[#allocation53_spill] sm:$0xff]  ;;  %v13338_v10 = vld [vmem:[#allocation60_spill] sm:$0xff] }
 0x697   :  { %5181 = vmatpush.bf16.xpose.msra.mxu2 %v13136_v26  ;;  %v5234_v26 = vsel %vm8347_vm9, %v5230_v17, %v5233_v62  ;;  %v5241_v23 = vsel %vm8347_vm9, %v5235_v35, %v5240_v59  ;;  %v5345_v62 = vunpack.c.l.b16 %v5329_v13  ;;  %v13306_v59 = vld [vmem:[#allocation15_spill] sm:$0xff] }
 0x698   :  { %v5251_v36 = vpack.c.b16 %v5248_v43, %v5247_v27  ;;  %v5249_v41 = vunpack.c.l.b16 %v5234_v26  ;;  %v6067_v27 = vld [vmem:[%s11548_s1 + $0xb8] sm:$0x30] }
 0x699   :  { %v5349_v17 = vpack.c.b16 %v5346_v49, %v5345_v62  ;;  %v13307_v43 = vld [vmem:[#allocation13_spill] sm:$0xff] }
 0x69a   :  { %5154 = vmatpush.bf16.xpose.msra.mxu0 %v13139_v51  ;;  %5195 = vmatpush.bf16.xpose.msra.mxu3 %v13143_v21  ;;  %v5250_v51 = vunpack.c.l.b16 %v5241_v23  ;;  %v5976_v21 = vld [vmem:[%s11548_s1 + $0xb0] sm:$0xf]  ;;  %v5257_v1 = vsel %vm1059_vm2, %v5251_v36, 0  ;;  %v5985_v36 = vor.u32 %v6067_v27, %v5984_v34 }
 0x69b   :  { %v5977_v39 = vor.u32 %v6066_v6, %v5976_v21  ;;  %v5355_v26 = vsel %vm1059_vm2, %v5349_v17, 0  ;;  %v13311_v21 = vld [vmem:[#allocation68_spill] sm:$0xff] }
 0x69e   :  { %5168 = vmatpush.bf16.xpose.msra.mxu1 %v13286_v32  ;;  %v13308_v32 = vld [vmem:[#allocation66_spill] sm:$0xff] }
 0x69f   :  { %5182 = vmatpush.bf16.xpose.msra.mxu2 %v13146_v28  ;;  %v5252_v28 = vpack.c.b16 %v5250_v51, %v5249_v41  ;;  %v13309_v41 = vld [vmem:[#allocation16_spill] sm:$0xff]  ;;  %v13310_v51 = vld [vmem:[#allocation17_spill] sm:$0xff] }
 0x6a2   :  { %5155 = vmatpush.bf16.xpose.msra.mxu0 %v13147_v16  ;;  %5196 = vmatpush.bf16.xpose.msra.mxu3 %v13148_v33  ;;  %v5260_v16 = vsel %vm1059_vm2, %v5252_v28, 0  ;;  %v13288_v33 = vld [vmem:[#allocation34_spill] sm:$0xff]  ;;  %v13313_v28 = vld [vmem:[#allocation69_spill] sm:$0xff] }
 0x6a6   :  { %5169 = vmatpush.bf16.xpose.msra.mxu1 %v13149_v50 }
 0x6a7   :  { %5183 = vmatpush.bf16.xpose.msra.mxu2 %v12968_v14  ;;  %v4925_v14 = vpop.f32.mrf.mxu0 }
 0x6a9   :  { %5978 = vmatmul.msk.bf16.vlgmr.msra.gmra.mxu0 %vm1059_vm2, %v5977_v39 }
 0x6aa   :  { %5262 = vmatpush.bf16.xpose.msrb.mxu0 %v13173_v30  ;;  %5197 = vmatpush.bf16.xpose.msra.mxu3 %v12970_v18  ;;  %v11352_v18 = vadd.f32 %v4925_v14, %v11256_v52  ;;  %v4939_v50 = vpop.f32.mrf.mxu1  ;;  %v13292_v52 = vld [vmem:[#allocation38_spill] sm:$0xff] }
 0x6ab   :  { %v11357_v30 = vadd.f32 %v4939_v50, %v11261_v53  ;;  %v13294_v53 = vld [vmem:[#allocation158_spill] sm:$0xff]  ;;  %v13319_v50 = vld [vmem:[#allocation84_spill] sm:$0xff] }
 0x6ac   :  { %v13316_v14 = vld [vmem:[#allocation82_spill] sm:$0xff] }
 0x6ad   :  { %5979 = vmatmul.msk.bf16.vlgmr.msra.gmra.mxu1 %vm1059_vm2, %v5977_v39 }
 0x6ae   :  { %5276 = vmatpush.bf16.xpose.msrb.mxu1 %v5257_v1  ;;  %5980 = vmatmul.msk.bf16.vlgmr.msra.gmra.mxu2 %vm1059_vm2, %v5977_v39  ;;  %v13312_v1 = vld [vmem:[#allocation18_spill] sm:$0xff] }
 0x6af   :  { %5290 = vmatpush.bf16.xpose.msrb.mxu2 %v13177_v61 }
 0x6b1   :  { %5981 = vmatmul.msk.bf16.vlgmr.msra.gmra.mxu3 %vm1059_vm2, %v5977_v39  ;;  %v4953_v61 = vpop.f32.mrf.mxu2  ;;  %v13314_v39 = vld [vmem:[#allocation63_spill] sm:$0xff] }
 0x6b2   :  { %5263 = vmatpush.bf16.xpose.msrb.mxu0 %v12829_v25  ;;  %5304 = vmatpush.bf16.xpose.msrb.mxu3 %v5260_v16  ;;  %v13287_v25 = vld [vmem:[#allocation155_spill] sm:$0xff]  ;;  %v13315_v16 = vld [vmem:[#allocation73_spill] sm:$0xff] }
 0x6b4   :  { %v4967_v58 = vpop.f32.mrf.mxu3 }
 0x6b5   :  { %v11368_v40 = vadd.f32 %v4967_v58, %v11278_v57  ;;  %v5335_v57 = vrot.slane %v11089_v7, 6  ;;  %v13304_v7 = vld [vmem:[#allocation12_spill] sm:$0xff]  ;;  %v13325_v58 = vld [vmem:[#allocation29_spill] sm:$0xff] }
 0x6b6   :  { %5277 = vmatpush.bf16.xpose.msrb.mxu1 %v10878_v48  ;;  %v13289_v48 = vld [vmem:[#allocation33_spill] sm:$0xff] }
 0x6b7   :  { %5291 = vmatpush.bf16.xpose.msrb.mxu2 %v12984_v54  ;;  %v13290_v54 = vld [vmem:[#allocation157_spill] sm:$0xff]  ;;  %v5337_v15 = vrot.slane %v5335_v57, 4  ;;  %v5336_v24 = vsel %vm9022_vm12, %v5991_v56, %v5335_v57  ;;  %v5994_v57 = vld [vmem:[%s11548_s1 + $0xc0] sm:$0xf] }
 0x6b8   :  { %v5347_v35 = vunpack.c.l.b16 %v5336_v24  ;;  %v13340_v56 = vld [vmem:[#allocation62_spill] sm:$0xff] }
 0x6b9   :  { %v5339_v11 = vsel %vm9022_vm12, %v5337_v15, %v5338_v45  ;;  %v4927_v15 = vpop.f32.mrf.mxu0  ;;  %v4941_v45 = vpop.f32.mrf.mxu1 }
 0x6ba   :  { %5264 = vmatpush.bf16.xpose.msrb.mxu0 %v12834_v46  ;;  %5305 = vmatpush.bf16.xpose.msrb.mxu3 %v10885_v38  ;;  %v13291_v46 = vld [vmem:[#allocation102_spill] sm:$0xff]  ;;  %v11363_v38 = vadd.f32 %v4953_v61, %v11270_v0  ;;  %v5348_v3 = vunpack.c.l.b16 %v5339_v11  ;;  %v13322_v61 = vld [vmem:[#allocation25_spill] sm:$0xff]  ;;  %v4955_v62 = vpop.f32.mrf.mxu2 }
 0x6bb   :  { %v13298_v0 = vld [vmem:[#allocation6_spill] sm:$0xff] }
 0x6bc   :  { %v5350_v23 = vpack.c.b16 %v5348_v3, %v5347_v35 }
 0x6be   :  { %5278 = vmatpush.bf16.xpose.msrb.mxu1 %v13287_v25  ;;  %v5358_v6 = vsel %vm1059_vm2, %v5350_v23, 0  ;;  %v13317_v25 = vld [vmem:[#allocation44_spill] sm:$0xff] }
 0x6bf   :  { %5292 = vmatpush.bf16.xpose.msrb.mxu2 %v13288_v33  ;;  %v13318_v33 = vld [vmem:[#allocation156_spill] sm:$0xff] }
 0x6c2   :  { %5265 = vmatpush.bf16.xpose.msrb.mxu0 %v13289_v48  ;;  %5306 = vmatpush.bf16.xpose.msrb.mxu3 %v13290_v54  ;;  %v13320_v48 = vld [vmem:[#allocation85_spill] sm:$0xff]  ;;  %v13321_v54 = vld [vmem:[#allocation24_spill] sm:$0xff] }
 0x6c6   :  { %5279 = vmatpush.bf16.xpose.msrb.mxu1 %v13291_v46  ;;  %v13323_v46 = vld [vmem:[#allocation89_spill] sm:$0xff] }
 0x6c7   :  { %5293 = vmatpush.bf16.xpose.msrb.mxu2 %v13292_v52  ;;  %v13324_v52 = vld [vmem:[#allocation37_spill] sm:$0xff] }
 0x6ca   :  { %5266 = vmatpush.bf16.xpose.msrb.mxu0 %v13293_v4  ;;  %5307 = vmatpush.bf16.xpose.msrb.mxu3 %v13294_v53  ;;  %v13326_v4 = vld [vmem:[#allocation40_spill] sm:$0xff]  ;;  %v13327_v53 = vld [vmem:[#allocation41_spill] sm:$0xff] }
 0x6ce   :  { %5280 = vmatpush.bf16.xpose.msrb.mxu1 %v13295_v44  ;;  %v13328_v44 = vld [vmem:[#allocation48_spill] sm:$0xff] }
 0x6cf   :  { %5294 = vmatpush.bf16.xpose.msrb.mxu2 %v13296_v20  ;;  %v13329_v20 = vld [vmem:[#allocation42_spill] sm:$0xff] }
 0x6d2   :  { %5267 = vmatpush.bf16.xpose.msrb.mxu0 %v13297_v29  ;;  %5308 = vmatpush.bf16.xpose.msrb.mxu3 %v13298_v0  ;;  %v13331_v29 = vld [vmem:[#allocation49_spill] sm:$0xff]  ;;  %v13332_v0 = vld [vmem:[#allocation54_spill] sm:$0xff] }
 0x6d6   :  { %5281 = vmatpush.bf16.xpose.msrb.mxu1 %v13299_v22  ;;  %v13336_v22 = vld [vmem:[#allocation58_spill] sm:$0xff] }
 0x6d7   :  { %5295 = vmatpush.bf16.xpose.msrb.mxu2 %v13300_v47  ;;  %v6068_v47 = vld [vmem:[%s11548_s1 + $0xc0] sm:$0x30] }
 0x6d8   :  { %v5995_v13 = vor.u32 %v6068_v47, %v5994_v57 }
 0x6da   :  { %5268 = vmatpush.bf16.xpose.msrb.mxu0 %v13302_v2  ;;  %5309 = vmatpush.bf16.xpose.msrb.mxu3 %v13303_v55  ;;  %v13339_v2 = vld [vmem:[#allocation61_spill] sm:$0xff] }
 0x6de   :  { %5282 = vmatpush.bf16.xpose.msrb.mxu1 %v13304_v7  ;;  %v4969_v7 = vpop.f32.mrf.mxu3 }
 0x6df   :  { %5296 = vmatpush.bf16.xpose.msrb.mxu2 %v13305_v8 }
 0x6e2   :  { %5269 = vmatpush.bf16.xpose.msrb.mxu0 %v13306_v59  ;;  %5310 = vmatpush.bf16.xpose.msrb.mxu3 %v13307_v43 }
 0x6e6   :  { %5283 = vmatpush.bf16.xpose.msrb.mxu1 %v13309_v41  ;;  %v5057_v55 = vpop.f32.mrf.mxu0 }
 0x6e7   :  { %5297 = vmatpush.bf16.xpose.msrb.mxu2 %v13310_v51  ;;  %v5104_v47 = vadd.f32 %v5057_v55, %v11352_v18 }
 0x6e9   :  { %5986 = vmatmul.msk.bf16.vlgmr.msrb.gmra.mxu0 %vm1059_vm2, %v5985_v36 }
 0x6ea   :  { %5360 = vmatpush.bf16.xpose.msra.mxu0 %v13308_v32  ;;  %5311 = vmatpush.bf16.xpose.msrb.mxu3 %v13312_v1  ;;  %v5071_v49 = vpop.f32.mrf.mxu1 }
 0x6ed   :  { %5987 = vmatmul.msk.bf16.vlgmr.msrb.gmra.mxu1 %vm1059_vm2, %v5985_v36 }
 0x6ee   :  { %5374 = vmatpush.bf16.xpose.msra.mxu1 %v5355_v26  ;;  %5988 = vmatmul.msk.bf16.vlgmr.msrb.gmra.mxu2 %vm1059_vm2, %v5985_v36  ;;  %v5059_v11 = vpop.f32.mrf.mxu0 }
 0x6ef   :  { %5388 = vmatpush.bf16.xpose.msra.mxu2 %v13311_v21 }
 0x6f1   :  { %5989 = vmatmul.msk.bf16.vlgmr.msrb.gmra.mxu3 %vm1059_vm2, %v5985_v36  ;;  %v5085_v24 = vpop.f32.mrf.mxu2 }
 0x6f2   :  { %5361 = vmatpush.bf16.xpose.msra.mxu0 %v13313_v28  ;;  %5402 = vmatpush.bf16.xpose.msra.mxu3 %v5358_v6  ;;  %v5073_v8 = vpop.f32.mrf.mxu1 }
 0x6f4   :  { %v11452_v17 = vpop.f32.mrf.mxu3 }
 0x6f6   :  { %5375 = vmatpush.bf16.xpose.msra.mxu1 %v13314_v39 }
 0x6f7   :  { %5389 = vmatpush.bf16.xpose.msra.mxu2 %v13315_v16 }
 0x6f9   :  { %v5087_v3 = vpop.f32.mrf.mxu2 }
 0x6fa   :  { %5362 = vmatpush.bf16.xpose.msra.mxu0 %v13316_v14  ;;  %5403 = vmatpush.bf16.xpose.msra.mxu3 %v13317_v25  ;;  %v4976_v25 = vadd.f32 %v4927_v15, %v11266_v37  ;;  %v4979_v37 = vadd.f32 %v4969_v7, %v11308_v31 }
 0x6fc   :  { %v5101_v34 = vpop.f32.mrf.mxu3 }
 0x6fe   :  { %5376 = vmatpush.bf16.xpose.msra.mxu1 %v13318_v33  ;;  %v4977_v33 = vadd.f32 %v4941_v45, %v11274_v60 }
 0x6ff   :  { %5390 = vmatpush.bf16.xpose.msra.mxu2 %v13319_v50 }
 0x702   :  { %5363 = vmatpush.bf16.xpose.msra.mxu0 %v13320_v48  ;;  %5404 = vmatpush.bf16.xpose.msra.mxu3 %v13321_v54  ;;  %v5108_v48 = vadd.f32 %v5059_v11, %v4976_v25  ;;  %v5109_v54 = vadd.f32 %v5073_v8, %v4977_v33 }
 0x706   :  { %5377 = vmatpush.bf16.xpose.msra.mxu1 %v13322_v61 }
 0x707   :  { %5391 = vmatpush.bf16.xpose.msra.mxu2 %v13323_v46 }
 0x70a   :  { %5364 = vmatpush.bf16.xpose.msra.mxu0 %v13324_v52  ;;  %5405 = vmatpush.bf16.xpose.msra.mxu3 %v13325_v58 }
 0x70e   :  { %5378 = vmatpush.bf16.xpose.msra.mxu1 %v13326_v4  ;;  %v4978_v4 = vadd.f32 %v4955_v62, %v11292_v5  ;;  %v5105_v5 = vadd.f32 %v5071_v49, %v11357_v30 }
 0x70f   :  { %5392 = vmatpush.bf16.xpose.msra.mxu2 %v13327_v53 }
 0x712   :  { %5365 = vmatpush.bf16.xpose.msra.mxu0 %v13328_v44  ;;  %5406 = vmatpush.bf16.xpose.msra.mxu3 %v13329_v20 }
 0x716   :  { %5379 = vmatpush.bf16.xpose.msra.mxu1 %v13330_v12  ;;  %v5110_v12 = vadd.f32 %v5087_v3, %v4978_v4 }
 0x717   :  { %5393 = vmatpush.bf16.xpose.msra.mxu2 %v13331_v29 }
 0x71a   :  { %5366 = vmatpush.bf16.xpose.msra.mxu0 %v13332_v0  ;;  %5407 = vmatpush.bf16.xpose.msra.mxu3 %v13333_v9 }
 0x71e   :  { %5380 = vmatpush.bf16.xpose.msra.mxu1 %v13334_v42  ;;  %v5111_v42 = vadd.f32 %v5101_v34, %v4979_v37 }
 0x71f   :  { %5394 = vmatpush.bf16.xpose.msra.mxu2 %v13335_v63 }
 0x722   :  { %5367 = vmatpush.bf16.xpose.msra.mxu0 %v13336_v22  ;;  %5408 = vmatpush.bf16.xpose.msra.mxu3 %v13337_v19 }
 0x726   :  { %5381 = vmatpush.bf16.xpose.msra.mxu1 %v13338_v10  ;;  %v5157_v35 = vpop.f32.mrf.mxu0 }
 0x727   :  { %5395 = vmatpush.bf16.xpose.msra.mxu2 %v13339_v2  ;;  %v5106_v2 = vadd.f32 %v5085_v24, %v11363_v38  ;;  %v5107_v38 = vadd.f32 %v11452_v17, %v11368_v40 }
 0x729   :  { %5996 = vmatmul.msk.bf16.vlgmr.msra.gmra.mxu0 %vm1059_vm2, %v5995_v13 }
 0x72a   :  { %5409 = vmatpush.bf16.xpose.msra.mxu3 %v13340_v56  ;;  %v5171_v59 = vpop.f32.mrf.mxu1  ;;  %v5204_v56 = vadd.f32 %v5157_v35, %v5104_v47 }
 0x72b   :  { %v5205_v15 = vadd.f32 %v5171_v59, %v5105_v5 }
 0x72d   :  { %5997 = vmatmul.msk.bf16.vlgmr.msra.gmra.mxu1 %vm1059_vm2, %v5995_v13 }
 0x72e   :  { %5998 = vmatmul.msk.bf16.vlgmr.msra.gmra.mxu2 %vm1059_vm2, %v5995_v13  ;;  %v5159_v43 = vpop.f32.mrf.mxu0 }
 0x72f   :  { %v5208_v61 = vadd.f32 %v5159_v43, %v5108_v48 }
 0x731   :  { %5999 = vmatmul.msk.bf16.vlgmr.msra.gmra.mxu3 %vm1059_vm2, %v5995_v13  ;;  %v5185_v27 = vpop.f32.mrf.mxu2 }
 0x732   :  { %v5173_v32 = vpop.f32.mrf.mxu1  ;;  %v5206_v7 = vadd.f32 %v5185_v27, %v5106_v2 }
 0x733   :  { %v5209_v46 = vadd.f32 %v5173_v32, %v5109_v54 }
 0x734   :  { %v5199_v26 = vpop.f32.mrf.mxu3 }
 0x735   :  { %v5207_v59 = vadd.f32 %v5199_v26, %v5107_v38  ;;  %v5498_v38 = vld [vmem:[%s11550_s2 + $0x8] sm:$0xf] }
 0x739   :  { %v5187_v36 = vpop.f32.mrf.mxu2 }
 0x73a   :  { %v5210_v60 = vadd.f32 %v5187_v36, %v5110_v12 }
 0x73c   :  { %v5201_v51 = vpop.f32.mrf.mxu3 }
 0x73d   :  { %v5211_v13 = vadd.f32 %v5201_v51, %v5111_v42  ;;  %v6263_v42 = vmov 0  }
 0x73e   :  { %6071 = vset.pattern.permute.xlu0 %v6263_v42  ;;  %6072 = vset.pattern.permute.xlu1 %v6263_v42 }
 0x73f   :  { %6070 = vset.pattern.permute.xlu2 %v6263_v42 }
 0x766   :  { %v5271_v23 = vpop.f32.mrf.mxu0 }
 0x767   :  { %v5318_v11 = vadd.f32 %v5271_v23, %v5204_v56 }
 0x76a   :  { %v5285_v41 = vpop.f32.mrf.mxu1 }
 0x76b   :  { %v5319_v8 = vadd.f32 %v5285_v41, %v5205_v15 }
 0x76e   :  { %v5273_v6 = vpop.f32.mrf.mxu0 }
 0x76f   :  { %v5322_v53 = vadd.f32 %v5273_v6, %v5208_v61 }
 0x771   :  { %v5299_v21 = vpop.f32.mrf.mxu2 }
 0x772   :  { %v5287_v1 = vpop.f32.mrf.mxu1  ;;  %v5320_v18 = vadd.f32 %v5299_v21, %v5206_v7 }
 0x773   :  { %v5323_v44 = vadd.f32 %v5287_v1, %v5209_v46 }
 0x774   :  { %v5313_v28 = vpop.f32.mrf.mxu3 }
 0x775   :  { %v5321_v36 = vadd.f32 %v5313_v28, %v5207_v59 }
 0x779   :  { %v5301_v16 = vpop.f32.mrf.mxu2 }
 0x77a   :  { %v5324_v63 = vadd.f32 %v5301_v16, %v5210_v60 }
 0x77c   :  { %v5315_v50 = vpop.f32.mrf.mxu3 }
 0x77d   :  { %v5325_v31 = vadd.f32 %v5315_v50, %v5211_v13 }
 0x7a6   :  { %v5369_v39 = vpop.f32.mrf.mxu0 }
 0x7a7   :  { %v5416_v55 = vadd.f32 %v5369_v39, %v5318_v11 }
 0x7aa   :  { %v5383_v14 = vpop.f32.mrf.mxu1 }
 0x7ab   :  { %v5417_v30 = vadd.f32 %v5383_v14, %v5319_v8 }
 0x7ad   :  { %v5424_v32 = vadd.f32 %v5417_v30, %v5416_v55 }
 0x7ae   :  { %v5371_v58 = vpop.f32.mrf.mxu0 }
 0x7af   :  { %v5420_v29 = vadd.f32 %v5371_v58, %v5322_v53 }
 0x7b1   :  { %v5397_v52 = vpop.f32.mrf.mxu2  ;;  %v5430_v22 = vsel %vm5429_vm13, %v5420_v29, 0.0 }
 0x7b2   :  { %v5385_v20 = vpop.f32.mrf.mxu1  ;;  %v5418_v24 = vadd.f32 %v5397_v52, %v5320_v18 }
 0x7b3   :  { %v5421_v0 = vadd.f32 %v5385_v20, %v5323_v44 }
 0x7b4   :  { %v5411_v9 = vpop.f32.mrf.mxu3  ;;  %v5425_v27 = vadd.f32 %v5424_v32, %v5418_v24 }
 0x7b5   :  { %v5431_v57 = vsel %vm5429_vm13, %v5421_v0, 0.0  ;;  %v5419_v23 = vadd.f32 %v5411_v9, %v5321_v36 }
 0x7b6   :  { %v5432_v45 = vadd.f32 %v5431_v57, %v5430_v22  ;;  %v5520_v22 = vld [vmem:[%s11549_s3 + $0x8] sm:$0xf] }
 0x7b7   :  { %v5426_v41 = vadd.f32 %v5425_v27, %v5419_v23 }
 0x7b9   :  { %v5399_v19 = vpop.f32.mrf.mxu2 }
 0x7ba   :  { %v5422_v10 = vadd.f32 %v5399_v19, %v5324_v63  ;;  %v5519_v63 = vld [vmem:[%s11549_s3] sm:$0xff] }
 0x7bc   :  { %v5433_v62 = vsel %vm5429_vm13, %v5422_v10, 0.0  ;;  %v5413_v3 = vpop.f32.mrf.mxu3 }
 0x7bd   :  { %v5434_v34 = vadd.f32 %v5433_v62, %v5432_v45  ;;  %v5423_v43 = vadd.f32 %v5413_v3, %v5325_v31 }
 0x7bf   :  { %v5435_v49 = vsel %vm5429_vm13, %v5423_v43, 0.0 }
 0x7c0   :  { %v5436_v35 = vadd.f32 %v5435_v49, %v5434_v34  ;;  %v5497_v34 = vld [vmem:[%s11550_s2] sm:$0xff] }
 0x7c2   :  { %5437 = vadd.xlane.f32.xlu0 %v5436_v35 }
 0x7ca   :  { %5427 = vadd.xlane.f32.xlu0 %v5426_v41 }
 0x7de   :  { %5523 = vperm.xlu0 %6071, %v5519_v63  }
 0x835   :  { %v5438_v51 = vpop.xlane.xlu0 %5437 }
 0x836   :  { %v5440_v6 = vmul.f32 0.001953125, %v5438_v51 }
 0x838   :  { %v11467_v21 = vsub.f32 %v5420_v29, %v5440_v6  ;;  %v11469_v1 = vsub.f32 %v5421_v0, %v5440_v6  ;;  %v11487_v48 = vsub.f32 %v5422_v10, %v5440_v6  ;;  %v11495_v53 = vsub.f32 %v5423_v43, %v5440_v6 }
 0x83a   :  { %v5453_v26 = vmul.f32 %v11467_v21, %v11467_v21  ;;  %v5454_v28 = vmul.f32 %v11469_v1, %v11469_v1  ;;  %v5455_v44 = vmul.f32 %v11487_v48, %v11487_v48  ;;  %v5456_v29 = vmul.f32 %v11495_v53, %v11495_v53 }
 0x83c   :  { %v5462_v46 = vsel %vm5429_vm13, %v5453_v26, 0.0  ;;  %v5463_v52 = vsel %vm5429_vm13, %v5454_v28, 0.0  ;;  %v5465_v0 = vsel %vm5429_vm13, %v5455_v44, 0.0  ;;  %v5467_v37 = vsel %vm5429_vm13, %v5456_v29, 0.0 }
 0x83d   :  { %v5428_v39 = vpop.xlane.xlu0 %5427  ;;  %v5464_v12 = vadd.f32 %v5463_v52, %v5462_v46 }
 0x83e   :  { %v5439_v16 = vmul.f32 0.001953125, %v5428_v39 }
 0x83f   :  { %v5466_v9 = vadd.f32 %v5465_v0, %v5464_v12 }
 0x840   :  { %v11471_v14 = vsub.f32 %v5416_v55, %v5439_v16  ;;  %v11473_v40 = vsub.f32 %v5417_v30, %v5439_v16  ;;  %v11475_v17 = vsub.f32 %v5418_v24, %v5439_v16  ;;  %v11481_v25 = vsub.f32 %v5419_v23, %v5439_v16 }
 0x841   :  { %v5468_v60 = vadd.f32 %v5467_v37, %v5466_v9 }
 0x842   :  { %v5449_v33 = vmul.f32 %v11471_v14, %v11471_v14  ;;  %v5450_v50 = vmul.f32 %v11473_v40, %v11473_v40  ;;  %v5451_v54 = vmul.f32 %v11475_v17, %v11475_v17  ;;  %v5452_v58 = vmul.f32 %v11481_v25, %v11481_v25 }
 0x844   :  { %v5457_v61 = vadd.f32 %v5450_v50, %v5449_v33 }
 0x846   :  { %v5458_v4 = vadd.f32 %v5457_v61, %v5451_v54 }
 0x848   :  { %v5459_v20 = vadd.f32 %v5458_v4, %v5452_v58 }
 0x84a   :  { %5460 = vadd.xlane.f32.xlu1 %v5459_v20 }
 0x850   :  { %v5524_v36 = vpop.permute.xlu0 %5523 }
 0x852   :  { %5469 = vadd.xlane.f32.xlu1 %v5468_v60 }
 0x86b   :  { %5528 = vperm.xlu1 %6072, %v5520_v22  }
 0x8bd   :  { %v5461_v57 = vpop.xlane.xlu1 %5460 }
 0x8be   :  { %v5471_v47 = vmul.f32 0.001953125, %v5461_v57 }
 0x8c0   :  { %v5473_v5 = vmax.f32 %v5471_v47, 0.0 }
 0x8c2   :  { %v5475_v19 = vadd.f32 1e-05, %v5473_v5 }
 0x8c4   :  { %6073 = vrsqrt.f32 %v5475_v19  ;;  %vm5483_vm15 = vweird.f32 %v5475_v19 }
 0x8c5   :  { %v5470_v13 = vpop.xlane.xlu1 %5469 }
 0x8c6   :  { %v5472_v10 = vmul.f32 0.001953125, %v5470_v13 }
 0x8c8   :  { %v5474_v2 = vmax.f32 %v5472_v10, 0.0 }
 0x8ca   :  { %v6074_v56 = vpop.eup %6073  ;;  %v5476_v15 = vadd.f32 1e-05, %v5474_v2 }
 0x8cb   :  { %v5478_v45 = vmul.f32 %v6074_v56, %v5475_v19  ;;  %vm5484_vm14 = vweird.f32 %v6074_v56 }
 0x8cc   :  { %6075 = vrsqrt.f32 %v5476_v15  ;;  %vm5485_vm0 = vmor %vm5483_vm15, %vm5484_vm14  ;;  %vm5493_vm2 = vweird.f32 %v5476_v15 }
 0x8cd   :  { %v5479_v31 = vmul.f32 %v6074_v56, %v5478_v45 }
 0x8cf   :  { %v5480_v62 = vmul.f32 0.5, %v5479_v31 }
 0x8d1   :  { %v5481_v7 = vsub.f32 1.5, %v5480_v62 }
 0x8d2   :  { %v6076_v11 = vpop.eup %6075 }
 0x8d3   :  { %v5488_v8 = vmul.f32 %v6076_v11, %v5476_v15  ;;  %v5482_v3 = vmul.f32 %v6074_v56, %v5481_v7  ;;  %vm5494_vm1 = vweird.f32 %v6076_v11 }
 0x8d4   :  { %vm5495_vm3 = vmor %vm5493_vm2, %vm5494_vm1 }
 0x8d5   :  { %v5489_v43 = vmul.f32 %v6076_v11, %v5488_v8  ;;  %v5486_v18 = vsel %vm5485_vm0, %v6074_v56, %v5482_v3 }
 0x8d6   :  { %v5499_v55 = vmul.f32 %v5497_v34, %v5486_v18 }
 0x8d7   :  { %v5490_v30 = vmul.f32 0.5, %v5489_v43 }
 0x8d8   :  { %5503 = vperm.xlu2 %6070, %v5499_v55  }
 0x8d9   :  { %v5491_v49 = vsub.f32 1.5, %v5490_v30 }
 0x8db   :  { %v5492_v24 = vmul.f32 %v6076_v11, %v5491_v49 }
 0x8dd   :  { %v5496_v35 = vsel %vm5495_vm3, %v6076_v11, %v5492_v24 }
 0x8de   :  { %v5500_v59 = vmul.f32 %v5498_v38, %v5496_v35 }
 0x8e0   :  { %5508 = vperm.xlu2 %6070, %v5500_v59  }
 0x932   :  { %v5504_v32 = vpop.permute.xlu2 %5503 }
 0x933   :  { %v5511_v27 = vmul.f32 %v5504_v32, %v11471_v14  ;;  %v5512_v23 = vmul.f32 %v5504_v32, %v11473_v40  ;;  %v5513_v41 = vmul.f32 %v5504_v32, %v11475_v17  ;;  %v5514_v51 = vmul.f32 %v5504_v32, %v11481_v25  ;;  %v5529_v40 = vpop.permute.xlu1 %5528 }
 0x935   :  { %v5531_v6 = vadd.f32 %v5524_v36, %v5511_v27  ;;  %v5532_v39 = vadd.f32 %v5524_v36, %v5512_v23  ;;  %v5533_v16 = vadd.f32 %v5524_v36, %v5513_v41  ;;  %v5534_v26 = vadd.f32 %v5524_v36, %v5514_v51 }
 0x937   :  { %v5539_v28 = vmax.f32 %v5531_v6, 0.0  ;;  %v5540_v33 = vmax.f32 %v5532_v39, 0.0  ;;  %v5541_v50 = vmax.f32 %v5533_v16, 0.0  ;;  %v5542_v54 = vmax.f32 %v5534_v26, 0.0 }
 0x939   :  { %5547 = vst [vmem:[%s11551_s4] sm:$0xff] %v5539_v28 }
 0x93a   :  { %5548 = vst [vmem:[%s11551_s4 + $0x8] sm:$0xff] %v5540_v33  ;;  %v5509_v14 = vpop.permute.xlu2 %5508 }
 0x93b   :  { %6000 = vst [vmem:[%s11551_s4 + $0x20] sm:$0xff] %v5541_v50  ;;  %v5515_v17 = vmul.f32 %v5509_v14, %v11467_v21  ;;  %v5516_v25 = vmul.f32 %v5509_v14, %v11469_v1  ;;  %v5517_v61 = vmul.f32 %v5509_v14, %v11487_v48  ;;  %v5518_v46 = vmul.f32 %v5509_v14, %v11495_v53 }
 0x93c   :  { %6001 = vst [vmem:[%s11551_s4 + $0x28] sm:$0xff] %v5542_v54 }
 0x93d   :  { %v5535_v52 = vadd.f32 %v5529_v40, %v5515_v17  ;;  %v5536_v58 = vadd.f32 %v5529_v40, %v5516_v25  ;;  %v5537_v4 = vadd.f32 %v5529_v40, %v5517_v61  ;;  %v5538_v44 = vadd.f32 %v5529_v40, %v5518_v46 }
 0x93f   :  { %v5543_v20 = vmax.f32 %v5535_v52, 0.0  ;;  %v5544_v12 = vmax.f32 %v5536_v58, 0.0  ;;  %v5545_v29 = vmax.f32 %v5537_v4, 0.0  ;;  %v5546_v0 = vmax.f32 %v5538_v44, 0.0 }
 0x941   :  { %5549 = vst [vmem:[%s11551_s4 + $0x10] sm:$0xf] %v5543_v20 }
 0x942   :  { %5550 = vst [vmem:[%s11551_s4 + $0x18] sm:$0xf] %v5544_v12 }
 0x943   :  { %6002 = vst [vmem:[%s11551_s4 + $0x30] sm:$0xf] %v5545_v29 }
 0x944   :  { %6003 = vst [vmem:[%s11551_s4 + $0x38] sm:$0xf] %v5546_v0 }

</bundles_post_ra>
